<compile_context>
chip_gen: v5e
topology: v5e:2x2
jax: 0.10.0
libtpu: 0.0.40
codegen_flags: <defaults>
</compile_context>

<pallas_src>
import functools

import jax
import jax.numpy as jnp
from jax.experimental import pallas as pl
from jax.experimental.pallas import tpu as pltpu

D_IN = 32 * 32 * 3   # 3072
H1 = 256
H2 = 64
H2P = 128            # zero-padded bottleneck width (lane-friendly, numerically exact)


def _round_up(n, m):
    return (n + m - 1) // m * m


def _tpu_block_defaults():
    """(block_b, vmem_limit_bytes, prefer_two_grid_steps) per TPU generation."""
    try:
        kind = jax.devices()[0].device_kind.lower()
    except Exception:
        kind = ""
    if "v5" in kind or "v6" in kind:
        # 128 MiB physical VMEM, single TensorCore per chip: go big.
        return 512, 96 * 1024 * 1024, False
    # v7x (64 MiB VMEM, 2 TCs) or unknown: stay conservative, shard across cores.
    return 256, 48 * 1024 * 1024, True


def _ae_kernel(x_ref, w1_ref, b1_ref, w2_ref, b2_ref,
               w3_ref, b3_ref, w4_ref, b4_ref, o_ref):
    # bf16 into the MXU, f32 accumulation, f32 elementwise (v5e has no bf16 VPU/EUP).
    x = x_ref[...].astype(jnp.bfloat16)   # no-op when the caller already supplies bf16

    # encoder
    h = jnp.dot(x, w1_ref[...], preferred_element_type=jnp.float32) + b1_ref[...]
    h = jnp.maximum(h, 0.0).astype(jnp.bfloat16)                    # ReLU
    h = jnp.dot(h, w2_ref[...], preferred_element_type=jnp.float32) + b2_ref[...]
    h = jnp.maximum(h, 0.0).astype(jnp.bfloat16)                    # ReLU

    # decoder
    h = jnp.dot(h, w3_ref[...], preferred_element_type=jnp.float32) + b3_ref[...]
    h = jnp.maximum(h, 0.0).astype(jnp.bfloat16)                    # ReLU
    z = jnp.dot(h, w4_ref[...], preferred_element_type=jnp.float32) + b4_ref[...]

    # Numerically stable sigmoid = 0.5*tanh(0.5*z) + 0.5 (one EUP pass, no exp
    # overflow); cast to the output dtype (bf16 by default) only on the store.
    o_ref[...] = (0.5 * jnp.tanh(0.5 * z) + 0.5).astype(o_ref.dtype)


def prepare_params(params):
    """One-time weight prep: bf16 cast for the MXU + zero-pad the 64-wide bottleneck
    to 128 lanes (exact).  Call once and reuse the result across forward calls."""
    return dict(
        w1=params["w1"].astype(jnp.bfloat16),
        b1=params["b1"].astype(jnp.float32),
        w2=jnp.pad(params["w2"], ((0, 0), (0, H2P - H2))).astype(jnp.bfloat16),
        b2=jnp.pad(params["b2"], ((0, 0), (0, H2P - H2))).astype(jnp.float32),
        w3=jnp.pad(params["w3"], ((0, H2P - H2), (0, 0))).astype(jnp.bfloat16),
        b3=params["b3"].astype(jnp.float32),
        w4=params["w4"].astype(jnp.bfloat16),
        b4=params["b4"].astype(jnp.float32),
    )


@functools.partial(jax.jit, static_argnames=("block_b", "out_dtype"))
def autoencoder_mlp2(x, prepared, *, block_b=None, out_dtype=jnp.bfloat16):
    """x: (B, 3072) float32 or bfloat16.  prepared: output of prepare_params().
    Returns (B, 3072) in out_dtype (bfloat16 by default)."""
    B, D = x.shape
    assert D == D_IN

    default_bb, vmem_limit, prefer_two_steps = _tpu_block_defaults()
    bb_target = default_bb if block_b is None else block_b

    # bf16 vregs pack 16 sublanes -> keep the batch block a multiple of 16.
    bb = min(bb_target, _round_up(B, 16))
    if block_b is None and prefer_two_steps and B >= 32:
        # v7x: make sure the grid has >= 2 steps so both TensorCores are used.
        bb = min(bb, _round_up(pl.cdiv(B, 2), 16))
    if bb > B:
        # Single full-extent block (always legal, avoids any padding copy).
        bb = B

    grid = (pl.cdiv(B, bb),)   # ragged last block is masked; rows are independent.

    def x_map(i):
        return (i, 0)

    def full_map(i):
        return (0, 0)

    out = pl.pallas_call(
        _ae_kernel,
        out_shape=jax.ShapeDtypeStruct((B, D_IN), out_dtype),
        grid_spec=pltpu.PrefetchScalarGridSpec(
            num_scalar_prefetch=0,
            grid=grid,
            in_specs=[
                pl.BlockSpec((bb, D_IN), x_map),        # x tile
                pl.BlockSpec((D_IN, H1), full_map),     # w1 (bf16)
                pl.BlockSpec((1, H1), full_map),        # b1 (f32)
                pl.BlockSpec((H1, H2P), full_map),      # w2 (bf16, padded)
                pl.BlockSpec((1, H2P), full_map),       # b2 (f32, padded)
                pl.BlockSpec((H2P, H1), full_map),      # w3 (bf16, padded)
                pl.BlockSpec((1, H1), full_map),        # b3 (f32)
                pl.BlockSpec((H1, D_IN), full_map),     # w4 (bf16)
                pl.BlockSpec((1, D_IN), full_map),      # b4 (f32)
            ],
            out_specs=pl.BlockSpec((bb, D_IN), x_map),
        ),
        compiler_params=pltpu.CompilerParams(
            dimension_semantics=("parallel",),
            vmem_limit_bytes=vmem_limit,
        ),
    )(x, prepared["w1"], prepared["b1"], prepared["w2"], prepared["b2"],
      prepared["w3"], prepared["b3"], prepared["w4"], prepared["b4"])

    return out


def init_params(key):
    """Deterministic synthetic parameters matching nn.Linear shapes (transposed)."""
    ks = jax.random.split(key, 8)

    def lin(kw, kb, fan_in, fan_out):
        bound = 1.0 / jnp.sqrt(jnp.float32(fan_in))
        w = jax.random.uniform(kw, (fan_in, fan_out), jnp.float32, -bound, bound)
        b = jax.random.uniform(kb, (1, fan_out), jnp.float32, -bound, bound)
        return w, b

    w1, b1 = lin(ks[0], ks[1], D_IN, H1)
    w2, b2 = lin(ks[2], ks[3], H1, H2)
    w3, b3 = lin(ks[4], ks[5], H2, H1)
    w4, b4 = lin(ks[6], ks[7], H1, D_IN)
    return dict(w1=w1, b1=b1, w2=w2, b2=b2, w3=w3, b3=b3, w4=w4, b4=b4)


def reference_forward_f32(x, p):
    """Full f32 reference (matches the PyTorch module up to weight layout)."""
    x = x.astype(jnp.float32)
    h = jnp.maximum(x @ p["w1"] + p["b1"], 0.0)
    h = jnp.maximum(h @ p["w2"] + p["b2"], 0.0)
    h = jnp.maximum(h @ p["w3"] + p["b3"], 0.0)
    return jax.nn.sigmoid(h @ p["w4"] + p["b4"])


def reference_forward_matched(x, p):
    """Reference matching the kernel's mixed precision (bf16 dots, f32 accumulate,
    tanh-form sigmoid)."""
    def dot(a, w):
        return jnp.dot(a.astype(jnp.bfloat16), w.astype(jnp.bfloat16),
                       preferred_element_type=jnp.float32)
    h = jnp.maximum(dot(x, p["w1"]) + p["b1"], 0.0)
    h = jnp.maximum(dot(h, p["w2"]) + p["b2"], 0.0)
    h = jnp.maximum(dot(h, p["w3"]) + p["b3"], 0.0)
    z = dot(h, p["w4"]) + p["b4"]
    return 0.5 * jnp.tanh(0.5 * z) + 0.5


if __name__ == "__main__":
    key = jax.random.PRNGKey(0)
    k_x, k_p = jax.random.split(key)

    B = 64  # small demo batch; general B (including non-multiples of 16) is supported
    x_f32 = jax.random.uniform(k_x, (B, D_IN), jnp.float32)   # pixel-like inputs in [0,1)
    x = x_f32.astype(jnp.bfloat16)        # caller-supplied bf16 input (halves HBM read)

    params = init_params(k_p)
    prepared = prepare_params(params)      # one-time bf16 cast + bottleneck padding

    out = autoencoder_mlp2(x, prepared)
    out = jax.block_until_ready(out)
    assert out.shape == (B, D_IN)
    assert out.dtype == jnp.bfloat16

    out_f32 = out.astype(jnp.float32)

    # Precision-matched reference (bf16 matmul inputs, f32 accumulation, bf16 store).
    ref_m = reference_forward_matched(x, params)
    assert jnp.allclose(out_f32, ref_m, atol=1e-2, rtol=1e-2), \
        "mismatch vs precision-matched reference"

    # Sanity vs. the full-f32 reference (loose tolerance for bf16 weights/activations).
    ref_f32 = reference_forward_f32(x_f32, params)
    assert float(jnp.max(jnp.abs(out_f32 - ref_f32))) < 5e-2, \
        "mismatch vs f32 reference"

    # TODO(synk): CNN1/CNN2 autoencoder configs (Conv2d/BatchNorm/MaxPool/ConvTranspose)
    # are not implemented; this kernel covers ae_name='MLP2'.
    print("KERNEL_OK")
</pallas_src>

<mosaic_0001>
module attributes {stable_mosaic.version = 11 : i64} {
  func.func @_ae_kernel(%arg0: i32, %arg1: memref<32x3072xbf16, #tpu.memory_space<vmem>>, %arg2: memref<3072x256xbf16, #tpu.memory_space<vmem>>, %arg3: memref<1x256xf32, #tpu.memory_space<vmem>>, %arg4: memref<256x128xbf16, #tpu.memory_space<vmem>>, %arg5: memref<1x128xf32, #tpu.memory_space<vmem>>, %arg6: memref<128x256xbf16, #tpu.memory_space<vmem>>, %arg7: memref<1x256xf32, #tpu.memory_space<vmem>>, %arg8: memref<256x3072xbf16, #tpu.memory_space<vmem>>, %arg9: memref<1x3072xf32, #tpu.memory_space<vmem>>, %arg10: memref<32x3072xbf16, #tpu.memory_space<vmem>>) attributes {dimension_semantics = [#tpu.dimension_semantics<parallel>], iteration_bounds = array<i64: 2>, scalar_prefetch = 0 : i64, scratch_operands = 0 : i64, tpu.core_type = #tpu.core_type<tc>, window_params = [{transform_indices = @transform_0, window_bounds = array<i64: 32, 3072>}, {pipeline_mode = #tpu.pipeline_mode<synchronous>, transform_indices = @transform_1, window_bounds = array<i64: 3072, 256>}, {pipeline_mode = #tpu.pipeline_mode<synchronous>, transform_indices = @transform_2, window_bounds = array<i64: 1, 256>}, {pipeline_mode = #tpu.pipeline_mode<synchronous>, transform_indices = @transform_3, window_bounds = array<i64: 256, 128>}, {pipeline_mode = #tpu.pipeline_mode<synchronous>, transform_indices = @transform_4, window_bounds = array<i64: 1, 128>}, {pipeline_mode = #tpu.pipeline_mode<synchronous>, transform_indices = @transform_5, window_bounds = array<i64: 128, 256>}, {pipeline_mode = #tpu.pipeline_mode<synchronous>, transform_indices = @transform_6, window_bounds = array<i64: 1, 256>}, {pipeline_mode = #tpu.pipeline_mode<synchronous>, transform_indices = @transform_7, window_bounds = array<i64: 256, 3072>}, {pipeline_mode = #tpu.pipeline_mode<synchronous>, transform_indices = @transform_8, window_bounds = array<i64: 1, 3072>}, {transform_indices = @transform_9, window_bounds = array<i64: 32, 3072>}]} {
    %c0 = arith.constant 0 : index
    %c0_0 = arith.constant 0 : index
    %0 = vector.load %arg1[%c0, %c0_0] : memref<32x3072xbf16, #tpu.memory_space<vmem>>, vector<32x3072xbf16>
    %c0_1 = arith.constant 0 : index
    %c0_2 = arith.constant 0 : index
    %1 = vector.load %arg2[%c0_1, %c0_2] : memref<3072x256xbf16, #tpu.memory_space<vmem>>, vector<3072x256xbf16>
    %cst = arith.constant dense<0.000000e+00> : vector<32x256xf32>
    %2 = tpu.matmul %0, %1, %cst {dimension_numbers = #tpu.dot_dimension_numbers<[1], [0], [0], [1], [0, 0, 1, 1], [], []>} : vector<32x3072xbf16>, vector<3072x256xbf16>, vector<32x256xf32> -> vector<32x256xf32>
    %c0_3 = arith.constant 0 : index
    %c0_4 = arith.constant 0 : index
    %3 = vector.load %arg3[%c0_3, %c0_4] : memref<1x256xf32, #tpu.memory_space<vmem>>, vector<1x256xf32>
    %4 = vector.broadcast %3 : vector<1x256xf32> to vector<32x256xf32>
    %5 = arith.addf %2, %4 : vector<32x256xf32>
    %cst_5 = arith.constant 0.000000e+00 : f32
    %6 = vector.broadcast %cst_5 : f32 to vector<32x256xf32>
    %7 = arith.maximumf %5, %6 : vector<32x256xf32>
    %8 = arith.truncf %7 : vector<32x256xf32> to vector<32x256xbf16>
    %c0_6 = arith.constant 0 : index
    %c0_7 = arith.constant 0 : index
    %9 = vector.load %arg4[%c0_6, %c0_7] : memref<256x128xbf16, #tpu.memory_space<vmem>>, vector<256x128xbf16>
    %cst_8 = arith.constant dense<0.000000e+00> : vector<32x128xf32>
    %10 = tpu.matmul %8, %9, %cst_8 {dimension_numbers = #tpu.dot_dimension_numbers<[1], [0], [0], [1], [0, 0, 1, 1], [], []>} : vector<32x256xbf16>, vector<256x128xbf16>, vector<32x128xf32> -> vector<32x128xf32>
    %c0_9 = arith.constant 0 : index
    %c0_10 = arith.constant 0 : index
    %11 = vector.load %arg5[%c0_9, %c0_10] : memref<1x128xf32, #tpu.memory_space<vmem>>, vector<1x128xf32>
    %12 = vector.broadcast %11 : vector<1x128xf32> to vector<32x128xf32>
    %13 = arith.addf %10, %12 : vector<32x128xf32>
    %cst_11 = arith.constant 0.000000e+00 : f32
    %14 = vector.broadcast %cst_11 : f32 to vector<32x128xf32>
    %15 = arith.maximumf %13, %14 : vector<32x128xf32>
    %16 = arith.truncf %15 : vector<32x128xf32> to vector<32x128xbf16>
    %c0_12 = arith.constant 0 : index
    %c0_13 = arith.constant 0 : index
    %17 = vector.load %arg6[%c0_12, %c0_13] : memref<128x256xbf16, #tpu.memory_space<vmem>>, vector<128x256xbf16>
    %cst_14 = arith.constant dense<0.000000e+00> : vector<32x256xf32>
    %18 = tpu.matmul %16, %17, %cst_14 {dimension_numbers = #tpu.dot_dimension_numbers<[1], [0], [0], [1], [0, 0, 1, 1], [], []>} : vector<32x128xbf16>, vector<128x256xbf16>, vector<32x256xf32> -> vector<32x256xf32>
    %c0_15 = arith.constant 0 : index
    %c0_16 = arith.constant 0 : index
    %19 = vector.load %arg7[%c0_15, %c0_16] : memref<1x256xf32, #tpu.memory_space<vmem>>, vector<1x256xf32>
    %20 = vector.broadcast %19 : vector<1x256xf32> to vector<32x256xf32>
    %21 = arith.addf %18, %20 : vector<32x256xf32>
    %cst_17 = arith.constant 0.000000e+00 : f32
    %22 = vector.broadcast %cst_17 : f32 to vector<32x256xf32>
    %23 = arith.maximumf %21, %22 : vector<32x256xf32>
    %24 = arith.truncf %23 : vector<32x256xf32> to vector<32x256xbf16>
    %c0_18 = arith.constant 0 : index
    %c0_19 = arith.constant 0 : index
    %25 = vector.load %arg8[%c0_18, %c0_19] : memref<256x3072xbf16, #tpu.memory_space<vmem>>, vector<256x3072xbf16>
    %cst_20 = arith.constant dense<0.000000e+00> : vector<32x3072xf32>
    %26 = tpu.matmul %24, %25, %cst_20 {dimension_numbers = #tpu.dot_dimension_numbers<[1], [0], [0], [1], [0, 0, 1, 1], [], []>} : vector<32x256xbf16>, vector<256x3072xbf16>, vector<32x3072xf32> -> vector<32x3072xf32>
    %c0_21 = arith.constant 0 : index
    %c0_22 = arith.constant 0 : index
    %27 = vector.load %arg9[%c0_21, %c0_22] : memref<1x3072xf32, #tpu.memory_space<vmem>>, vector<1x3072xf32>
    %28 = vector.broadcast %27 : vector<1x3072xf32> to vector<32x3072xf32>
    %29 = arith.addf %26, %28 : vector<32x3072xf32>
    %cst_23 = arith.constant 5.000000e-01 : f32
    %30 = vector.broadcast %cst_23 : f32 to vector<32x3072xf32>
    %31 = arith.mulf %30, %29 : vector<32x3072xf32>
    %32 = math.tanh %31 : vector<32x3072xf32>
    %cst_24 = arith.constant 5.000000e-01 : f32
    %33 = vector.broadcast %cst_24 : f32 to vector<32x3072xf32>
    %34 = arith.mulf %33, %32 : vector<32x3072xf32>
    %cst_25 = arith.constant 5.000000e-01 : f32
    %35 = vector.broadcast %cst_25 : f32 to vector<32x3072xf32>
    %36 = arith.addf %34, %35 : vector<32x3072xf32>
    %37 = arith.truncf %36 : vector<32x3072xf32> to vector<32x3072xbf16>
    %c0_26 = arith.constant 0 : index
    %c0_27 = arith.constant 0 : index
    %38 = vector.load %arg10[%c0_26, %c0_27] : memref<32x3072xbf16, #tpu.memory_space<vmem>>, vector<32x3072xbf16>
    tpu.vector_store %arg10[%c0_26, %c0_27], %37 {strides = array<i32>} : memref<32x3072xbf16, #tpu.memory_space<vmem>>, vector<32x3072xbf16>,
    return
  }
  func.func @transform_0(%arg0: i32) -> (i32, i32) {
    %c0_i32 = arith.constant 0 : i32
    %c0_i32_0 = arith.constant 0 : i32
    return %arg0, %c0_i32 : i32, i32
  }
  func.func @transform_1(%arg0: i32) -> (i32, i32) {
    %c0_i32 = arith.constant 0 : i32
    %c0_i32_0 = arith.constant 0 : i32
    %c0_i32_1 = arith.constant 0 : i32
    return %c0_i32, %c0_i32_0 : i32, i32
  }
  func.func @transform_2(%arg0: i32) -> (i32, i32) {
    %c0_i32 = arith.constant 0 : i32
    %c0_i32_0 = arith.constant 0 : i32
    %c0_i32_1 = arith.constant 0 : i32
    return %c0_i32, %c0_i32_0 : i32, i32
  }
  func.func @transform_3(%arg0: i32) -> (i32, i32) {
    %c0_i32 = arith.constant 0 : i32
    %c0_i32_0 = arith.constant 0 : i32
    %c0_i32_1 = arith.constant 0 : i32
    return %c0_i32, %c0_i32_0 : i32, i32
  }
  func.func @transform_4(%arg0: i32) -> (i32, i32) {
    %c0_i32 = arith.constant 0 : i32
    %c0_i32_0 = arith.constant 0 : i32
    %c0_i32_1 = arith.constant 0 : i32
    return %c0_i32, %c0_i32_0 : i32, i32
  }
  func.func @transform_5(%arg0: i32) -> (i32, i32) {
    %c0_i32 = arith.constant 0 : i32
    %c0_i32_0 = arith.constant 0 : i32
    %c0_i32_1 = arith.constant 0 : i32
    return %c0_i32, %c0_i32_0 : i32, i32
  }
  func.func @transform_6(%arg0: i32) -> (i32, i32) {
    %c0_i32 = arith.constant 0 : i32
    %c0_i32_0 = arith.constant 0 : i32
    %c0_i32_1 = arith.constant 0 : i32
    return %c0_i32, %c0_i32_0 : i32, i32
  }
  func.func @transform_7(%arg0: i32) -> (i32, i32) {
    %c0_i32 = arith.constant 0 : i32
    %c0_i32_0 = arith.constant 0 : i32
    %c0_i32_1 = arith.constant 0 : i32
    return %c0_i32, %c0_i32_0 : i32, i32
  }
  func.func @transform_8(%arg0: i32) -> (i32, i32) {
    %c0_i32 = arith.constant 0 : i32
    %c0_i32_0 = arith.constant 0 : i32
    %c0_i32_1 = arith.constant 0 : i32
    return %c0_i32, %c0_i32_0 : i32, i32
  }
  func.func @transform_9(%arg0: i32) -> (i32, i32) {
    %c0_i32 = arith.constant 0 : i32
    %c0_i32_0 = arith.constant 0 : i32
    return %arg0, %c0_i32 : i32, i32
  }
}

</mosaic_0001>

<bundles_post_ra>
// kernel: autoencoder_mlp2.1
= control target key start
LH: loop header
LB: loop body
LE: loop exit
PB: predicated region body
PF: predicated region fallthrough
CT: control target
= control target key end

     0   :  { %s14296_s0 = inlined_call_operand.hbm [shape: bf16[64,3072], index: 0, kind: input, shape index: {}]   ;;  %s14297_s1 = inlined_call_operand.hbm [shape: bf16[3072,256], index: 1, kind: input, shape index: {}]   ;;  %s14298_s2 = inlined_call_operand.hbm [shape: f32[1,256], index: 2, kind: input, shape index: {}]   ;;  %s14299_s3 = inlined_call_operand.hbm [shape: bf16[256,128], index: 3, kind: input, shape index: {}]   ;;  %s14300_s4 = inlined_call_operand.hbm [shape: f32[1,128], index: 4, kind: input, shape index: {}]   ;;  %s14301_s5 = inlined_call_operand.hbm [shape: bf16[128,256], index: 5, kind: input, shape index: {}]   ;;  %s14302_s6 = inlined_call_operand.hbm [shape: f32[1,256], index: 6, kind: input, shape index: {}]   ;;  %s14303_s7 = inlined_call_operand.hbm [shape: bf16[256,3072], index: 7, kind: input, shape index: {}]   ;;  %s14304_s8 = inlined_call_operand.hbm [shape: f32[1,3072], index: 8, kind: input, shape index: {}]   ;;  %s14305_s9 = inlined_call_operand.hbm [shape: bf16[64,3072], index: 9, kind: output, shape index: {}]  }
   0x1   :  { %14329 = sst [smem:[#allocation45_spill]] %s14297_s1 }
   0x2   :  { %14330 = sst [smem:[#allocation46_spill]] %s14298_s2 }
   0x3   :  { %14331 = sst [smem:[#allocation47_spill]] %s14299_s3 }
   0x4   :  { %14332 = sst [smem:[#allocation48_spill]] %s14300_s4 }
   0x5   :  { %14333 = sst [smem:[#allocation49_spill]] %s14301_s5 }
   0x6   :  { %14 = vsyncpa [#allocation3], 0 }
   0x7   :  { %16 = vsyncpa [#allocation3 + $0x1], 0 }
   0x8   :  { %17 = vsyncpa [#allocation6], 0 }
   0x9   :  { %18 = vsyncpa [#allocation9], 0 }
   0xa   :  { %19 = vsyncpa [#allocation12], 0 }
   0xb   :  { %20 = vsyncpa [#allocation15], 0 }
   0xc   :  { %21 = vsyncpa [#allocation4], 0 }
   0xd   :  { %23 = vsyncpa [#allocation4 + $0x1], 0  ;;  %s13269_s30 = smov 0   ;;  %s13271_s10 = smov 0  }
   0xe   :  { %s13273_s11 = smov 0   ;;  %s13275_s12 = smov 0  }
   0xf LB: > { %s14334_s1 = sld [smem:[#allocation45_spill]]  ;;  %s13293_s16 = sadd.s32 4294967295, %s13201_s12   ;;  %s13201_s12 = sphi %s13275_s12, %s14393_s12   ;;  %s13197_s11 = sphi %s13273_s11, %s14392_s11   ;;  %s13193_s10 = sphi %s13271_s10, %s14391_s10   ;;  %s13189_s30 = sphi %s13269_s30, %s14390_s30  }
  0x10   : > { %p8247_p0 = scmp.ge.s32.totalorder %s13201_s12, 1  ;;  %p50_p1 = scmp.eq.s32.totalorder %s13293_s16, 0 }
  0x11   : > { %p254_p2 = scmp.lt.s32.totalorder %s13201_s12, 3  ;;  %s13203_s18 = smov [#allocation5]  }
  0x12   : > { %s267_s19 = sshll.u32 %s13203_s18, 4  ;;  %s14336_s3 = sld [smem:[#allocation47_spill]]  ;;  %s268_s19 = int_to_ptr.vmem [resolvable:$true] %s267_s19 }
  0x13   : > { %p13298_p3 = pnand %p8247_p0, %p254_p2  ;;  %s13204_s24 = smov [#allocation8]  }
  0x14   : > { %s293_s25 = sshll.u32 %s13204_s24, 4  ;;  %s13205_s26 = smov 128   ;;  %s294_s25 = int_to_ptr.vmem [resolvable:$true] %s293_s25 }
  0x15   : > { %s265_s15 = sshll.u32 %s14334_s1, 4  ;;  %p12554_p4 = pneg %p13298_p3  ;;  %s266_s15 = int_to_ptr.hbm [resolvable:$true] %s265_s15 }
  0x16   : > { %s13206_s27 = smov 8   ;;  %s13207_s28 = smov 64  }
  0x17   : > { %p13310_p6 = pnand %p12554_p4, %p50_p1  ;;  %s13208_s29 = smov 4  }
  0x18   : > { %s291_s22 = sshll.u32 %s14336_s3, 4  ;;  %s14338_s5 = sld [smem:[#allocation49_spill]]  ;;  %s292_s22 = int_to_ptr.hbm [resolvable:$true] %s291_s22 }
  0x19   : > { %12557 = dma.hbm_to_vmem [thread:$0]  (!%p13310_p6), %s266_s15, 49152, %s268_s19, [#allocation6], %s13205_s26, %s13205_s26, %s13206_s27  }
  0x1a   : > { %12563 = dma.hbm_to_vmem [thread:$0]  (!%p13310_p6), %s292_s22, 2048, %s294_s25, [#allocation9], %s13207_s28, %s13207_s28, %s13208_s29  }
  0x1b   : > { %s13209_s20 = smov [#allocation11]   ;;  %s343_s3 = sshll.u32 %s14303_s7, 4  ;;  %s344_s3 = int_to_ptr.hbm [resolvable:$true] %s343_s3 }
  0x1c   : > { %s319_s21 = sshll.u32 %s13209_s20, 4  ;;  %s13210_s15 = smov [#allocation14]   ;;  %s320_s21 = int_to_ptr.vmem [resolvable:$true] %s319_s21 }
  0x1d   : > { %s345_s19 = sshll.u32 %s13210_s15, 4  ;;  %s14306_s22 = smov 1536   ;;  %s346_s19 = int_to_ptr.vmem [resolvable:$true] %s345_s19 }
  0x1e   : > { %s317_s18 = sshll.u32 %s14338_s5, 4  ;;  %s14307_s25 = smov 96   ;;  %s318_s18 = int_to_ptr.hbm [resolvable:$true] %s317_s18 }
  0x1f   : > { %12569 = dma.hbm_to_vmem [thread:$0]  (!%p13310_p6), %s318_s18, 2048, %s320_s21, [#allocation12], %s13205_s26, %s13205_s26, %s13206_s27  }
  0x20   : > { %12575 = dma.hbm_to_vmem [thread:$0]  (!%p13310_p6), %s344_s3, 49152, %s346_s19, [#allocation15], %s14306_s22, %s14306_s22, %s14307_s25  }
  0x21   : > { %s14339_s2 = sld [smem:[#allocation46_spill]]  ;;  %s13213_s13 = smov [#allocation7]  }
  0x22   : > { %s282_s14 = sshll.u32 %s13213_s13, 4  ;;  %s14340_s4 = sld [smem:[#allocation48_spill]]  ;;  %s283_s14 = int_to_ptr.vmem [resolvable:$true] %s282_s14 }
  0x23   : > { %s13214_s20 = smov [#allocation10]   ;;  %s332_s15 = sshll.u32 %s14302_s6, 4  ;;  %s333_s15 = int_to_ptr.hbm [resolvable:$true] %s332_s15 }
  0x24   : > { %s308_s3 = sshll.u32 %s13214_s20, 4  ;;  %s358_s29 = sshll.u32 %s14304_s8, 4  ;;  %s309_s3 = int_to_ptr.vmem [resolvable:$true] %s308_s3  ;;  %s359_s29 = int_to_ptr.hbm [resolvable:$true] %s358_s29 }
  0x25   : > { %s8246_s27 = sadd.s32 4294967294, %s13201_s12   ;;  %p43_p8 = scmp.ne.s32.totalorder %s13197_s11, %s13193_s10 }
  0x26   : > { %p44_p9 = scmp.eq.s32.totalorder %s13201_s12, 0  ;;  %p49_p10 = scmp.ne.s32.totalorder %s13193_s10, %s13189_s30 }
  0x27   : > { %s280_s1 = sshll.u32 %s14339_s2, 4  ;;  %p241_p13 = scmp.eq.s32.totalorder %s13293_s16, 1  ;;  %s281_s1 = int_to_ptr.hbm [resolvable:$true] %s280_s1 }
  0x28   : > { %s306_s18 = sshll.u32 %s14340_s4, 4  ;;  %p45_p11 = por %p44_p9, %p43_p8  ;;  %s307_s18 = int_to_ptr.hbm [resolvable:$true] %s306_s18 }
  0x29   : > { %12560 = dma.hbm_to_vmem [thread:$0]  (!%p13310_p6), %s281_s1, 32, %s283_s14, [#allocation6]  }
  0x2a   : > { %12566 = dma.hbm_to_vmem [thread:$0]  (!%p13310_p6), %s307_s18, 16, %s309_s3, [#allocation9]  }
  0x2b   : > { %s13215_s1 = smov [#allocation13]   ;;  %s13216_s14 = smov [#allocation16]  }
  0x2c   : > { %s334_s13 = sshll.u32 %s13215_s1, 4  ;;  %s360_s26 = sshll.u32 %s13216_s14, 4  ;;  %s335_s13 = int_to_ptr.vmem [resolvable:$true] %s334_s13  ;;  %s361_s26 = int_to_ptr.vmem [resolvable:$true] %s360_s26 }
  0x2d   : > { %12572 = dma.hbm_to_vmem [thread:$0]  (!%p13310_p6), %s333_s15, 32, %s335_s13, [#allocation12]  }
  0x2e   : > { %12578 = dma.hbm_to_vmem [thread:$0]  (!%p13310_p6), %s359_s29, 384, %s361_s26, [#allocation15]  }
  0x2f   : > { %s13353_s18 = sadd.s32 1, %s13201_s12   ;;  %s36_s3 = sadd.s32 1, %s13197_s11 }
  0x30   : > { %s33_s20 = ssub.s32 %s13201_s12, %s13353_s18  ;;  %p13368_p12 = por %p50_p1, %p49_p10 }
  0x31   : > { %p34_p7 = scmp.eq.s32.totalorder %s33_s20, 0  ;;  %p247_p0 = scmp.eq.s32.totalorder %s8246_s27, 1 }
  0x32   : > { %p12595_p2 = scmp.lt.s32.totalorder %s13201_s12, 2  ;;  %s371_s23 = sand.u32 1, %s13197_s11  }
  0x33   : > { %s13364_s21 = scalar_select %p34_p7, %s13197_s11, %s36_s3  }
  0x34   : > { %p13375_p4 = por %p241_p13, %p43_p8  ;;  %p13379_p6 = por %p247_p0, %p49_p10 }
  0x35   : > { %s12514_s28 = smul.u32 384, %s371_s23  ;;  %p13384_p7 = pnand %p12595_p2, %p45_p11 }
  0x36   : > { %s12515_s29 = smul.u32 384, %s13201_s12  ;;  %s372_s22 = scalar_lea.sflag [#allocation3], %s371_s23 }
  0x37   : > { %s375_s27 = scalar_lea.vmem [#allocation2], %s12514_s28  ;;  %p13093_p9 = pneg %p13384_p7 }
  0x38   : > { %s381_s26 = scalar_lea.hbm %s14296_s0, %s12515_s29  ;;  %s384_s20 = sshll.u32 %s375_s27, 4  ;;  %s385_s20 = int_to_ptr.vmem [resolvable:$true] %s384_s20 }
  0x39   : > { %s382_s3 = sshll.u32 %s381_s26, 4  ;;  %s13096_s13 = scalar_lea.hbm %s14296_s0, 768  ;;  %s383_s3 = int_to_ptr.hbm [resolvable:$true] %s382_s3 }
  0x3a   : > { %s13089_s25 = sshra.s32 %s383_s3, 4  ;;  %s13090_s25 = int_to_ptr.hbm [resolvable:$true] %s13089_s25 }
  0x3b   : > { %s13091_s2 = scalar_lea.hbm %s13090_s25, 384  ;;  %p13097_p13 = scmp.lt.s32.totalorder %s13090_s25, %s14296_s0 }
  0x3c   : > { %p13092_p8 = scmp.ne.s32.totalorder %s13090_s25, %s13091_s2  ;;  %p13098_p0 = scmp.lt.s32.totalorder %s13096_s13, %s13091_s2 }
  0x3e   : > { %p13094_p10 = pnand %p13093_p9, %p13092_p8  ;;  %p13099_p2 = por %p13098_p0, %p13097_p13 }
  0x40   : > { %p13095_p11 = pneg %p13094_p10 }
  0x42   : > { %p13100_p5 = pnand %p13099_p2, %p13095_p11 }
  0x44   : > { %13103 = shalt.err (!%p13100_p5)
}
  0x45   : > { %s14345_s23 = smov 96   ;;  %s14346_s28 = smov 1536  }
  0x46   : > { %12582 = dma.hbm_to_vmem [thread:$0]  (!%p13384_p7), %s383_s3, 6144, %s385_s20, %s372_s22, %s14346_s28, %s14346_s28, %s14345_s23  }
  0x47   : > { %396 = sbr.rel (%p13298_p3) target bundleno = 1449 (0x5a9), region = 56 }
  0x4c   : > { %s13407_s4 = sand.u32 1, %s13193_s10  }
  0x4d   : > { %s12516_s2 = smul.u32 384, %s13407_s4  ;;  %s399_s5 = scalar_lea.sflag [#allocation3], %s13407_s4 }
  0x4f   : > { %s13413_s25 = scalar_lea.vmem [#allocation2], %s12516_s2 }
  0x50   : > { %13164 = dma.done.wait (%p13368_p12), %s399_s5, 6144  }
  0x51   : > { %13166 = vsyncadd (%p13368_p12), %s399_s5, 4294961152 }
  0x52   : > { %13168 = dma.done.wait (%p50_p1), [#allocation6], 49184  }
  0x53   : > { %13170 = vsyncadd (%p50_p1), [#allocation6], 4294918112 }
  0x54   : > { %13172 = dma.done.wait (%p50_p1), [#allocation9], 2064  }
  0x55   : > { %13174 = vsyncadd (%p50_p1), [#allocation9], 4294965232 }
  0x56   : > { %13176 = dma.done.wait (%p50_p1), [#allocation12], 2080  }
  0x57   : > { %13178 = vsyncadd (%p50_p1), [#allocation12], 4294965216 }
  0x58   : > { %13180 = dma.done.wait (%p50_p1), [#allocation15], 49536  }
  0x59   : > { %13182 = vsyncadd (%p50_p1), [#allocation15], 4294917760  ;;  %v8519_v0 = vld [vmem:[#allocation5 + $0x70] sm:$0xf]  ;;  %v11729_v1 = vld [vmem:[#allocation5 + $0x74] sm:$0xf0] }
  0x5a   : > { %v8583_v2 = vld [vmem:[#allocation5 + $0xf0] sm:$0xf]  ;;  %v8520_v3 = vor.u32 %v11729_v1, %v8519_v0  ;;  %v11745_v4 = vld [vmem:[#allocation5 + $0xf4] sm:$0xf0]  ;;  %v8511_v11 = vld [vmem:[#allocation5 + $0x60] sm:$0xf] }
  0x5b   : > { %v8647_v5 = vld [vmem:[#allocation5 + $0x170] sm:$0xf]  ;;  %v11761_v6 = vld [vmem:[#allocation5 + $0x174] sm:$0xf0]  ;;  %v8584_v7 = vor.u32 %v11745_v4, %v8583_v2  ;;  %v11727_v13 = vld [vmem:[#allocation5 + $0x64] sm:$0xf0] }
  0x5c   : > { %v8648_v8 = vor.u32 %v11761_v6, %v8647_v5  ;;  %v8711_v9 = vld [vmem:[#allocation5 + $0x1f0] sm:$0xf]  ;;  %v11777_v10 = vld [vmem:[#allocation5 + $0x1f4] sm:$0xf0]  ;;  %3078 = vmatpush.bf16.msra.mxu0 %v8520_v3  ;;  %v8575_v14 = vld [vmem:[#allocation5 + $0xe0] sm:$0xf]  ;;  %v8512_v16 = vor.u32 %v11727_v13, %v8511_v11 }
  0x5d   : > { %v8712_v12 = vor.u32 %v11777_v10, %v8711_v9  ;;  %v11743_v15 = vld [vmem:[#allocation5 + $0xe4] sm:$0xf0]  ;;  %3097 = vmatpush.bf16.msra.mxu1 %v8584_v7  ;;  %v8639_v18 = vld [vmem:[#allocation5 + $0x160] sm:$0xf]  ;;  %v8503_v23 = vld [vmem:[#allocation5 + $0x50] sm:$0xf] }
  0x5e   : > { %3116 = vmatpush.bf16.msra.mxu2 %v8648_v8  ;;  %v8576_v17 = vor.u32 %v11743_v15, %v8575_v14  ;;  %v11759_v19 = vld [vmem:[#allocation5 + $0x164] sm:$0xf0]  ;;  %v8703_v20 = vld [vmem:[#allocation5 + $0x1e0] sm:$0xf]  ;;  %v11725_v24 = vld [vmem:[#allocation5 + $0x54] sm:$0xf0] }
  0x5f   : > { %3135 = vmatpush.bf16.msra.mxu3 %v8712_v12  ;;  %v8640_v21 = vor.u32 %v11759_v19, %v8639_v18  ;;  %v11775_v22 = vld [vmem:[#allocation5 + $0x1e4] sm:$0xf0]  ;;  %v8567_v26 = vld [vmem:[#allocation5 + $0xd0] sm:$0xf]  ;;  %v11741_v27 = vld [vmem:[#allocation5 + $0xd4] sm:$0xf0]  ;;  %v8504_v29 = vor.u32 %v11725_v24, %v8503_v23 }
  0x60   : > { %v8704_v25 = vor.u32 %v11775_v22, %v8703_v20  ;;  %v8631_v28 = vld [vmem:[#allocation5 + $0x150] sm:$0xf]  ;;  %3079 = vmatpush.bf16.msra.mxu0 %v8512_v16  ;;  %v11757_v30 = vld [vmem:[#allocation5 + $0x154] sm:$0xf0]  ;;  %v8568_v33 = vor.u32 %v11741_v27, %v8567_v26  ;;  %v8495_v35 = vld [vmem:[#allocation5 + $0x40] sm:$0xf] }
  0x61   : > { %v8695_v31 = vld [vmem:[#allocation5 + $0x1d0] sm:$0xf]  ;;  %v11773_v32 = vld [vmem:[#allocation5 + $0x1d4] sm:$0xf0]  ;;  %3098 = vmatpush.bf16.msra.mxu1 %v8576_v17  ;;  %v8632_v34 = vor.u32 %v11757_v30, %v8631_v28  ;;  %v11723_v36 = vld [vmem:[#allocation5 + $0x44] sm:$0xf0] }
  0x62   : > { %3117 = vmatpush.bf16.msra.mxu2 %v8640_v21  ;;  %v8559_v37 = vld [vmem:[#allocation5 + $0xc0] sm:$0xf]  ;;  %v8696_v38 = vor.u32 %v11773_v32, %v8695_v31  ;;  %v11739_v39 = vld [vmem:[#allocation5 + $0xc4] sm:$0xf0]  ;;  %v8496_v44 = vor.u32 %v11723_v36, %v8495_v35  ;;  %v8487_v47 = vld [vmem:[#allocation5 + $0x30] sm:$0xf] }
  0x63   : > { %3136 = vmatpush.bf16.msra.mxu3 %v8704_v25  ;;  %v8623_v40 = vld [vmem:[#allocation5 + $0x140] sm:$0xf]  ;;  %v11755_v41 = vld [vmem:[#allocation5 + $0x144] sm:$0xf0]  ;;  %v8560_v45 = vor.u32 %v11739_v39, %v8559_v37  ;;  %v11721_v48 = vld [vmem:[#allocation5 + $0x34] sm:$0xf0] }
  0x64   : > { %v8687_v42 = vld [vmem:[#allocation5 + $0x1c0] sm:$0xf]  ;;  %v11771_v43 = vld [vmem:[#allocation5 + $0x1c4] sm:$0xf0]  ;;  %3080 = vmatpush.bf16.msra.mxu0 %v8504_v29  ;;  %v8624_v46 = vor.u32 %v11755_v41, %v8623_v40  ;;  %v8551_v49 = vld [vmem:[#allocation5 + $0xb0] sm:$0xf]  ;;  %v8488_v56 = vor.u32 %v11721_v48, %v8487_v47 }
  0x65   : > { %3099 = vmatpush.bf16.msra.mxu1 %v8568_v33  ;;  %v8688_v50 = vor.u32 %v11771_v43, %v8687_v42  ;;  %v11737_v51 = vld [vmem:[#allocation5 + $0xb4] sm:$0xf0]  ;;  %v8615_v52 = vld [vmem:[#allocation5 + $0x130] sm:$0xf]  ;;  %v8479_v59 = vld [vmem:[#allocation5 + $0x20] sm:$0xf] }
  0x66   : > { %3118 = vmatpush.bf16.msra.mxu2 %v8632_v34  ;;  %v11753_v53 = vld [vmem:[#allocation5 + $0x134] sm:$0xf0]  ;;  %v8679_v54 = vld [vmem:[#allocation5 + $0x1b0] sm:$0xf]  ;;  %v8552_v57 = vor.u32 %v11737_v51, %v8551_v49  ;;  %v11719_v60 = vld [vmem:[#allocation5 + $0x24] sm:$0xf0] }
  0x67   : > { %3137 = vmatpush.bf16.msra.mxu3 %v8696_v38  ;;  %v11769_v55 = vld [vmem:[#allocation5 + $0x1b4] sm:$0xf0]  ;;  %v8616_v58 = vor.u32 %v11753_v53, %v8615_v52  ;;  %v8543_v61 = vld [vmem:[#allocation5 + $0xa0] sm:$0xf]  ;;  %v11735_v63 = vld [vmem:[#allocation5 + $0xa4] sm:$0xf0]  ;;  %v8480_v4 = vor.u32 %v11719_v60, %v8479_v59 }
  0x68   : > { %3081 = vmatpush.bf16.msra.mxu0 %v8496_v44  ;;  %v8680_v62 = vor.u32 %v11769_v55, %v8679_v54  ;;  %v8607_v0 = vld [vmem:[#allocation5 + $0x120] sm:$0xf]  ;;  %v11751_v1 = vld [vmem:[#allocation5 + $0x124] sm:$0xf0]  ;;  %v8544_v5 = vor.u32 %v11735_v63, %v8543_v61  ;;  %v8471_v7 = vld [vmem:[#allocation5 + $0x10] sm:$0xf] }
  0x69   : > { %3100 = vmatpush.bf16.msra.mxu1 %v8560_v45  ;;  %v8671_v2 = vld [vmem:[#allocation5 + $0x1a0] sm:$0xf]  ;;  %v11767_v3 = vld [vmem:[#allocation5 + $0x1a4] sm:$0xf0]  ;;  %v8608_v6 = vor.u32 %v11751_v1, %v8607_v0  ;;  %v11717_v8 = vld [vmem:[#allocation5 + $0x14] sm:$0xf0] }
  0x6a   : > { %3119 = vmatpush.bf16.msra.mxu2 %v8624_v46  ;;  %v8535_v9 = vld [vmem:[#allocation5 + $0x90] sm:$0xf]  ;;  %v8672_v10 = vor.u32 %v11767_v3, %v8671_v2  ;;  %v11733_v11 = vld [vmem:[#allocation5 + $0x94] sm:$0xf0]  ;;  %v8463_v16 = vld [vmem:[#allocation5] sm:$0xf]  ;;  %v8472_v17 = vor.u32 %v11717_v8, %v8471_v7 }
  0x6b   : > { %3138 = vmatpush.bf16.msra.mxu3 %v8688_v50  ;;  %v8599_v12 = vld [vmem:[#allocation5 + $0x110] sm:$0xf]  ;;  %v11749_v13 = vld [vmem:[#allocation5 + $0x114] sm:$0xf0]  ;;  %v11715_v18 = vld [vmem:[#allocation5 + $0x4] sm:$0xf0]  ;;  %v8536_v21 = vor.u32 %v11733_v11, %v8535_v9 }
  0x6c   : > { %3082 = vmatpush.bf16.msra.mxu0 %v8488_v56  ;;  %v8663_v14 = vld [vmem:[#allocation5 + $0x190] sm:$0xf]  ;;  %v11765_v15 = vld [vmem:[#allocation5 + $0x194] sm:$0xf0]  ;;  %v8527_v19 = vld [vmem:[#allocation5 + $0x80] sm:$0xf]  ;;  %v8600_v22 = vor.u32 %v11749_v13, %v8599_v12  ;;  %v8464_v34 = vor.u32 %v11715_v18, %v8463_v16 }
  0x6d   : > { %3101 = vmatpush.bf16.msra.mxu1 %v8552_v57  ;;  %v11731_v20 = vld [vmem:[#allocation5 + $0x84] sm:$0xf0]  ;;  %v8591_v23 = vld [vmem:[#allocation5 + $0x100] sm:$0xf]  ;;  %v8664_v26 = vor.u32 %v11765_v15, %v8663_v14  ;;  %v11666_v30 = vld [vmem:[%s13413_s25 + $0x4] sm:$0xf] }
  0x6e   : > { %3120 = vmatpush.bf16.msra.mxu2 %v8616_v58  ;;  %v11747_v24 = vld [vmem:[#allocation5 + $0x104] sm:$0xf0]  ;;  %v8655_v25 = vld [vmem:[#allocation5 + $0x180] sm:$0xf]  ;;  %v8273_v31 = vld [vmem:[%s13413_s25 + $0x60] sm:$0xf0]  ;;  %v8528_v38 = vor.u32 %v11731_v20, %v8527_v19 }
  0x6f   : > { %3139 = vmatpush.bf16.msra.mxu3 %v8680_v62  ;;  %v11763_v27 = vld [vmem:[#allocation5 + $0x184] sm:$0xf0]  ;;  %v8271_v28 = vld [vmem:[%s13413_s25] sm:$0xf]  ;;  %v8903_v32 = vld [vmem:[#allocation5 + $0x370] sm:$0xf]  ;;  %v8592_v39 = vor.u32 %v11747_v24, %v8591_v23  ;;  %v13445_v53 = vor.u32 %v11666_v30, %v8273_v31 }
  0x70   : > { %3083 = vmatpush.bf16.msra.mxu0 %v8480_v4  ;;  %v11678_v29 = vld [vmem:[%s13413_s25 + $0x5c] sm:$0xf0]  ;;  %v11825_v33 = vld [vmem:[#allocation5 + $0x374] sm:$0xf0]  ;;  %v8279_v35 = vld [vmem:[%s13413_s25 + $0x8] sm:$0xf]  ;;  %v8656_v43 = vor.u32 %v11763_v27, %v8655_v25 }
  0x71   : > { %3102 = vmatpush.bf16.msra.mxu1 %v8544_v5  ;;  %v8839_v36 = vld [vmem:[#allocation5 + $0x2f0] sm:$0xf]  ;;  %v11809_v37 = vld [vmem:[#allocation5 + $0x2f4] sm:$0xf0]  ;;  %v11679_v40 = vld [vmem:[%s13413_s25 + $0x64] sm:$0xf0]  ;;  %v8904_v44 = vor.u32 %v11825_v33, %v8903_v32  ;;  %v13443_v48 = vor.u32 %v11678_v29, %v8271_v28 }
  0x72   : > { %3121 = vmatpush.bf16.msra.mxu2 %v8608_v6  ;;  %v11667_v41 = vld [vmem:[%s13413_s25 + $0xc] sm:$0xf]  ;;  %v8775_v45 = vld [vmem:[#allocation5 + $0x270] sm:$0xf]  ;;  %v11793_v46 = vld [vmem:[#allocation5 + $0x274] sm:$0xf0]  ;;  %v8840_v49 = vor.u32 %v11809_v37, %v8839_v36  ;;  %v13447_v54 = vor.u32 %v11679_v40, %v8279_v35 }
  0x73   : > { %3140 = vmatpush.bf16.msra.mxu3 %v8672_v10  ;;  %v8281_v42 = vld [vmem:[%s13413_s25 + $0x68] sm:$0xf0]  ;;  %v8967_v47 = vld [vmem:[#allocation5 + $0x3f0] sm:$0xf]  ;;  %v11841_v50 = vld [vmem:[#allocation5 + $0x3f4] sm:$0xf0]  ;;  %v8776_v58 = vor.u32 %v11793_v46, %v8775_v45 }
  0x74   : > { %3084 = vmatpush.bf16.msra.mxu0 %v8472_v17  ;;  %v8895_v51 = vld [vmem:[#allocation5 + $0x360] sm:$0xf]  ;;  %v11823_v52 = vld [vmem:[#allocation5 + $0x364] sm:$0xf0]  ;;  %v13449_v57 = vor.u32 %v11667_v41, %v8281_v42  ;;  %v8968_v59 = vor.u32 %v11841_v50, %v8967_v47  ;;  %v8887_v2 = vld [vmem:[#allocation5 + $0x350] sm:$0xf] }
  0x75   : > { %3103 = vmatpush.bf16.msra.mxu1 %v8536_v21  ;;  %v8831_v55 = vld [vmem:[#allocation5 + $0x2e0] sm:$0xf]  ;;  %v11807_v56 = vld [vmem:[#allocation5 + $0x2e4] sm:$0xf0]  ;;  %v8896_v60 = vor.u32 %v11823_v52, %v8895_v51  ;;  %v11821_v3 = vld [vmem:[#allocation5 + $0x354] sm:$0xf0] }
  0x76   : > { %3122 = vmatpush.bf16.msra.mxu2 %v8600_v22  ;;  %v8767_v61 = vld [vmem:[#allocation5 + $0x260] sm:$0xf]  ;;  %v11791_v62 = vld [vmem:[#allocation5 + $0x264] sm:$0xf0]  ;;  %v8832_v0 = vor.u32 %v11807_v56, %v8831_v55  ;;  %v8823_v4 = vld [vmem:[#allocation5 + $0x2d0] sm:$0xf]  ;;  %v8888_v8 = vor.u32 %v11821_v3, %v8887_v2 }
  0x77   : > { %3141 = vmatpush.bf16.msra.mxu3 %v8664_v26  ;;  %v8959_v63 = vld [vmem:[#allocation5 + $0x3e0] sm:$0xf]  ;;  %v11839_v1 = vld [vmem:[#allocation5 + $0x3e4] sm:$0xf0]  ;;  %v11805_v5 = vld [vmem:[#allocation5 + $0x2d4] sm:$0xf0]  ;;  %v8768_v6 = vor.u32 %v11791_v62, %v8767_v61 }
  0x78   : > { %3085 = vmatpush.bf16.msra.mxu0 %v8464_v34  ;;  %v8960_v7 = vor.u32 %v11839_v1, %v8959_v63  ;;  %v8759_v9 = vld [vmem:[#allocation5 + $0x250] sm:$0xf]  ;;  %v11789_v10 = vld [vmem:[#allocation5 + $0x254] sm:$0xf0]  ;;  %v8824_v12 = vor.u32 %v11805_v5, %v8823_v4  ;;  %v8879_v14 = vld [vmem:[#allocation5 + $0x340] sm:$0xf] }
  0x79   : > { %3104 = vmatpush.bf16.msra.mxu1 %v8528_v38  ;;  %v8951_v11 = vld [vmem:[#allocation5 + $0x3d0] sm:$0xf]  ;;  %v11837_v13 = vld [vmem:[#allocation5 + $0x3d4] sm:$0xf0]  ;;  %v11819_v15 = vld [vmem:[#allocation5 + $0x344] sm:$0xf0]  ;;  %v8760_v18 = vor.u32 %v11789_v10, %v8759_v9 }
  0x7a   : > { %3123 = vmatpush.bf16.msra.mxu2 %v8592_v39  ;;  %v8815_v16 = vld [vmem:[#allocation5 + $0x2c0] sm:$0xf]  ;;  %v11803_v17 = vld [vmem:[#allocation5 + $0x2c4] sm:$0xf0]  ;;  %v8952_v22 = vor.u32 %v11837_v13, %v8951_v11  ;;  %v8880_v23 = vor.u32 %v11819_v15, %v8879_v14  ;;  %v11690_v28 = vld [vmem:[%s13413_s25 + $0xc4] sm:$0xf] }
  0x7b   : > { %3142 = vmatpush.bf16.msra.mxu3 %v8656_v43  ;;  %3086 = vmatmul.bf16.vlgmr.msra.gmra.mxu0 %v13443_v48  ;;  %v8751_v19 = vld [vmem:[#allocation5 + $0x240] sm:$0xf]  ;;  %v11787_v20 = vld [vmem:[#allocation5 + $0x244] sm:$0xf0]  ;;  %v8816_v27 = vor.u32 %v11803_v17, %v8815_v16  ;;  %v8369_v29 = vld [vmem:[%s13413_s25 + $0x120] sm:$0xf0] }
  0x7c   : > { %3105 = vmatmul.bf16.vlgmr.msra.gmra.mxu1 %v13445_v53  ;;  %3154 = vmatpush.bf16.msrb.mxu0 %v8776_v58  ;;  %v8943_v21 = vld [vmem:[#allocation5 + $0x3c0] sm:$0xf]  ;;  %v11835_v24 = vld [vmem:[#allocation5 + $0x3c4] sm:$0xf0]  ;;  %v8871_v30 = vld [vmem:[#allocation5 + $0x330] sm:$0xf]  ;;  %v8752_v35 = vor.u32 %v11787_v20, %v8751_v19  ;;  %v13465_v50 = vor.u32 %v11690_v28, %v8369_v29 }
  0x7d   : > { %3173 = vmatpush.bf16.msrb.mxu1 %v8840_v49  ;;  %3124 = vmatmul.bf16.vlgmr.msra.gmra.mxu2 %v13447_v54  ;;  %v8367_v25 = vld [vmem:[%s13413_s25 + $0xc0] sm:$0xf]  ;;  %v11817_v31 = vld [vmem:[#allocation5 + $0x334] sm:$0xf0]  ;;  %v8375_v32 = vld [vmem:[%s13413_s25 + $0xc8] sm:$0xf]  ;;  %v8944_v39 = vor.u32 %v11835_v24, %v8943_v21 }
  0x7e   : > { %3192 = vmatpush.bf16.msrb.mxu2 %v8904_v44  ;;  %3143 = vmatmul.bf16.vlgmr.msra.gmra.mxu3 %v13449_v57  ;;  %v11702_v26 = vld [vmem:[%s13413_s25 + $0x11c] sm:$0xf0]  ;;  %v8807_v33 = vld [vmem:[#allocation5 + $0x2b0] sm:$0xf]  ;;  %v11801_v34 = vld [vmem:[#allocation5 + $0x2b4] sm:$0xf0]  ;;  %v8872_v40 = vor.u32 %v11817_v31, %v8871_v30 }
  0x7f   : > { %3211 = vmatpush.bf16.msrb.mxu3 %v8968_v59  ;;  %v11703_v36 = vld [vmem:[%s13413_s25 + $0x124] sm:$0xf0]  ;;  %v11691_v37 = vld [vmem:[%s13413_s25 + $0xcc] sm:$0xf]  ;;  %v8743_v41 = vld [vmem:[#allocation5 + $0x230] sm:$0xf]  ;;  %v13463_v44 = vor.u32 %v11702_v26, %v8367_v25  ;;  %v8808_v45 = vor.u32 %v11801_v34, %v8807_v33 }
  0x80   : > { %3155 = vmatpush.bf16.msrb.mxu0 %v8768_v6  ;;  %v8377_v38 = vld [vmem:[%s13413_s25 + $0x128] sm:$0xf0]  ;;  %v11785_v42 = vld [vmem:[#allocation5 + $0x234] sm:$0xf0]  ;;  %v8935_v43 = vld [vmem:[#allocation5 + $0x3b0] sm:$0xf]  ;;  %v13467_v51 = vor.u32 %v11703_v36, %v8375_v32 }
  0x81   : > { %3174 = vmatpush.bf16.msrb.mxu1 %v8832_v0  ;;  %v11833_v46 = vld [vmem:[#allocation5 + $0x3b4] sm:$0xf0]  ;;  %v8863_v47 = vld [vmem:[#allocation5 + $0x320] sm:$0xf]  ;;  %v11815_v49 = vld [vmem:[#allocation5 + $0x324] sm:$0xf0]  ;;  %v13469_v56 = vor.u32 %v11691_v37, %v8377_v38  ;;  %v8744_v58 = vor.u32 %v11785_v42, %v8743_v41 }
  0x82   : > { %3193 = vmatpush.bf16.msrb.mxu2 %v8896_v60  ;;  %v8799_v52 = vld [vmem:[#allocation5 + $0x2a0] sm:$0xf]  ;;  %v11799_v55 = vld [vmem:[#allocation5 + $0x2a4] sm:$0xf0]  ;;  %v8936_v59 = vor.u32 %v11833_v46, %v8935_v43  ;;  %v8864_v60 = vor.u32 %v11815_v49, %v8863_v47  ;;  %v8855_v2 = vld [vmem:[#allocation5 + $0x310] sm:$0xf] }
  0x83   : > { %3212 = vmatpush.bf16.msrb.mxu3 %v8960_v7  ;;  %v8735_v61 = vld [vmem:[#allocation5 + $0x220] sm:$0xf]  ;;  %v11783_v62 = vld [vmem:[#allocation5 + $0x224] sm:$0xf0]  ;;  %v8800_v0 = vor.u32 %v11799_v55, %v8799_v52  ;;  %v11813_v3 = vld [vmem:[#allocation5 + $0x314] sm:$0xf0] }
  0x84   : > { %3156 = vmatpush.bf16.msrb.mxu0 %v8760_v18  ;;  %v8927_v63 = vld [vmem:[#allocation5 + $0x3a0] sm:$0xf]  ;;  %v11831_v1 = vld [vmem:[#allocation5 + $0x3a4] sm:$0xf0]  ;;  %v8791_v4 = vld [vmem:[#allocation5 + $0x290] sm:$0xf]  ;;  %v8736_v6 = vor.u32 %v11783_v62, %v8735_v61  ;;  %v8856_v9 = vor.u32 %v11813_v3, %v8855_v2 }
  0x85   : > { %3175 = vmatpush.bf16.msrb.mxu1 %v8824_v12  ;;  %v11797_v5 = vld [vmem:[#allocation5 + $0x294] sm:$0xf0]  ;;  %v8727_v7 = vld [vmem:[#allocation5 + $0x210] sm:$0xf]  ;;  %v8847_v14 = vld [vmem:[#allocation5 + $0x300] sm:$0xf] }
  0x86   : > { %3194 = vmatpush.bf16.msrb.mxu2 %v8888_v8  ;;  %v8928_v8 = vor.u32 %v11831_v1, %v8927_v63  ;;  %v11781_v10 = vld [vmem:[#allocation5 + $0x214] sm:$0xf0]  ;;  %v8919_v11 = vld [vmem:[#allocation5 + $0x390] sm:$0xf]  ;;  %v8792_v13 = vor.u32 %v11797_v5, %v8791_v4  ;;  %v11811_v15 = vld [vmem:[#allocation5 + $0x304] sm:$0xf0] }
  0x87   : > { %3213 = vmatpush.bf16.msrb.mxu3 %v8952_v22  ;;  %v11829_v12 = vld [vmem:[#allocation5 + $0x394] sm:$0xf0]  ;;  %v8783_v16 = vld [vmem:[#allocation5 + $0x280] sm:$0xf]  ;;  %v11795_v17 = vld [vmem:[#allocation5 + $0x284] sm:$0xf0]  ;;  %v8728_v20 = vor.u32 %v11781_v10, %v8727_v7  ;;  %v8848_v25 = vor.u32 %v11811_v15, %v8847_v14 }
  0x88   : > { %3157 = vmatpush.bf16.msrb.mxu0 %v8752_v35  ;;  %v9159_v18 = vld [vmem:[#allocation5 + $0x570] sm:$0xf]  ;;  %v11889_v19 = vld [vmem:[#allocation5 + $0x574] sm:$0xf0]  ;;  %v8719_v21 = vld [vmem:[#allocation5 + $0x200] sm:$0xf]  ;;  %v8920_v24 = vor.u32 %v11829_v12, %v8919_v11  ;;  %v8784_v29 = vor.u32 %v11795_v17, %v8783_v16 }
  0x89   : > { %3176 = vmatpush.bf16.msrb.mxu1 %v8816_v27  ;;  %v9095_v22 = vld [vmem:[#allocation5 + $0x4f0] sm:$0xf]  ;;  %v11779_v26 = vld [vmem:[#allocation5 + $0x204] sm:$0xf0]  ;;  %v8911_v27 = vld [vmem:[#allocation5 + $0x380] sm:$0xf]  ;;  %v9160_v34 = vor.u32 %v11889_v19, %v9159_v18 }
  0x8a   : > { %3195 = vmatpush.bf16.msrb.mxu2 %v8880_v23  ;;  %v11873_v23 = vld [vmem:[#allocation5 + $0x4f4] sm:$0xf0]  ;;  %v11827_v28 = vld [vmem:[#allocation5 + $0x384] sm:$0xf0]  ;;  %v8287_v30 = vld [vmem:[%s13413_s25 + $0x10] sm:$0xf]  ;;  %v8720_v42 = vor.u32 %v11779_v26, %v8719_v21 }
  0x8b   : > { %3214 = vmatpush.bf16.msrb.mxu3 %v8944_v39  ;;  %3091 = vmatmul.bf16.gmra.mxu0 %v13463_v44  ;;  %v11680_v31 = vld [vmem:[%s13413_s25 + $0x6c] sm:$0xf0]  ;;  %v11668_v32 = vld [vmem:[%s13413_s25 + $0x14] sm:$0xf]  ;;  %v11857_v36 = vld [vmem:[#allocation5 + $0x474] sm:$0xf0]  ;;  %v9096_v38 = vor.u32 %v11873_v23, %v9095_v22  ;;  %v8912_v47 = vor.u32 %v11827_v28, %v8911_v27 }
  0x8c   : > { %3110 = vmatmul.bf16.gmra.mxu1 %v13465_v50  ;;  %3158 = vmatpush.bf16.msrb.mxu0 %v8744_v58  ;;  %v8289_v33 = vld [vmem:[%s13413_s25 + $0x70] sm:$0xf0]  ;;  %v9031_v35 = vld [vmem:[#allocation5 + $0x470] sm:$0xf]  ;;  %v11905_v39 = vld [vmem:[#allocation5 + $0x5f4] sm:$0xf0] }
  0x8d   : > { %3177 = vmatpush.bf16.msrb.mxu1 %v8808_v45  ;;  %3129 = vmatmul.bf16.gmra.mxu2 %v13467_v51  ;;  %v9223_v37 = vld [vmem:[#allocation5 + $0x5f0] sm:$0xf]  ;;  %v11887_v41 = vld [vmem:[#allocation5 + $0x564] sm:$0xf0]  ;;  %v8295_v43 = vld [vmem:[%s13413_s25 + $0x18] sm:$0xf]  ;;  %v9032_v52 = vor.u32 %v11857_v36, %v9031_v35  ;;  %v13485_v1 = vor.u32 %v11668_v32, %v8289_v33 }
  0x8e   : > { %3196 = vmatpush.bf16.msrb.mxu2 %v8872_v40  ;;  %3148 = vmatmul.bf16.gmra.mxu3 %v13469_v56  ;;  %v9151_v40 = vld [vmem:[#allocation5 + $0x560] sm:$0xf]  ;;  %v11681_v45 = vld [vmem:[%s13413_s25 + $0x74] sm:$0xf0]  ;;  %v11669_v46 = vld [vmem:[%s13413_s25 + $0x1c] sm:$0xf] }
  0x8f   : > { %3215 = vmatpush.bf16.msrb.mxu3 %v8936_v59  ;;  %v8297_v49 = vld [vmem:[%s13413_s25 + $0x78] sm:$0xf0]  ;;  %v9023_v55 = vld [vmem:[#allocation5 + $0x460] sm:$0xf]  ;;  %v11855_v58 = vld [vmem:[#allocation5 + $0x464] sm:$0xf0]  ;;  %v9224_v59 = vor.u32 %v11905_v39, %v9223_v37  ;;  %v13487_v5 = vor.u32 %v11681_v45, %v8295_v43 }
  0x90   : > { %3159 = vmatpush.bf16.msrb.mxu0 %v8736_v6  ;;  %v9087_v61 = vld [vmem:[#allocation5 + $0x4e0] sm:$0xf]  ;;  %v11871_v62 = vld [vmem:[#allocation5 + $0x4e4] sm:$0xf0]  ;;  %v9143_v3 = vld [vmem:[#allocation5 + $0x550] sm:$0xf]  ;;  %v13489_v6 = vor.u32 %v11669_v46, %v8297_v49  ;;  %v9024_v7 = vor.u32 %v11855_v58, %v9023_v55 }
  0x91   : > { %3178 = vmatpush.bf16.msrb.mxu1 %v8800_v0  ;;  %v9215_v63 = vld [vmem:[#allocation5 + $0x5e0] sm:$0xf]  ;;  %v13483_v0 = vor.u32 %v11680_v31, %v8287_v30  ;;  %v11903_v2 = vld [vmem:[#allocation5 + $0x5e4] sm:$0xf0]  ;;  %v11885_v4 = vld [vmem:[#allocation5 + $0x554] sm:$0xf0] }
  0x92   : > { %3197 = vmatpush.bf16.msrb.mxu2 %v8864_v60  ;;  %v9152_v60 = vor.u32 %v11887_v41, %v9151_v40  ;;  %v11853_v10 = vld [vmem:[#allocation5 + $0x454] sm:$0xf0]  ;;  %v9216_v11 = vor.u32 %v11903_v2, %v9215_v63  ;;  %v9144_v12 = vor.u32 %v11885_v4, %v9143_v3  ;;  %v9207_v15 = vld [vmem:[#allocation5 + $0x5d0] sm:$0xf]  ;;  %v9135_v17 = vld [vmem:[#allocation5 + $0x540] sm:$0xf] }
  0x93   : > { %3216 = vmatpush.bf16.msrb.mxu3 %v8928_v8  ;;  %v9088_v8 = vor.u32 %v11871_v62, %v9087_v61  ;;  %v11869_v14 = vld [vmem:[#allocation5 + $0x4d4] sm:$0xf0]  ;;  %v11883_v18 = vld [vmem:[#allocation5 + $0x544] sm:$0xf0]  ;;  %v9007_v21 = vld [vmem:[#allocation5 + $0x440] sm:$0xf] }
  0x94   : > { %3160 = vmatpush.bf16.msrb.mxu0 %v8728_v20  ;;  %v11901_v16 = vld [vmem:[#allocation5 + $0x5d4] sm:$0xf0]  ;;  %v11851_v22 = vld [vmem:[#allocation5 + $0x444] sm:$0xf0]  ;;  %v9199_v27 = vld [vmem:[#allocation5 + $0x5c0] sm:$0xf] }
  0x95   : > { %3179 = vmatpush.bf16.msrb.mxu1 %v8792_v13  ;;  %v9079_v13 = vld [vmem:[#allocation5 + $0x4d0] sm:$0xf]  ;;  %v9208_v23 = vor.u32 %v11901_v16, %v9207_v15  ;;  %v11867_v26 = vld [vmem:[#allocation5 + $0x4c4] sm:$0xf0]  ;;  %v11881_v30 = vld [vmem:[#allocation5 + $0x534] sm:$0xf0]  ;;  %v9008_v31 = vor.u32 %v11851_v22, %v9007_v21 }
  0x96   : > { %3198 = vmatpush.bf16.msrb.mxu2 %v8856_v9  ;;  %v9015_v9 = vld [vmem:[#allocation5 + $0x450] sm:$0xf]  ;;  %v9080_v20 = vor.u32 %v11869_v14, %v9079_v13  ;;  %v11899_v28 = vld [vmem:[#allocation5 + $0x5c4] sm:$0xf0]  ;;  %v8385_v39 = vld [vmem:[%s13413_s25 + $0x130] sm:$0xf0] }
  0x97   : > { %3217 = vmatpush.bf16.msrb.mxu3 %v8920_v24  ;;  %v9016_v19 = vor.u32 %v11853_v10, %v9015_v9  ;;  %v9136_v24 = vor.u32 %v11883_v18, %v9135_v17  ;;  %v8999_v33 = vld [vmem:[#allocation5 + $0x430] sm:$0xf]  ;;  %v9200_v35 = vor.u32 %v11899_v28, %v9199_v27  ;;  %v11897_v45 = vld [vmem:[#allocation5 + $0x5b4] sm:$0xf0]  ;;  %v9119_v46 = vld [vmem:[#allocation5 + $0x520] sm:$0xf] }
  0x98   : > { %3161 = vmatpush.bf16.msrb.mxu0 %v8720_v42  ;;  %v8383_v36 = vld [vmem:[%s13413_s25 + $0xd0] sm:$0xf]  ;;  %v11865_v42 = vld [vmem:[#allocation5 + $0x4b4] sm:$0xf0]  ;;  %v11693_v55 = vld [vmem:[%s13413_s25 + $0xdc] sm:$0xf] }
  0x99   : > { %3180 = vmatpush.bf16.msrb.mxu1 %v8784_v29  ;;  %v9127_v29 = vld [vmem:[#allocation5 + $0x530] sm:$0xf]  ;;  %v8391_v49 = vld [vmem:[%s13413_s25 + $0xd8] sm:$0xf]  ;;  %v8393_v58 = vld [vmem:[%s13413_s25 + $0x138] sm:$0xf0] }
  0x9a   : > { %3199 = vmatpush.bf16.msrb.mxu2 %v8848_v25  ;;  %v9071_v25 = vld [vmem:[#allocation5 + $0x4c0] sm:$0xf]  ;;  %v11704_v37 = vld [vmem:[%s13413_s25 + $0x12c] sm:$0xf0]  ;;  %v9128_v40 = vor.u32 %v11881_v30, %v9127_v29  ;;  %v11847_v62 = vld [vmem:[#allocation5 + $0x424] sm:$0xf0]  ;;  %v13509_v14 = vor.u32 %v11693_v55, %v8393_v58 }
  0x9b   : > { %3218 = vmatpush.bf16.msrb.mxu3 %v8912_v47  ;;  %3162 = vmatmul.bf16.vlgmr.msrb.gmra.mxu0 %v13483_v0  ;;  %v9072_v32 = vor.u32 %v11867_v26, %v9071_v25  ;;  %v9063_v41 = vld [vmem:[#allocation5 + $0x4b0] sm:$0xf]  ;;  %v11879_v47 = vld [vmem:[#allocation5 + $0x524] sm:$0xf0]  ;;  %v8991_v61 = vld [vmem:[#allocation5 + $0x420] sm:$0xf] }
  0x9c   : > { %3230 = vmatpush.bf16.msra.mxu0 %v9032_v52  ;;  %3181 = vmatmul.bf16.vlgmr.msrb.gmra.mxu1 %v13485_v1  ;;  %v9191_v43 = vld [vmem:[#allocation5 + $0x5b0] sm:$0xf]  ;;  %v11705_v52 = vld [vmem:[%s13413_s25 + $0x134] sm:$0xf0]  ;;  %v9120_v2 = vor.u32 %v11879_v47, %v9119_v46  ;;  %v9055_v3 = vld [vmem:[#allocation5 + $0x4a0] sm:$0xf]  ;;  %v8992_v15 = vor.u32 %v11847_v62, %v8991_v61 }
  0x9d   : > { %3249 = vmatpush.bf16.msra.mxu1 %v9096_v38  ;;  %3200 = vmatmul.bf16.vlgmr.msrb.gmra.mxu2 %v13487_v5  ;;  %v11692_v38 = vld [vmem:[%s13413_s25 + $0xd4] sm:$0xf]  ;;  %v9192_v63 = vor.u32 %v11897_v45, %v9191_v43  ;;  %v11863_v4 = vld [vmem:[#allocation5 + $0x4a4] sm:$0xf0]  ;;  %v13507_v13 = vor.u32 %v11705_v52, %v8391_v49  ;;  %v8983_v17 = vld [vmem:[#allocation5 + $0x410] sm:$0xf] }
  0x9e   : > { %3268 = vmatpush.bf16.msra.mxu2 %v9160_v34  ;;  %3219 = vmatmul.bf16.vlgmr.msrb.gmra.mxu3 %v13489_v6  ;;  %v11849_v34 = vld [vmem:[#allocation5 + $0x434] sm:$0xf0]  ;;  %v13505_v9 = vor.u32 %v11692_v38, %v8385_v39  ;;  %v11895_v10 = vld [vmem:[#allocation5 + $0x5a4] sm:$0xf0]  ;;  %v9056_v16 = vor.u32 %v11863_v4, %v9055_v3  ;;  %v9047_v21 = vld [vmem:[#allocation5 + $0x490] sm:$0xf] }
  0x9f   : > { %3287 = vmatpush.bf16.msra.mxu3 %v9224_v59  ;;  %v9000_v59 = vor.u32 %v11849_v34, %v8999_v33  ;;  %v11845_v18 = vld [vmem:[#allocation5 + $0x414] sm:$0xf0]  ;;  %v9103_v25 = vld [vmem:[#allocation5 + $0x500] sm:$0xf]  ;;  %v11875_v26 = vld [vmem:[#allocation5 + $0x504] sm:$0xf0] }
  0xa0   : > { %3231 = vmatpush.bf16.msra.mxu0 %v9024_v7  ;;  %v9183_v7 = vld [vmem:[#allocation5 + $0x5a0] sm:$0xf]  ;;  %v11861_v22 = vld [vmem:[#allocation5 + $0x494] sm:$0xf0]  ;;  %v9415_v27 = vld [vmem:[#allocation5 + $0x770] sm:$0xf]  ;;  %v8984_v29 = vor.u32 %v11845_v18, %v8983_v17 }
  0xa1   : > { %3250 = vmatpush.bf16.msra.mxu1 %v9088_v8  ;;  %v13503_v8 = vor.u32 %v11704_v37, %v8383_v36  ;;  %v11953_v28 = vld [vmem:[#allocation5 + $0x774] sm:$0xf0]  ;;  %v9048_v30 = vor.u32 %v11861_v22, %v9047_v21  ;;  %v9039_v33 = vld [vmem:[#allocation5 + $0x480] sm:$0xf]  ;;  %v11859_v36 = vld [vmem:[#allocation5 + $0x484] sm:$0xf0] }
  0xa2   : > { %3269 = vmatpush.bf16.msra.mxu2 %v9152_v60  ;;  %v9064_v60 = vor.u32 %v11865_v42, %v9063_v41  ;;  %v9167_v37 = vld [vmem:[#allocation5 + $0x580] sm:$0xf]  ;;  %v11891_v38 = vld [vmem:[#allocation5 + $0x584] sm:$0xf0]  ;;  %v9416_v39 = vor.u32 %v11953_v28, %v9415_v27  ;;  %v11921_v41 = vld [vmem:[#allocation5 + $0x674] sm:$0xf0]  ;;  %v9040_v49 = vor.u32 %v11859_v36, %v9039_v33 }
  0xa3   : > { %3288 = vmatpush.bf16.msra.mxu3 %v9216_v11  ;;  %v9111_v11 = vld [vmem:[#allocation5 + $0x510] sm:$0xf]  ;;  %v11937_v43 = vld [vmem:[#allocation5 + $0x6f4] sm:$0xf0]  ;;  %v9407_v52 = vld [vmem:[#allocation5 + $0x760] sm:$0xf]  ;;  %v9168_v58 = vor.u32 %v11891_v38, %v9167_v37 }
  0xa4   : > { %3232 = vmatpush.bf16.msra.mxu0 %v9016_v19  ;;  %v9184_v19 = vor.u32 %v11895_v10, %v9183_v7  ;;  %v9351_v42 = vld [vmem:[#allocation5 + $0x6f0] sm:$0xf]  ;;  %v11969_v46 = vld [vmem:[#allocation5 + $0x7f4] sm:$0xf0]  ;;  %v11951_v55 = vld [vmem:[#allocation5 + $0x764] sm:$0xf0] }
  0xa5   : > { %3251 = vmatpush.bf16.msra.mxu1 %v9080_v20  ;;  %v9479_v45 = vld [vmem:[#allocation5 + $0x7f0] sm:$0xf]  ;;  %v11670_v61 = vld [vmem:[%s13413_s25 + $0x24] sm:$0xf]  ;;  %v9279_v4 = vld [vmem:[#allocation5 + $0x660] sm:$0xf] }
  0xa6   : > { %3270 = vmatpush.bf16.msra.mxu2 %v9144_v12  ;;  %v11877_v12 = vld [vmem:[#allocation5 + $0x514] sm:$0xf0]  ;;  %v9480_v3 = vor.u32 %v11969_v46, %v9479_v45  ;;  %v11919_v7 = vld [vmem:[#allocation5 + $0x664] sm:$0xf0]  ;;  %v9343_v17 = vld [vmem:[#allocation5 + $0x6e0] sm:$0xf] }
  0xa7   : > { %3289 = vmatpush.bf16.msra.mxu3 %v9208_v23  ;;  %v9112_v20 = vor.u32 %v11877_v12, %v9111_v11  ;;  %v9175_v23 = vld [vmem:[#allocation5 + $0x590] sm:$0xf]  ;;  %v8311_v10 = vld [vmem:[%s13413_s25 + $0x28] sm:$0xf]  ;;  %v11671_v12 = vld [vmem:[%s13413_s25 + $0x2c] sm:$0xf] }
  0xa8   : > { %3233 = vmatpush.bf16.msra.mxu0 %v9008_v31  ;;  %v8975_v31 = vld [vmem:[#allocation5 + $0x400] sm:$0xf]  ;;  %v11683_v11 = vld [vmem:[%s13413_s25 + $0x84] sm:$0xf0]  ;;  %v9399_v22 = vld [vmem:[#allocation5 + $0x750] sm:$0xf] }
  0xa9   : > { %3252 = vmatpush.bf16.msra.mxu1 %v9072_v32  ;;  %v11843_v32 = vld [vmem:[#allocation5 + $0x404] sm:$0xf0]  ;;  %v11917_v27 = vld [vmem:[#allocation5 + $0x654] sm:$0xf0]  ;;  %v13527_v28 = vor.u32 %v11683_v11, %v8311_v10  ;;  %v9463_v36 = vld [vmem:[#allocation5 + $0x7d0] sm:$0xf] }
  0xaa   : > { %3271 = vmatpush.bf16.msra.mxu2 %v9136_v24  ;;  %v11893_v24 = vld [vmem:[#allocation5 + $0x594] sm:$0xf0]  ;;  %v8976_v47 = vor.u32 %v11843_v32, %v8975_v31  ;;  %v11935_v18 = vld [vmem:[#allocation5 + $0x6e4] sm:$0xf0]  ;;  %v9335_v32 = vld [vmem:[#allocation5 + $0x6d0] sm:$0xf] }
  0xab   : > { %3290 = vmatpush.bf16.msra.mxu3 %v9200_v35  ;;  %3167 = vmatmul.bf16.gmra.mxu0 %v13503_v8  ;;  %v9176_v34 = vor.u32 %v11893_v24, %v9175_v23  ;;  %v9104_v35 = vor.u32 %v11875_v26, %v9103_v25  ;;  %v11967_v21 = vld [vmem:[#allocation5 + $0x7e4] sm:$0xf0]  ;;  %v11949_v25 = vld [vmem:[#allocation5 + $0x754] sm:$0xf0]  ;;  %v9271_v26 = vld [vmem:[#allocation5 + $0x650] sm:$0xf] }
  0xac   : > { %3234 = vmatpush.bf16.msra.mxu0 %v9000_v59  ;;  %3186 = vmatmul.bf16.gmra.mxu1 %v13505_v9  ;;  %v8303_v59 = vld [vmem:[%s13413_s25 + $0x20] sm:$0xf]  ;;  %v11933_v33 = vld [vmem:[#allocation5 + $0x6d4] sm:$0xf0]  ;;  %v11931_v46 = vld [vmem:[#allocation5 + $0x6c4] sm:$0xf0] }
  0xad   : > { %3253 = vmatpush.bf16.msra.mxu1 %v9064_v60  ;;  %3205 = vmatmul.bf16.gmra.mxu2 %v13507_v13  ;;  %v11682_v60 = vld [vmem:[%s13413_s25 + $0x7c] sm:$0xf0]  ;;  %v11965_v37 = vld [vmem:[#allocation5 + $0x7d4] sm:$0xf0]  ;;  %v11694_v10 = vld [vmem:[%s13413_s25 + $0xe4] sm:$0xf] }
  0xae   : > { %3272 = vmatpush.bf16.msra.mxu2 %v9128_v40  ;;  %3224 = vmatmul.bf16.gmra.mxu3 %v13509_v14  ;;  %v9287_v40 = vld [vmem:[#allocation5 + $0x670] sm:$0xf]  ;;  %v13523_v23 = vor.u32 %v11682_v60, %v8303_v59  ;;  %v9391_v38 = vld [vmem:[#allocation5 + $0x740] sm:$0xf]  ;;  %v11945_v59 = vld [vmem:[#allocation5 + $0x734] sm:$0xf0] }
  0xaf   : > { %3291 = vmatpush.bf16.msra.mxu3 %v9192_v63  ;;  %v9288_v62 = vor.u32 %v11921_v41, %v9287_v40  ;;  %v8305_v63 = vld [vmem:[%s13413_s25 + $0x80] sm:$0xf0]  ;;  %v9263_v40 = vld [vmem:[#allocation5 + $0x640] sm:$0xf]  ;;  %v11915_v41 = vld [vmem:[#allocation5 + $0x644] sm:$0xf0] }
  0xb0   : > { %3235 = vmatpush.bf16.msra.mxu0 %v8992_v15  ;;  %v9408_v15 = vor.u32 %v11951_v55, %v9407_v52  ;;  %v13525_v24 = vor.u32 %v11670_v61, %v8305_v63  ;;  %v9327_v45 = vld [vmem:[#allocation5 + $0x6c0] sm:$0xf]  ;;  %v11963_v55 = vld [vmem:[#allocation5 + $0x7c4] sm:$0xf0]  ;;  %v9255_v60 = vld [vmem:[#allocation5 + $0x630] sm:$0xf] }
  0xb1   : > { %3254 = vmatpush.bf16.msra.mxu1 %v9056_v16  ;;  %v8313_v16 = vld [vmem:[%s13413_s25 + $0x88] sm:$0xf0]  ;;  %v9455_v52 = vld [vmem:[#allocation5 + $0x7c0] sm:$0xf]  ;;  %v11913_v61 = vld [vmem:[#allocation5 + $0x634] sm:$0xf0] }
  0xb2   : > { %3273 = vmatpush.bf16.msra.mxu2 %v9120_v2  ;;  %v9352_v2 = vor.u32 %v11937_v43, %v9351_v42  ;;  %v9336_v42 = vor.u32 %v11933_v33, %v9335_v32  ;;  %v9464_v43 = vor.u32 %v11965_v37, %v9463_v36  ;;  %v9456_v63 = vor.u32 %v11963_v55, %v9455_v52  ;;  %v8401_v11 = vld [vmem:[%s13413_s25 + $0x140] sm:$0xf0]  ;;  %v9311_v32 = vld [vmem:[#allocation5 + $0x6a0] sm:$0xf]  ;;  %v11927_v33 = vld [vmem:[#allocation5 + $0x6a4] sm:$0xf0] }
  0xb3   : > { %3292 = vmatpush.bf16.msra.mxu3 %v9184_v19  ;;  %v9280_v19 = vor.u32 %v11919_v7, %v9279_v4  ;;  %v8399_v4 = vld [vmem:[%s13413_s25 + $0xe0] sm:$0xf]  ;;  %v11959_v37 = vld [vmem:[#allocation5 + $0x7a4] sm:$0xf0]  ;;  %v9303_v52 = vld [vmem:[#allocation5 + $0x690] sm:$0xf] }
  0xb4   : > { %3236 = vmatpush.bf16.msra.mxu0 %v8984_v29  ;;  %v13529_v29 = vor.u32 %v11671_v12, %v8313_v16  ;;  %v11706_v7 = vld [vmem:[%s13413_s25 + $0x13c] sm:$0xf0]  ;;  %v9447_v16 = vld [vmem:[#allocation5 + $0x7b0] sm:$0xf]  ;;  %v11925_v55 = vld [vmem:[#allocation5 + $0x694] sm:$0xf0] }
  0xb5   : > { %3255 = vmatpush.bf16.msra.mxu1 %v9048_v30  ;;  %v9344_v30 = vor.u32 %v11935_v18, %v9343_v17  ;;  %v11961_v17 = vld [vmem:[#allocation5 + $0x7b4] sm:$0xf0]  ;;  %v9375_v18 = vld [vmem:[#allocation5 + $0x720] sm:$0xf]  ;;  %s14001_s17 = scalar_lea.vmem [#allocation17], %s12516_s2  ;;  %s12517_s22 = smul.u32 384, %s13293_s16 }
  0xb6   : > { %3274 = vmatpush.bf16.msra.mxu2 %v9112_v20  ;;  %v9471_v20 = vld [vmem:[#allocation5 + $0x7e0] sm:$0xf]  ;;  %s8094_s27 = sshll.u32 %s14001_s17, 4  ;;  %s8081_s16 = scalar_lea.sflag [#allocation4], %s13407_s4  ;;  %s8095_s27 = int_to_ptr.vmem [resolvable:$true] %s8094_s27 }
  0xb7   : > { %3293 = vmatpush.bf16.msra.mxu3 %v9176_v34  ;;  %v9472_v31 = vor.u32 %v11967_v21, %v9471_v20  ;;  %v9400_v34 = vor.u32 %v11949_v25, %v9399_v22  ;;  %v9247_v20 = vld [vmem:[#allocation5 + $0x620] sm:$0xf]  ;;  %v11911_v21 = vld [vmem:[#allocation5 + $0x624] sm:$0xf0]  ;;  %s8093_s26 = scalar_lea.hbm %s14305_s9, %s12517_s22  ;;  %s13139_s23 = scalar_lea.hbm %s14305_s9, 768 }
  0xb8   : > { %3237 = vmatpush.bf16.msra.mxu0 %v8976_v47  ;;  %v8407_v22 = vld [vmem:[%s13413_s25 + $0xe8] sm:$0xf]  ;;  %v9439_v36 = vld [vmem:[#allocation5 + $0x7a0] sm:$0xf]  ;;  %s8096_s20 = sshll.u32 %s8093_s26, 4  ;;  %s8097_s20 = int_to_ptr.hbm [resolvable:$true] %s8096_s20 }
  0xb9   : > { %3256 = vmatpush.bf16.msra.mxu1 %v9040_v49  ;;  %v9264_v49 = vor.u32 %v11915_v41, %v9263_v40  ;;  %v11707_v25 = vld [vmem:[%s13413_s25 + $0x144] sm:$0xf0]  ;;  %v13545_v40 = vor.u32 %v11694_v10, %v8401_v11  ;;  %v11941_v41 = vld [vmem:[#allocation5 + $0x714] sm:$0xf0]  ;;  %v9543_v10 = vld [vmem:[#allocation5 + $0x870] sm:$0xf] }
  0xba   : > { %3275 = vmatpush.bf16.msra.mxu2 %v9104_v35  ;;  %v9272_v35 = vor.u32 %v11917_v27, %v9271_v26  ;;  %v11695_v26 = vld [vmem:[%s13413_s25 + $0xec] sm:$0xf]  ;;  %v11985_v11 = vld [vmem:[#allocation5 + $0x874] sm:$0xf0]  ;;  %s13133_s3 = sshra.s32 %s8097_s20, 4  ;;  %s13134_s3 = int_to_ptr.hbm [resolvable:$true] %s13133_s3 }
  0xbb   : > { %3294 = vmatpush.bf16.msra.mxu3 %v9168_v58  ;;  %3238 = vmatmul.bf16.vlgmr.msra.gmra.mxu0 %v13523_v23  ;;  %v9383_v58 = vld [vmem:[#allocation5 + $0x730] sm:$0xf]  ;;  %v8409_v27 = vld [vmem:[%s13413_s25 + $0x148] sm:$0xf0]  ;;  %s13135_s13 = scalar_lea.hbm %s13134_s3, 384  ;;  %p13140_p12 = scmp.lt.s32.totalorder %s13134_s3, %s14305_s9 }
  0xbc   : > { %3306 = vmatpush.bf16.msrb.mxu0 %v9288_v62  ;;  %3257 = vmatmul.bf16.vlgmr.msra.gmra.mxu1 %v13525_v24  ;;  %v9328_v62 = vor.u32 %v11931_v46, %v9327_v45  ;;  %v9384_v12 = vor.u32 %v11945_v59, %v9383_v58  ;;  %v13547_v45 = vor.u32 %v11707_v25, %v8407_v22  ;;  %v9431_v58 = vld [vmem:[#allocation5 + $0x790] sm:$0xf]  ;;  %v12001_v25 = vld [vmem:[#allocation5 + $0x8f4] sm:$0xf0]  ;;  %p13136_p1 = scmp.ne.s32.totalorder %s13134_s3, %s13135_s13  ;;  %p13141_p7 = scmp.lt.s32.totalorder %s13139_s23, %s13135_s13 }
  0xbd   : > { %3325 = vmatpush.bf16.msrb.mxu1 %v9352_v2  ;;  %3276 = vmatmul.bf16.vlgmr.msra.gmra.mxu2 %v13527_v28  ;;  %v9319_v2 = vld [vmem:[#allocation5 + $0x6b0] sm:$0xf]  ;;  %v13549_v46 = vor.u32 %v11695_v26, %v8409_v27  ;;  %v9544_v27 = vor.u32 %v11985_v11, %v9543_v10 }
  0xbe   : > { %3344 = vmatpush.bf16.msrb.mxu2 %v9416_v39  ;;  %v11947_v39 = vld [vmem:[#allocation5 + $0x744] sm:$0xf0]  ;;  %3295 = vmatmul.bf16.vlgmr.msra.gmra.mxu3 %v13529_v29  ;;  %v9607_v22 = vld [vmem:[#allocation5 + $0x8f0] sm:$0xf]  ;;  %p13137_p3 = pnand %p13136_p1, %p13375_p4  ;;  %p13142_p8 = por %p13141_p7, %p13140_p12 }
  0xbf   : > { %3363 = vmatpush.bf16.msrb.mxu3 %v9480_v3  ;;  %v9392_v47 = vor.u32 %v11947_v39, %v9391_v38  ;;  %v11929_v3 = vld [vmem:[#allocation5 + $0x6b4] sm:$0xf0]  ;;  %v9367_v38 = vld [vmem:[#allocation5 + $0x710] sm:$0xf]  ;;  %v13543_v39 = vor.u32 %v11706_v7, %v8399_v4 }
  0xc0   : > { %3307 = vmatpush.bf16.msrb.mxu0 %v9280_v19  ;;  %v11943_v19 = vld [vmem:[#allocation5 + $0x724] sm:$0xf0]  ;;  %v9368_v59 = vor.u32 %v11941_v41, %v9367_v38  ;;  %v9671_v4 = vld [vmem:[#allocation5 + $0x970] sm:$0xf]  ;;  %v12017_v7 = vld [vmem:[#allocation5 + $0x974] sm:$0xf0]  ;;  %p13138_p5 = pneg %p13137_p3 }
  0xc1   : > { %3326 = vmatpush.bf16.msrb.mxu1 %v9344_v30  ;;  %v9320_v30 = vor.u32 %v11929_v3, %v9319_v2  ;;  %v9231_v2 = vld [vmem:[#allocation5 + $0x600] sm:$0xf]  ;;  %v11907_v3 = vld [vmem:[#allocation5 + $0x604] sm:$0xf0]  ;;  %v9672_v26 = vor.u32 %v12017_v7, %v9671_v4  ;;  %v8319_v38 = vld [vmem:[%s13413_s25 + $0x30] sm:$0xf] }
  0xc2   : > { %3345 = vmatpush.bf16.msrb.mxu2 %v9408_v15  ;;  %v9256_v15 = vor.u32 %v11913_v61, %v9255_v60  ;;  %v11957_v61 = vld [vmem:[#allocation5 + $0x794] sm:$0xf0]  ;;  %v11684_v41 = vld [vmem:[%s13413_s25 + $0x8c] sm:$0xf0]  ;;  %p13143_p9 = pnand %p13142_p8, %p13138_p5 }
  0xc3   : > { %3364 = vmatpush.bf16.msrb.mxu3 %v9472_v31  ;;  %v9448_v31 = vor.u32 %v11961_v17, %v9447_v16  ;;  %v9295_v16 = vld [vmem:[#allocation5 + $0x680] sm:$0xf]  ;;  %v11923_v17 = vld [vmem:[#allocation5 + $0x684] sm:$0xf0]  ;;  %v9655_v4 = vld [vmem:[#allocation5 + $0x950] sm:$0xf] }
  0xc4   : > { %3308 = vmatpush.bf16.msrb.mxu0 %v9272_v35  ;;  %v9248_v35 = vor.u32 %v11911_v21, %v9247_v20  ;;  %v9232_v20 = vor.u32 %v11907_v3, %v9231_v2  ;;  %v11955_v21 = vld [vmem:[#allocation5 + $0x784] sm:$0xf0]  ;;  %v11673_v2 = vld [vmem:[%s13413_s25 + $0x3c] sm:$0xf]  ;;  %v12013_v7 = vld [vmem:[#allocation5 + $0x954] sm:$0xf0] }
  0xc5   : > { %3327 = vmatpush.bf16.msrb.mxu1 %v9336_v42  ;;  %v9239_v42 = vld [vmem:[#allocation5 + $0x610] sm:$0xf]  ;;  %v8329_v3 = vld [vmem:[%s13413_s25 + $0x98] sm:$0xf0] }
  0xc6   : > { %3346 = vmatpush.bf16.msrb.mxu2 %v9400_v34  ;;  %v9376_v34 = vor.u32 %v11943_v19, %v9375_v18  ;;  %v9423_v18 = vld [vmem:[#allocation5 + $0x780] sm:$0xf] }
  0xc7   : > { %3365 = vmatpush.bf16.msrb.mxu3 %v9464_v43  ;;  %v11909_v43 = vld [vmem:[#allocation5 + $0x614] sm:$0xf0] }
  0xc8   : > { %3309 = vmatpush.bf16.msrb.mxu0 %v9264_v49  ;;  %v9440_v49 = vor.u32 %v11959_v37, %v9439_v36  ;;  %v9240_v60 = vor.u32 %v11909_v43, %v9239_v42  ;;  %v9296_v36 = vor.u32 %v11923_v17, %v9295_v16  ;;  %v9424_v37 = vor.u32 %v11955_v21, %v9423_v18  ;;  %v11672_v42 = vld [vmem:[%s13413_s25 + $0x34] sm:$0xf]  ;;  %v9591_v16 = vld [vmem:[#allocation5 + $0x8d0] sm:$0xf]  ;;  %v12029_v21 = vld [vmem:[#allocation5 + $0x9d4] sm:$0xf0] }
  0xc9   : > { %3328 = vmatpush.bf16.msrb.mxu1 %v9328_v62  ;;  %v9359_v62 = vld [vmem:[#allocation5 + $0x700] sm:$0xf]  ;;  %v8321_v43 = vld [vmem:[%s13413_s25 + $0x90] sm:$0xf0]  ;;  %v13563_v17 = vor.u32 %v11684_v41, %v8319_v38  ;;  %v12027_v41 = vld [vmem:[#allocation5 + $0x9c4] sm:$0xf0] }
  0xca   : > { %3347 = vmatpush.bf16.msrb.mxu2 %v9392_v47  ;;  %v9312_v47 = vor.u32 %v11927_v33, %v9311_v32  ;;  %v9663_v32 = vld [vmem:[#allocation5 + $0x960] sm:$0xf]  ;;  %v12015_v33 = vld [vmem:[#allocation5 + $0x964] sm:$0xf0]  ;;  %v13565_v18 = vor.u32 %v11672_v42, %v8321_v43 }
  0xcb   : > { %3366 = vmatpush.bf16.msrb.mxu3 %v9456_v63  ;;  %v11939_v63 = vld [vmem:[#allocation5 + $0x704] sm:$0xf0]  ;;  %3243 = vmatmul.bf16.gmra.mxu0 %v13543_v39  ;;  %v9711_v38 = vld [vmem:[#allocation5 + $0x9c0] sm:$0xf] }
  0xcc   : > { %3310 = vmatpush.bf16.msrb.mxu0 %v9256_v15  ;;  %3262 = vmatmul.bf16.gmra.mxu1 %v13545_v40  ;;  %v9432_v15 = vor.u32 %v11957_v61, %v9431_v58  ;;  %v9360_v19 = vor.u32 %v11939_v63, %v9359_v62  ;;  %v12031_v61 = vld [vmem:[#allocation5 + $0x9e4] sm:$0xf0]  ;;  %v8327_v62 = vld [vmem:[%s13413_s25 + $0x38] sm:$0xf] }
  0xcd   : > { %3329 = vmatpush.bf16.msrb.mxu1 %v9320_v30  ;;  %3281 = vmatmul.bf16.gmra.mxu2 %v13547_v45  ;;  %v9735_v30 = vld [vmem:[#allocation5 + $0x9f0] sm:$0xf]  ;;  %v11685_v63 = vld [vmem:[%s13413_s25 + $0x94] sm:$0xf0] }
  0xce   : > { %3348 = vmatpush.bf16.msrb.mxu2 %v9384_v12  ;;  %3300 = vmatmul.bf16.gmra.mxu3 %v13549_v46  ;;  %v9304_v12 = vor.u32 %v11925_v55, %v9303_v52  ;;  %v9599_v52 = vld [vmem:[#allocation5 + $0x8e0] sm:$0xf]  ;;  %v9664_v55 = vor.u32 %v12015_v33, %v9663_v32 }
  0xcf   : > { %3367 = vmatpush.bf16.msrb.mxu3 %v9448_v31  ;;  %v12033_v31 = vld [vmem:[#allocation5 + $0x9f4] sm:$0xf0] }
  0xd0   : > { %3311 = vmatpush.bf16.msrb.mxu0 %v9248_v35  ;;  %v11983_v35 = vld [vmem:[#allocation5 + $0x864] sm:$0xf0] }
  0xd1   : > { %3330 = vmatpush.bf16.msrb.mxu1 %v9312_v47  ;;  %v9608_v47 = vor.u32 %v12001_v25, %v9607_v22  ;;  %v13567_v22 = vor.u32 %v11685_v63, %v8327_v62  ;;  %v13569_v25 = vor.u32 %v11673_v2, %v8329_v3  ;;  %v9703_v62 = vld [vmem:[#allocation5 + $0x9b0] sm:$0xf]  ;;  %v12025_v63 = vld [vmem:[#allocation5 + $0x9b4] sm:$0xf0] }
  0xd2   : > { %3349 = vmatpush.bf16.msrb.mxu2 %v9376_v34  ;;  %v9535_v34 = vld [vmem:[#allocation5 + $0x860] sm:$0xf] }
  0xd3   : > { %3368 = vmatpush.bf16.msrb.mxu3 %v9440_v49  ;;  %v9736_v49 = vor.u32 %v12033_v31, %v9735_v30  ;;  %v9536_v58 = vor.u32 %v11983_v35, %v9535_v34  ;;  %14347 = vst [vmem:[#allocation24_spill] sm:$0xff] %v13567_v22  ;;  %v9647_v30 = vld [vmem:[#allocation5 + $0x940] sm:$0xf]  ;;  %v12011_v31 = vld [vmem:[#allocation5 + $0x944] sm:$0xf0] }
  0xd4   : > { %3312 = vmatpush.bf16.msrb.mxu0 %v9240_v60  ;;  %v9727_v60 = vld [vmem:[#allocation5 + $0x9e0] sm:$0xf]  ;;  %14348 = vst [vmem:[#allocation25_spill] sm:$0xff] %v13569_v25  ;;  %v11979_v35 = vld [vmem:[#allocation5 + $0x844] sm:$0xf0]  ;;  %v9648_v42 = vor.u32 %v12011_v31, %v9647_v30 }
  0xd5   : > { %3331 = vmatpush.bf16.msrb.mxu1 %v9304_v12  ;;  %v9728_v11 = vor.u32 %v12031_v61, %v9727_v60  ;;  %v9527_v12 = vld [vmem:[#allocation5 + $0x850] sm:$0xf]  ;;  %v9519_v34 = vld [vmem:[#allocation5 + $0x840] sm:$0xf]  ;;  %v11993_v61 = vld [vmem:[#allocation5 + $0x8b4] sm:$0xf0] }
  0xd6   : > { %3350 = vmatpush.bf16.msrb.mxu2 %v9368_v59  ;;  %v11999_v59 = vld [vmem:[#allocation5 + $0x8e4] sm:$0xf0]  ;;  %v9520_v43 = vor.u32 %v11979_v35, %v9519_v34  ;;  %v9575_v60 = vld [vmem:[#allocation5 + $0x8b0] sm:$0xf]  ;;  %v9695_v30 = vld [vmem:[#allocation5 + $0x9a0] sm:$0xf] }
  0xd7   : > { %3369 = vmatpush.bf16.msrb.mxu3 %v9432_v15  ;;  %v9600_v10 = vor.u32 %v11999_v59, %v9599_v52  ;;  %v11981_v15 = vld [vmem:[#allocation5 + $0x854] sm:$0xf0]  ;;  %v12023_v31 = vld [vmem:[#allocation5 + $0x9a4] sm:$0xf0]  ;;  %v11697_v34 = vld [vmem:[%s13413_s25 + $0xfc] sm:$0xf] }
  0xd8   : > { %3313 = vmatpush.bf16.msrb.mxu0 %v9232_v20  ;;  %v9719_v20 = vld [vmem:[#allocation5 + $0x9d0] sm:$0xf]  ;;  %v11977_v59 = vld [vmem:[#allocation5 + $0x834] sm:$0xf0]  ;;  %v8425_v35 = vld [vmem:[%s13413_s25 + $0x158] sm:$0xf0] }
  0xd9   : > { %3332 = vmatpush.bf16.msrb.mxu1 %v9296_v36  ;;  %v9720_v33 = vor.u32 %v12029_v21, %v9719_v20  ;;  %v9583_v36 = vld [vmem:[#allocation5 + $0x8c0] sm:$0xf]  ;;  %v11975_v21 = vld [vmem:[#allocation5 + $0x824] sm:$0xf0] }
  0xda   : > { %3351 = vmatpush.bf16.msrb.mxu2 %v9360_v19  ;;  %v11997_v19 = vld [vmem:[#allocation5 + $0x8d4] sm:$0xf0]  ;;  %v9503_v20 = vld [vmem:[#allocation5 + $0x820] sm:$0xf] }
  0xdb   : > { %3370 = vmatpush.bf16.msrb.mxu3 %v9424_v37  ;;  %v9592_v32 = vor.u32 %v11997_v19, %v9591_v16  ;;  %3314 = vmatmul.bf16.vlgmr.msrb.gmra.mxu0 %v13563_v17  ;;  %v11995_v37 = vld [vmem:[#allocation5 + $0x8c4] sm:$0xf0]  ;;  %v9576_v16 = vor.u32 %v11993_v61, %v9575_v60  ;;  %v9704_v19 = vor.u32 %v12025_v63, %v9703_v62  ;;  %v9687_v60 = vld [vmem:[#allocation5 + $0x990] sm:$0xf]  ;;  %v12021_v61 = vld [vmem:[#allocation5 + $0x994] sm:$0xf0] }
  0xdc   : > { %3382 = vmatpush.bf16.msra.mxu0 %v9544_v27  ;;  %v9528_v27 = vor.u32 %v11981_v15, %v9527_v12  ;;  %3333 = vmatmul.bf16.vlgmr.msrb.gmra.mxu1 %v13565_v18  ;;  %v9584_v52 = vor.u32 %v11995_v37, %v9583_v36  ;;  %v11696_v12 = vld [vmem:[%s13413_s25 + $0xf4] sm:$0xf]  ;;  %v9504_v37 = vor.u32 %v11975_v21, %v9503_v20  ;;  %v9679_v20 = vld [vmem:[#allocation5 + $0x980] sm:$0xf]  ;;  %v12019_v21 = vld [vmem:[#allocation5 + $0x984] sm:$0xf0] }
  0xdd   : > { %3401 = vmatpush.bf16.msra.mxu1 %v9608_v47  ;;  %3352 = vmatmul.bf16.vlgmr.msrb.gmra.mxu2 %v13567_v22  ;;  %v9639_v47 = vld [vmem:[#allocation5 + $0x930] sm:$0xf]  ;;  %v8417_v15 = vld [vmem:[%s13413_s25 + $0x150] sm:$0xf0]  ;;  %v13589_v63 = vor.u32 %v11697_v34, %v8425_v35  ;;  %v12065_v35 = vld [vmem:[#allocation5 + $0xaf4] sm:$0xf0] }
  0xde   : > { %3420 = vmatpush.bf16.msra.mxu2 %v9672_v26  ;;  %v9656_v26 = vor.u32 %v12013_v7, %v9655_v4  ;;  %3371 = vmatmul.bf16.vlgmr.msrb.gmra.mxu3 %v13569_v25  ;;  %v9631_v4 = vld [vmem:[#allocation5 + $0x920] sm:$0xf]  ;;  %v12007_v7 = vld [vmem:[#allocation5 + $0x924] sm:$0xf0] }
  0xdf   : > { %3439 = vmatpush.bf16.msra.mxu3 %v9736_v49  ;;  %v12009_v49 = vld [vmem:[#allocation5 + $0x934] sm:$0xf0]  ;;  %v9632_v36 = vor.u32 %v12007_v7, %v9631_v4  ;;  %14352 = vst [vmem:[#allocation29_spill] sm:$0xff] %v13589_v63  ;;  %v12003_v7 = vld [vmem:[#allocation5 + $0x904] sm:$0xf0] }
  0xe0   : > { %3383 = vmatpush.bf16.msra.mxu0 %v9536_v58  ;;  %v9511_v58 = vld [vmem:[#allocation5 + $0x830] sm:$0xf]  ;;  %v9640_v2 = vor.u32 %v12009_v49, %v9639_v47  ;;  %v11973_v49 = vld [vmem:[#allocation5 + $0x814] sm:$0xf0] }
  0xe1   : > { %3402 = vmatpush.bf16.msra.mxu1 %v9600_v10  ;;  %v9512_v3 = vor.u32 %v11977_v59, %v9511_v58  ;;  %v8415_v10 = vld [vmem:[%s13413_s25 + $0xf0] sm:$0xf]  ;;  %v13585_v58 = vor.u32 %v11696_v12, %v8417_v15  ;;  %v11989_v59 = vld [vmem:[#allocation5 + $0x894] sm:$0xf0]  ;;  %v9551_v12 = vld [vmem:[#allocation5 + $0x880] sm:$0xf] }
  0xe2   : > { %3421 = vmatpush.bf16.msra.mxu2 %v9664_v55  ;;  %v9712_v55 = vor.u32 %v12027_v41, %v9711_v38  ;;  %v9623_v38 = vld [vmem:[#allocation5 + $0x910] sm:$0xf]  ;;  %v12005_v41 = vld [vmem:[#allocation5 + $0x914] sm:$0xf0]  ;;  %v11987_v15 = vld [vmem:[#allocation5 + $0x884] sm:$0xf0] }
  0xe3   : > { %3440 = vmatpush.bf16.msra.mxu3 %v9728_v11  ;;  %v11708_v11 = vld [vmem:[%s13413_s25 + $0x14c] sm:$0xf0]  ;;  %14350 = vst [vmem:[#allocation27_spill] sm:$0xff] %v13585_v58 }
  0xe4   : > { %3384 = vmatpush.bf16.msra.mxu0 %v9528_v27  ;;  %v11991_v27 = vld [vmem:[#allocation5 + $0x8a4] sm:$0xf0]  ;;  %v9495_v47 = vld [vmem:[#allocation5 + $0x810] sm:$0xf] }
  0xe5   : > { %3403 = vmatpush.bf16.msra.mxu1 %v9592_v32  ;;  %v8423_v32 = vld [vmem:[%s13413_s25 + $0xf8] sm:$0xf]  ;;  %v9496_v4 = vor.u32 %v11973_v49, %v9495_v47  ;;  %v9919_v49 = vld [vmem:[#allocation5 + $0xb60] sm:$0xf] }
  0xe6   : > { %3422 = vmatpush.bf16.msra.mxu2 %v9656_v26  ;;  %v9567_v26 = vld [vmem:[#allocation5 + $0x8a0] sm:$0xf] }
  0xe7   : > { %3441 = vmatpush.bf16.msra.mxu3 %v9720_v33  ;;  %v11709_v33 = vld [vmem:[%s13413_s25 + $0x154] sm:$0xf0] }
  0xe8   : > { %3385 = vmatpush.bf16.msra.mxu0 %v9520_v43  ;;  %v9696_v43 = vor.u32 %v12023_v31, %v9695_v30  ;;  %v13587_v62 = vor.u32 %v11709_v33, %v8423_v32  ;;  %v9799_v30 = vld [vmem:[#allocation5 + $0xa70] sm:$0xf]  ;;  %v12049_v31 = vld [vmem:[#allocation5 + $0xa74] sm:$0xf0] }
  0xe9   : > { %3404 = vmatpush.bf16.msra.mxu1 %v9584_v52  ;;  %v9559_v52 = vld [vmem:[#allocation5 + $0x890] sm:$0xf]  ;;  %v9800_v47 = vor.u32 %v12049_v31, %v9799_v30  ;;  %v11675_v30 = vld [vmem:[%s13413_s25 + $0x4c] sm:$0xf] }
  0xea   : > { %3423 = vmatpush.bf16.msra.mxu2 %v9648_v42  ;;  %v9568_v42 = vor.u32 %v11991_v27, %v9567_v26  ;;  %14351 = vst [vmem:[#allocation28_spill] sm:$0xff] %v13587_v62  ;;  %v9927_v26 = vld [vmem:[#allocation5 + $0xb70] sm:$0xf]  ;;  %v12081_v27 = vld [vmem:[#allocation5 + $0xb74] sm:$0xf0] }
  0xeb   : > { %3442 = vmatpush.bf16.msra.mxu3 %v9712_v55  ;;  %v13583_v55 = vor.u32 %v11708_v11, %v8415_v10  ;;  %v9560_v10 = vor.u32 %v11989_v59, %v9559_v52  ;;  %v9688_v11 = vor.u32 %v12021_v61, %v9687_v60  ;;  %v9863_v32 = vld [vmem:[#allocation5 + $0xaf0] sm:$0xf]  ;;  %v12079_v52 = vld [vmem:[#allocation5 + $0xb64] sm:$0xf0]  ;;  %v9791_v61 = vld [vmem:[#allocation5 + $0xa60] sm:$0xf] }
  0xec   : > { %3386 = vmatpush.bf16.msra.mxu0 %v9512_v3  ;;  %v9624_v3 = vor.u32 %v12005_v41, %v9623_v38  ;;  %3338 = vmatmul.bf16.gmra.mxu1 %v13585_v58  ;;  %v9552_v38 = vor.u32 %v11987_v15, %v9551_v12  ;;  %v9680_v41 = vor.u32 %v12019_v21, %v9679_v20  ;;  %v11674_v12 = vld [vmem:[%s13413_s25 + $0x44] sm:$0xf] }
  0xed   : > { %3405 = vmatpush.bf16.msra.mxu1 %v9576_v16  ;;  %14349 = vst [vmem:[#allocation26_spill] sm:$0xff] %v13583_v55  ;;  %v9487_v16 = vld [vmem:[#allocation5 + $0x800] sm:$0xf]  ;;  %3319 = vmatmul.bf16.gmra.mxu0 %v13583_v55  ;;  %v9864_v59 = vor.u32 %v12065_v35, %v9863_v32  ;;  %v8337_v15 = vld [vmem:[%s13413_s25 + $0xa0] sm:$0xf0]  ;;  %v9920_v20 = vor.u32 %v12079_v52, %v9919_v49 }
  0xee   : > { %3424 = vmatpush.bf16.msra.mxu2 %v9640_v2  ;;  %v9615_v2 = vld [vmem:[#allocation5 + $0x900] sm:$0xf]  ;;  %3376 = vmatmul.bf16.gmra.mxu3 %v13589_v63  ;;  %v12077_v35 = vld [vmem:[#allocation5 + $0xb54] sm:$0xf0]  ;;  %v9975_v49 = vld [vmem:[#allocation5 + $0xbd0] sm:$0xf] }
  0xef   : > { %3443 = vmatpush.bf16.msra.mxu3 %v9704_v19  ;;  %v11971_v19 = vld [vmem:[#allocation5 + $0x804] sm:$0xf0]  ;;  %3357 = vmatmul.bf16.gmra.mxu2 %v13587_v62  ;;  %v9616_v33 = vor.u32 %v12003_v7, %v9615_v2  ;;  %v9983_v7 = vld [vmem:[#allocation5 + $0xbe0] sm:$0xf]  ;;  %v12093_v52 = vld [vmem:[#allocation5 + $0xbd4] sm:$0xf0] }
  0xf0   : > { %3387 = vmatpush.bf16.msra.mxu0 %v9504_v37  ;;  %v9488_v34 = vor.u32 %v11971_v19, %v9487_v16  ;;  %v12097_v37 = vld [vmem:[#allocation5 + $0xbf4] sm:$0xf0]  ;;  %v12047_v2 = vld [vmem:[#allocation5 + $0xa64] sm:$0xf0]  ;;  %v9815_v63 = vld [vmem:[#allocation5 + $0xa90] sm:$0xf] }
  0xf1   : > { %3406 = vmatpush.bf16.msra.mxu1 %v9568_v42  ;;  %v912_v42 = vld [vmem:[#allocation7] sm:$0x3]  ;;  %v12095_v16 = vld [vmem:[#allocation5 + $0xbe4] sm:$0xf0]  ;;  %v9792_v21 = vor.u32 %v12047_v2, %v9791_v61 }
  0xf2   : > { %3425 = vmatpush.bf16.msra.mxu2 %v9632_v36  ;;  %v9991_v36 = vld [vmem:[#allocation5 + $0xbf0] sm:$0xf]  ;;  %v13595_v19 = vperm.slane %v912_v42, 0  ;;  %v9984_v32 = vor.u32 %v12095_v16, %v9983_v7  ;;  %v9903_v7 = vld [vmem:[#allocation5 + $0xb40] sm:$0xf] }
  0xf3   : > { %3444 = vmatpush.bf16.msra.mxu3 %v9696_v43  ;;  %v9928_v43 = vor.u32 %v12081_v27, %v9927_v26  ;;  %v9992_v60 = vor.u32 %v12097_v37, %v9991_v36  ;;  %v8343_v26 = vld [vmem:[%s13413_s25 + $0x48] sm:$0xf]  ;;  %v9783_v36 = vld [vmem:[#allocation5 + $0xa50] sm:$0xf]  ;;  %v12045_v37 = vld [vmem:[#allocation5 + $0xa54] sm:$0xf0] }
  0xf4   : > { %3388 = vmatpush.bf16.msra.mxu0 %v9496_v4  ;;  %v12063_v4 = vld [vmem:[#allocation5 + $0xae4] sm:$0xf0] }
  0xf5   : > { %3407 = vmatpush.bf16.msra.mxu1 %v9560_v10  ;;  %v8335_v10 = vld [vmem:[%s13413_s25 + $0x40] sm:$0xf]  ;;  %v11687_v27 = vld [vmem:[%s13413_s25 + $0xa4] sm:$0xf0] }
  0xf6   : > { %3426 = vmatpush.bf16.msra.mxu2 %v9624_v3  ;;  %v9855_v3 = vld [vmem:[#allocation5 + $0xae0] sm:$0xf]  ;;  %v13610_v61 = vor.u32 %v11687_v27, %v8343_v26  ;;  %v12075_v16 = vld [vmem:[#allocation5 + $0xb44] sm:$0xf0] }
  0xf7   : > { %3445 = vmatpush.bf16.msra.mxu3 %v9688_v11  ;;  %v11686_v11 = vld [vmem:[%s13413_s25 + $0x9c] sm:$0xf0]  ;;  %v9856_v31 = vor.u32 %v12063_v4, %v9855_v3  ;;  %v9784_v4 = vor.u32 %v12045_v37, %v9783_v36  ;;  %v12059_v26 = vld [vmem:[#allocation5 + $0xac4] sm:$0xf0] }
  0xf8   : > { %3389 = vmatpush.bf16.msra.mxu0 %v9488_v34  ;;  %v9911_v34 = vld [vmem:[#allocation5 + $0xb50] sm:$0xf]  ;;  %v13605_v42 = vor.u32 %v11686_v11, %v8335_v10  ;;  %14355 = vst [vmem:[#allocation32_spill] sm:$0xff] %v13610_v61  ;;  %v9967_v27 = vld [vmem:[#allocation5 + $0xbc0] sm:$0xf] }
  0xf9   : > { %3408 = vmatpush.bf16.msra.mxu1 %v9552_v38  ;;  %v9847_v38 = vld [vmem:[#allocation5 + $0xad0] sm:$0xf]  ;;  %v9912_v3 = vor.u32 %v12077_v35, %v9911_v34  ;;  %v12073_v34 = vld [vmem:[#allocation5 + $0xb34] sm:$0xf0] }
  0xfa   : > { %3427 = vmatpush.bf16.msra.mxu2 %v9616_v33  ;;  %v8345_v33 = vld [vmem:[%s13413_s25 + $0xa8] sm:$0xf0]  ;;  %14353 = vst [vmem:[#allocation30_spill] sm:$0xff] %v13605_v42 }
  0xfb   : > { %3446 = vmatpush.bf16.msra.mxu3 %v9680_v41  ;;  %v3087_v41 = vpop.f32.mrf.mxu0  ;;  %v13612_v2 = vor.u32 %v11675_v30, %v8345_v33  ;;  %v12091_v30 = vld [vmem:[#allocation5 + $0xbc4] sm:$0xf0]  ;;  %v9895_v33 = vld [vmem:[#allocation5 + $0xb30] sm:$0xf] }
  0xfc   : > { %3458 = vmatpush.bf16.msrb.mxu0 %v9800_v47  ;;  %v12061_v47 = vld [vmem:[#allocation5 + $0xad4] sm:$0xf0]  ;;  %v9968_v37 = vor.u32 %v12091_v30, %v9967_v27  ;;  %v11710_v27 = vld [vmem:[%s13413_s25 + $0x15c] sm:$0xf0]  ;;  %v11698_v30 = vld [vmem:[%s13413_s25 + $0x104] sm:$0xf] }
  0xfd   : > { %3477 = vmatpush.bf16.msrb.mxu1 %v9864_v59  ;;  %v3088_v59 = vadd.f32 %v3087_v41, %v13595_v19  ;;  %14356 = vst [vmem:[#allocation33_spill] sm:$0xff] %v13612_v2  ;;  %v9848_v11 = vor.u32 %v12061_v47, %v9847_v38  ;;  %3390 = vmatmul.bf16.vlgmr.msra.gmra.mxu0 %v13605_v42  ;;  %v9767_v38 = vld [vmem:[#allocation5 + $0xa30] sm:$0xf]  ;;  %v12041_v41 = vld [vmem:[#allocation5 + $0xa34] sm:$0xf0] }
  0xfe   : > { %3496 = vmatpush.bf16.msrb.mxu2 %v9928_v43  ;;  %v13607_v43 = vor.u32 %v11674_v12, %v8337_v15  ;;  %v9976_v12 = vor.u32 %v12093_v52, %v9975_v49  ;;  %v9775_v15 = vld [vmem:[#allocation5 + $0xa40] sm:$0xf]  ;;  %3447 = vmatmul.bf16.vlgmr.msra.gmra.mxu3 %v13612_v2  ;;  %v9831_v47 = vld [vmem:[#allocation5 + $0xab0] sm:$0xf]  ;;  %v11711_v2 = vld [vmem:[%s13413_s25 + $0x164] sm:$0xf0] }
  0xff   : > { %3515 = vmatpush.bf16.msrb.mxu3 %v9992_v60  ;;  %v3106_v60 = vpop.f32.mrf.mxu1  ;;  %3428 = vmatmul.bf16.vlgmr.msra.gmra.mxu2 %v13610_v61  ;;  %v9879_v61 = vld [vmem:[#allocation5 + $0xb10] sm:$0xf] }
 0x100   : > { %14354 = vst [vmem:[#allocation31_spill] sm:$0xff] %v13607_v43  ;;  %3459 = vmatpush.bf16.msrb.mxu0 %v9792_v21  ;;  %v3107_v10 = vadd.f32 %v3106_v60, %v3088_v59  ;;  %v9839_v21 = vld [vmem:[#allocation5 + $0xac0] sm:$0xf]  ;;  %3409 = vmatmul.bf16.vlgmr.msra.gmra.mxu1 %v13607_v43  ;;  %v3125_v35 = vpop.f32.mrf.mxu2  ;;  %v12057_v60 = vld [vmem:[#allocation5 + $0xab4] sm:$0xf0] }
 0x101   : > { %3478 = vmatpush.bf16.msrb.mxu1 %v9856_v31  ;;  %v9904_v31 = vor.u32 %v12075_v16, %v9903_v7  ;;  %v9840_v36 = vor.u32 %v12059_v26, %v9839_v21  ;;  %v3144_v52 = vpop.f32.mrf.mxu3  ;;  %v8431_v26 = vld [vmem:[%s13413_s25 + $0x100] sm:$0xf]  ;;  %v12069_v43 = vld [vmem:[#allocation5 + $0xb14] sm:$0xf0] }
 0x102   : > { %3497 = vmatpush.bf16.msrb.mxu2 %v9920_v20  ;;  %v12043_v20 = vld [vmem:[#allocation5 + $0xa44] sm:$0xf0]  ;;  %v3126_v49 = vadd.f32 %v3125_v35, %v3107_v10  ;;  %v8433_v35 = vld [vmem:[%s13413_s25 + $0x160] sm:$0xf0]  ;;  %v13629_v25 = vor.u32 %v11710_v27, %v8431_v26  ;;  %v9743_v27 = vld [vmem:[#allocation5 + $0xa00] sm:$0xf] }
 0x103   : > { %3516 = vmatpush.bf16.msrb.mxu3 %v9984_v32  ;;  %v9776_v32 = vor.u32 %v12043_v20, %v9775_v15  ;;  %v3089_v59 = vpop.f32.mrf.mxu0  ;;  %v9768_v15 = vor.u32 %v12041_v41, %v9767_v38  ;;  %v9887_v20 = vld [vmem:[#allocation5 + $0xb20] sm:$0xf]  ;;  %v12071_v10 = vld [vmem:[#allocation5 + $0xb24] sm:$0xf0]  ;;  %v13631_v22 = vor.u32 %v11698_v30, %v8433_v35 }
 0x104   : > { %3460 = vmatpush.bf16.msrb.mxu0 %v9784_v4  ;;  %v12089_v4 = vld [vmem:[#allocation5 + $0xbb4] sm:$0xf0]  ;;  %v3090_v7 = vadd.f32 %v3089_v59, %v13595_v19  ;;  %v9832_v59 = vor.u32 %v12057_v60, %v9831_v47  ;;  %v12087_v38 = vld [vmem:[#allocation5 + $0xba4] sm:$0xf0]  ;;  %14357 = vst [vmem:[#allocation34_spill] sm:$0xff] %v13629_v25 }
 0x105   : > { %3479 = vmatpush.bf16.msrb.mxu1 %v9848_v11  ;;  %v13619_v11 = vadd.f32 %v3144_v52, %v3126_v49  ;;  %v9759_v52 = vld [vmem:[#allocation5 + $0xa20] sm:$0xf]  ;;  %v8439_v41 = vld [vmem:[%s13413_s25 + $0x108] sm:$0xf]  ;;  %14358 = vst [vmem:[#allocation35_spill] sm:$0xff] %v13631_v22 }
 0x106   : > { %3498 = vmatpush.bf16.msrb.mxu2 %v9912_v3  ;;  %v9959_v3 = vld [vmem:[#allocation5 + $0xbb0] sm:$0xf]  ;;  %v12067_v26 = vld [vmem:[#allocation5 + $0xb04] sm:$0xf0] }
 0x107   : > { %3517 = vmatpush.bf16.msrb.mxu3 %v9976_v12  ;;  %v3108_v16 = vpop.f32.mrf.mxu1  ;;  %v9896_v12 = vor.u32 %v12073_v34, %v9895_v33  ;;  %v9960_v49 = vor.u32 %v12089_v4, %v9959_v3  ;;  %v12055_v33 = vld [vmem:[#allocation5 + $0xaa4] sm:$0xf0]  ;;  %v9951_v34 = vld [vmem:[#allocation5 + $0xba0] sm:$0xf]  ;;  %v9751_v3 = vld [vmem:[#allocation5 + $0xa10] sm:$0xf] }
 0x108   : > { %3461 = vmatpush.bf16.msrb.mxu0 %v9776_v32  ;;  %v3109_v21 = vadd.f32 %v3108_v16, %v3090_v7  ;;  %v9823_v32 = vld [vmem:[#allocation5 + $0xaa0] sm:$0xf]  ;;  %v11699_v7 = vld [vmem:[%s13413_s25 + $0x10c] sm:$0xf]  ;;  %v3127_v42 = vpop.f32.mrf.mxu2  ;;  %v9952_v60 = vor.u32 %v12087_v38, %v9951_v34  ;;  %v12037_v4 = vld [vmem:[#allocation5 + $0xa14] sm:$0xf0] }
 0x109   : > { %3480 = vmatpush.bf16.msrb.mxu1 %v9840_v36  ;;  %v8441_v16 = vld [vmem:[%s13413_s25 + $0x168] sm:$0xf0]  ;;  %v9888_v36 = vor.u32 %v12071_v10, %v9887_v20  ;;  %v9824_v47 = vor.u32 %v12055_v33, %v9823_v32  ;;  %v3146_v58 = vpop.f32.mrf.mxu3  ;;  %v12085_v20 = vld [vmem:[#allocation5 + $0xb94] sm:$0xf0]  ;;  %v12035_v30 = vld [vmem:[#allocation5 + $0xa04] sm:$0xf0] }
 0x10a   : > { %3499 = vmatpush.bf16.msrb.mxu2 %v9904_v31  ;;  %v12039_v31 = vld [vmem:[#allocation5 + $0xa24] sm:$0xf0]  ;;  %v3128_v62 = vadd.f32 %v3127_v42, %v3109_v21  ;;  %v9880_v42 = vor.u32 %v12069_v43, %v9879_v61  ;;  %v9752_v21 = vor.u32 %v12037_v4, %v9751_v3  ;;  %v9807_v34 = vld [vmem:[#allocation5 + $0xa80] sm:$0xf]  ;;  %v11728_v43 = vld [vmem:[#allocation5 + $0x74] sm:$0xf] }
 0x10b   : > { %3518 = vmatpush.bf16.msrb.mxu3 %v9968_v37  ;;  %v9760_v37 = vor.u32 %v12039_v31, %v9759_v52  ;;  %v3092_v55 = vpop.f32.mrf.mxu0  ;;  %v9871_v31 = vld [vmem:[#allocation5 + $0xb00] sm:$0xf]  ;;  %v8521_v61 = vld [vmem:[#allocation5 + $0x78] sm:$0xf0] }
 0x10c   : > { %3462 = vmatpush.bf16.msrb.mxu0 %v9768_v15  ;;  %v9943_v15 = vld [vmem:[#allocation5 + $0xb90] sm:$0xf]  ;;  %v3093_v10 = vadd.f32 %v3092_v55, %v13595_v19  ;;  %v13638_v32 = vadd.f32 %v3146_v58, %v3128_v62  ;;  %v9935_v38 = vld [vmem:[#allocation5 + $0xb80] sm:$0xf]  ;;  %v12083_v58 = vld [vmem:[#allocation5 + $0xb84] sm:$0xf0] }
 0x10d   : > { %3481 = vmatpush.bf16.msrb.mxu1 %v9832_v59  ;;  %v13634_v59 = vor.u32 %v11711_v2, %v8439_v41  ;;  %v9944_v55 = vor.u32 %v12085_v20, %v9943_v15  ;;  %v12051_v2 = vld [vmem:[#allocation5 + $0xa84] sm:$0xf0]  ;;  %3395 = vmatmul.bf16.gmra.mxu0 %v13629_v25  ;;  %v11760_v62 = vld [vmem:[#allocation5 + $0x174] sm:$0xf]  ;;  %v8649_v41 = vld [vmem:[#allocation5 + $0x178] sm:$0xf0]  ;;  %v9936_v4 = vor.u32 %v12083_v58, %v9935_v38 }
 0x10e   : > { %3500 = vmatpush.bf16.msrb.mxu2 %v9896_v12  ;;  %v12053_v12 = vld [vmem:[#allocation5 + $0xa94] sm:$0xf0]  ;;  %v9808_v3 = vor.u32 %v12051_v2, %v9807_v34  ;;  %v11774_v34 = vld [vmem:[#allocation5 + $0x1e4] sm:$0xf]  ;;  %v8351_v38 = vld [vmem:[%s13413_s25 + $0x50] sm:$0xf] }
 0x10f   : > { %3519 = vmatpush.bf16.msrb.mxu3 %v9960_v49  ;;  %v3111_v52 = vpop.f32.mrf.mxu1  ;;  %14359 = vst [vmem:[#allocation36_spill] sm:$0xff] %v13634_v59  ;;  %v13636_v49 = vor.u32 %v11699_v7, %v8441_v16  ;;  %v9816_v33 = vor.u32 %v12053_v12, %v9815_v63  ;;  %3433 = vmatmul.bf16.gmra.mxu2 %v13634_v59  ;;  %v11744_v7 = vld [vmem:[#allocation5 + $0xf4] sm:$0xf]  ;;  %v8641_v59 = vld [vmem:[#allocation5 + $0x168] sm:$0xf0] }
 0x110   : > { %3463 = vmatpush.bf16.msrb.mxu0 %v9760_v37  ;;  %v3112_v35 = vadd.f32 %v3111_v52, %v3093_v10  ;;  %3414 = vmatmul.bf16.gmra.mxu1 %v13631_v22  ;;  %v9872_v63 = vor.u32 %v12067_v26, %v9871_v31  ;;  %v9744_v16 = vor.u32 %v12035_v30, %v9743_v27  ;;  %v11776_v37 = vld [vmem:[#allocation5 + $0x1f4] sm:$0xf]  ;;  %v11726_v27 = vld [vmem:[#allocation5 + $0x64] sm:$0xf]  ;;  %v8513_v30 = vld [vmem:[#allocation5 + $0x68] sm:$0xf0] }
 0x111   : > { %14360 = vst [vmem:[#allocation37_spill] sm:$0xff] %v13636_v49  ;;  %3482 = vmatpush.bf16.msrb.mxu1 %v9824_v47  ;;  %3452 = vmatmul.bf16.gmra.mxu3 %v13636_v49  ;;  %v8713_v47 = vld [vmem:[#allocation5 + $0x1f8] sm:$0xf0]  ;;  %v3149_v15 = vpop.f32.mrf.mxu3  ;;  %v8652_v10 = vor.u32 %v11760_v62, %v8649_v41  ;;  %v8524_v52 = vor.u32 %v11728_v43, %v8521_v61  ;;  %v11758_v49 = vld [vmem:[#allocation5 + $0x164] sm:$0xf] }
 0x112   : > { %3501 = vmatpush.bf16.msrb.mxu2 %v9888_v36  ;;  %v8585_v36 = vld [vmem:[#allocation5 + $0xf8] sm:$0xf0]  ;;  %v8716_v26 = vor.u32 %v11776_v37, %v8713_v47  ;;  %v11688_v58 = vld [vmem:[%s13413_s25 + $0xac] sm:$0xf0]  ;;  %v11676_v62 = vld [vmem:[%s13413_s25 + $0x54] sm:$0xf]  ;;  %v8644_v43 = vor.u32 %v11758_v49, %v8641_v59  ;;  %v8516_v61 = vor.u32 %v11726_v27, %v8513_v30 }
 0x113   : > { %3520 = vmatpush.bf16.msrb.mxu3 %v9952_v60  ;;  %v3130_v60 = vpop.f32.mrf.mxu2  ;;  %v3094_v20 = vpop.f32.mrf.mxu0  ;;  %v8353_v41 = vld [vmem:[%s13413_s25 + $0xb0] sm:$0xf0]  ;;  %v8361_v47 = vld [vmem:[%s13413_s25 + $0xb8] sm:$0xf0] }
 0x114   : > { %3464 = vmatpush.bf16.msrb.mxu0 %v9752_v21  ;;  %v3131_v12 = vadd.f32 %v3130_v60, %v3112_v35  ;;  %v8588_v21 = vor.u32 %v11744_v7, %v8585_v36  ;;  %v8577_v35 = vld [vmem:[#allocation5 + $0xe8] sm:$0xf0]  ;;  %v8359_v7 = vld [vmem:[%s13413_s25 + $0x58] sm:$0xf]  ;;  %v11756_v60 = vld [vmem:[#allocation5 + $0x154] sm:$0xf]  ;;  %v13657_v59 = vor.u32 %v11676_v62, %v8353_v41 }
 0x115   : > { %3483 = vmatpush.bf16.msrb.mxu1 %v9816_v33  ;;  %v11742_v33 = vld [vmem:[#allocation5 + $0xe4] sm:$0xf]  ;;  %v8569_v49 = vld [vmem:[#allocation5 + $0xd8] sm:$0xf0] }
 0x116   : > { %3502 = vmatpush.bf16.msrb.mxu2 %v9880_v42  ;;  %v3095_v42 = vadd.f32 %v3094_v20, %v13595_v19  ;;  %v8705_v19 = vld [vmem:[#allocation5 + $0x1e8] sm:$0xf0]  ;;  %v8580_v36 = vor.u32 %v11742_v33, %v8577_v35  ;;  %v11740_v20 = vld [vmem:[#allocation5 + $0xd4] sm:$0xf]  ;;  %14362 = vst [vmem:[#allocation39_spill] sm:$0xff] %v13657_v59 }
 0x117   : > { %3521 = vmatpush.bf16.msrb.mxu3 %v9944_v55  ;;  %v3113_v31 = vpop.f32.mrf.mxu1  ;;  %v13645_v55 = vadd.f32 %v3149_v15, %v3131_v12  ;;  %v8708_v37 = vor.u32 %v11774_v34, %v8705_v19  ;;  %v11724_v12 = vld [vmem:[#allocation5 + $0x54] sm:$0xf]  ;;  %v8505_v15 = vld [vmem:[#allocation5 + $0x58] sm:$0xf0]  ;;  %v8572_v62 = vor.u32 %v11740_v20, %v8569_v49 }
 0x118   : > { %3465 = vmatpush.bf16.msrb.mxu0 %v9744_v16  ;;  %v3114_v2 = vadd.f32 %v3113_v31, %v3095_v42  ;;  %v11677_v16 = vld [vmem:[%s13413_s25 + $0x5c] sm:$0xf]  ;;  %v11736_v20 = vld [vmem:[#allocation5 + $0xb4] sm:$0xf] }
 0x119   : > { %3484 = vmatpush.bf16.msrb.mxu1 %v9808_v3  ;;  %v8633_v3 = vld [vmem:[#allocation5 + $0x158] sm:$0xf0]  ;;  %v3151_v31 = vpop.f32.mrf.mxu3  ;;  %v13661_v33 = vor.u32 %v11677_v16, %v8361_v47  ;;  %v8689_v16 = vld [vmem:[#allocation5 + $0x1c8] sm:$0xf0] }
 0x11a   : > { %3503 = vmatpush.bf16.msrb.mxu2 %v9872_v63  ;;  %v11689_v63 = vld [vmem:[%s13413_s25 + $0xb4] sm:$0xf0]  ;;  %v8636_v19 = vor.u32 %v11756_v60, %v8633_v3  ;;  %v8617_v47 = vld [vmem:[#allocation5 + $0x138] sm:$0xf0] }
 0x11b   : > { %3522 = vmatpush.bf16.msrb.mxu3 %v9936_v4  ;;  %v3132_v4 = vpop.f32.mrf.mxu2  ;;  %v13659_v30 = vor.u32 %v11689_v63, %v8359_v7  ;;  %14364 = vst [vmem:[#allocation41_spill] sm:$0xff] %v13661_v33  ;;  %v8561_v7 = vld [vmem:[#allocation5 + $0xc8] sm:$0xf0]  ;;  %v11770_v63 = vld [vmem:[#allocation5 + $0x1c4] sm:$0xf] }
 0x11c   : > { %3534 = vmatpush.bf16.msra.mxu0 %v8524_v52  ;;  %v3133_v42 = vadd.f32 %v3132_v4, %v3114_v2  ;;  %v11772_v52 = vld [vmem:[#allocation5 + $0x1d4] sm:$0xf]  ;;  %v8508_v2 = vor.u32 %v11724_v12, %v8505_v15  ;;  %v11738_v4 = vld [vmem:[#allocation5 + $0xc4] sm:$0xf]  ;;  %v8692_v3 = vor.u32 %v11770_v63, %v8689_v16  ;;  %v8489_v15 = vld [vmem:[#allocation5 + $0x38] sm:$0xf0] }
 0x11d   : > { %3553 = vmatpush.bf16.msra.mxu1 %v8588_v21  ;;  %v8697_v21 = vld [vmem:[#allocation5 + $0x1d8] sm:$0xf0]  ;;  %14363 = vst [vmem:[#allocation40_spill] sm:$0xff] %v13659_v30  ;;  %v8564_v60 = vor.u32 %v11738_v4, %v8561_v7  ;;  %v11720_v12 = vld [vmem:[#allocation5 + $0x34] sm:$0xf] }
 0x11e   : > { %3572 = vmatpush.bf16.msra.mxu2 %v8652_v10  ;;  %v13655_v10 = vor.u32 %v11688_v58, %v8351_v38  ;;  %v13663_v35 = vadd.f32 %v3151_v31, %v3133_v42  ;;  %v11754_v38 = vld [vmem:[#allocation5 + $0x144] sm:$0xf]  ;;  %v8625_v58 = vld [vmem:[#allocation5 + $0x148] sm:$0xf0]  ;;  %v8700_v41 = vor.u32 %v11772_v52, %v8697_v21  ;;  %v8553_v49 = vld [vmem:[#allocation5 + $0xb8] sm:$0xf0] }
 0x11f   : > { %3591 = vmatpush.bf16.msra.mxu3 %v8716_v26  ;;  %v3163_v26 = vpop.f32.mrf.mxu0  ;;  %v3182_v27 = vpop.f32.mrf.mxu1  ;;  %3504 = vmatmul.bf16.vlgmr.msrb.gmra.mxu2 %v13659_v30  ;;  %v11768_v52 = vld [vmem:[#allocation5 + $0x1b4] sm:$0xf]  ;;  %v8681_v21 = vld [vmem:[#allocation5 + $0x1b8] sm:$0xf0]  ;;  %v8556_v7 = vor.u32 %v11736_v20, %v8553_v49  ;;  %v11718_v63 = vld [vmem:[#allocation5 + $0x24] sm:$0xf] }
 0x120   : > { %14361 = vst [vmem:[#allocation38_spill] sm:$0xff] %v13655_v10  ;;  %3535 = vmatpush.bf16.msra.mxu0 %v8516_v61  ;;  %v3164_v34 = vadd.f32 %v3163_v26, %v13619_v11  ;;  %v8497_v61 = vld [vmem:[#allocation5 + $0x48] sm:$0xf0]  ;;  %3485 = vmatmul.bf16.vlgmr.msrb.gmra.mxu1 %v13657_v59  ;;  %v8628_v11 = vor.u32 %v11754_v38, %v8625_v58  ;;  %v11750_v58 = vld [vmem:[#allocation5 + $0x124] sm:$0xf] }
 0x121   : > { %3554 = vmatpush.bf16.msra.mxu1 %v8580_v36  ;;  %3466 = vmatmul.bf16.vlgmr.msrb.gmra.mxu0 %v13655_v10  ;;  %v3220_v31 = vpop.f32.mrf.mxu3  ;;  %v8492_v38 = vor.u32 %v11720_v12, %v8489_v15  ;;  %v8449_v4 = vld [vmem:[%s13413_s25 + $0x170] sm:$0xf0]  ;;  %v8481_v16 = vld [vmem:[#allocation5 + $0x28] sm:$0xf0]  ;;  %v8455_v15 = vld [vmem:[%s13413_s25 + $0x118] sm:$0xf] }
 0x122   : > { %3573 = vmatpush.bf16.msra.mxu2 %v8644_v43  ;;  %v11722_v43 = vld [vmem:[#allocation5 + $0x44] sm:$0xf]  ;;  %v3183_v22 = vadd.f32 %v3182_v27, %v3164_v34  ;;  %3523 = vmatmul.bf16.vlgmr.msrb.gmra.mxu3 %v13661_v33  ;;  %v8673_v12 = vld [vmem:[#allocation5 + $0x1a8] sm:$0xf0]  ;;  %v8601_v33 = vld [vmem:[#allocation5 + $0x118] sm:$0xf0] }
 0x123   : > { %3592 = vmatpush.bf16.msra.mxu3 %v8708_v37  ;;  %v8500_v36 = vor.u32 %v11722_v43, %v8497_v61  ;;  %v11752_v37 = vld [vmem:[#allocation5 + $0x134] sm:$0xf]  ;;  %v3201_v42 = vpop.f32.mrf.mxu2  ;;  %v8447_v43 = vld [vmem:[%s13413_s25 + $0x110] sm:$0xf]  ;;  %v8537_v25 = vld [vmem:[#allocation5 + $0x98] sm:$0xf0] }
 0x124   : > { %3536 = vmatpush.bf16.msra.mxu0 %v8508_v2  ;;  %v3202_v26 = vadd.f32 %v3201_v42, %v3183_v22  ;;  %v8620_v2 = vor.u32 %v11752_v37, %v8617_v47  ;;  %v11712_v22 = vld [vmem:[%s13413_s25 + $0x16c] sm:$0xf0]  ;;  %v11700_v61 = vld [vmem:[%s13413_s25 + $0x114] sm:$0xf]  ;;  %v8545_v37 = vld [vmem:[#allocation5 + $0xa8] sm:$0xf0] }
 0x125   : > { %3555 = vmatpush.bf16.msra.mxu1 %v8572_v62  ;;  %v8609_v62 = vld [vmem:[#allocation5 + $0x128] sm:$0xf0]  ;;  %v11766_v47 = vld [vmem:[#allocation5 + $0x1a4] sm:$0xf]  ;;  %v11713_v42 = vld [vmem:[%s13413_s25 + $0x174] sm:$0xf0]  ;;  %v13681_v59 = vor.u32 %v11712_v22, %v8447_v43  ;;  %v13683_v10 = vor.u32 %v11700_v61, %v8449_v4 }
 0x126   : > { %3574 = vmatpush.bf16.msra.mxu2 %v8636_v19  ;;  %v8676_v49 = vor.u32 %v11766_v47, %v8673_v12  ;;  %v8593_v22 = vld [vmem:[#allocation5 + $0x108] sm:$0xf0]  ;;  %v11714_v61 = vld [vmem:[#allocation5 + $0x4] sm:$0xf] }
 0x127   : > { %3593 = vmatpush.bf16.msra.mxu3 %v8700_v41  ;;  %v3165_v27 = vpop.f32.mrf.mxu0  ;;  %v3184_v34 = vpop.f32.mrf.mxu1  ;;  %v13671_v41 = vadd.f32 %v3220_v31, %v3202_v26  ;;  %v8457_v31 = vld [vmem:[%s13413_s25 + $0x178] sm:$0xf0]  ;;  %v8484_v26 = vor.u32 %v11718_v63, %v8481_v16  ;;  %14365 = vst [vmem:[#allocation42_spill] sm:$0xff] %v13683_v10  ;;  %v13685_v16 = vor.u32 %v11713_v42, %v8455_v15  ;;  %v8465_v4 = vld [vmem:[#allocation5 + $0x8] sm:$0xf0] }
 0x128   : > { %v3166_v19 = vadd.f32 %v3165_v27, %v13638_v32  ;;  %3537 = vmatpush.bf16.msra.mxu0 %v8500_v36  ;;  %v8684_v32 = vor.u32 %v11768_v52, %v8681_v21  ;;  %v11748_v27 = vld [vmem:[#allocation5 + $0x114] sm:$0xf]  ;;  %v8473_v21 = vld [vmem:[#allocation5 + $0x18] sm:$0xf0]  ;;  %v11730_v15 = vld [vmem:[#allocation5 + $0x84] sm:$0xf] }
 0x129   : > { %3556 = vmatpush.bf16.msra.mxu1 %v8564_v60  ;;  %v11701_v60 = vld [vmem:[%s13413_s25 + $0x11c] sm:$0xf]  ;;  %v11716_v52 = vld [vmem:[#allocation5 + $0x14] sm:$0xf]  ;;  %v3222_v30 = vpop.f32.mrf.mxu3  ;;  %14366 = vst [vmem:[#allocation43_spill] sm:$0xff] %v13685_v16 }
 0x12a   : > { %3575 = vmatpush.bf16.msra.mxu2 %v8628_v11  ;;  %v11734_v11 = vld [vmem:[#allocation5 + $0xa4] sm:$0xf]  ;;  %v3185_v36 = vadd.f32 %v3184_v34, %v3166_v19  ;;  %v11732_v34 = vld [vmem:[#allocation5 + $0x94] sm:$0xf]  ;;  %v8476_v43 = vor.u32 %v11716_v52, %v8473_v21  ;;  %v8529_v42 = vld [vmem:[#allocation5 + $0x88] sm:$0xf0] }
 0x12b   : > { %3594 = vmatpush.bf16.msra.mxu3 %v8692_v3  ;;  %v8612_v3 = vor.u32 %v11750_v58, %v8609_v62  ;;  %v8548_v20 = vor.u32 %v11734_v11, %v8545_v37  ;;  %v3203_v19 = vpop.f32.mrf.mxu2  ;;  %v8604_v37 = vor.u32 %v11748_v27, %v8601_v33  ;;  %v11824_v33 = vld [vmem:[#allocation5 + $0x374] sm:$0xf]  ;;  %v8969_v21 = vld [vmem:[#allocation5 + $0x3f8] sm:$0xf0] }
 0x12c   : > { %3538 = vmatpush.bf16.msra.mxu0 %v8492_v38  ;;  %v8665_v38 = vld [vmem:[#allocation5 + $0x198] sm:$0xf0]  ;;  %v3204_v58 = vadd.f32 %v3203_v19, %v3185_v36  ;;  %v8540_v36 = vor.u32 %v11732_v34, %v8537_v25  ;;  %v11808_v27 = vld [vmem:[#allocation5 + $0x2f4] sm:$0xf]  ;;  %v8532_v34 = vor.u32 %v11730_v15, %v8529_v42  ;;  %v8961_v15 = vld [vmem:[#allocation5 + $0x3e8] sm:$0xf0] }
 0x12d   : > { %3557 = vmatpush.bf16.msra.mxu1 %v8556_v7  ;;  %v13687_v7 = vor.u32 %v11701_v60, %v8457_v31  ;;  %v11762_v60 = vld [vmem:[#allocation5 + $0x184] sm:$0xf]  ;;  %v11840_v52 = vld [vmem:[#allocation5 + $0x3f4] sm:$0xf] }
 0x12e   : > { %3576 = vmatpush.bf16.msra.mxu2 %v8620_v2  ;;  %v11764_v2 = vld [vmem:[#allocation5 + $0x194] sm:$0xf]  ;;  %v13690_v47 = vadd.f32 %v3222_v30, %v3204_v58 }
 0x12f   : > { %3595 = vmatpush.bf16.msra.mxu3 %v8684_v32  ;;  %v3168_v62 = vpop.f32.mrf.mxu0  ;;  %v3187_v63 = vpop.f32.mrf.mxu1  ;;  %14367 = vst [vmem:[#allocation44_spill] sm:$0xff] %v13687_v7  ;;  %v11746_v32 = vld [vmem:[#allocation5 + $0x104] sm:$0xf]  ;;  %v8668_v12 = vor.u32 %v11764_v2, %v8665_v38  ;;  %3509 = vmatmul.bf16.gmra.mxu2 %v13685_v16  ;;  %v11792_v30 = vld [vmem:[#allocation5 + $0x274] sm:$0xf] }
 0x130   : > { %v3169_v11 = vadd.f32 %v3168_v62, %v13645_v55  ;;  %3539 = vmatpush.bf16.msra.mxu0 %v8484_v26  ;;  %3490 = vmatmul.bf16.gmra.mxu1 %v13683_v10  ;;  %v8657_v55 = vld [vmem:[#allocation5 + $0x188] sm:$0xf0]  ;;  %v8777_v26 = vld [vmem:[#allocation5 + $0x278] sm:$0xf0]  ;;  %v8596_v25 = vor.u32 %v11746_v32, %v8593_v22  ;;  %v11790_v32 = vld [vmem:[#allocation5 + $0x264] sm:$0xf] }
 0x131   : > { %3558 = vmatpush.bf16.msra.mxu1 %v8548_v20  ;;  %3471 = vmatmul.bf16.gmra.mxu0 %v13681_v59  ;;  %v8468_v20 = vor.u32 %v11714_v61, %v8465_v4  ;;  %v8660_v19 = vor.u32 %v11762_v60, %v8657_v55  ;;  %v3225_v38 = vpop.f32.mrf.mxu3  ;;  %v8780_v62 = vor.u32 %v11792_v30, %v8777_v26  ;;  %v8769_v22 = vld [vmem:[#allocation5 + $0x268] sm:$0xf0]  ;;  %v11806_v61 = vld [vmem:[#allocation5 + $0x2e4] sm:$0xf]  ;;  %v11820_v30 = vld [vmem:[#allocation5 + $0x354] sm:$0xf] }
 0x132   : > { %3577 = vmatpush.bf16.msra.mxu2 %v8612_v3  ;;  %v3188_v31 = vadd.f32 %v3187_v63, %v3169_v11  ;;  %v8905_v3 = vld [vmem:[#allocation5 + $0x378] sm:$0xf0]  ;;  %3528 = vmatmul.bf16.gmra.mxu3 %v13687_v7  ;;  %v11822_v63 = vld [vmem:[#allocation5 + $0x364] sm:$0xf]  ;;  %v8897_v11 = vld [vmem:[#allocation5 + $0x368] sm:$0xf0]  ;;  %v8772_v55 = vor.u32 %v11790_v32, %v8769_v22 }
 0x133   : > { %3596 = vmatpush.bf16.msra.mxu3 %v8676_v49  ;;  %v8841_v49 = vld [vmem:[#allocation5 + $0x2f8] sm:$0xf0]  ;;  %v3206_v2 = vpop.f32.mrf.mxu2  ;;  %v8908_v58 = vor.u32 %v11824_v33, %v8905_v3  ;;  %v8753_v32 = vld [vmem:[#allocation5 + $0x248] sm:$0xf0]  ;;  %v11802_v22 = vld [vmem:[#allocation5 + $0x2c4] sm:$0xf] }
 0x134   : > { %3540 = vmatpush.bf16.msra.mxu0 %v8476_v43  ;;  %v3207_v7 = vadd.f32 %v3206_v2, %v3188_v31  ;;  %v8972_v43 = vor.u32 %v11840_v52, %v8969_v21  ;;  %v8900_v31 = vor.u32 %v11822_v63, %v8897_v11  ;;  %v8761_v26 = vld [vmem:[#allocation5 + $0x258] sm:$0xf0] }
 0x135   : > { %3559 = vmatpush.bf16.msra.mxu1 %v8540_v36  ;;  %v8833_v36 = vld [vmem:[#allocation5 + $0x2e8] sm:$0xf0] }
 0x136   : > { %3578 = vmatpush.bf16.msra.mxu2 %v8604_v37  ;;  %v8844_v37 = vor.u32 %v11808_v27, %v8841_v49  ;;  %v13697_v42 = vadd.f32 %v3225_v38, %v3207_v7  ;;  %v8836_v33 = vor.u32 %v11806_v61, %v8833_v36  ;;  %v11804_v27 = vld [vmem:[#allocation5 + $0x2d4] sm:$0xf]  ;;  %v8825_v7 = vld [vmem:[#allocation5 + $0x2d8] sm:$0xf0]  ;;  %v11834_v36 = vld [vmem:[#allocation5 + $0x3c4] sm:$0xf] }
 0x137   : > { %3597 = vmatpush.bf16.msra.mxu3 %v8668_v12  ;;  %v3170_v16 = vpop.f32.mrf.mxu0  ;;  %v3189_v10 = vpop.f32.mrf.mxu1  ;;  %v11838_v12 = vld [vmem:[#allocation5 + $0x3e4] sm:$0xf]  ;;  %v11836_v49 = vld [vmem:[#allocation5 + $0x3d4] sm:$0xf]  ;;  %v8828_v11 = vor.u32 %v11804_v27, %v8825_v7 }
 0x138   : > { %v3171_v4 = vadd.f32 %v3170_v16, %v13663_v35  ;;  %3541 = vmatpush.bf16.msra.mxu0 %v8468_v20  ;;  %v8964_v3 = vor.u32 %v11838_v12, %v8961_v15  ;;  %v8889_v35 = vld [vmem:[#allocation5 + $0x358] sm:$0xf0]  ;;  %v11788_v16 = vld [vmem:[#allocation5 + $0x254] sm:$0xf]  ;;  %v8945_v12 = vld [vmem:[#allocation5 + $0x3c8] sm:$0xf0] }
 0x139   : > { %3560 = vmatpush.bf16.msra.mxu1 %v8532_v34  ;;  %v3227_v20 = vpop.f32.mrf.mxu3  ;;  %v8892_v2 = vor.u32 %v11820_v30, %v8889_v35  ;;  %v8764_v38 = vor.u32 %v11788_v16, %v8761_v26  ;;  %v8809_v16 = vld [vmem:[#allocation5 + $0x2b8] sm:$0xf0]  ;;  %v11832_v26 = vld [vmem:[#allocation5 + $0x3b4] sm:$0xf] }
 0x13a   : > { %3579 = vmatpush.bf16.msra.mxu2 %v8596_v25  ;;  %v3190_v60 = vadd.f32 %v3189_v10, %v3171_v4  ;;  %v8953_v10 = vld [vmem:[#allocation5 + $0x3d8] sm:$0xf0]  ;;  %v8817_v4 = vld [vmem:[#allocation5 + $0x2c8] sm:$0xf0] }
 0x13b   : > { %3598 = vmatpush.bf16.msra.mxu3 %v8660_v19  ;;  %v3208_v25 = vpop.f32.mrf.mxu2 }
 0x13c   : > { %3610 = vmatpush.bf16.msrb.mxu0 %v8780_v62  ;;  %v3209_v52 = vadd.f32 %v3208_v25, %v3190_v60  ;;  %v8881_v62 = vld [vmem:[#allocation5 + $0x348] sm:$0xf0]  ;;  %v11816_v60 = vld [vmem:[#allocation5 + $0x334] sm:$0xf] }
 0x13d   : > { %3629 = vmatpush.bf16.msrb.mxu1 %v8844_v37  ;;  %v8956_v37 = vor.u32 %v11836_v49, %v8953_v10  ;;  %v11814_v10 = vld [vmem:[#allocation5 + $0x324] sm:$0xf] }
 0x13e   : > { %3648 = vmatpush.bf16.msrb.mxu2 %v8908_v58  ;;  %v11818_v58 = vld [vmem:[#allocation5 + $0x344] sm:$0xf]  ;;  %v13700_v63 = vadd.f32 %v3227_v20, %v3209_v52  ;;  %v8865_v52 = vld [vmem:[#allocation5 + $0x328] sm:$0xf0] }
 0x13f   : > { %3667 = vmatpush.bf16.msrb.mxu3 %v8972_v43  ;;  %v3239_v21 = vpop.f32.mrf.mxu0  ;;  %v3258_v34 = vpop.f32.mrf.mxu1  ;;  %v11786_v43 = vld [vmem:[#allocation5 + $0x244] sm:$0xf]  ;;  %3580 = vmatmul.bf16.vlgmr.msra.gmra.mxu2 %v13447_v54  ;;  %v8937_v54 = vld [vmem:[#allocation5 + $0x3b8] sm:$0xf0] }
 0x140   : > { %3611 = vmatpush.bf16.msrb.mxu0 %v8772_v55  ;;  %v3240_v19 = vadd.f32 %v3239_v21, %v13671_v41  ;;  %3561 = vmatmul.bf16.vlgmr.msra.gmra.mxu1 %v13445_v53  ;;  %v8884_v41 = vor.u32 %v11818_v58, %v8881_v62  ;;  %v8756_v15 = vor.u32 %v11786_v43, %v8753_v32  ;;  %v11800_v53 = vld [vmem:[#allocation5 + $0x2b4] sm:$0xf]  ;;  %v11798_v58 = vld [vmem:[#allocation5 + $0x2a4] sm:$0xf]  ;;  %v8929_v43 = vld [vmem:[#allocation5 + $0x3a8] sm:$0xf0] }
 0x141   : > { %3630 = vmatpush.bf16.msrb.mxu1 %v8836_v33  ;;  %3542 = vmatmul.bf16.vlgmr.msra.gmra.mxu0 %v13443_v48  ;;  %v8820_v55 = vor.u32 %v11802_v22, %v8817_v4  ;;  %v8948_v33 = vor.u32 %v11834_v36, %v8945_v12  ;;  %v11784_v48 = vld [vmem:[#allocation5 + $0x234] sm:$0xf]  ;;  %v3296_v35 = vpop.f32.mrf.mxu3 }
 0x142   : > { %3649 = vmatpush.bf16.msrb.mxu2 %v8900_v31  ;;  %v3259_v61 = vadd.f32 %v3258_v34, %v3240_v19  ;;  %3599 = vmatmul.bf16.vlgmr.msra.gmra.mxu3 %v13449_v57  ;;  %v8873_v31 = vld [vmem:[#allocation5 + $0x338] sm:$0xf0]  ;;  %v8812_v34 = vor.u32 %v11800_v53, %v8809_v16  ;;  %v8940_v19 = vor.u32 %v11832_v26, %v8937_v54  ;;  %v11812_v22 = vld [vmem:[#allocation5 + $0x314] sm:$0xf] }
 0x143   : > { %3668 = vmatpush.bf16.msrb.mxu3 %v8964_v3  ;;  %v8745_v3 = vld [vmem:[#allocation5 + $0x238] sm:$0xf0]  ;;  %v3277_v30 = vpop.f32.mrf.mxu2  ;;  %v8876_v7 = vor.u32 %v11816_v60, %v8873_v31  ;;  %v11780_v12 = vld [vmem:[#allocation5 + $0x214] sm:$0xf] }
 0x144   : > { %3612 = vmatpush.bf16.msrb.mxu0 %v8764_v38  ;;  %v3278_v27 = vadd.f32 %v3277_v30, %v3259_v61  ;;  %v8748_v49 = vor.u32 %v11784_v48, %v8745_v3  ;;  %v8737_v38 = vld [vmem:[#allocation5 + $0x228] sm:$0xf0]  ;;  %v8857_v61 = vld [vmem:[#allocation5 + $0x318] sm:$0xf0] }
 0x145   : > { %3631 = vmatpush.bf16.msrb.mxu1 %v8828_v11  ;;  %v8801_v11 = vld [vmem:[#allocation5 + $0x2a8] sm:$0xf0]  ;;  %v8921_v48 = vld [vmem:[#allocation5 + $0x398] sm:$0xf0]  ;;  %v8860_v26 = vor.u32 %v11812_v22, %v8857_v61 }
 0x146   : > { %3650 = vmatpush.bf16.msrb.mxu2 %v8892_v2  ;;  %v13707_v21 = vadd.f32 %v3296_v35, %v3278_v27  ;;  %v11782_v2 = vld [vmem:[#allocation5 + $0x224] sm:$0xf]  ;;  %v8804_v4 = vor.u32 %v11798_v58, %v8801_v11  ;;  %v8849_v27 = vld [vmem:[#allocation5 + $0x308] sm:$0xf0]  ;;  %v11856_v58 = vld [vmem:[#allocation5 + $0x474] sm:$0xf] }
 0x147   : > { %3669 = vmatpush.bf16.msrb.mxu3 %v8956_v37  ;;  %v3241_v57 = vpop.f32.mrf.mxu0  ;;  %v3260_v25 = vpop.f32.mrf.mxu1  ;;  %v11830_v37 = vld [vmem:[#allocation5 + $0x3a4] sm:$0xf]  ;;  %v8740_v32 = vor.u32 %v11782_v2, %v8737_v38  ;;  %v11888_v2 = vld [vmem:[#allocation5 + $0x574] sm:$0xf]  ;;  %v9161_v38 = vld [vmem:[#allocation5 + $0x578] sm:$0xf0] }
 0x148   : > { %v3242_v20 = vadd.f32 %v3241_v57, %v13690_v47  ;;  %3613 = vmatpush.bf16.msrb.mxu0 %v8756_v15  ;;  %v8868_v47 = vor.u32 %v11814_v10, %v8865_v52  ;;  %v8932_v36 = vor.u32 %v11830_v37, %v8929_v43  ;;  %v11796_v15 = vld [vmem:[#allocation5 + $0x294] sm:$0xf]  ;;  %v11810_v35 = vld [vmem:[#allocation5 + $0x304] sm:$0xf]  ;;  %v8785_v52 = vld [vmem:[#allocation5 + $0x288] sm:$0xf0] }
 0x149   : > { %3632 = vmatpush.bf16.msrb.mxu1 %v8820_v55  ;;  %v3298_v31 = vpop.f32.mrf.mxu3  ;;  %v8793_v55 = vld [vmem:[#allocation5 + $0x298] sm:$0xf0]  ;;  %v11778_v57 = vld [vmem:[#allocation5 + $0x204] sm:$0xf]  ;;  %v11872_v11 = vld [vmem:[#allocation5 + $0x4f4] sm:$0xf]  ;;  %v8852_v37 = vor.u32 %v11810_v35, %v8849_v27 }
 0x14a   : > { %3651 = vmatpush.bf16.msrb.mxu2 %v8884_v41  ;;  %v3261_v62 = vadd.f32 %v3260_v25, %v3242_v20  ;;  %v8729_v41 = vld [vmem:[#allocation5 + $0x218] sm:$0xf0]  ;;  %v8721_v25 = vld [vmem:[#allocation5 + $0x208] sm:$0xf0]  ;;  %v11794_v10 = vld [vmem:[#allocation5 + $0x284] sm:$0xf] }
 0x14b   : > { %3670 = vmatpush.bf16.msrb.mxu3 %v8948_v33  ;;  %v3279_v60 = vpop.f32.mrf.mxu2  ;;  %v11828_v33 = vld [vmem:[#allocation5 + $0x394] sm:$0xf]  ;;  %v8732_v54 = vor.u32 %v11780_v12, %v8729_v41  ;;  %v8724_v43 = vor.u32 %v11778_v57, %v8721_v25  ;;  %v9225_v22 = vld [vmem:[#allocation5 + $0x5f8] sm:$0xf0]  ;;  %v11886_v12 = vld [vmem:[#allocation5 + $0x564] sm:$0xf] }
 0x14c   : > { %3614 = vmatpush.bf16.msrb.mxu0 %v8748_v49  ;;  %v3280_v3 = vadd.f32 %v3279_v60, %v3261_v62  ;;  %v8924_v49 = vor.u32 %v11828_v33, %v8921_v48  ;;  %v9033_v62 = vld [vmem:[#allocation5 + $0x478] sm:$0xf0]  ;;  %v11854_v33 = vld [vmem:[#allocation5 + $0x464] sm:$0xf]  ;;  %v9025_v48 = vld [vmem:[#allocation5 + $0x468] sm:$0xf0] }
 0x14d   : > { %3633 = vmatpush.bf16.msrb.mxu1 %v8812_v34  ;;  %v11826_v34 = vld [vmem:[#allocation5 + $0x384] sm:$0xf]  ;;  %v9028_v57 = vor.u32 %v11854_v33, %v9025_v48  ;;  %v9129_v33 = vld [vmem:[#allocation5 + $0x538] sm:$0xf0] }
 0x14e   : > { %3652 = vmatpush.bf16.msrb.mxu2 %v8876_v7  ;;  %v13710_v20 = vadd.f32 %v3298_v31, %v3280_v3  ;;  %v8796_v7 = vor.u32 %v11796_v15, %v8793_v55  ;;  %v11870_v3 = vld [vmem:[#allocation5 + $0x4e4] sm:$0xf] }
 0x14f   : > { %3671 = vmatpush.bf16.msrb.mxu3 %v8940_v19  ;;  %v3244_v53 = vpop.f32.mrf.mxu0  ;;  %v3263_v30 = vpop.f32.mrf.mxu1  ;;  %3585 = vmatmul.bf16.gmra.mxu2 %v13467_v51  ;;  %v9036_v51 = vor.u32 %v11856_v58, %v9033_v62  ;;  %v11902_v35 = vld [vmem:[#allocation5 + $0x5e4] sm:$0xf]  ;;  %v9209_v58 = vld [vmem:[#allocation5 + $0x5d8] sm:$0xf0] }
 0x150   : > { %v3245_v16 = vadd.f32 %v3244_v53, %v13697_v42  ;;  %3615 = vmatpush.bf16.msrb.mxu0 %v8740_v32  ;;  %3566 = vmatmul.bf16.gmra.mxu1 %v13465_v50  ;;  %v8913_v42 = vld [vmem:[#allocation5 + $0x388] sm:$0xf0]  ;;  %v11904_v32 = vld [vmem:[#allocation5 + $0x5f4] sm:$0xf] }
 0x151   : > { %3634 = vmatpush.bf16.msrb.mxu1 %v8804_v4  ;;  %3547 = vmatmul.bf16.gmra.mxu0 %v13463_v44  ;;  %v8788_v44 = vor.u32 %v11794_v10, %v8785_v52  ;;  %v8916_v50 = vor.u32 %v11826_v34, %v8913_v42  ;;  %v3301_v4 = vpop.f32.mrf.mxu3  ;;  %v9228_v55 = vor.u32 %v11904_v32, %v9225_v22  ;;  %v11852_v10 = vld [vmem:[#allocation5 + $0x454] sm:$0xf]  ;;  %v9017_v52 = vld [vmem:[#allocation5 + $0x458] sm:$0xf0]  ;;  %v11882_v22 = vld [vmem:[#allocation5 + $0x544] sm:$0xf] }
 0x152   : > { %3653 = vmatpush.bf16.msrb.mxu2 %v8868_v47  ;;  %v3264_v19 = vadd.f32 %v3263_v30, %v3245_v16  ;;  %3604 = vmatmul.bf16.gmra.mxu3 %v13469_v56  ;;  %v9097_v47 = vld [vmem:[#allocation5 + $0x4f8] sm:$0xf0]  ;;  %v9153_v56 = vld [vmem:[#allocation5 + $0x568] sm:$0xf0]  ;;  %v11868_v34 = vld [vmem:[#allocation5 + $0x4d4] sm:$0xf]  ;;  %v9020_v32 = vor.u32 %v11852_v10, %v9017_v52 }
 0x153   : > { %3672 = vmatpush.bf16.msrb.mxu3 %v8932_v36  ;;  %v3282_v61 = vpop.f32.mrf.mxu2  ;;  %v9164_v36 = vor.u32 %v11888_v2, %v9161_v38  ;;  %v9100_v31 = vor.u32 %v11872_v11, %v9097_v47  ;;  %v9089_v30 = vld [vmem:[#allocation5 + $0x4e8] sm:$0xf0]  ;;  %v9156_v27 = vor.u32 %v11886_v12, %v9153_v56  ;;  %v9081_v2 = vld [vmem:[#allocation5 + $0x4d8] sm:$0xf0]  ;;  %v11900_v38 = vld [vmem:[#allocation5 + $0x5d4] sm:$0xf] }
 0x154   : > { %3616 = vmatpush.bf16.msrb.mxu0 %v8732_v54  ;;  %v3283_v41 = vadd.f32 %v3282_v61, %v3264_v19  ;;  %v9217_v16 = vld [vmem:[#allocation5 + $0x5e8] sm:$0xf0]  ;;  %v9092_v25 = vor.u32 %v11870_v3, %v9089_v30  ;;  %v9084_v61 = vor.u32 %v11868_v34, %v9081_v2  ;;  %v11866_v12 = vld [vmem:[#allocation5 + $0x4c4] sm:$0xf] }
 0x155   : > { %3635 = vmatpush.bf16.msrb.mxu1 %v8796_v7  ;;  %v9220_v7 = vor.u32 %v11902_v35, %v9217_v16  ;;  %v9065_v16 = vld [vmem:[#allocation5 + $0x4b8] sm:$0xf0]  ;;  %v9121_v10 = vld [vmem:[#allocation5 + $0x528] sm:$0xf0] }
 0x156   : > { %3654 = vmatpush.bf16.msrb.mxu2 %v8860_v26  ;;  %v13717_v26 = vadd.f32 %v3301_v4, %v3283_v41  ;;  %v9212_v4 = vor.u32 %v11900_v38, %v9209_v58  ;;  %v9073_v41 = vld [vmem:[#allocation5 + $0x4c8] sm:$0xf0]  ;;  %v11862_v38 = vld [vmem:[#allocation5 + $0x4a4] sm:$0xf] }
 0x157   : > { %3673 = vmatpush.bf16.msrb.mxu3 %v8924_v49  ;;  %v3246_v15 = vpop.f32.mrf.mxu0  ;;  %v3265_v60 = vpop.f32.mrf.mxu1  ;;  %v11884_v49 = vld [vmem:[#allocation5 + $0x554] sm:$0xf]  ;;  %v9076_v48 = vor.u32 %v11866_v12, %v9073_v41  ;;  %v8993_v2 = vld [vmem:[#allocation5 + $0x428] sm:$0xf0] }
 0x158   : > { %v3247_v53 = vadd.f32 %v3246_v15, %v13700_v63  ;;  %3617 = vmatpush.bf16.msrb.mxu0 %v8724_v43  ;;  %v9145_v63 = vld [vmem:[#allocation5 + $0x558] sm:$0xf0]  ;;  %v11898_v15 = vld [vmem:[#allocation5 + $0x5c4] sm:$0xf]  ;;  %v11892_v41 = vld [vmem:[#allocation5 + $0x594] sm:$0xf] }
 0x159   : > { %3636 = vmatpush.bf16.msrb.mxu1 %v8788_v44  ;;  %v3303_v42 = vpop.f32.mrf.mxu3  ;;  %v9148_v47 = vor.u32 %v11884_v49, %v9145_v63  ;;  %v9137_v44 = vld [vmem:[#allocation5 + $0x548] sm:$0xf0]  ;;  %v11878_v63 = vld [vmem:[#allocation5 + $0x524] sm:$0xf] }
 0x15a   : > { %3655 = vmatpush.bf16.msrb.mxu2 %v8852_v37  ;;  %v3266_v54 = vadd.f32 %v3265_v60, %v3247_v53  ;;  %v9201_v60 = vld [vmem:[#allocation5 + $0x5c8] sm:$0xf0]  ;;  %v9001_v53 = vld [vmem:[#allocation5 + $0x438] sm:$0xf0] }
 0x15b   : > { %3674 = vmatpush.bf16.msrb.mxu3 %v8916_v50  ;;  %v3284_v19 = vpop.f32.mrf.mxu2  ;;  %v9204_v3 = vor.u32 %v11898_v15, %v9201_v60  ;;  %v9177_v15 = vld [vmem:[#allocation5 + $0x598] sm:$0xf0] }
 0x15c   : > { %3686 = vmatpush.bf16.msra.mxu0 %v9036_v51  ;;  %v3285_v62 = vadd.f32 %v3284_v19, %v3266_v54  ;;  %v9009_v51 = vld [vmem:[#allocation5 + $0x448] sm:$0xf0]  ;;  %v11896_v54 = vld [vmem:[#allocation5 + $0x5b4] sm:$0xf] }
 0x15d   : > { %3705 = vmatpush.bf16.msra.mxu1 %v9100_v31 }
 0x15e   : > { %3724 = vmatpush.bf16.msra.mxu2 %v9164_v36  ;;  %v13720_v50 = vadd.f32 %v3303_v42, %v3285_v62  ;;  %v11850_v36 = vld [vmem:[#allocation5 + $0x444] sm:$0xf]  ;;  %v9057_v62 = vld [vmem:[#allocation5 + $0x4a8] sm:$0xf0] }
 0x15f   : > { %3743 = vmatpush.bf16.msra.mxu3 %v9228_v55  ;;  %v3315_v11 = vpop.f32.mrf.mxu0  ;;  %v3334_v37 = vpop.f32.mrf.mxu1  ;;  %3656 = vmatmul.bf16.vlgmr.msrb.gmra.mxu2 %v13487_v5  ;;  %v9012_v31 = vor.u32 %v11850_v36, %v9009_v51  ;;  %v11880_v55 = vld [vmem:[#allocation5 + $0x534] sm:$0xf]  ;;  %v9193_v5 = vld [vmem:[#allocation5 + $0x5b8] sm:$0xf0]  ;;  %v11846_v42 = vld [vmem:[#allocation5 + $0x424] sm:$0xf] }
 0x160   : > { %3687 = vmatpush.bf16.msra.mxu0 %v9028_v57  ;;  %v3316_v43 = vadd.f32 %v3315_v11, %v13707_v21  ;;  %3637 = vmatmul.bf16.vlgmr.msrb.gmra.mxu1 %v13485_v1  ;;  %v9140_v21 = vor.u32 %v11882_v22, %v9137_v44  ;;  %v11864_v1 = vld [vmem:[#allocation5 + $0x4b4] sm:$0xf]  ;;  %v9196_v19 = vor.u32 %v11896_v54, %v9193_v5  ;;  %v11894_v11 = vld [vmem:[#allocation5 + $0x5a4] sm:$0xf]  ;;  %v9041_v5 = vld [vmem:[#allocation5 + $0x488] sm:$0xf0] }
 0x161   : > { %3706 = vmatpush.bf16.msra.mxu1 %v9092_v25  ;;  %3618 = vmatmul.bf16.vlgmr.msrb.gmra.mxu0 %v13483_v0  ;;  %v11848_v0 = vld [vmem:[#allocation5 + $0x434] sm:$0xf]  ;;  %v3372_v35 = vpop.f32.mrf.mxu3  ;;  %v9068_v34 = vor.u32 %v11864_v1, %v9065_v16  ;;  %v9060_v22 = vor.u32 %v11862_v38, %v9057_v62  ;;  %v8977_v1 = vld [vmem:[#allocation5 + $0x408] sm:$0xf0]  ;;  %v9180_v16 = vor.u32 %v11892_v41, %v9177_v15  ;;  %v11858_v54 = vld [vmem:[#allocation5 + $0x484] sm:$0xf] }
 0x162   : > { %3725 = vmatpush.bf16.msra.mxu2 %v9156_v27  ;;  %v3335_v56 = vadd.f32 %v3334_v37, %v3316_v43  ;;  %3675 = vmatmul.bf16.vlgmr.msrb.gmra.mxu3 %v13489_v6  ;;  %v9004_v49 = vor.u32 %v11848_v0, %v9001_v53  ;;  %v9185_v37 = vld [vmem:[#allocation5 + $0x5a8] sm:$0xf0]  ;;  %v8996_v43 = vor.u32 %v11846_v42, %v8993_v2  ;;  %v11860_v36 = vld [vmem:[#allocation5 + $0x494] sm:$0xf]  ;;  %v11842_v53 = vld [vmem:[#allocation5 + $0x404] sm:$0xf] }
 0x163   : > { %3744 = vmatpush.bf16.msra.mxu3 %v9220_v7  ;;  %v3353_v30 = vpop.f32.mrf.mxu2  ;;  %v9132_v7 = vor.u32 %v11880_v55, %v9129_v33  ;;  %v9188_v44 = vor.u32 %v11894_v11, %v9185_v37  ;;  %v11874_v55 = vld [vmem:[#allocation5 + $0x504] sm:$0xf]  ;;  %v9105_v0 = vld [vmem:[#allocation5 + $0x508] sm:$0xf0]  ;;  %v11968_v42 = vld [vmem:[#allocation5 + $0x7f4] sm:$0xf] }
 0x164   : > { %3688 = vmatpush.bf16.msra.mxu0 %v9020_v32  ;;  %v3354_v27 = vadd.f32 %v3353_v30, %v3335_v56  ;;  %v9113_v32 = vld [vmem:[#allocation5 + $0x518] sm:$0xf0]  ;;  %v11950_v11 = vld [vmem:[#allocation5 + $0x764] sm:$0xf] }
 0x165   : > { %3707 = vmatpush.bf16.msra.mxu1 %v9084_v61  ;;  %v11844_v61 = vld [vmem:[#allocation5 + $0x414] sm:$0xf]  ;;  %v9049_v56 = vld [vmem:[#allocation5 + $0x498] sm:$0xf0] }
 0x166   : > { %3726 = vmatpush.bf16.msra.mxu2 %v9148_v47  ;;  %v13727_v52 = vadd.f32 %v3372_v35, %v3354_v27  ;;  %v11876_v47 = vld [vmem:[#allocation5 + $0x514] sm:$0xf]  ;;  %v9052_v35 = vor.u32 %v11860_v36, %v9049_v56  ;;  %v11890_v27 = vld [vmem:[#allocation5 + $0x584] sm:$0xf]  ;;  %v9481_v2 = vld [vmem:[#allocation5 + $0x7f8] sm:$0xf0] }
 0x167   : > { %3745 = vmatpush.bf16.msra.mxu3 %v9212_v4  ;;  %v3317_v6 = vpop.f32.mrf.mxu0  ;;  %v3336_v57 = vpop.f32.mrf.mxu1  ;;  %v8985_v4 = vld [vmem:[#allocation5 + $0x418] sm:$0xf0]  ;;  %v9345_v36 = vld [vmem:[#allocation5 + $0x6e8] sm:$0xf0] }
 0x168   : > { %v3318_v25 = vadd.f32 %v3317_v6, %v13710_v20  ;;  %3689 = vmatpush.bf16.msra.mxu0 %v9012_v31  ;;  %v9124_v20 = vor.u32 %v11878_v63, %v9121_v10  ;;  %v11936_v63 = vld [vmem:[#allocation5 + $0x6f4] sm:$0xf]  ;;  %v9108_v10 = vor.u32 %v11874_v55, %v9105_v0 }
 0x169   : > { %3708 = vmatpush.bf16.msra.mxu1 %v9076_v48  ;;  %v3374_v12 = vpop.f32.mrf.mxu3  ;;  %v9116_v48 = vor.u32 %v11876_v47, %v9113_v32  ;;  %v9484_v32 = vor.u32 %v11968_v42, %v9481_v2  ;;  %v11948_v55 = vld [vmem:[#allocation5 + $0x754] sm:$0xf]  ;;  %v11930_v42 = vld [vmem:[#allocation5 + $0x6c4] sm:$0xf] }
 0x16a   : > { %3727 = vmatpush.bf16.msra.mxu2 %v9140_v21  ;;  %v3337_v58 = vadd.f32 %v3336_v57, %v3318_v25  ;;  %v11952_v57 = vld [vmem:[#allocation5 + $0x774] sm:$0xf]  ;;  %v9417_v25 = vld [vmem:[#allocation5 + $0x778] sm:$0xf0] }
 0x16b   : > { %3746 = vmatpush.bf16.msra.mxu3 %v9204_v3  ;;  %v3355_v51 = vpop.f32.mrf.mxu2  ;;  %v8988_v3 = vor.u32 %v11844_v61, %v8985_v4  ;;  %v9420_v62 = vor.u32 %v11952_v57, %v9417_v25  ;;  %v11934_v61 = vld [vmem:[#allocation5 + $0x6e4] sm:$0xf] }
 0x16c   : > { %3690 = vmatpush.bf16.msra.mxu0 %v9004_v49  ;;  %v3356_v60 = vadd.f32 %v3355_v51, %v3337_v58  ;;  %v9289_v49 = vld [vmem:[#allocation5 + $0x678] sm:$0xf0]  ;;  %v11966_v51 = vld [vmem:[#allocation5 + $0x7e4] sm:$0xf] }
 0x16d   : > { %3709 = vmatpush.bf16.msra.mxu1 %v9068_v34  ;;  %v8980_v34 = vor.u32 %v11842_v53, %v8977_v1  ;;  %v9337_v1 = vld [vmem:[#allocation5 + $0x6d8] sm:$0xf0]  ;;  %v11946_v25 = vld [vmem:[#allocation5 + $0x744] sm:$0xf] }
 0x16e   : > { %3728 = vmatpush.bf16.msra.mxu2 %v9132_v7  ;;  %v13730_v30 = vadd.f32 %v3374_v12, %v3356_v60  ;;  %v11920_v7 = vld [vmem:[#allocation5 + $0x674] sm:$0xf]  ;;  %v9473_v12 = vld [vmem:[#allocation5 + $0x7e8] sm:$0xf0] }
 0x16f   : > { %3747 = vmatpush.bf16.msra.mxu3 %v9196_v19  ;;  %v3320_v21 = vpop.f32.mrf.mxu0  ;;  %v3339_v31 = vpop.f32.mrf.mxu1  ;;  %3661 = vmatmul.bf16.gmra.mxu2 %v13507_v13  ;;  %v9353_v19 = vld [vmem:[#allocation5 + $0x6f8] sm:$0xf0]  ;;  %v9292_v13 = vor.u32 %v11920_v7, %v9289_v49  ;;  %v9393_v7 = vld [vmem:[#allocation5 + $0x748] sm:$0xf0] }
 0x170   : > { %v3321_v33 = vadd.f32 %v3320_v21, %v13717_v26  ;;  %3691 = vmatpush.bf16.msra.mxu0 %v8996_v43  ;;  %3642 = vmatmul.bf16.gmra.mxu1 %v13505_v9  ;;  %v9169_v26 = vld [vmem:[#allocation5 + $0x588] sm:$0xf0]  ;;  %v9356_v47 = vor.u32 %v11936_v63, %v9353_v19  ;;  %v9348_v21 = vor.u32 %v11934_v61, %v9345_v36 }
 0x171   : > { %3710 = vmatpush.bf16.msra.mxu1 %v9060_v22  ;;  %3623 = vmatmul.bf16.gmra.mxu0 %v13503_v8  ;;  %v9044_v8 = vor.u32 %v11858_v54, %v9041_v5  ;;  %v9172_v9 = vor.u32 %v11890_v27, %v9169_v26  ;;  %v3377_v58 = vpop.f32.mrf.mxu3  ;;  %v11918_v22 = vld [vmem:[#allocation5 + $0x664] sm:$0xf]  ;;  %v9265_v19 = vld [vmem:[#allocation5 + $0x648] sm:$0xf0] }
 0x172   : > { %3729 = vmatpush.bf16.msra.mxu2 %v9124_v20  ;;  %v3340_v6 = vadd.f32 %v3339_v31, %v3321_v33  ;;  %3680 = vmatmul.bf16.gmra.mxu3 %v13509_v14  ;;  %v9409_v14 = vld [vmem:[#allocation5 + $0x768] sm:$0xf0]  ;;  %v9476_v31 = vor.u32 %v11966_v51, %v9473_v12  ;;  %v11916_v33 = vld [vmem:[#allocation5 + $0x654] sm:$0xf]  ;;  %v11942_v51 = vld [vmem:[#allocation5 + $0x724] sm:$0xf] }
 0x173   : > { %3748 = vmatpush.bf16.msra.mxu3 %v9188_v44  ;;  %v3358_v38 = vpop.f32.mrf.mxu2  ;;  %v9281_v44 = vld [vmem:[#allocation5 + $0x668] sm:$0xf0]  ;;  %v9412_v15 = vor.u32 %v11950_v11, %v9409_v14 }
 0x174   : > { %3692 = vmatpush.bf16.msra.mxu0 %v8988_v3  ;;  %v3359_v37 = vadd.f32 %v3358_v38, %v3340_v6  ;;  %v9284_v60 = vor.u32 %v11918_v22, %v9281_v44  ;;  %v11932_v3 = vld [vmem:[#allocation5 + $0x6d4] sm:$0xf]  ;;  %v9457_v38 = vld [vmem:[#allocation5 + $0x7c8] sm:$0xf0] }
 0x175   : > { %3711 = vmatpush.bf16.msra.mxu1 %v9052_v35  ;;  %v11964_v35 = vld [vmem:[#allocation5 + $0x7d4] sm:$0xf]  ;;  %v9340_v63 = vor.u32 %v11932_v3, %v9337_v1  ;;  %v9377_v12 = vld [vmem:[#allocation5 + $0x728] sm:$0xf0]  ;;  %v9369_v1 = vld [vmem:[#allocation5 + $0x718] sm:$0xf0] }
 0x176   : > { %3730 = vmatpush.bf16.msra.mxu2 %v9116_v48  ;;  %v13737_v56 = vadd.f32 %v3377_v58, %v3359_v37  ;;  %v9273_v48 = vld [vmem:[#allocation5 + $0x658] sm:$0xf0]  ;;  %v9441_v3 = vld [vmem:[#allocation5 + $0x7a8] sm:$0xf0] }
 0x177   : > { %3749 = vmatpush.bf16.msra.mxu3 %v9180_v16  ;;  %v3322_v20 = vpop.f32.mrf.mxu0  ;;  %v3341_v43 = vpop.f32.mrf.mxu1  ;;  %v9465_v16 = vld [vmem:[#allocation5 + $0x7d8] sm:$0xf0]  ;;  %v9276_v57 = vor.u32 %v11916_v33, %v9273_v48  ;;  %v9313_v33 = vld [vmem:[#allocation5 + $0x6a8] sm:$0xf0]  ;;  %v11958_v48 = vld [vmem:[#allocation5 + $0x7a4] sm:$0xf] }
 0x178   : > { %v3323_v4 = vadd.f32 %v3322_v20, %v13720_v50  ;;  %3693 = vmatpush.bf16.msra.mxu0 %v8980_v34  ;;  %v9401_v50 = vld [vmem:[#allocation5 + $0x758] sm:$0xf0]  ;;  %v11914_v34 = vld [vmem:[#allocation5 + $0x644] sm:$0xf] }
 0x179   : > { %3712 = vmatpush.bf16.msra.mxu1 %v9044_v8  ;;  %v3379_v53 = vpop.f32.mrf.mxu3  ;;  %v9404_v26 = vor.u32 %v11948_v55, %v9401_v50  ;;  %v9329_v8 = vld [vmem:[#allocation5 + $0x6c8] sm:$0xf0]  ;;  %v9268_v58 = vor.u32 %v11914_v34, %v9265_v19  ;;  %v9257_v37 = vld [vmem:[#allocation5 + $0x638] sm:$0xf0]  ;;  %v11926_v55 = vld [vmem:[#allocation5 + $0x6a4] sm:$0xf] }
 0x17a   : > { %3731 = vmatpush.bf16.msra.mxu2 %v9108_v10  ;;  %v3342_v41 = vadd.f32 %v3341_v43, %v3323_v4  ;;  %v9468_v10 = vor.u32 %v11964_v35, %v9465_v16  ;;  %v9332_v11 = vor.u32 %v11930_v42, %v9329_v8  ;;  %v9316_v35 = vor.u32 %v11926_v55, %v9313_v33  ;;  %v11938_v19 = vld [vmem:[#allocation5 + $0x704] sm:$0xf]  ;;  %v9537_v33 = vld [vmem:[#allocation5 + $0x868] sm:$0xf0] }
 0x17b   : > { %3750 = vmatpush.bf16.msra.mxu3 %v9172_v9  ;;  %v3360_v0 = vpop.f32.mrf.mxu2  ;;  %v11962_v9 = vld [vmem:[#allocation5 + $0x7c4] sm:$0xf]  ;;  %v9444_v16 = vor.u32 %v11958_v48, %v9441_v3 }
 0x17c   : > { %3762 = vmatpush.bf16.msrb.mxu0 %v9292_v13  ;;  %v3361_v54 = vadd.f32 %v3360_v0, %v3342_v41  ;;  %v9385_v13 = vld [vmem:[#allocation5 + $0x738] sm:$0xf0]  ;;  %v9460_v14 = vor.u32 %v11962_v9, %v9457_v38  ;;  %v9361_v9 = vld [vmem:[#allocation5 + $0x708] sm:$0xf0]  ;;  %v11906_v38 = vld [vmem:[#allocation5 + $0x604] sm:$0xf] }
 0x17d   : > { %3781 = vmatpush.bf16.msrb.mxu1 %v9356_v47  ;;  %v9321_v47 = vld [vmem:[#allocation5 + $0x6b8] sm:$0xf0]  ;;  %v11998_v48 = vld [vmem:[#allocation5 + $0x8e4] sm:$0xf] }
 0x17e   : > { %3800 = vmatpush.bf16.msrb.mxu2 %v9420_v62  ;;  %v13740_v49 = vadd.f32 %v3379_v53, %v3361_v54  ;;  %v11944_v62 = vld [vmem:[#allocation5 + $0x734] sm:$0xf] }
 0x17f   : > { %3819 = vmatpush.bf16.msrb.mxu3 %v9484_v32  ;;  %v3391_v5 = vpop.f32.mrf.mxu0  ;;  %v3410_v27 = vpop.f32.mrf.mxu1  ;;  %3732 = vmatmul.bf16.vlgmr.msra.gmra.mxu2 %v13527_v28  ;;  %v11960_v32 = vld [vmem:[#allocation5 + $0x7b4] sm:$0xf]  ;;  %v9449_v28 = vld [vmem:[#allocation5 + $0x7b8] sm:$0xf0]  ;;  %v9388_v4 = vor.u32 %v11944_v62, %v9385_v13 }
 0x180   : > { %3763 = vmatpush.bf16.msrb.mxu0 %v9284_v60  ;;  %v3392_v6 = vadd.f32 %v3391_v5, %v13727_v52  ;;  %3713 = vmatmul.bf16.vlgmr.msra.gmra.mxu1 %v13525_v24  ;;  %v9396_v52 = vor.u32 %v11946_v25, %v9393_v7  ;;  %v11928_v24 = vld [vmem:[#allocation5 + $0x6b4] sm:$0xf]  ;;  %v9452_v60 = vor.u32 %v11960_v32, %v9449_v28  ;;  %v9241_v5 = vld [vmem:[#allocation5 + $0x618] sm:$0xf0] }
 0x181   : > { %3782 = vmatpush.bf16.msrb.mxu1 %v9348_v21  ;;  %3694 = vmatmul.bf16.vlgmr.msra.gmra.mxu0 %v13523_v23  ;;  %v11912_v23 = vld [vmem:[#allocation5 + $0x634] sm:$0xf]  ;;  %v3448_v43 = vpop.f32.mrf.mxu3  ;;  %v11910_v21 = vld [vmem:[#allocation5 + $0x624] sm:$0xf]  ;;  %v9433_v7 = vld [vmem:[#allocation5 + $0x798] sm:$0xf0]  ;;  %v9364_v28 = vor.u32 %v11938_v19, %v9361_v9 }
 0x182   : > { %3801 = vmatpush.bf16.msrb.mxu2 %v9412_v15  ;;  %v3411_v2 = vadd.f32 %v3410_v27, %v3392_v6  ;;  %3751 = vmatmul.bf16.vlgmr.msra.gmra.mxu3 %v13529_v29  ;;  %v9260_v36 = vor.u32 %v11912_v23, %v9257_v37  ;;  %v9324_v15 = vor.u32 %v11928_v24, %v9321_v47  ;;  %v11940_v53 = vld [vmem:[#allocation5 + $0x714] sm:$0xf]  ;;  %v11954_v23 = vld [vmem:[#allocation5 + $0x784] sm:$0xf]  ;;  %v9545_v47 = vld [vmem:[#allocation5 + $0x878] sm:$0xf0] }
 0x183   : > { %3820 = vmatpush.bf16.msrb.mxu3 %v9476_v31  ;;  %v3429_v20 = vpop.f32.mrf.mxu2  ;;  %v9249_v31 = vld [vmem:[#allocation5 + $0x628] sm:$0xf0]  ;;  %v11908_v54 = vld [vmem:[#allocation5 + $0x614] sm:$0xf]  ;;  %v9721_v19 = vld [vmem:[#allocation5 + $0x9d8] sm:$0xf0] }
 0x184   : > { %3764 = vmatpush.bf16.msrb.mxu0 %v9276_v57  ;;  %v3430_v22 = vadd.f32 %v3429_v20, %v3411_v2  ;;  %v9252_v0 = vor.u32 %v11910_v21, %v9249_v31  ;;  %v11924_v27 = vld [vmem:[#allocation5 + $0x694] sm:$0xf]  ;;  %v9305_v57 = vld [vmem:[#allocation5 + $0x698] sm:$0xf0]  ;;  %v9372_v2 = vor.u32 %v11940_v53, %v9369_v1  ;;  %v9244_v8 = vor.u32 %v11908_v54, %v9241_v5  ;;  %v9729_v53 = vld [vmem:[#allocation5 + $0x9e8] sm:$0xf0] }
 0x185   : > { %3783 = vmatpush.bf16.msrb.mxu1 %v9340_v63  ;;  %v11956_v25 = vld [vmem:[#allocation5 + $0x794] sm:$0xf]  ;;  %v9308_v62 = vor.u32 %v11924_v27, %v9305_v57  ;;  %v9673_v20 = vld [vmem:[#allocation5 + $0x978] sm:$0xf0] }
 0x186   : > { %3802 = vmatpush.bf16.msrb.mxu2 %v9404_v26  ;;  %v13747_v41 = vadd.f32 %v3448_v43, %v3430_v22  ;;  %v9436_v13 = vor.u32 %v11956_v25, %v9433_v7  ;;  %v12016_v24 = vld [vmem:[#allocation5 + $0x974] sm:$0xf]  ;;  %v9529_v57 = vld [vmem:[#allocation5 + $0x858] sm:$0xf0] }
 0x187   : > { %3821 = vmatpush.bf16.msrb.mxu3 %v9468_v10  ;;  %v3393_v29 = vpop.f32.mrf.mxu0  ;;  %v3412_v44 = vpop.f32.mrf.mxu1  ;;  %v11984_v43 = vld [vmem:[#allocation5 + $0x874] sm:$0xf] }
 0x188   : > { %v3394_v61 = vadd.f32 %v3393_v29, %v13730_v30  ;;  %3765 = vmatpush.bf16.msrb.mxu0 %v9268_v58  ;;  %v9380_v30 = vor.u32 %v11942_v51, %v9377_v12  ;;  %v12000_v32 = vld [vmem:[#allocation5 + $0x8f4] sm:$0xf]  ;;  %v9609_v29 = vld [vmem:[#allocation5 + $0x8f8] sm:$0xf0]  ;;  %v9676_v51 = vor.u32 %v12016_v24, %v9673_v20  ;;  %v12014_v12 = vld [vmem:[#allocation5 + $0x964] sm:$0xf] }
 0x189   : > { %3784 = vmatpush.bf16.msrb.mxu1 %v9332_v11  ;;  %v3450_v26 = vpop.f32.mrf.mxu3  ;;  %v11922_v11 = vld [vmem:[#allocation5 + $0x684] sm:$0xf]  ;;  %v9612_v31 = vor.u32 %v12000_v32, %v9609_v29  ;;  %v11996_v25 = vld [vmem:[#allocation5 + $0x8d4] sm:$0xf]  ;;  %v9713_v32 = vld [vmem:[#allocation5 + $0x9c8] sm:$0xf0] }
 0x18a   : > { %3803 = vmatpush.bf16.msrb.mxu2 %v9396_v52  ;;  %v3413_v50 = vadd.f32 %v3412_v44, %v3394_v61  ;;  %v9233_v52 = vld [vmem:[#allocation5 + $0x608] sm:$0xf0]  ;;  %v12032_v44 = vld [vmem:[#allocation5 + $0x9f4] sm:$0xf]  ;;  %v9737_v61 = vld [vmem:[#allocation5 + $0x9f8] sm:$0xf0] }
 0x18b   : > { %3822 = vmatpush.bf16.msrb.mxu3 %v9460_v14  ;;  %v3431_v6 = vpop.f32.mrf.mxu2  ;;  %v9297_v14 = vld [vmem:[#allocation5 + $0x688] sm:$0xf0]  ;;  %v9236_v22 = vor.u32 %v11906_v38, %v9233_v52  ;;  %v9740_v55 = vor.u32 %v12032_v44, %v9737_v61  ;;  %v11994_v24 = vld [vmem:[#allocation5 + $0x8c4] sm:$0xf]  ;;  %v12008_v44 = vld [vmem:[#allocation5 + $0x934] sm:$0xf] }
 0x18c   : > { %3766 = vmatpush.bf16.msrb.mxu0 %v9260_v36  ;;  %v3432_v63 = vadd.f32 %v3431_v6, %v3413_v50  ;;  %v11982_v50 = vld [vmem:[#allocation5 + $0x864] sm:$0xf]  ;;  %v12012_v6 = vld [vmem:[#allocation5 + $0x954] sm:$0xf]  ;;  %v9641_v61 = vld [vmem:[#allocation5 + $0x938] sm:$0xf0] }
 0x18d   : > { %3785 = vmatpush.bf16.msrb.mxu1 %v9324_v15  ;;  %v9540_v54 = vor.u32 %v11982_v50, %v9537_v33  ;;  %v12006_v33 = vld [vmem:[#allocation5 + $0x924] sm:$0xf] }
 0x18e   : > { %3804 = vmatpush.bf16.msrb.mxu2 %v9388_v4  ;;  %v13750_v58 = vadd.f32 %v3450_v26, %v3432_v63  ;;  %v11980_v26 = vld [vmem:[#allocation5 + $0x854] sm:$0xf] }
 0x18f   : > { %3823 = vmatpush.bf16.msrb.mxu3 %v9452_v60  ;;  %v3396_v10 = vpop.f32.mrf.mxu0  ;;  %v3415_v34 = vpop.f32.mrf.mxu1  ;;  %3737 = vmatmul.bf16.gmra.mxu2 %v13547_v45  ;;  %v9548_v45 = vor.u32 %v11984_v43, %v9545_v47  ;;  %v9532_v52 = vor.u32 %v11980_v26, %v9529_v57  ;;  %v9585_v43 = vld [vmem:[#allocation5 + $0x8c8] sm:$0xf0]  ;;  %v12026_v47 = vld [vmem:[#allocation5 + $0x9c4] sm:$0xf]  ;;  %v12004_v26 = vld [vmem:[#allocation5 + $0x914] sm:$0xf] }
 0x190   : > { %v3397_v42 = vadd.f32 %v3396_v10, %v13737_v56  ;;  %3767 = vmatpush.bf16.msrb.mxu0 %v9252_v0  ;;  %3718 = vmatmul.bf16.gmra.mxu1 %v13545_v40  ;;  %v9425_v56 = vld [vmem:[#allocation5 + $0x788] sm:$0xf0]  ;;  %v12030_v0 = vld [vmem:[#allocation5 + $0x9e4] sm:$0xf]  ;;  %v9593_v10 = vld [vmem:[#allocation5 + $0x8d8] sm:$0xf0] }
 0x191   : > { %3786 = vmatpush.bf16.msrb.mxu1 %v9316_v35  ;;  %3699 = vmatmul.bf16.gmra.mxu0 %v13543_v39  ;;  %v9300_v39 = vor.u32 %v11922_v11, %v9297_v14  ;;  %v9428_v40 = vor.u32 %v11954_v23, %v9425_v56  ;;  %v9732_v27 = vor.u32 %v12030_v0, %v9729_v53  ;;  %v9521_v56 = vld [vmem:[#allocation5 + $0x848] sm:$0xf0]  ;;  %v11974_v53 = vld [vmem:[#allocation5 + $0x824] sm:$0xf]  ;;  %v9625_v57 = vld [vmem:[#allocation5 + $0x918] sm:$0xf0] }
 0x192   : > { %3805 = vmatpush.bf16.msrb.mxu2 %v9380_v30  ;;  %v3416_v37 = vadd.f32 %v3415_v34, %v3397_v42  ;;  %3756 = vmatmul.bf16.gmra.mxu3 %v13549_v46  ;;  %v9665_v46 = vld [vmem:[#allocation5 + $0x968] sm:$0xf0]  ;;  %v12028_v34 = vld [vmem:[#allocation5 + $0x9d4] sm:$0xf]  ;;  %v9596_v14 = vor.u32 %v11996_v25, %v9593_v10  ;;  %v9497_v10 = vld [vmem:[#allocation5 + $0x818] sm:$0xf0] }
 0x193   : > { %3824 = vmatpush.bf16.msrb.mxu3 %v9444_v16  ;;  %v3434_v4 = vpop.f32.mrf.mxu2  ;;  %v9601_v30 = vld [vmem:[#allocation5 + $0x8e8] sm:$0xf0]  ;;  %v9668_v16 = vor.u32 %v12014_v12, %v9665_v46  ;;  %v9724_v23 = vor.u32 %v12028_v34, %v9721_v19  ;;  %v12024_v12 = vld [vmem:[#allocation5 + $0x9b4] sm:$0xf]  ;;  %v9705_v46 = vld [vmem:[#allocation5 + $0x9b8] sm:$0xf0] }
 0x194   : > { %3768 = vmatpush.bf16.msrb.mxu0 %v9244_v8  ;;  %v3453_v36 = vpop.f32.mrf.mxu3  ;;  %v3435_v15 = vadd.f32 %v3434_v4, %v3416_v37  ;;  %v9604_v5 = vor.u32 %v11998_v48, %v9601_v30  ;;  %v11978_v37 = vld [vmem:[#allocation5 + $0x844] sm:$0xf]  ;;  %v9513_v4 = vld [vmem:[#allocation5 + $0x838] sm:$0xf0]  ;;  %v9633_v48 = vld [vmem:[#allocation5 + $0x928] sm:$0xf0]  ;;  %v9708_v0 = vor.u32 %v12024_v12, %v9705_v46 }
 0x195   : > { %3787 = vmatpush.bf16.msrb.mxu1 %v9308_v62  ;;  %v12010_v62 = vld [vmem:[#allocation5 + $0x944] sm:$0xf]  ;;  %v9524_v29 = vor.u32 %v11978_v37, %v9521_v56  ;;  %v11988_v34 = vld [vmem:[#allocation5 + $0x894] sm:$0xf]  ;;  %v9628_v37 = vor.u32 %v12004_v26, %v9625_v57 }
 0x196   : > { %3806 = vmatpush.bf16.msrb.mxu2 %v9372_v2  ;;  %v13757_v1 = vadd.f32 %v3453_v36, %v3435_v15  ;;  %v12064_v12 = vld [vmem:[#allocation5 + $0xaf4] sm:$0xf]  ;;  %v12062_v26 = vld [vmem:[#allocation5 + $0xae4] sm:$0xf] }
 0x197   : > { %3825 = vmatpush.bf16.msrb.mxu3 %v9436_v13  ;;  %v3398_v60 = vpop.f32.mrf.mxu0  ;;  %v3417_v21 = vpop.f32.mrf.mxu1  ;;  %v9649_v13 = vld [vmem:[#allocation5 + $0x948] sm:$0xf0] }
 0x198   : > { %v3399_v3 = vadd.f32 %v3398_v60, %v13740_v49  ;;  %3769 = vmatpush.bf16.msrb.mxu0 %v9236_v22  ;;  %v9657_v49 = vld [vmem:[#allocation5 + $0x958] sm:$0xf0]  ;;  %v9652_v22 = vor.u32 %v12010_v62, %v9649_v13  ;;  %v12002_v13 = vld [vmem:[#allocation5 + $0x904] sm:$0xf] }
 0x199   : > { %3788 = vmatpush.bf16.msrb.mxu1 %v9300_v39  ;;  %v9660_v38 = vor.u32 %v12012_v6, %v9657_v49  ;;  %v9588_v39 = vor.u32 %v11994_v24, %v9585_v43  ;;  %v9697_v6 = vld [vmem:[#allocation5 + $0x9a8] sm:$0xf0]  ;;  %v11970_v24 = vld [vmem:[#allocation5 + $0x804] sm:$0xf] }
 0x19a   : > { %3807 = vmatpush.bf16.msrb.mxu2 %v9364_v28  ;;  %v3418_v35 = vadd.f32 %v3417_v21, %v3399_v3  ;;  %v14369_v28 = vld [vmem:[#allocation25_spill] sm:$0xff] }
 0x19b   : > { %3826 = vmatpush.bf16.msrb.mxu3 %v9428_v40  ;;  %v3436_v7 = vpop.f32.mrf.mxu2  ;;  %v9716_v40 = vor.u32 %v12026_v47, %v9713_v32  ;;  %v11986_v43 = vld [vmem:[#allocation5 + $0x884] sm:$0xf] }
 0x19c   : > { %3838 = vmatpush.bf16.msra.mxu0 %v9548_v45  ;;  %v3455_v63 = vpop.f32.mrf.mxu3  ;;  %v3437_v42 = vadd.f32 %v3436_v7, %v3418_v35  ;;  %v9577_v45 = vld [vmem:[#allocation5 + $0x8b8] sm:$0xf0]  ;;  %v9505_v35 = vld [vmem:[#allocation5 + $0x828] sm:$0xf0] }
 0x19d   : > { %3857 = vmatpush.bf16.msra.mxu1 %v9612_v31  ;;  %v9508_v49 = vor.u32 %v11974_v53, %v9505_v35  ;;  %v12078_v53 = vld [vmem:[#allocation5 + $0xb64] sm:$0xf]  ;;  %v9921_v35 = vld [vmem:[#allocation5 + $0xb68] sm:$0xf0] }
 0x19e   : > { %3876 = vmatpush.bf16.msra.mxu2 %v9676_v51  ;;  %v13760_v11 = vadd.f32 %v3455_v63, %v3437_v42  ;;  %v11972_v63 = vld [vmem:[#allocation5 + $0x814] sm:$0xf] }
 0x19f   : > { %3895 = vmatpush.bf16.msra.mxu3 %v9740_v55  ;;  %v3467_v2 = vpop.f32.mrf.mxu0  ;;  %v3486_v8 = vpop.f32.mrf.mxu1  ;;  %v9644_v55 = vor.u32 %v12008_v44, %v9641_v61  ;;  %v9500_v56 = vor.u32 %v11972_v63, %v9497_v10  ;;  %v14370_v61 = vld [vmem:[#allocation26_spill] sm:$0xff] }
 0x1a0   : > { %3839 = vmatpush.bf16.msra.mxu0 %v9540_v54  ;;  %v3468_v9 = vadd.f32 %v3467_v2, %v13747_v41  ;;  %3789 = vmatmul.bf16.vlgmr.msrb.gmra.mxu1 %v13565_v18  ;;  %v14368_v41 = vld [vmem:[#allocation24_spill] sm:$0xff]  ;;  %v11992_v18 = vld [vmem:[#allocation5 + $0x8b4] sm:$0xf]  ;;  %v9985_v63 = vld [vmem:[#allocation5 + $0xbe8] sm:$0xf0] }
 0x1a1   : > { %3858 = vmatpush.bf16.msra.mxu1 %v9604_v5  ;;  %3770 = vmatmul.bf16.vlgmr.msrb.gmra.mxu0 %v13563_v17  ;;  %v11976_v17 = vld [vmem:[#allocation5 + $0x834] sm:$0xf]  ;;  %v9580_v30 = vor.u32 %v11992_v18, %v9577_v45  ;;  %v9569_v5 = vld [vmem:[#allocation5 + $0x8a8] sm:$0xf0]  ;;  %v9561_v2 = vld [vmem:[#allocation5 + $0x898] sm:$0xf0] }
 0x1a2   : > { %3877 = vmatpush.bf16.msra.mxu2 %v9668_v16  ;;  %v3487_v20 = vadd.f32 %v3486_v8, %v3468_v9  ;;  %3827 = vmatmul.bf16.vlgmr.msrb.gmra.mxu3 %v14369_v28  ;;  %v9516_v50 = vor.u32 %v11976_v17, %v9513_v4  ;;  %v11990_v16 = vld [vmem:[#allocation5 + $0x8a4] sm:$0xf]  ;;  %v12020_v8 = vld [vmem:[#allocation5 + $0x994] sm:$0xf]  ;;  %v9689_v9 = vld [vmem:[#allocation5 + $0x998] sm:$0xf0]  ;;  %v9564_v32 = vor.u32 %v11988_v34, %v9561_v2 }
 0x1a3   : > { %3896 = vmatpush.bf16.msra.mxu3 %v9732_v27  ;;  %3808 = vmatmul.bf16.vlgmr.msrb.gmra.mxu2 %v14368_v41  ;;  %v3505_v36 = vpop.f32.mrf.mxu2  ;;  %v12022_v27 = vld [vmem:[#allocation5 + $0x9a4] sm:$0xf]  ;;  %v9572_v25 = vor.u32 %v11990_v16, %v9569_v5  ;;  %v9692_v41 = vor.u32 %v12020_v8, %v9689_v9  ;;  %v9553_v28 = vld [vmem:[#allocation5 + $0x888] sm:$0xf0]  ;;  %v12048_v17 = vld [vmem:[#allocation5 + $0xa74] sm:$0xf] }
 0x1a4   : > { %3840 = vmatpush.bf16.msra.mxu0 %v9532_v52  ;;  %v3506_v15 = vadd.f32 %v3505_v36, %v3487_v20  ;;  %v9700_v7 = vor.u32 %v12022_v27, %v9697_v6  ;;  %v9489_v20 = vld [vmem:[#allocation5 + $0x808] sm:$0xf0]  ;;  %v14372_v36 = vld [vmem:[#allocation28_spill] sm:$0xff] }
 0x1a5   : > { %3859 = vmatpush.bf16.msra.mxu1 %v9596_v14  ;;  %v3524_v51 = vpop.f32.mrf.mxu3  ;;  %v9617_v14 = vld [vmem:[#allocation5 + $0x908] sm:$0xf0]  ;;  %v9801_v45 = vld [vmem:[#allocation5 + $0xa78] sm:$0xf0]  ;;  %v12846_v9 = vld [vmem:[#allocation7] sm:$0x3] }
 0x1a6   : > { %3878 = vmatpush.bf16.msra.mxu2 %v9660_v38  ;;  %v13767_v3 = vadd.f32 %v3524_v51, %v3506_v15  ;;  %v14373_v51 = vld [vmem:[#allocation29_spill] sm:$0xff]  ;;  %v9620_v46 = vor.u32 %v12002_v13, %v9617_v14  ;;  %v9492_v15 = vor.u32 %v11970_v24, %v9489_v20  ;;  %v9785_v13 = vld [vmem:[#allocation5 + $0xa58] sm:$0xf0]  ;;  %v12060_v14 = vld [vmem:[#allocation5 + $0xad4] sm:$0xf] }
 0x1a7   : > { %3897 = vmatpush.bf16.msra.mxu3 %v9724_v23  ;;  %v3469_v60 = vpop.f32.mrf.mxu0  ;;  %v3488_v21 = vpop.f32.mrf.mxu1  ;;  %v12092_v24 = vld [vmem:[#allocation5 + $0xbd4] sm:$0xf]  ;;  %v9977_v20 = vld [vmem:[#allocation5 + $0xbd8] sm:$0xf0] }
 0x1a8   : > { %v3470_v31 = vadd.f32 %v3469_v60, %v13750_v58  ;;  %3841 = vmatpush.bf16.msra.mxu0 %v9524_v29  ;;  %v9636_v58 = vor.u32 %v12006_v33, %v9633_v48  ;;  %v9681_v29 = vld [vmem:[#allocation5 + $0x988] sm:$0xf0]  ;;  %v3990_v4 = vmax.f32 %v13767_v3, 0.0  ;;  %v9865_v60 = vld [vmem:[#allocation5 + $0xaf8] sm:$0xf0] }
 0x1a9   : > { %3860 = vmatpush.bf16.msra.mxu1 %v9588_v39  ;;  %v14371_v39 = vld [vmem:[#allocation27_spill] sm:$0xff]  ;;  %v9868_v27 = vor.u32 %v12064_v12, %v9865_v60  ;;  %v12090_v12 = vld [vmem:[#allocation5 + $0xbc4] sm:$0xf] }
 0x1aa   : > { %3879 = vmatpush.bf16.msra.mxu2 %v9652_v22  ;;  %v3489_v54 = vadd.f32 %v3488_v21, %v3470_v31  ;;  %v12018_v22 = vld [vmem:[#allocation5 + $0x984] sm:$0xf]  ;;  %v12096_v21 = vld [vmem:[#allocation5 + $0xbf4] sm:$0xf]  ;;  %v9993_v31 = vld [vmem:[#allocation5 + $0xbf8] sm:$0xf0] }
 0x1ab   : > { %3898 = vmatpush.bf16.msra.mxu3 %v9716_v40  ;;  %v3507_v19 = vpop.f32.mrf.mxu2  ;;  %v9929_v40 = vld [vmem:[#allocation5 + $0xb78] sm:$0xf0]  ;;  %v9684_v33 = vor.u32 %v12018_v22, %v9681_v29  ;;  %v9996_v6 = vor.u32 %v12096_v21, %v9993_v31  ;;  %v12074_v29 = vld [vmem:[#allocation5 + $0xb44] sm:$0xf] }
 0x1ac   : > { %3842 = vmatpush.bf16.msra.mxu0 %v9516_v50  ;;  %v3508_v38 = vadd.f32 %v3507_v19, %v3489_v54  ;;  %v9556_v50 = vor.u32 %v11986_v43, %v9553_v28  ;;  %v9924_v19 = vor.u32 %v12078_v53, %v9921_v35  ;;  %v14376_v21 = vld [vmem:[#allocation32_spill] sm:$0xff]  ;;  %v14377_v31 = vld [vmem:[#allocation33_spill] sm:$0xff]  ;;  %v12040_v53 = vld [vmem:[#allocation5 + $0xa34] sm:$0xf] }
 0x1ad   : > { %3861 = vmatpush.bf16.msra.mxu1 %v9580_v30  ;;  %v3526_v42 = vpop.f32.mrf.mxu3  ;;  %v9769_v35 = vld [vmem:[#allocation5 + $0xa38] sm:$0xf0] }
 0x1ae   : > { %3880 = vmatpush.bf16.msra.mxu2 %v9644_v55  ;;  %v3527_v47 = vadd.f32 %v3526_v42, %v3508_v38  ;;  %v12076_v38 = vld [vmem:[#allocation5 + $0xb54] sm:$0xf] }
 0x1af   : > { %3899 = vmatpush.bf16.msra.mxu3 %v9708_v0  ;;  %v3472_v52 = vpop.f32.mrf.mxu0  ;;  %v3491_v62 = vpop.f32.mrf.mxu1  ;;  %v9804_v0 = vor.u32 %v12048_v17, %v9801_v45  ;;  %v9777_v17 = vld [vmem:[#allocation5 + $0xa48] sm:$0xf0] }
 0x1b0   : > { %v3473_v23 = vadd.f32 %v3472_v52, %v13757_v1  ;;  %3843 = vmatpush.bf16.msra.mxu0 %v9508_v49  ;;  %3794 = vmatmul.bf16.gmra.mxu1 %v14371_v39  ;;  %v12080_v1 = vld [vmem:[#allocation5 + $0xb74] sm:$0xf]  ;;  %v3992_v18 = vmax.f32 %v3527_v47, 0.0  ;;  %v9793_v49 = vld [vmem:[#allocation5 + $0xa68] sm:$0xf0] }
 0x1b1   : > { %3862 = vmatpush.bf16.msra.mxu1 %v9572_v25  ;;  %3775 = vmatmul.bf16.gmra.mxu0 %v14370_v61  ;;  %v9932_v30 = vor.u32 %v12080_v1, %v9929_v40  ;;  %v9857_v25 = vld [vmem:[#allocation5 + $0xae8] sm:$0xf0]  ;;  %v9913_v52 = vld [vmem:[#allocation5 + $0xb58] sm:$0xf0]  ;;  %v9980_v1 = vor.u32 %v12092_v24, %v9977_v20  ;;  %v12042_v40 = vld [vmem:[#allocation5 + $0xa44] sm:$0xf] }
 0x1b2   : > { %3881 = vmatpush.bf16.msra.mxu2 %v9636_v58  ;;  %v3492_v44 = vadd.f32 %v3491_v62, %v3473_v23  ;;  %3832 = vmatmul.bf16.gmra.mxu3 %v14373_v51  ;;  %v13775_v55 = vpack.c.bf16 %v3992_v18, %v3990_v4  ;;  %v12046_v58 = vld [vmem:[#allocation5 + $0xa64] sm:$0xf]  ;;  %v9860_v2 = vor.u32 %v12062_v26, %v9857_v25  ;;  %v12044_v62 = vld [vmem:[#allocation5 + $0xa54] sm:$0xf]  ;;  %v9841_v45 = vld [vmem:[#allocation5 + $0xac8] sm:$0xf0] }
 0x1b3   : > { %3900 = vmatpush.bf16.msra.mxu3 %v9700_v7  ;;  %3813 = vmatmul.bf16.gmra.mxu2 %v14372_v36  ;;  %v3510_v48 = vpop.f32.mrf.mxu2  ;;  %v12094_v7 = vld [vmem:[#allocation5 + $0xbe4] sm:$0xf]  ;;  %v9796_v42 = vor.u32 %v12046_v58, %v9793_v49  ;;  %v9916_v28 = vor.u32 %v12076_v38, %v9913_v52  ;;  %v9788_v22 = vor.u32 %v12044_v62, %v9785_v13  ;;  %v14374_v36 = vld [vmem:[#allocation30_spill] sm:$0xff]  ;;  %v14375_v51 = vld [vmem:[#allocation31_spill] sm:$0xff] }
 0x1b4   : > { %3844 = vmatpush.bf16.msra.mxu0 %v9500_v56  ;;  %v3511_v16 = vadd.f32 %v3510_v48, %v3492_v44  ;;  %v9988_v8 = vor.u32 %v12094_v7, %v9985_v63  ;;  %v9849_v56 = vld [vmem:[#allocation5 + $0xad8] sm:$0xf0]  ;;  %v9905_v44 = vld [vmem:[#allocation5 + $0xb48] sm:$0xf0]  ;;  %v12058_v4 = vld [vmem:[#allocation5 + $0xac4] sm:$0xf]  ;;  %v9772_v63 = vor.u32 %v12040_v53, %v9769_v35 }
 0x1b5   : > { %3863 = vmatpush.bf16.msra.mxu1 %v9564_v32  ;;  %v3529_v3 = vpop.f32.mrf.mxu3  ;;  %v9852_v39 = vor.u32 %v12060_v14, %v9849_v56  ;;  %v12072_v48 = vld [vmem:[#allocation5 + $0xb34] sm:$0xf]  ;;  %v9961_v49 = vld [vmem:[#allocation5 + $0xbb8] sm:$0xf0]  ;;  %v12054_v38 = vld [vmem:[#allocation5 + $0xaa4] sm:$0xf] }
 0x1b6   : > { %3882 = vmatpush.bf16.msra.mxu2 %v9628_v37  ;;  %v13778_v10 = vadd.f32 %v3529_v3, %v3511_v16  ;;  %v9897_v3 = vld [vmem:[#allocation5 + $0xb38] sm:$0xf0]  ;;  %v12056_v16 = vld [vmem:[#allocation5 + $0xab4] sm:$0xf]  ;;  %v9825_v52 = vld [vmem:[#allocation5 + $0xaa8] sm:$0xf0] }
 0x1b7   : > { %3901 = vmatpush.bf16.msra.mxu3 %v9692_v41  ;;  %v3474_v54 = vpop.f32.mrf.mxu0  ;;  %v3493_v5 = vpop.f32.mrf.mxu1  ;;  %v12088_v58 = vld [vmem:[#allocation5 + $0xbb4] sm:$0xf]  ;;  %v9900_v7 = vor.u32 %v12072_v48, %v9897_v3  ;;  %v12086_v62 = vld [vmem:[#allocation5 + $0xba4] sm:$0xf]  ;;  %v9953_v13 = vld [vmem:[#allocation5 + $0xba8] sm:$0xf0]  ;;  %v9828_v24 = vor.u32 %v12054_v38, %v9825_v52 }
 0x1b8   : > { %v3475_v57 = vadd.f32 %v3474_v54, %v13760_v11  ;;  %3845 = vmatpush.bf16.msra.mxu0 %v9492_v15  ;;  %v13780_v11 = vperm.slane %v12846_v9, 1  ;;  %v3994_v15 = vmax.f32 %v13778_v10, 0.0  ;;  %v12070_v10 = vld [vmem:[#allocation5 + $0xb24] sm:$0xf]  ;;  %v9761_v9 = vld [vmem:[#allocation5 + $0xa28] sm:$0xf0]  ;;  %v9956_v20 = vor.u32 %v12086_v62, %v9953_v13 }
 0x1b9   : > { %3864 = vmatpush.bf16.msra.mxu1 %v9556_v50  ;;  %v9908_v50 = vor.u32 %v12074_v29, %v9905_v44  ;;  %v9881_v56 = vld [vmem:[#allocation5 + $0xb18] sm:$0xf0]  ;;  %v12084_v29 = vld [vmem:[#allocation5 + $0xb94] sm:$0xf]  ;;  %v14381_v3 = vld [vmem:[#allocation37_spill] sm:$0xff] }
 0x1ba   : > { %3883 = vmatpush.bf16.msra.mxu2 %v9620_v46  ;;  %v3494_v34 = vadd.f32 %v3493_v5, %v3475_v57  ;;  %v9969_v46 = vld [vmem:[#allocation5 + $0xbc8] sm:$0xf0]  ;;  %v9945_v44 = vld [vmem:[#allocation5 + $0xb98] sm:$0xf0] }
 0x1bb   : > { %3902 = vmatpush.bf16.msra.mxu3 %v9684_v33  ;;  %v3512_v23 = vpop.f32.mrf.mxu2  ;;  %v9780_v33 = vor.u32 %v12042_v40, %v9777_v17  ;;  %v14380_v48 = vld [vmem:[#allocation36_spill] sm:$0xff]  ;;  %v14382_v38 = vld [vmem:[#allocation38_spill] sm:$0xff]  ;;  %v14383_v52 = vld [vmem:[#allocation39_spill] sm:$0xff] }
 0x1bc   : > { %3914 = vmatpush.bf16.msrb.mxu0 %v9804_v0  ;;  %v3513_v43 = vadd.f32 %v3512_v23, %v3494_v34  ;;  %v9972_v0 = vor.u32 %v12090_v12, %v9969_v46  ;;  %v9889_v34 = vld [vmem:[#allocation5 + $0xb28] sm:$0xf0]  ;;  %v12050_v46 = vld [vmem:[#allocation5 + $0xa84] sm:$0xf] }
 0x1bd   : > { %3933 = vmatpush.bf16.msrb.mxu1 %v9868_v27  ;;  %v3531_v37 = vpop.f32.mrf.mxu3  ;;  %v9892_v14 = vor.u32 %v12070_v10, %v9889_v34  ;;  %v9745_v12 = vld [vmem:[#allocation5 + $0xa08] sm:$0xf0]  ;;  %v14384_v62 = vld [vmem:[#allocation40_spill] sm:$0xff] }
 0x1be   : > { %3952 = vmatpush.bf16.msrb.mxu2 %v9932_v30  ;;  %v3532_v61 = vadd.f32 %v3531_v37, %v3513_v43  ;;  %v9844_v30 = vor.u32 %v12058_v4, %v9841_v45  ;;  %v12068_v37 = vld [vmem:[#allocation5 + $0xb14] sm:$0xf]  ;;  %v12066_v4 = vld [vmem:[#allocation5 + $0xb04] sm:$0xf] }
 0x1bf   : > { %3971 = vmatpush.bf16.msrb.mxu3 %v9996_v6  ;;  %v3543_v47 = vpop.f32.mrf.mxu0  ;;  %v3562_v32 = vpop.f32.mrf.mxu1  ;;  %v9833_v6 = vld [vmem:[#allocation5 + $0xab8] sm:$0xf0]  ;;  %v12036_v43 = vld [vmem:[#allocation5 + $0xa14] sm:$0xf]  ;;  %v9884_v40 = vor.u32 %v12068_v37, %v9881_v56  ;;  %v12034_v45 = vld [vmem:[#allocation5 + $0xa04] sm:$0xf] }
 0x1c0   : > { %3915 = vmatpush.bf16.msrb.mxu0 %v9796_v42  ;;  %v3544_v41 = vadd.f32 %v3543_v47, %v13780_v11  ;;  %3865 = vmatmul.bf16.vlgmr.msra.gmra.mxu1 %v14375_v51  ;;  %v3996_v60 = vmax.f32 %v3532_v61, 0.0  ;;  %v9836_v42 = vor.u32 %v12056_v16, %v9833_v6  ;;  %v9753_v47 = vld [vmem:[#allocation5 + $0xa18] sm:$0xf0]  ;;  %v9948_v51 = vor.u32 %v12084_v29, %v9945_v44  ;;  %v14385_v13 = vld [vmem:[#allocation41_spill] sm:$0xff] }
 0x1c1   : > { %3934 = vmatpush.bf16.msrb.mxu1 %v9860_v2  ;;  %3846 = vmatmul.bf16.vlgmr.msra.gmra.mxu0 %v14374_v36  ;;  %v9964_v2 = vor.u32 %v12088_v58, %v9961_v49  ;;  %v9756_v17 = vor.u32 %v12036_v43, %v9753_v47  ;;  %v12100_v47 = vld [vmem:[#allocation8 + $0x10] sm:$0xff] }
 0x1c2   : > { %3953 = vmatpush.bf16.msrb.mxu2 %v9924_v19  ;;  %v3563_v18 = vadd.f32 %v3562_v32, %v3544_v41  ;;  %3903 = vmatmul.bf16.vlgmr.msra.gmra.mxu3 %v14377_v31  ;;  %v13788_v54 = vpack.c.bf16 %v3996_v60, %v3994_v15  ;;  %v12052_v32 = vld [vmem:[#allocation5 + $0xa94] sm:$0xf]  ;;  %v9809_v31 = vld [vmem:[#allocation5 + $0xa88] sm:$0xf0] }
 0x1c3   : > { %3972 = vmatpush.bf16.msrb.mxu3 %v9988_v8  ;;  %3884 = vmatmul.bf16.vlgmr.msra.gmra.mxu2 %v14376_v21  ;;  %v3581_v5 = vpop.f32.mrf.mxu2  ;;  %v12038_v8 = vld [vmem:[#allocation5 + $0xa24] sm:$0xf]  ;;  %v14378_v60 = vld [vmem:[#allocation34_spill] sm:$0xff]  ;;  %v14379_v21 = vld [vmem:[#allocation35_spill] sm:$0xff]  ;;  %v9812_v53 = vor.u32 %v12050_v46, %v9809_v31 }
 0x1c4   : > { %3916 = vmatpush.bf16.msrb.mxu0 %v9788_v22  ;;  %v3582_v26 = vadd.f32 %v3581_v5, %v3563_v18  ;;  %v9764_v23 = vor.u32 %v12038_v8, %v9761_v9  ;;  %v9817_v22 = vld [vmem:[#allocation5 + $0xa98] sm:$0xf0]  ;;  %v9873_v18 = vld [vmem:[#allocation5 + $0xb08] sm:$0xf0] }
 0x1c5   : > { %3935 = vmatpush.bf16.msrb.mxu1 %v9852_v39  ;;  %v3600_v27 = vpop.f32.mrf.mxu3  ;;  %v9820_v36 = vor.u32 %v12052_v32, %v9817_v22  ;;  %v12103_v8 = vld [vmem:[#allocation8 + $0x28] sm:$0xff] }
 0x1c6   : > { %3954 = vmatpush.bf16.msrb.mxu2 %v9916_v28  ;;  %v13794_v19 = vadd.f32 %v3600_v27, %v3582_v26  ;;  %v12105_v27 = vld [vmem:[#allocation8 + $0x38] sm:$0xff] }
 0x1c7   : > { %3973 = vmatpush.bf16.msrb.mxu3 %v9980_v1  ;;  %v13790_v57 = vpop.f32.mrf.mxu0  ;;  %v13792_v25 = vpop.f32.mrf.mxu1 }
 0x1c8   : > { %3917 = vmatpush.bf16.msrb.mxu0 %v9780_v33  ;;  %v9937_v33 = vld [vmem:[#allocation5 + $0xb88] sm:$0xf0] }
 0x1c9   : > { %3936 = vmatpush.bf16.msrb.mxu1 %v9844_v30  ;;  %v9876_v30 = vor.u32 %v12066_v4, %v9873_v18  ;;  %v14388_v4 = vld [vmem:[#allocation44_spill] sm:$0xff] }
 0x1ca   : > { %3955 = vmatpush.bf16.msrb.mxu2 %v9908_v50  ;;  %v12082_v50 = vld [vmem:[#allocation5 + $0xb84] sm:$0xf] }
 0x1cb   : > { %3974 = vmatpush.bf16.msrb.mxu3 %v9972_v0  ;;  %v13796_v41 = vpop.f32.mrf.mxu2  ;;  %v9748_v0 = vor.u32 %v12034_v45, %v9745_v12  ;;  %v9940_v35 = vor.u32 %v12082_v50, %v9937_v33  ;;  %v12098_v18 = vld [vmem:[#allocation8] sm:$0xff] }
 0x1cc   : > { %3918 = vmatpush.bf16.msrb.mxu0 %v9772_v63 }
 0x1cd   : > { %3937 = vmatpush.bf16.msrb.mxu1 %v9836_v42  ;;  %v13798_v28 = vpop.f32.mrf.mxu3 }
 0x1ce   : > { %3956 = vmatpush.bf16.msrb.mxu2 %v9900_v7  ;;  %v12104_v7 = vld [vmem:[#allocation8 + $0x30] sm:$0xff] }
 0x1cf   : > { %3975 = vmatpush.bf16.msrb.mxu3 %v9964_v2  ;;  %v3548_v61 = vpop.f32.mrf.mxu0  ;;  %v3567_v39 = vpop.f32.mrf.mxu1 }
 0x1d0   : > { %v3549_v1 = vadd.f32 %v3548_v61, %v13780_v11  ;;  %3919 = vmatpush.bf16.msrb.mxu0 %v9764_v23  ;;  %3870 = vmatmul.bf16.gmra.mxu1 %v14379_v21 }
 0x1d1   : > { %3938 = vmatpush.bf16.msrb.mxu1 %v9828_v24  ;;  %3851 = vmatmul.bf16.gmra.mxu0 %v14378_v60 }
 0x1d2   : > { %3957 = vmatpush.bf16.msrb.mxu2 %v9892_v14  ;;  %v3568_v15 = vadd.f32 %v3567_v39, %v3549_v1  ;;  %3908 = vmatmul.bf16.gmra.mxu3 %v14381_v3  ;;  %v12102_v14 = vld [vmem:[#allocation8 + $0x20] sm:$0xff]  ;;  %v12099_v39 = vld [vmem:[#allocation8 + $0x8] sm:$0xff] }
 0x1d3   : > { %3976 = vmatpush.bf16.msrb.mxu3 %v9956_v20  ;;  %3889 = vmatmul.bf16.gmra.mxu2 %v14380_v48  ;;  %v3586_v16 = vpop.f32.mrf.mxu2 }
 0x1d4   : > { %3920 = vmatpush.bf16.msrb.mxu0 %v9756_v17  ;;  %v3587_v6 = vadd.f32 %v3586_v16, %v3568_v15  ;;  %v14387_v17 = vld [vmem:[#allocation43_spill] sm:$0xff] }
 0x1d5   : > { %3939 = vmatpush.bf16.msrb.mxu1 %v9820_v36  ;;  %v3605_v5 = vpop.f32.mrf.mxu3 }
 0x1d6   : > { %3958 = vmatpush.bf16.msrb.mxu2 %v9884_v40  ;;  %v3606_v26 = vadd.f32 %v3605_v5, %v3587_v6  ;;  %v14386_v40 = vld [vmem:[#allocation42_spill] sm:$0xff] }
 0x1d7   : > { %3977 = vmatpush.bf16.msrb.mxu3 %v9948_v51  ;;  %v13805_v58 = vpop.f32.mrf.mxu0  ;;  %v13807_v49 = vpop.f32.mrf.mxu1 }
 0x1d8   : > { %3921 = vmatpush.bf16.msrb.mxu0 %v9748_v0 }
 0x1d9   : > { %3940 = vmatpush.bf16.msrb.mxu1 %v9812_v53 }
 0x1da   : > { %3959 = vmatpush.bf16.msrb.mxu2 %v9876_v30 }
 0x1db   : > { %3978 = vmatpush.bf16.msrb.mxu3 %v9940_v35  ;;  %v13809_v63 = vpop.f32.mrf.mxu2 }
 0x1dc   : > { %4134 = vmatpush.bf16.msra.mxu0 %v12105_v27 }
 0x1dd   : > { %v13811_v10 = vpop.f32.mrf.mxu3 }
 0x1df   : > { %v3619_v34 = vpop.f32.mrf.mxu0  ;;  %v3638_v42 = vpop.f32.mrf.mxu1 }
 0x1e0   : > { %4135 = vmatpush.bf16.msra.mxu0 %v12104_v7  ;;  %v3620_v2 = vadd.f32 %v3619_v34, %v13794_v19  ;;  %3941 = vmatmul.bf16.vlgmr.msrb.gmra.mxu1 %v14383_v52  ;;  %v12101_v19 = vld [vmem:[#allocation8 + $0x18] sm:$0xff] }
 0x1e1   : > { %3922 = vmatmul.bf16.vlgmr.msrb.gmra.mxu0 %v14382_v38 }
 0x1e2   : > { %v3639_v9 = vadd.f32 %v3638_v42, %v3620_v2  ;;  %3979 = vmatmul.bf16.vlgmr.msrb.gmra.mxu3 %v14385_v13 }
 0x1e3   : > { %3960 = vmatmul.bf16.vlgmr.msrb.gmra.mxu2 %v14384_v62  ;;  %v3657_v23 = vpop.f32.mrf.mxu2 }
 0x1e4   : > { %4136 = vmatpush.bf16.msra.mxu0 %v12103_v8  ;;  %v3658_v56 = vadd.f32 %v3657_v23, %v3639_v9 }
 0x1e5   : > { %v3676_v37 = vpop.f32.mrf.mxu3 }
 0x1e6   : > { %v3677_v43 = vadd.f32 %v3676_v37, %v3658_v56  ;;  %v3546_v56 = vadd.f32 %v13790_v57, %v13780_v11 }
 0x1e7   : > { %v13818_v24 = vpop.f32.mrf.mxu0  ;;  %v13820_v20 = vpop.f32.mrf.mxu1 }
 0x1e8   : > { %4137 = vmatpush.bf16.msra.mxu0 %v12102_v14 }
 0x1eb   : > { %v13822_v32 = vpop.f32.mrf.mxu2 }
 0x1ec   : > { %4138 = vmatpush.bf16.msra.mxu0 %v12101_v19 }
 0x1ed   : > { %v13824_v22 = vpop.f32.mrf.mxu3 }
 0x1ef   : > { %v3624_v29 = vpop.f32.mrf.mxu0  ;;  %v3643_v44 = vpop.f32.mrf.mxu1 }
 0x1f0   : > { %v3625_v61 = vadd.f32 %v3624_v29, %v3606_v26  ;;  %4139 = vmatpush.bf16.msra.mxu0 %v12100_v47  ;;  %3946 = vmatmul.bf16.gmra.mxu1 %v14386_v40  ;;  %v12113_v40 = vld [vmem:[#allocation8 + $0x78] sm:$0xff] }
 0x1f1   : > { %3927 = vmatmul.bf16.gmra.mxu0 %v13681_v59  ;;  %4153 = vmatpush.bf16.msra.mxu1 %v12113_v40 }
 0x1f2   : > { %v3644_v1 = vadd.f32 %v3643_v44, %v3625_v61  ;;  %3984 = vmatmul.bf16.gmra.mxu3 %v14388_v4  ;;  %v3565_v44 = vadd.f32 %v13792_v25, %v3546_v56  ;;  %v3551_v25 = vadd.f32 %v13805_v58, %v13780_v11 }
 0x1f3   : > { %3965 = vmatmul.bf16.gmra.mxu2 %v14387_v17  ;;  %v3662_v36 = vpop.f32.mrf.mxu2 }
 0x1f4   : > { %4140 = vmatpush.bf16.msra.mxu0 %v12099_v39  ;;  %v3663_v45 = vadd.f32 %v3662_v36, %v3644_v1  ;;  %v3584_v61 = vadd.f32 %v13796_v41, %v3565_v44  ;;  %v12112_v36 = vld [vmem:[#allocation8 + $0x70] sm:$0xff] }
 0x1f5   : > { %v3681_v51 = vpop.f32.mrf.mxu3  ;;  %4154 = vmatpush.bf16.msra.mxu1 %v12112_v36 }
 0x1f6   : > { %v3682_v15 = vadd.f32 %v3681_v51, %v3663_v45  ;;  %v3603_v17 = vadd.f32 %v13798_v28, %v3584_v61  ;;  %v12106_v61 = vld [vmem:[#allocation8 + $0x40] sm:$0xff] }
 0x1f7   : > { %v13830_v12 = vpop.f32.mrf.mxu0  ;;  %v13832_v46 = vpop.f32.mrf.mxu1 }
 0x1f8   : > { %4141 = vmatpush.bf16.msra.mxu0 %v12098_v18  ;;  %v3622_v18 = vadd.f32 %v13818_v24, %v3603_v17  ;;  %v12110_v24 = vld [vmem:[#allocation8 + $0x60] sm:$0xff] }
 0x1fa   : > { %v3641_v41 = vadd.f32 %v13820_v20, %v3622_v18 }
 0x1fb   : > { %v13834_v60 = vpop.f32.mrf.mxu2 }
 0x1fc   : > { %v3660_v28 = vadd.f32 %v13822_v32, %v3641_v41 }
 0x1fd   : > { %v13836_v59 = vpop.f32.mrf.mxu3 }
 0x1ff   : > { %v3695_v21 = vpop.f32.mrf.mxu0  ;;  %v3714_v31 = vpop.f32.mrf.mxu1 }
 0x200   : > { %v3696_v50 = vadd.f32 %v3695_v21, %v3677_v43 }
 0x201   : > { %4142 = vmatmul.bf16.vlgmr.msra.gmra.mxu0 %v13775_v55 }
 0x202   : > { %v3715_v33 = vadd.f32 %v3714_v31, %v3696_v50  ;;  %v3570_v50 = vadd.f32 %v13807_v49, %v3551_v25  ;;  %v12108_v49 = vld [vmem:[#allocation8 + $0x50] sm:$0xff] }
 0x203   : > { %v3733_v48 = vpop.f32.mrf.mxu2 }
 0x204   : > { %v3734_v30 = vadd.f32 %v3733_v48, %v3715_v33  ;;  %v3589_v33 = vadd.f32 %v13809_v63, %v3570_v50  ;;  %v3679_v48 = vadd.f32 %v13824_v22, %v3660_v28 }
 0x205   : > { %v3752_v3 = vpop.f32.mrf.mxu3 }
 0x206   : > { %v13841_v35 = vadd.f32 %v3752_v3, %v3734_v30  ;;  %v12109_v3 = vld [vmem:[#allocation8 + $0x58] sm:$0xff]  ;;  %v3608_v30 = vadd.f32 %v13811_v10, %v3589_v33 }
 0x207   : > { %v3697_v0 = vpop.f32.mrf.mxu0  ;;  %v13839_v53 = vpop.f32.mrf.mxu1 }
 0x208   : > { %v3698_v11 = vadd.f32 %v3697_v0, %v3679_v48  ;;  %v3627_v32 = vadd.f32 %v13830_v12, %v3608_v30 }
 0x20a   : > { %v3646_v63 = vadd.f32 %v13832_v46, %v3627_v32 }
 0x20b   : > { %v13843_v16 = vpop.f32.mrf.mxu2 }
 0x20c   : > { %v3665_v10 = vadd.f32 %v13834_v60, %v3646_v63 }
 0x20d   : > { %v13845_v5 = vpop.f32.mrf.mxu3 }
 0x20f   : > { %v3700_v27 = vpop.f32.mrf.mxu0  ;;  %v3719_v6 = vpop.f32.mrf.mxu1 }
 0x210   : > { %v3701_v26 = vadd.f32 %v3700_v27, %v3682_v15  ;;  %v12111_v15 = vld [vmem:[#allocation8 + $0x68] sm:$0xff] }
 0x211   : > { %4147 = vmatmul.bf16.gmra.mxu0 %v13788_v54  ;;  %4155 = vmatpush.bf16.msra.mxu1 %v12111_v15 }
 0x212   : > { %v3720_v7 = vadd.f32 %v3719_v6, %v3701_v26  ;;  %v3717_v26 = vadd.f32 %v13839_v53, %v3698_v11 }
 0x213   : > { %v3738_v34 = vpop.f32.mrf.mxu2 }
 0x214   : > { %v3739_v42 = vadd.f32 %v3738_v34, %v3720_v7  ;;  %v3736_v7 = vadd.f32 %v13843_v16, %v3717_v26  ;;  %v3684_v16 = vadd.f32 %v13836_v59, %v3665_v10 }
 0x215   : > { %v3757_v55 = vpop.f32.mrf.mxu3  ;;  %4156 = vmatpush.bf16.msra.mxu1 %v12110_v24 }
 0x216   : > { %v13852_v9 = vadd.f32 %v3757_v55, %v3739_v42  ;;  %v12107_v55 = vld [vmem:[#allocation8 + $0x48] sm:$0xff]  ;;  %v3755_v42 = vadd.f32 %v13845_v5, %v3736_v7 }
 0x217   : > { %v13848_v2 = vpop.f32.mrf.mxu0  ;;  %v13850_v8 = vpop.f32.mrf.mxu1 }
 0x218   : > { %v3703_v46 = vadd.f32 %v13848_v2, %v3684_v16 }
 0x219   : > { %4157 = vmatpush.bf16.msra.mxu1 %v12109_v3 }
 0x21a   : > { %v3722_v25 = vadd.f32 %v13850_v8, %v3703_v46  ;;  %v12129_v46 = vld [vmem:[#allocation11 + $0x74] sm:$0xf0] }
 0x21b   : > { %v13854_v38 = vpop.f32.mrf.mxu2 }
 0x21d   : > { %v13856_v52 = vpop.f32.mrf.mxu3  ;;  %4158 = vmatpush.bf16.msra.mxu1 %v12108_v49 }
 0x21f   : > { %v3771_v62 = vpop.f32.mrf.mxu0  ;;  %v3790_v13 = vpop.f32.mrf.mxu1 }
 0x220   : > { %v3772_v22 = vadd.f32 %v3771_v62, %v13841_v35 }
 0x221   : > { %4159 = vmatpush.bf16.msra.mxu1 %v12107_v55 }
 0x222   : > { %v3791_v12 = vadd.f32 %v3790_v13, %v3772_v22 }
 0x225   : > { %v13858_v23 = vpop.f32.mrf.mxu3  ;;  %4160 = vmatpush.bf16.msra.mxu1 %v12106_v61 }
 0x226   : > { %v3809_v14 = vpop.f32.mrf.mxu2 }
 0x227   : > { %v3773_v37 = vpop.f32.mrf.mxu0  ;;  %v3792_v54 = vpop.f32.mrf.mxu1  ;;  %v3810_v40 = vadd.f32 %v3809_v14, %v3791_v12 }
 0x228   : > { %v3774_v53 = vadd.f32 %v3773_v37, %v3755_v42  ;;  %v3741_v37 = vadd.f32 %v13854_v38, %v3722_v25  ;;  %v12127_v25 = vld [vmem:[#allocation11 + $0x64] sm:$0xf0] }
 0x229   : > { %v3829_v18 = vadd.f32 %v13858_v23, %v3810_v40  ;;  %v10119_v40 = vld [vmem:[#allocation11 + $0x70] sm:$0xf] }
 0x22a   : > { %v3793_v35 = vadd.f32 %v3792_v54, %v3774_v53  ;;  %v3760_v23 = vadd.f32 %v13856_v52, %v3741_v37  ;;  %v10113_v37 = vld [vmem:[#allocation11 + $0x68] sm:$0xf0] }
 0x22d   : > { %v13864_v43 = vpop.f32.mrf.mxu3 }
 0x22e   : > { %v13862_v19 = vpop.f32.mrf.mxu2 }
 0x22f   : > { %v13866_v47 = vpop.f32.mrf.mxu0  ;;  %v13868_v29 = vpop.f32.mrf.mxu1  ;;  %v3812_v60 = vadd.f32 %v13862_v19, %v3793_v35  ;;  %v12128_v35 = vld [vmem:[#allocation11 + $0x74] sm:$0xf] }
 0x230   : > { %v3777_v14 = vadd.f32 %v13866_v47, %v13852_v9 }
 0x231   : > { %v3831_v59 = vadd.f32 %v13864_v43, %v3812_v60  ;;  %v10120_v60 = vor.u32 %v12129_v46, %v10119_v40  ;;  %v10801_v40 = vld [vmem:[#allocation14 + $0x5a0] sm:$0xf0]  ;;  %v10799_v46 = vld [vmem:[#allocation14 + $0x540] sm:$0xf] }
 0x232   : > { %v3796_v24 = vadd.f32 %v13868_v29, %v3777_v14 }
 0x233   : > { %4280 = vmatpush.bf16.msra.mxu2 %v10120_v60  ;;  %v12310_v60 = vld [vmem:[#allocation14 + $0x59c] sm:$0xf0] }
 0x235   : > { %v13874_v1 = vpop.f32.mrf.mxu3 }
 0x236   : > { %v13872_v39 = vpop.f32.mrf.mxu2 }
 0x237   : > { %v13877_v57 = vpop.f32.mrf.mxu0  ;;  %v13879_v4 = vpop.f32.mrf.mxu1  ;;  %v3815_v38 = vadd.f32 %v13872_v39, %v3796_v24 }
 0x238   : > { %v3779_v8 = vadd.f32 %v13877_v57, %v3760_v23 }
 0x239   : > { %v3834_v11 = vadd.f32 %v13874_v1, %v3815_v38 }
 0x23a   : > { %v3798_v9 = vadd.f32 %v13879_v4, %v3779_v8 }
 0x23d   : > { %v13887_v45 = vpop.f32.mrf.mxu3 }
 0x23e   : > { %v13885_v51 = vpop.f32.mrf.mxu2 }
 0x23f   : > { %v3847_v21 = vpop.f32.mrf.mxu0  ;;  %v3866_v31 = vpop.f32.mrf.mxu1  ;;  %v3817_v52 = vadd.f32 %v13885_v51, %v3798_v9  ;;  %v12123_v9 = vld [vmem:[#allocation11 + $0x44] sm:$0xf0] }
 0x240   : > { %v3848_v13 = vadd.f32 %v3847_v21, %v3829_v18 }
 0x242   : > { %v3867_v2 = vadd.f32 %v3866_v31, %v3848_v13  ;;  %v12126_v13 = vld [vmem:[#allocation11 + $0x64] sm:$0xf] }
 0x245   : > { %v3904_v20 = vpop.f32.mrf.mxu3 }
 0x246   : > { %v3885_v58 = vpop.f32.mrf.mxu2 }
 0x247   : > { %v3849_v27 = vpop.f32.mrf.mxu0  ;;  %v3868_v6 = vpop.f32.mrf.mxu1  ;;  %v3886_v28 = vadd.f32 %v3885_v58, %v3867_v2 }
 0x248   : > { %v3850_v54 = vadd.f32 %v3849_v27, %v3831_v59 }
 0x249   : > { %v3905_v43 = vadd.f32 %v3904_v20, %v3886_v28  ;;  %v12124_v28 = vld [vmem:[#allocation11 + $0x54] sm:$0xf] }
 0x24a   : > { %v3869_v21 = vadd.f32 %v3868_v6, %v3850_v54  ;;  %v3836_v6 = vadd.f32 %v13887_v45, %v3817_v52  ;;  %v10116_v54 = vor.u32 %v12126_v13, %v10113_v37  ;;  %v12490_v13 = vld [vmem:[#allocation14 + $0xb44] sm:$0xf] }
 0x24b   : > { %v11569_v37 = vld [vmem:[#allocation14 + $0xba0] sm:$0xf0] }
 0x24d   : > { %v3906_v34 = vpop.f32.mrf.mxu3 }
 0x24e   : > { %v3887_v0 = vpop.f32.mrf.mxu2 }
 0x24f   : > { %v3852_v56 = vpop.f32.mrf.mxu0  ;;  %v3871_v44 = vpop.f32.mrf.mxu1  ;;  %v3888_v33 = vadd.f32 %v3887_v0, %v3869_v21 }
 0x250   : > { %v3853_v29 = vadd.f32 %v3852_v56, %v3834_v11 }
 0x251   : > { %v3907_v58 = vadd.f32 %v3906_v34, %v3888_v33  ;;  %v10095_v33 = vld [vmem:[#allocation11 + $0x40] sm:$0xf] }
 0x252   : > { %v3872_v20 = vadd.f32 %v3871_v44, %v3853_v29  ;;  %v12121_v29 = vld [vmem:[#allocation11 + $0x34] sm:$0xf0] }
 0x255   : > { %v3909_v17 = vpop.f32.mrf.mxu3 }
 0x256   : > { %v3890_v62 = vpop.f32.mrf.mxu2 }
 0x257   : > { %v3854_v5 = vpop.f32.mrf.mxu0  ;;  %v3873_v36 = vpop.f32.mrf.mxu1  ;;  %v3891_v7 = vadd.f32 %v3890_v62, %v3872_v20 }
 0x258   : > { %v3855_v32 = vadd.f32 %v3854_v5, %v3836_v6  ;;  %v10121_v5 = vld [vmem:[#allocation11 + $0x78] sm:$0xf0]  ;;  %v12120_v6 = vld [vmem:[#allocation11 + $0x34] sm:$0xf] }
 0x259   : > { %v3910_v55 = vadd.f32 %v3909_v17, %v3891_v7  ;;  %v10124_v17 = vor.u32 %v12128_v35, %v10121_v5  ;;  %v10081_v7 = vld [vmem:[#allocation11 + $0x28] sm:$0xf0]  ;;  %v11567_v5 = vld [vmem:[#allocation14 + $0xb40] sm:$0xf] }
 0x25a   : > { %v3874_v0 = vadd.f32 %v3873_v36, %v3855_v32  ;;  %v10111_v36 = vld [vmem:[#allocation11 + $0x60] sm:$0xf] }
 0x25b   : > { %v10112_v14 = vor.u32 %v12127_v25, %v10111_v36  ;;  %4299 = vmatpush.bf16.msra.mxu3 %v10124_v17  ;;  %v10079_v32 = vld [vmem:[#allocation11 + $0x20] sm:$0xf]  ;;  %v10800_v25 = vor.u32 %v12310_v60, %v10799_v46 }
 0x25c   : > { %v12502_v36 = vld [vmem:[#allocation14 + $0xb9c] sm:$0xf0] }
 0x25d   : > { %v3911_v15 = vpop.f32.mrf.mxu3  ;;  %4281 = vmatpush.bf16.msra.mxu2 %v10112_v14  ;;  %v11568_v17 = vor.u32 %v12502_v36, %v11567_v5  ;;  %v11572_v14 = vor.u32 %v12490_v13, %v11569_v37  ;;  %6688 = vmatpush.bf16.msrb.mxu0 %v10800_v25  ;;  %v10415_v25 = vld [vmem:[#allocation14 + $0x240] sm:$0xf] }
 0x25e   : > { %v3892_v41 = vpop.f32.mrf.mxu2  ;;  %v11183_v13 = vld [vmem:[#allocation14 + $0x840] sm:$0xf] }
 0x25f   : > { %v3923_v19 = vpop.f32.mrf.mxu0  ;;  %v3942_v50 = vpop.f32.mrf.mxu1  ;;  %v3893_v10 = vadd.f32 %v3892_v41, %v3874_v0  ;;  %v10103_v41 = vld [vmem:[#allocation11 + $0x50] sm:$0xf]  ;;  %4300 = vmatpush.bf16.msra.mxu3 %v10116_v54  ;;  %v10703_v54 = vld [vmem:[#allocation14 + $0x480] sm:$0xf]  ;;  %6707 = vmatpush.bf16.msrb.mxu1 %v11568_v17 }
 0x260   : > { %v3924_v47 = vadd.f32 %v3923_v19, %v3905_v43  ;;  %v10105_v19 = vld [vmem:[#allocation11 + $0x58] sm:$0xf0]  ;;  %v12214_v17 = vld [vmem:[#allocation14 + $0x29c] sm:$0xf0] }
 0x261   : > { %v3912_v44 = vadd.f32 %v3911_v15, %v3893_v10  ;;  %v12125_v15 = vld [vmem:[#allocation11 + $0x54] sm:$0xf0]  ;;  %v10108_v43 = vor.u32 %v12124_v28, %v10105_v19  ;;  %v10063_v10 = vld [vmem:[#allocation11] sm:$0xf]  ;;  %v10416_v37 = vor.u32 %v12214_v17, %v10415_v25 }
 0x262   : > { %v3943_v27 = vadd.f32 %v3942_v50, %v3924_v47  ;;  %v10104_v21 = vor.u32 %v12125_v15, %v10103_v41  ;;  %v12286_v41 = vld [vmem:[#allocation14 + $0x4dc] sm:$0xf0] }
 0x263   : > { %4301 = vmatpush.bf16.msra.mxu3 %v10108_v43  ;;  %v11471_v28 = vld [vmem:[#allocation14 + $0xa80] sm:$0xf] }
 0x264   : > { %4282 = vmatpush.bf16.msra.mxu2 %v10104_v21  ;;  %v12478_v19 = vld [vmem:[#allocation14 + $0xadc] sm:$0xf0]  ;;  %v12250_v21 = vld [vmem:[#allocation14 + $0x3c4] sm:$0xf] }
 0x265   : > { %v3980_v48 = vpop.f32.mrf.mxu3 }
 0x266   : > { %v3961_v31 = vpop.f32.mrf.mxu2 }
 0x267   : > { %v3925_v3 = vpop.f32.mrf.mxu0  ;;  %v3944_v30 = vpop.f32.mrf.mxu1  ;;  %v3962_v39 = vadd.f32 %v3961_v31, %v3943_v27  ;;  %v12122_v31 = vld [vmem:[#allocation11 + $0x44] sm:$0xf] }
 0x268   : > { %v3926_v57 = vadd.f32 %v3925_v3, %v3907_v58  ;;  %v10096_v58 = vor.u32 %v12123_v9, %v10095_v33  ;;  %v10609_v33 = vld [vmem:[#allocation14 + $0x420] sm:$0xf0]  ;;  %v10607_v9 = vld [vmem:[#allocation14 + $0x3c0] sm:$0xf] }
 0x269   : > { %v3981_v63 = vadd.f32 %v3980_v48, %v3962_v39  ;;  %v10097_v48 = vld [vmem:[#allocation11 + $0x48] sm:$0xf0]  ;;  %v10089_v39 = vld [vmem:[#allocation11 + $0x38] sm:$0xf0] }
 0x26a   : > { %v3945_v26 = vadd.f32 %v3944_v30, %v3926_v57  ;;  %v10100_v3 = vor.u32 %v12122_v31, %v10097_v48  ;;  %v10087_v30 = vld [vmem:[#allocation11 + $0x30] sm:$0xf]  ;;  %4283 = vmatpush.bf16.msra.mxu2 %v10096_v58  ;;  %v10092_v20 = vor.u32 %v12120_v6, %v10089_v39  ;;  %v10612_v48 = vor.u32 %v12250_v21, %v10609_v33  ;;  %v12442_v58 = vld [vmem:[#allocation14 + $0x9c4] sm:$0xf] }
 0x26b   : > { %v3991_v42 = vmax.f32 %v3981_v63, 0.0  ;;  %v10088_v57 = vor.u32 %v12121_v29, %v10087_v30  ;;  %v10513_v6 = vld [vmem:[#allocation14 + $0x360] sm:$0xf0] }
 0x26c   : > { %4302 = vmatpush.bf16.msra.mxu3 %v10100_v3  ;;  %v12154_v33 = vld [vmem:[#allocation14 + $0xc4] sm:$0xf] }
 0x26d   : > { %v3982_v49 = vpop.f32.mrf.mxu3 }
 0x26e   : > { %v3963_v4 = vpop.f32.mrf.mxu2  ;;  %4284 = vmatpush.bf16.msra.mxu2 %v10088_v57  ;;  %v12226_v57 = vld [vmem:[#allocation14 + $0x304] sm:$0xf] }
 0x26f   : > { %v3964_v22 = vadd.f32 %v3963_v4, %v3945_v26  ;;  %v3928_v1 = vpop.f32.mrf.mxu0  ;;  %v3947_v34 = vpop.f32.mrf.mxu1  ;;  %v12119_v26 = vld [vmem:[#allocation11 + $0x24] sm:$0xf0]  ;;  %v12118_v4 = vld [vmem:[#allocation11 + $0x24] sm:$0xf] }
 0x270   : > { %v3929_v53 = vadd.f32 %v3928_v1, %v3910_v55  ;;  %4303 = vmatpush.bf16.msra.mxu3 %v10092_v20  ;;  %v10084_v63 = vor.u32 %v12118_v4, %v10081_v7  ;;  %v12117_v1 = vld [vmem:[#allocation11 + $0x14] sm:$0xf0]  ;;  %v12238_v4 = vld [vmem:[#allocation14 + $0x35c] sm:$0xf0] }
 0x271   : > { %v3983_v51 = vadd.f32 %v3982_v49, %v3964_v22  ;;  %v10080_v49 = vor.u32 %v12119_v26, %v10079_v32  ;;  %v10071_v22 = vld [vmem:[#allocation11 + $0x10] sm:$0xf]  ;;  %v10511_v32 = vld [vmem:[#allocation14 + $0x300] sm:$0xf] }
 0x272   : > { %v3948_v62 = vadd.f32 %v3947_v34, %v3929_v53  ;;  %v10072_v0 = vor.u32 %v12117_v1, %v10071_v22  ;;  %v10073_v34 = vld [vmem:[#allocation11 + $0x18] sm:$0xf0]  ;;  %v10065_v53 = vld [vmem:[#allocation11 + $0x8] sm:$0xf0]  ;;  %v12430_v7 = vld [vmem:[#allocation14 + $0x95c] sm:$0xf0]  ;;  %v10516_v22 = vor.u32 %v12226_v57, %v10513_v6 }
 0x273   : > { %v3993_v56 = vmax.f32 %v3983_v51, 0.0  ;;  %4285 = vmatpush.bf16.msra.mxu2 %v10080_v49  ;;  %v12116_v51 = vld [vmem:[#allocation11 + $0x14] sm:$0xf]  ;;  %v11279_v49 = vld [vmem:[#allocation14 + $0x900] sm:$0xf] }
 0x274   : > { %4304 = vmatpush.bf16.msra.mxu3 %v10084_v63  ;;  %v10076_v55 = vor.u32 %v12116_v51, %v10073_v34  ;;  %v12418_v1 = vld [vmem:[#allocation14 + $0x904] sm:$0xf] }
 0x275   : > { %v3999_v12 = vpack.c.bf16 %v3993_v56, %v3991_v42  ;;  %v3985_v61 = vpop.f32.mrf.mxu3  ;;  %v12115_v42 = vld [vmem:[#allocation11 + $0x4] sm:$0xf0]  ;;  %v12114_v56 = vld [vmem:[#allocation11 + $0x4] sm:$0xf] }
 0x276   : > { %v3966_v45 = vpop.f32.mrf.mxu2  ;;  %v12130_v6 = vld [vmem:[#allocation14 + $0x4] sm:$0xf] }
 0x277   : > { %4161 = vmatmul.bf16.vlgmr.msra.gmra.mxu1 %v3999_v12  ;;  %v3930_v16 = vpop.f32.mrf.mxu0  ;;  %v3967_v59 = vadd.f32 %v3966_v45, %v3948_v62  ;;  %v3949_v2 = vpop.f32.mrf.mxu1  ;;  %4286 = vmatpush.bf16.msra.mxu2 %v10072_v0  ;;  %v10064_v12 = vor.u32 %v12115_v42, %v10063_v10  ;;  %v10068_v45 = vor.u32 %v12114_v56, %v10065_v53  ;;  %v11281_v0 = vld [vmem:[#allocation14 + $0x960] sm:$0xf0] }
 0x278   : > { %v3931_v18 = vadd.f32 %v3930_v16, %v3912_v44  ;;  %4305 = vmatpush.bf16.msra.mxu3 %v10076_v55  ;;  %v13918_v44 = vld [vmem:[#allocation10] ss:$0 sm:$0xff]  ;;  %v12298_v16 = vld [vmem:[#allocation14 + $0x544] sm:$0xf]  ;;  %v10512_v42 = vor.u32 %v12238_v4, %v10511_v32  ;;  %v11280_v56 = vor.u32 %v12430_v7, %v11279_v49  ;;  %v11284_v53 = vor.u32 %v12418_v1, %v11281_v0  ;;  %v10895_v4 = vld [vmem:[#allocation14 + $0x600] sm:$0xf] }
 0x279   : > { %v3986_v24 = vadd.f32 %v3985_v61, %v3967_v59  ;;  %v12274_v59 = vld [vmem:[#allocation14 + $0x484] sm:$0xf]  ;;  %v12334_v49 = vld [vmem:[#allocation14 + $0x65c] sm:$0xf0] }
 0x27a   : > { %v3950_v23 = vadd.f32 %v3949_v2, %v3931_v18  ;;  %v10804_v18 = vor.u32 %v12298_v16, %v10801_v40  ;;  %v10705_v2 = vld [vmem:[#allocation14 + $0x4e0] sm:$0xf0] }
 0x27b   : > { %v3995_v11 = vmax.f32 %v3986_v24, 0.0  ;;  %4287 = vmatpush.bf16.msra.mxu2 %v10064_v12  ;;  %v10708_v15 = vor.u32 %v12274_v59, %v10705_v2  ;;  %v12466_v24 = vld [vmem:[#allocation14 + $0xa84] sm:$0xf]  ;;  %v12406_v59 = vld [vmem:[#allocation14 + $0x89c] sm:$0xf0] }
 0x27c   : > { %4306 = vmatpush.bf16.msra.mxu3 %v10068_v45  ;;  %v12202_v55 = vld [vmem:[#allocation14 + $0x244] sm:$0xf] }
 0x27d   : > { %v3987_v38 = vpop.f32.mrf.mxu3  ;;  %v10417_v10 = vld [vmem:[#allocation14 + $0x2a0] sm:$0xf0] }
 0x27e   : > { %v3968_v50 = vpop.f32.mrf.mxu2  ;;  %v10420_v45 = vor.u32 %v12202_v55, %v10417_v10  ;;  %v11185_v2 = vld [vmem:[#allocation14 + $0x8a0] sm:$0xf0]  ;;  %v10807_v55 = vld [vmem:[#allocation14 + $0x548] sm:$0xf] }
 0x27f   : > { %v3969_v8 = vadd.f32 %v3968_v50, %v3950_v23  ;;  %v4143_v61 = vpop.f32.mrf.mxu0  ;;  %6726 = vmatpush.bf16.msrb.mxu2 %v10804_v18  ;;  %v10704_v23 = vor.u32 %v12286_v41, %v10703_v54  ;;  %v11472_v50 = vor.u32 %v12478_v19, %v11471_v28  ;;  %v11184_v54 = vor.u32 %v12406_v59, %v11183_v13  ;;  %v12190_v19 = vld [vmem:[#allocation14 + $0x1dc] sm:$0xf0]  ;;  %v10897_v1 = vld [vmem:[#allocation14 + $0x660] sm:$0xf0]  ;;  %v12467_v13 = vld [vmem:[#allocation14 + $0xa8c] sm:$0xf] }
 0x280   : > { %6745 = vmatpush.bf16.msrb.mxu3 %v11572_v14  ;;  %v12394_v14 = vld [vmem:[#allocation14 + $0x844] sm:$0xf]  ;;  %v12251_v59 = vld [vmem:[#allocation14 + $0x3cc] sm:$0xf] }
 0x281   : > { %v3988_v47 = vadd.f32 %v3987_v38, %v3969_v8  ;;  %v11473_v8 = vld [vmem:[#allocation14 + $0xae0] sm:$0xf0]  ;;  %v4144_v38 = vadd.f32 %v13918_v44, %v4143_v61  ;;  %6689 = vmatpush.bf16.msrb.mxu0 %v10704_v23  ;;  %6708 = vmatpush.bf16.msrb.mxu1 %v11472_v50  ;;  %v11188_v41 = vor.u32 %v12394_v14, %v11185_v2  ;;  %v10319_v23 = vld [vmem:[#allocation14 + $0x180] sm:$0xf]  ;;  %v10617_v2 = vld [vmem:[#allocation14 + $0x428] sm:$0xf0] }
 0x282   : > { %v11476_v43 = vor.u32 %v12466_v24, %v11473_v8  ;;  %v11087_v50 = vld [vmem:[#allocation14 + $0x780] sm:$0xf]  ;;  %v10320_v8 = vor.u32 %v12190_v19, %v10319_v23  ;;  %v12443_v19 = vld [vmem:[#allocation14 + $0x9cc] sm:$0xf] }
 0x283   : > { %v3997_v52 = vmax.f32 %v3988_v47, 0.0  ;;  %v12262_v47 = vld [vmem:[#allocation14 + $0x41c] sm:$0xf0]  ;;  %6727 = vmatpush.bf16.msrb.mxu2 %v10708_v15  ;;  %v10321_v15 = vld [vmem:[#allocation14 + $0x1e0] sm:$0xf0] }
 0x284   : > { %v10608_v30 = vor.u32 %v12262_v47, %v10607_v9  ;;  %6746 = vmatpush.bf16.msrb.mxu3 %v11476_v43  ;;  %v12382_v24 = vld [vmem:[#allocation14 + $0x7dc] sm:$0xf0]  ;;  %v11089_v43 = vld [vmem:[#allocation14 + $0x7e0] sm:$0xf0] }
 0x285   : > { %v4001_v27 = vpack.c.bf16 %v3997_v52, %v3995_v11  ;;  %v11375_v11 = vld [vmem:[#allocation14 + $0x9c0] sm:$0xf]  ;;  %v11088_v21 = vor.u32 %v12382_v24, %v11087_v50  ;;  %v10225_v47 = vld [vmem:[#allocation14 + $0x120] sm:$0xf0]  ;;  %v11385_v50 = vld [vmem:[#allocation14 + $0xa28] sm:$0xf0] }
 0x286   : > { %v12454_v52 = vld [vmem:[#allocation14 + $0xa1c] sm:$0xf0]  ;;  %6690 = vmatpush.bf16.msrb.mxu0 %v10608_v30  ;;  %v12346_v30 = vld [vmem:[#allocation14 + $0x6c4] sm:$0xf] }
 0x287   : > { %4166 = vmatmul.bf16.gmra.mxu1 %v4001_v27  ;;  %v4145_v35 = vpop.f32.mrf.mxu0  ;;  %v11376_v29 = vor.u32 %v12454_v52, %v11375_v11  ;;  %v11377_v27 = vld [vmem:[#allocation14 + $0xa20] sm:$0xf0]  ;;  %6728 = vmatpush.bf16.msrb.mxu2 %v10612_v48  ;;  %v10223_v48 = vld [vmem:[#allocation14 + $0xc0] sm:$0xf] }
 0x288   : > { %v4146_v31 = vadd.f32 %v13918_v44, %v4145_v35  ;;  %v11380_v20 = vor.u32 %v12442_v58, %v11377_v27  ;;  %v12166_v11 = vld [vmem:[#allocation14 + $0x11c] sm:$0xf0] }
 0x289   : > { %6709 = vmatpush.bf16.msrb.mxu1 %v11376_v29  ;;  %v10991_v52 = vld [vmem:[#allocation14 + $0x6c0] sm:$0xf]  ;;  %v10224_v58 = vor.u32 %v12166_v11, %v10223_v48  ;;  %v10993_v29 = vld [vmem:[#allocation14 + $0x720] sm:$0xf0] }
 0x28a   : > { %6747 = vmatpush.bf16.msrb.mxu3 %v11380_v20  ;;  %6691 = vmatpush.bf16.msrb.mxu0 %v10512_v42  ;;  %v10996_v57 = vor.u32 %v12346_v30, %v10993_v29  ;;  %v10127_v20 = vld [vmem:[#allocation14] sm:$0xf]  ;;  %v12311_v42 = vld [vmem:[#allocation14 + $0x5a4] sm:$0xf0]  ;;  %v4194_v30 = vld [vmem:[#allocation13] sm:$0x3] }
 0x28b   : > { %6729 = vmatpush.bf16.msrb.mxu2 %v10516_v22  ;;  %v12322_v22 = vld [vmem:[#allocation14 + $0x604] sm:$0xf]  ;;  %v12203_v29 = vld [vmem:[#allocation14 + $0x24c] sm:$0xf] }
 0x28c   : > { %v10900_v0 = vor.u32 %v12322_v22, %v10897_v1  ;;  %v11193_v22 = vld [vmem:[#allocation14 + $0x8a8] sm:$0xf0] }
 0x28d   : > { %6710 = vmatpush.bf16.msrb.mxu1 %v11280_v56  ;;  %v11575_v56 = vld [vmem:[#allocation14 + $0xb48] sm:$0xf]  ;;  %v12179_v1 = vld [vmem:[#allocation14 + $0x18c] sm:$0xf] }
 0x28e   : > { %6748 = vmatpush.bf16.msrb.mxu3 %v11284_v53  ;;  %6692 = vmatpush.bf16.msrb.mxu0 %v10416_v37  ;;  %v10808_v53 = vor.u32 %v12311_v42, %v10807_v55  ;;  %v11481_v37 = vld [vmem:[#allocation14 + $0xae8] sm:$0xf0]  ;;  %v12191_v55 = vld [vmem:[#allocation14 + $0x1e4] sm:$0xf0] }
 0x28f   : > { %v4148_v63 = vpop.f32.mrf.mxu0  ;;  %6730 = vmatpush.bf16.msrb.mxu2 %v10420_v45  ;;  %v11484_v14 = vor.u32 %v12467_v13, %v11481_v37 }
 0x290   : > { %v4149_v40 = vadd.f32 %v13918_v44, %v4148_v63  ;;  %v10896_v63 = vor.u32 %v12334_v49, %v10895_v4 }
 0x291   : > { %6711 = vmatpush.bf16.msrb.mxu1 %v11184_v54  ;;  %v10620_v54 = vor.u32 %v12251_v59, %v10617_v2  ;;  %v11001_v59 = vld [vmem:[#allocation14 + $0x728] sm:$0xf0] }
 0x292   : > { %6749 = vmatpush.bf16.msrb.mxu3 %v11188_v41  ;;  %6693 = vmatpush.bf16.msrb.mxu0 %v10320_v8  ;;  %v10615_v41 = vld [vmem:[#allocation14 + $0x3c8] sm:$0xf]  ;;  %v11388_v8 = vor.u32 %v12443_v19, %v11385_v50  ;;  %v10137_v2 = vld [vmem:[#allocation14 + $0x68] sm:$0xf0] }
 0x295   : > { %6712 = vmatpush.bf16.msrb.mxu1 %v11088_v21  ;;  %v12227_v21 = vld [vmem:[#allocation14 + $0x30c] sm:$0xf] }
 0x296   : > { %6694 = vmatpush.bf16.msrb.mxu0 %v10224_v58  ;;  %v11289_v58 = vld [vmem:[#allocation14 + $0x968] sm:$0xf0] }
 0x297   : > { %v4150_v16 = vpop.f32.mrf.mxu0 }
 0x298   : > { %v4151_v46 = vadd.f32 %v13918_v44, %v4150_v16  ;;  %v12178_v44 = vld [vmem:[#allocation14 + $0x184] sm:$0xf]  ;;  %v11577_v16 = vld [vmem:[#allocation14 + $0xba8] sm:$0xf0] }
 0x299   : > { %v10324_v28 = vor.u32 %v12178_v44, %v10321_v15  ;;  %v12263_v44 = vld [vmem:[#allocation14 + $0x424] sm:$0xf0] }
 0x29a   : > { %v11383_v15 = vld [vmem:[#allocation14 + $0x9c8] sm:$0xf]  ;;  %v10616_v23 = vor.u32 %v12263_v44, %v10615_v41 }
 0x29b   : > { %6731 = vmatpush.bf16.msrb.mxu2 %v10324_v28  ;;  %v12455_v28 = vld [vmem:[#allocation14 + $0xa24] sm:$0xf0] }
 0x29c   : > { %v11384_v24 = vor.u32 %v12455_v28, %v11383_v15  ;;  %v10135_v15 = vld [vmem:[#allocation14 + $0x8] sm:$0xf] }
 0x29d   : > { %v10903_v28 = vld [vmem:[#allocation14 + $0x608] sm:$0xf] }
 0x2f4   : > { %v4162_v62 = vpop.f32.mrf.mxu1 }
 0x2f5   : > { %v4163_v3 = vadd.f32 %v4162_v62, %v4144_v38  ;;  %v12370_v38 = vld [vmem:[#allocation14 + $0x784] sm:$0xf] }
 0x2f6   : > { %v11092_v9 = vor.u32 %v12370_v38, %v11089_v43  ;;  %v10521_v38 = vld [vmem:[#allocation14 + $0x368] sm:$0xf0]  ;;  %v10519_v43 = vld [vmem:[#allocation14 + $0x308] sm:$0xf] }
 0x2f7   : > { %v4172_v51 = vmax.f32 %v4163_v3, 0.0  ;;  %v12358_v3 = vld [vmem:[#allocation14 + $0x71c] sm:$0xf0] }
 0x2f8   : > { %6750 = vmatpush.bf16.msrb.mxu3 %v11092_v9  ;;  %v10992_v27 = vor.u32 %v12358_v3, %v10991_v52  ;;  %v12239_v9 = vld [vmem:[#allocation14 + $0x364] sm:$0xf0]  ;;  %v12419_v52 = vld [vmem:[#allocation14 + $0x90c] sm:$0xf] }
 0x2f9   : > { %v10520_v48 = vor.u32 %v12239_v9, %v10519_v43  ;;  %v11292_v3 = vor.u32 %v12419_v52, %v11289_v58  ;;  %v12323_v9 = vld [vmem:[#allocation14 + $0x60c] sm:$0xf] }
 0x2fa   : > { %6713 = vmatpush.bf16.msrb.mxu1 %v10992_v27  ;;  %v10425_v27 = vld [vmem:[#allocation14 + $0x2a8] sm:$0xf0] }
 0x2fc   : > { %v4164_v39 = vpop.f32.mrf.mxu1  ;;  %6751 = vmatpush.bf16.msrb.mxu3 %v10996_v57  ;;  %v10423_v57 = vld [vmem:[#allocation14 + $0x248] sm:$0xf] }
 0x2fd   : > { %v4165_v26 = vadd.f32 %v4164_v39, %v4146_v31  ;;  %v10228_v31 = vor.u32 %v12154_v33, %v10225_v47  ;;  %v10129_v39 = vld [vmem:[#allocation14 + $0x60] sm:$0xf0]  ;;  %v10524_v33 = vor.u32 %v12227_v21, %v10521_v38  ;;  %v11287_v47 = vld [vmem:[#allocation14 + $0x908] sm:$0xf] }
 0x2fe   : > { %v10132_v32 = vor.u32 %v12130_v6, %v10129_v39  ;;  %6714 = vmatpush.bf16.msrb.mxu1 %v10896_v63  ;;  %v10428_v6 = vor.u32 %v12203_v29, %v10425_v27  ;;  %v12215_v39 = vld [vmem:[#allocation14 + $0x2a4] sm:$0xf0]  ;;  %v12395_v63 = vld [vmem:[#allocation14 + $0x84c] sm:$0xf]  ;;  %v12300_v29 = vld [vmem:[#allocation14 + $0x554] sm:$0xf] }
 0x2ff   : > { %v4173_v34 = vmax.f32 %v4165_v26, 0.0  ;;  %6732 = vmatpush.bf16.msrb.mxu2 %v10228_v31  ;;  %v12142_v26 = vld [vmem:[#allocation14 + $0x5c] sm:$0xf0]  ;;  %v12431_v31 = vld [vmem:[#allocation14 + $0x964] sm:$0xf0]  ;;  %v10424_v49 = vor.u32 %v12215_v39, %v10423_v57 }
 0x300   : > { %v10128_v7 = vor.u32 %v12142_v26, %v10127_v20  ;;  %6752 = vmatpush.bf16.msrb.mxu3 %v10900_v0  ;;  %v11288_v11 = vor.u32 %v12431_v31, %v11287_v47  ;;  %v11191_v20 = vld [vmem:[#allocation14 + $0x848] sm:$0xf]  ;;  %v11196_v0 = vor.u32 %v12395_v63, %v11193_v22  ;;  %v10905_v47 = vld [vmem:[#allocation14 + $0x668] sm:$0xf0]  ;;  %v10817_v27 = vld [vmem:[#allocation14 + $0x5b0] sm:$0xf0] }
 0x301   : > { %v4176_v12 = vpack.c.bf16 %v4173_v34, %v4172_v51  ;;  %v12299_v51 = vld [vmem:[#allocation14 + $0x54c] sm:$0xf]  ;;  %v10815_v57 = vld [vmem:[#allocation14 + $0x550] sm:$0xf]  ;;  %v12492_v63 = vld [vmem:[#allocation14 + $0xb54] sm:$0xf] }
 0x302   : > { %6695 = vmatpush.bf16.msrb.mxu0 %v10128_v7  ;;  %v10809_v34 = vld [vmem:[#allocation14 + $0x5a8] sm:$0xf0]  ;;  %v12312_v39 = vld [vmem:[#allocation14 + $0x5ac] sm:$0xf0]  ;;  %v11585_v22 = vld [vmem:[#allocation14 + $0xbb0] sm:$0xf0] }
 0x303   : > { %4288 = vmatmul.bf16.vlgmr.msra.gmra.mxu2 %v4176_v12  ;;  %4307 = vmatmul.bf16.vlgmr.msra.gmra.mxu3 %v4176_v12  ;;  %v10812_v10 = vor.u32 %v12299_v51, %v10809_v34  ;;  %v12503_v12 = vld [vmem:[#allocation14 + $0xba4] sm:$0xf0]  ;;  %v10329_v51 = vld [vmem:[#allocation14 + $0x1e8] sm:$0xf0] }
 0x304   : > { %v4167_v61 = vpop.f32.mrf.mxu1  ;;  %6733 = vmatpush.bf16.msrb.mxu2 %v10132_v32  ;;  %v11576_v45 = vor.u32 %v12503_v12, %v11575_v56  ;;  %v12407_v32 = vld [vmem:[#allocation14 + $0x8a4] sm:$0xf0] }
 0x305   : > { %v4168_v35 = vadd.f32 %v4167_v61, %v4149_v40  ;;  %v12491_v61 = vld [vmem:[#allocation14 + $0xb4c] sm:$0xf]  ;;  %v11192_v7 = vor.u32 %v12407_v32, %v11191_v20  ;;  %v10327_v34 = vld [vmem:[#allocation14 + $0x188] sm:$0xf]  ;;  %v11583_v20 = vld [vmem:[#allocation14 + $0xb50] sm:$0xf] }
 0x306   : > { %v11580_v40 = vor.u32 %v12491_v61, %v11577_v16  ;;  %6764 = vmatpush.bf16.msra.mxu0 %v10808_v53  ;;  %6783 = vmatpush.bf16.msra.mxu1 %v11576_v45  ;;  %v10328_v42 = vor.u32 %v12191_v55, %v10327_v34  ;;  %v11095_v56 = vld [vmem:[#allocation14 + $0x788] sm:$0xf]  ;;  %v12371_v53 = vld [vmem:[#allocation14 + $0x78c] sm:$0xf]  ;;  %v13924_v45 = vperm.slane %v4194_v30, 0  ;;  %v13926_v61 = vperm.slane %v4194_v30, 1 }
 0x307   : > { %v4174_v60 = vmax.f32 %v4168_v35, 0.0  ;;  %v10713_v35 = vld [vmem:[#allocation14 + $0x4e8] sm:$0xf0]  ;;  %v12383_v12 = vld [vmem:[#allocation14 + $0x7e4] sm:$0xf0]  ;;  %v10908_v30 = vor.u32 %v12323_v9, %v10905_v47 }
 0x308   : > { %6802 = vmatpush.bf16.msra.mxu2 %v10812_v10  ;;  %6821 = vmatpush.bf16.msra.mxu3 %v11580_v40  ;;  %v10332_v10 = vor.u32 %v12179_v1, %v10329_v51  ;;  %v11096_v16 = vor.u32 %v12383_v12, %v11095_v56  ;;  %v11097_v40 = vld [vmem:[#allocation14 + $0x7e8] sm:$0xf0]  ;;  %v12504_v32 = vld [vmem:[#allocation14 + $0xbac] sm:$0xf0]  ;;  %v12276_v1 = vld [vmem:[#allocation14 + $0x494] sm:$0xf] }
 0x309   : > { %v10721_v51 = vld [vmem:[#allocation14 + $0x4f0] sm:$0xf0]  ;;  %v10719_v34 = vld [vmem:[#allocation14 + $0x490] sm:$0xf] }
 0x30a   : > { %v12288_v55 = vld [vmem:[#allocation14 + $0x4ec] sm:$0xf0]  ;;  %v12420_v9 = vld [vmem:[#allocation14 + $0x914] sm:$0xf] }
 0x30b   : > { %v11487_v56 = vld [vmem:[#allocation14 + $0xa90] sm:$0xf]  ;;  %v11297_v47 = vld [vmem:[#allocation14 + $0x970] sm:$0xf0] }
 0x30c   : > { %v4169_v62 = vpop.f32.mrf.mxu1  ;;  %6822 = vmatpush.bf16.msra.mxu3 %v11484_v14  ;;  %v12131_v14 = vld [vmem:[#allocation14 + $0xc] sm:$0xf]  ;;  %v12480_v12 = vld [vmem:[#allocation14 + $0xaec] sm:$0xf0] }
 0x30d   : > { %v4170_v18 = vadd.f32 %v4169_v62, %v4151_v46  ;;  %v12275_v46 = vld [vmem:[#allocation14 + $0x48c] sm:$0xf]  ;;  %v10711_v62 = vld [vmem:[#allocation14 + $0x488] sm:$0xf]  ;;  %v10140_v38 = vor.u32 %v12131_v14, %v10137_v2  ;;  %v12228_v14 = vld [vmem:[#allocation14 + $0x314] sm:$0xf] }
 0x30e   : > { %v10529_v2 = vld [vmem:[#allocation14 + $0x370] sm:$0xf0] }
 0x30f   : > { %v4175_v5 = vmax.f32 %v4170_v18, 0.0  ;;  %v10716_v18 = vor.u32 %v12275_v46, %v10713_v35  ;;  %v12155_v46 = vld [vmem:[#allocation14 + $0xcc] sm:$0xf]  ;;  %v11100_v35 = vor.u32 %v12371_v53, %v11097_v40  ;;  %v12468_v53 = vld [vmem:[#allocation14 + $0xa94] sm:$0xf] }
 0x310   : > { %6823 = vmatpush.bf16.msra.mxu3 %v11388_v8  ;;  %v11489_v40 = vld [vmem:[#allocation14 + $0xaf0] sm:$0xf0] }
 0x311   : > { %v4177_v36 = vpack.c.bf16 %v4175_v5, %v4174_v60  ;;  %v12287_v60 = vld [vmem:[#allocation14 + $0x4e4] sm:$0xf0]  ;;  %6803 = vmatpush.bf16.msra.mxu2 %v10716_v18 }
 0x312   : > { %v11479_v5 = vld [vmem:[#allocation14 + $0xa88] sm:$0xf]  ;;  %v10712_v25 = vor.u32 %v12287_v60, %v10711_v62  ;;  %v10233_v62 = vld [vmem:[#allocation14 + $0x128] sm:$0xf0] }
 0x313   : > { %4293 = vmatmul.bf16.gmra.mxu2 %v4177_v36  ;;  %4312 = vmatmul.bf16.gmra.mxu3 %v4177_v36  ;;  %v12479_v36 = vld [vmem:[#allocation14 + $0xae4] sm:$0xf0] }
 0x314   : > { %v11480_v17 = vor.u32 %v12479_v36, %v11479_v5  ;;  %6765 = vmatpush.bf16.msra.mxu0 %v10712_v25  ;;  %6824 = vmatpush.bf16.msra.mxu3 %v11292_v3  ;;  %v10231_v18 = vld [vmem:[#allocation14 + $0xc8] sm:$0xf]  ;;  %v10236_v5 = vor.u32 %v12155_v46, %v10233_v62  ;;  %v12252_v46 = vld [vmem:[#allocation14 + $0x3d4] sm:$0xf] }
 0x315   : > { %6804 = vmatpush.bf16.msra.mxu2 %v10620_v54  ;;  %v12167_v60 = vld [vmem:[#allocation14 + $0x124] sm:$0xf0]  ;;  %v10625_v62 = vld [vmem:[#allocation14 + $0x430] sm:$0xf0] }
 0x316   : > { %6784 = vmatpush.bf16.msra.mxu1 %v11480_v17  ;;  %v10999_v36 = vld [vmem:[#allocation14 + $0x6c8] sm:$0xf]  ;;  %v12347_v17 = vld [vmem:[#allocation14 + $0x6cc] sm:$0xf]  ;;  %v10232_v13 = vor.u32 %v12167_v60, %v10231_v18  ;;  %v10623_v18 = vld [vmem:[#allocation14 + $0x3d0] sm:$0xf] }
 0x317   : > { %v12359_v25 = vld [vmem:[#allocation14 + $0x724] sm:$0xf0]  ;;  %v11004_v44 = vor.u32 %v12347_v17, %v11001_v59  ;;  %v12264_v60 = vld [vmem:[#allocation14 + $0x42c] sm:$0xf0]  ;;  %v12444_v17 = vld [vmem:[#allocation14 + $0x9d4] sm:$0xf] }
 0x318   : > { %6766 = vmatpush.bf16.msra.mxu0 %v10616_v23  ;;  %6825 = vmatpush.bf16.msra.mxu3 %v11196_v0  ;;  %v11000_v37 = vor.u32 %v12359_v25, %v10999_v36  ;;  %v12143_v23 = vld [vmem:[#allocation14 + $0x64] sm:$0xf0]  ;;  %v11588_v0 = vor.u32 %v12492_v63, %v11585_v22  ;;  %v11391_v36 = vld [vmem:[#allocation14 + $0x9d0] sm:$0xf]  ;;  %v11393_v59 = vld [vmem:[#allocation14 + $0xa30] sm:$0xf0] }
 0x319   : > { %6805 = vmatpush.bf16.msra.mxu2 %v10524_v33  ;;  %v10136_v43 = vor.u32 %v12143_v23, %v10135_v15  ;;  %v12456_v25 = vld [vmem:[#allocation14 + $0xa2c] sm:$0xf0]  ;;  %v12180_v63 = vld [vmem:[#allocation14 + $0x194] sm:$0xf] }
 0x31a   : > { %6785 = vmatpush.bf16.msra.mxu1 %v11384_v24  ;;  %v12335_v24 = vld [vmem:[#allocation14 + $0x664] sm:$0xf0]  ;;  %v10527_v15 = vld [vmem:[#allocation14 + $0x310] sm:$0xf] }
 0x31b   : > { %v10904_v33 = vor.u32 %v12335_v24, %v10903_v28  ;;  %v12240_v23 = vld [vmem:[#allocation14 + $0x36c] sm:$0xf0] }
 0x31c   : > { %6767 = vmatpush.bf16.msra.mxu0 %v10520_v48  ;;  %6826 = vmatpush.bf16.msra.mxu3 %v11100_v35  ;;  %v11492_v35 = vor.u32 %v12468_v53, %v11489_v40  ;;  %v11295_v28 = vld [vmem:[#allocation14 + $0x910] sm:$0xf]  ;;  %v11105_v53 = vld [vmem:[#allocation14 + $0x7f0] sm:$0xf0] }
 0x31d   : > { %6806 = vmatpush.bf16.msra.mxu2 %v10428_v6  ;;  %v10820_v6 = vor.u32 %v12300_v29, %v10817_v27  ;;  %v12432_v24 = vld [vmem:[#allocation14 + $0x96c] sm:$0xf0]  ;;  %v10433_v27 = vld [vmem:[#allocation14 + $0x2b0] sm:$0xf0] }
 0x31e   : > { %6786 = vmatpush.bf16.msra.mxu1 %v11288_v11  ;;  %v10241_v40 = vld [vmem:[#allocation14 + $0x130] sm:$0xf0] }
 0x320   : > { %6768 = vmatpush.bf16.msra.mxu0 %v10424_v49  ;;  %6827 = vmatpush.bf16.msra.mxu3 %v11004_v44  ;;  %v10816_v49 = vor.u32 %v12312_v39, %v10815_v57  ;;  %v11396_v44 = vor.u32 %v12444_v17, %v11393_v59  ;;  %v10431_v57 = vld [vmem:[#allocation14 + $0x250] sm:$0xf]  ;;  %v10145_v59 = vld [vmem:[#allocation14 + $0x70] sm:$0xf0] }
 0x321   : > { %6807 = vmatpush.bf16.msra.mxu2 %v10332_v10  ;;  %v10724_v10 = vor.u32 %v12276_v1, %v10721_v51  ;;  %v12216_v39 = vld [vmem:[#allocation14 + $0x2ac] sm:$0xf0]  ;;  %v10337_v1 = vld [vmem:[#allocation14 + $0x1f0] sm:$0xf0] }
 0x322   : > { %6787 = vmatpush.bf16.msra.mxu1 %v11192_v7  ;;  %v11584_v7 = vor.u32 %v12504_v32, %v11583_v20  ;;  %v11199_v20 = vld [vmem:[#allocation14 + $0x850] sm:$0xf] }
 0x323   : > { %v12408_v32 = vld [vmem:[#allocation14 + $0x8ac] sm:$0xf0] }
 0x324   : > { %6769 = vmatpush.bf16.msra.mxu0 %v10328_v42  ;;  %6828 = vmatpush.bf16.msra.mxu3 %v10908_v30  ;;  %v10720_v42 = vor.u32 %v12288_v55, %v10719_v34  ;;  %v12192_v51 = vld [vmem:[#allocation14 + $0x1ec] sm:$0xf0]  ;;  %v10340_v34 = vor.u32 %v12180_v63, %v10337_v1  ;;  %v12253_v63 = vld [vmem:[#allocation14 + $0x3dc] sm:$0xf] }
 0x325   : > { %6808 = vmatpush.bf16.msra.mxu2 %v10236_v5  ;;  %v10628_v5 = vor.u32 %v12252_v46, %v10625_v62  ;;  %v10239_v46 = vld [vmem:[#allocation14 + $0xd0] sm:$0xf] }
 0x326   : > { %6788 = vmatpush.bf16.msra.mxu1 %v11096_v16  ;;  %v11488_v16 = vor.u32 %v12480_v12, %v11487_v56  ;;  %v12372_v56 = vld [vmem:[#allocation14 + $0x794] sm:$0xf]  ;;  %v11007_v62 = vld [vmem:[#allocation14 + $0x6d0] sm:$0xf] }
 0x328   : > { %6770 = vmatpush.bf16.msra.mxu0 %v10232_v13  ;;  %v10624_v13 = vor.u32 %v12264_v60, %v10623_v18  ;;  %v11108_v18 = vor.u32 %v12372_v56, %v11105_v53  ;;  %v11401_v56 = vld [vmem:[#allocation14 + $0xa38] sm:$0xf0] }
 0x329   : > { %6809 = vmatpush.bf16.msra.mxu2 %v10140_v38  ;;  %v10532_v38 = vor.u32 %v12228_v14, %v10529_v2  ;;  %v10143_v14 = vld [vmem:[#allocation14 + $0x10] sm:$0xf] }
 0x32a   : > { %6789 = vmatpush.bf16.msra.mxu1 %v11000_v37  ;;  %v11392_v37 = vor.u32 %v12456_v25, %v11391_v36  ;;  %v12348_v36 = vld [vmem:[#allocation14 + $0x6d4] sm:$0xf]  ;;  %v12144_v2 = vld [vmem:[#allocation14 + $0x6c] sm:$0xf0] }
 0x32b   : > { %v11009_v25 = vld [vmem:[#allocation14 + $0x730] sm:$0xf0] }
 0x32c   : > { %6771 = vmatpush.bf16.msra.mxu0 %v10136_v43  ;;  %v10528_v43 = vor.u32 %v12240_v23, %v10527_v15  ;;  %v10144_v23 = vor.u32 %v12144_v2, %v10143_v14  ;;  %v10441_v14 = vld [vmem:[#allocation14 + $0x2b8] sm:$0xf0]  ;;  %v10439_v2 = vld [vmem:[#allocation14 + $0x258] sm:$0xf] }
 0x32e   : > { %6790 = vmatpush.bf16.msra.mxu1 %v10904_v33  ;;  %v11296_v33 = vor.u32 %v12432_v24, %v11295_v28 }
 0x386   : > { %v4289_v26 = vpop.f32.mrf.mxu2  ;;  %v4308_v4 = vpop.f32.mrf.mxu3 }
 0x387   : > { %v4290_v54 = vadd.f32 %v4289_v26, %v13924_v45  ;;  %v4309_v41 = vadd.f32 %v4308_v4, %v13926_v61 }
 0x389   : > { %v4318_v31 = vmax.f32 %v4290_v54, 0.0  ;;  %v4319_v48 = vmax.f32 %v4309_v41, 0.0 }
 0x38e   : > { %v4291_v19 = vpop.f32.mrf.mxu2  ;;  %v4310_v50 = vpop.f32.mrf.mxu3 }
 0x38f   : > { %v4292_v8 = vadd.f32 %v4291_v19, %v13924_v45  ;;  %v4311_v21 = vadd.f32 %v4310_v50, %v13926_v61 }
 0x391   : > { %v4320_v11 = vmax.f32 %v4292_v8, 0.0  ;;  %v4321_v52 = vmax.f32 %v4311_v21, 0.0 }
 0x393   : > { %v13932_v58 = vpack.c.bf16 %v4320_v11, %v4318_v31  ;;  %v13934_v3 = vpack.c.bf16 %v4321_v52, %v4319_v48 }
 0x395   : > { %6696 = vmatmul.bf16.vlgmr.msrb.gmra.mxu0 %v13932_v58  ;;  %6715 = vmatmul.bf16.vlgmr.msrb.gmra.mxu1 %v13934_v3 }
 0x396   : > { %6734 = vmatmul.bf16.vlgmr.msrb.gmra.mxu2 %v13932_v58  ;;  %6753 = vmatmul.bf16.vlgmr.msrb.gmra.mxu3 %v13934_v3  ;;  %v4294_v26 = vpop.f32.mrf.mxu2  ;;  %v4313_v4 = vpop.f32.mrf.mxu3 }
 0x397   : > { %6878 = vmatpush.bf16.msrb.mxu2 %v10820_v6  ;;  %6840 = vmatpush.bf16.msrb.mxu0 %v10816_v49  ;;  %v4295_v54 = vadd.f32 %v4294_v26, %v13924_v45  ;;  %v4314_v41 = vadd.f32 %v4313_v4, %v13926_v61  ;;  %v10432_v26 = vor.u32 %v12216_v39, %v10431_v57  ;;  %v12396_v49 = vld [vmem:[#allocation14 + $0x854] sm:$0xf]  ;;  %v10727_v57 = vld [vmem:[#allocation14 + $0x498] sm:$0xf] }
 0x398   : > { %6859 = vmatpush.bf16.msrb.mxu1 %v11584_v7  ;;  %6897 = vmatpush.bf16.msrb.mxu3 %v11588_v0  ;;  %v11200_v4 = vor.u32 %v12408_v32, %v11199_v20  ;;  %v11201_v7 = vld [vmem:[#allocation14 + $0x8b0] sm:$0xf0]  ;;  %v10335_v0 = vld [vmem:[#allocation14 + $0x190] sm:$0xf]  ;;  %v11495_v32 = vld [vmem:[#allocation14 + $0xa98] sm:$0xf] }
 0x399   : > { %v4322_v31 = vmax.f32 %v4295_v54, 0.0  ;;  %v4323_v48 = vmax.f32 %v4314_v41, 0.0  ;;  %v11204_v22 = vor.u32 %v12396_v49, %v11201_v7  ;;  %v10336_v55 = vor.u32 %v12192_v51, %v10335_v0  ;;  %v10911_v54 = vld [vmem:[#allocation14 + $0x610] sm:$0xf]  ;;  %v11497_v7 = vld [vmem:[#allocation14 + $0xaf8] sm:$0xf0] }
 0x39a   : > { %v12336_v41 = vld [vmem:[#allocation14 + $0x66c] sm:$0xf0]  ;;  %v10631_v0 = vld [vmem:[#allocation14 + $0x3d8] sm:$0xf] }
 0x39b   : > { %6879 = vmatpush.bf16.msrb.mxu2 %v10724_v10  ;;  %6841 = vmatpush.bf16.msrb.mxu0 %v10720_v42  ;;  %v11103_v10 = vld [vmem:[#allocation14 + $0x790] sm:$0xf]  ;;  %v10912_v28 = vor.u32 %v12336_v41, %v10911_v54  ;;  %v12265_v51 = vld [vmem:[#allocation14 + $0x434] sm:$0xf0] }
 0x39c   : > { %6860 = vmatpush.bf16.msrb.mxu1 %v11488_v16  ;;  %6898 = vmatpush.bf16.msrb.mxu3 %v11492_v35  ;;  %v12384_v42 = vld [vmem:[#allocation14 + $0x7ec] sm:$0xf0]  ;;  %v12156_v16 = vld [vmem:[#allocation14 + $0xd4] sm:$0xf]  ;;  %v12217_v41 = vld [vmem:[#allocation14 + $0x2b4] sm:$0xf0] }
 0x39d   : > { %v11104_v12 = vor.u32 %v12384_v42, %v11103_v10  ;;  %v12168_v35 = vld [vmem:[#allocation14 + $0x12c] sm:$0xf0]  ;;  %v10244_v60 = vor.u32 %v12156_v16, %v10241_v40  ;;  %v12457_v10 = vld [vmem:[#allocation14 + $0xa34] sm:$0xf0]  ;;  %v12445_v42 = vld [vmem:[#allocation14 + $0x9dc] sm:$0xf] }
 0x39e   : > { %v4296_v19 = vpop.f32.mrf.mxu2  ;;  %v4315_v50 = vpop.f32.mrf.mxu3  ;;  %v10240_v17 = vor.u32 %v12168_v35, %v10239_v46  ;;  %v12229_v16 = vld [vmem:[#allocation14 + $0x31c] sm:$0xf]  ;;  %v10535_v46 = vld [vmem:[#allocation14 + $0x318] sm:$0xf]  ;;  %v11404_v35 = vor.u32 %v12445_v42, %v11401_v56 }
 0x39f   : > { %v4297_v8 = vadd.f32 %v4296_v19, %v13924_v45  ;;  %v4316_v21 = vadd.f32 %v4315_v50, %v13926_v61  ;;  %6880 = vmatpush.bf16.msrb.mxu2 %v10628_v5  ;;  %6842 = vmatpush.bf16.msrb.mxu0 %v10624_v13  ;;  %v11300_v45 = vor.u32 %v12420_v9, %v11297_v47  ;;  %v12204_v61 = vld [vmem:[#allocation14 + $0x254] sm:$0xf]  ;;  %v12360_v5 = vld [vmem:[#allocation14 + $0x72c] sm:$0xf0]  ;;  %v11591_v9 = vld [vmem:[#allocation14 + $0xb58] sm:$0xf] }
 0x3a0   : > { %6861 = vmatpush.bf16.msrb.mxu1 %v11392_v37  ;;  %6899 = vmatpush.bf16.msrb.mxu3 %v11396_v44  ;;  %v10436_v6 = vor.u32 %v12204_v61, %v10433_v27  ;;  %v11008_v13 = vor.u32 %v12360_v5, %v11007_v62  ;;  %v12132_v37 = vld [vmem:[#allocation14 + $0x14] sm:$0xf]  ;;  %v11012_v44 = vor.u32 %v12348_v36, %v11009_v25  ;;  %v12505_v47 = vld [vmem:[#allocation14 + $0xbb4] sm:$0xf0]  ;;  %v10729_v27 = vld [vmem:[#allocation14 + $0x4f8] sm:$0xf0] }
 0x3a1   : > { %v4324_v11 = vmax.f32 %v4297_v8, 0.0  ;;  %v4325_v52 = vmax.f32 %v4316_v21, 0.0  ;;  %v10148_v15 = vor.u32 %v12132_v37, %v10145_v59  ;;  %v12324_v19 = vld [vmem:[#allocation14 + $0x614] sm:$0xf]  ;;  %v12301_v8 = vld [vmem:[#allocation14 + $0x55c] sm:$0xf] }
 0x3a2   : > { %v10913_v50 = vld [vmem:[#allocation14 + $0x670] sm:$0xf0]  ;;  %v10825_v21 = vld [vmem:[#allocation14 + $0x5b8] sm:$0xf0]  ;;  %v12241_v62 = vld [vmem:[#allocation14 + $0x374] sm:$0xf0] }
 0x3a3   : > { %v13944_v30 = vpack.c.bf16 %v4324_v11, %v4322_v31  ;;  %v13946_v29 = vpack.c.bf16 %v4325_v52, %v4323_v48  ;;  %6881 = vmatpush.bf16.msrb.mxu2 %v10532_v38  ;;  %6843 = vmatpush.bf16.msrb.mxu0 %v10528_v43  ;;  %v10916_v24 = vor.u32 %v12324_v19, %v10913_v50  ;;  %v10823_v38 = vld [vmem:[#allocation14 + $0x558] sm:$0xf]  ;;  %v12493_v11 = vld [vmem:[#allocation14 + $0xb5c] sm:$0xf] }
 0x3a4   : > { %6862 = vmatpush.bf16.msrb.mxu1 %v11296_v33  ;;  %6900 = vmatpush.bf16.msrb.mxu3 %v11300_v45  ;;  %v10828_v43 = vor.u32 %v12301_v8, %v10825_v21  ;;  %v12313_v33 = vld [vmem:[#allocation14 + $0x5b4] sm:$0xf0]  ;;  %v11592_v48 = vor.u32 %v12505_v47, %v11591_v9  ;;  %v11593_v52 = vld [vmem:[#allocation14 + $0xbb8] sm:$0xf0]  ;;  %v10536_v36 = vor.u32 %v12241_v62, %v10535_v46  ;;  %v10833_v46 = vld [vmem:[#allocation14 + $0x5c0] sm:$0xf0] }
 0x3a5   : > { %6701 = vmatmul.bf16.gmra.mxu0 %v13944_v30  ;;  %6720 = vmatmul.bf16.gmra.mxu1 %v13946_v29  ;;  %v10824_v31 = vor.u32 %v12313_v33, %v10823_v38  ;;  %v12277_v45 = vld [vmem:[#allocation14 + $0x49c] sm:$0xf]  ;;  %v11596_v61 = vor.u32 %v12493_v11, %v11593_v52  ;;  %v10343_v38 = vld [vmem:[#allocation14 + $0x198] sm:$0xf] }
 0x3a6   : > { %6739 = vmatmul.bf16.gmra.mxu2 %v13944_v30  ;;  %6758 = vmatmul.bf16.gmra.mxu3 %v13946_v29  ;;  %v10732_v39 = vor.u32 %v12277_v45, %v10729_v27  ;;  %v10537_v40 = vld [vmem:[#allocation14 + $0x378] sm:$0xf0]  ;;  %v11111_v47 = vld [vmem:[#allocation14 + $0x798] sm:$0xf] }
 0x3a7   : > { %6882 = vmatpush.bf16.msrb.mxu2 %v10436_v6  ;;  %6844 = vmatpush.bf16.msrb.mxu0 %v10432_v26  ;;  %v12289_v6 = vld [vmem:[#allocation14 + $0x4f4] sm:$0xf0]  ;;  %v10540_v5 = vor.u32 %v12229_v16, %v10537_v40  ;;  %v12205_v59 = vld [vmem:[#allocation14 + $0x25c] sm:$0xf]  ;;  %v12302_v40 = vld [vmem:[#allocation14 + $0x564] sm:$0xf] }
 0x3a8   : > { %6863 = vmatpush.bf16.msrb.mxu1 %v11200_v4  ;;  %6901 = vmatpush.bf16.msrb.mxu3 %v11204_v22  ;;  %v10728_v20 = vor.u32 %v12289_v6, %v10727_v57  ;;  %v12481_v26 = vld [vmem:[#allocation14 + $0xaf4] sm:$0xf0]  ;;  %v12469_v4 = vld [vmem:[#allocation14 + $0xa9c] sm:$0xf]  ;;  %v10444_v54 = vor.u32 %v12205_v59, %v10441_v14  ;;  %v10836_v62 = vor.u32 %v12302_v40, %v10833_v46  ;;  %v10737_v14 = vld [vmem:[#allocation14 + $0x500] sm:$0xf0] }
 0x3a9   : > { %v11496_v49 = vor.u32 %v12481_v26, %v11495_v32  ;;  %v10633_v22 = vld [vmem:[#allocation14 + $0x438] sm:$0xf0]  ;;  %v11500_v1 = vor.u32 %v12469_v4, %v11497_v7  ;;  %v10247_v27 = vld [vmem:[#allocation14 + $0xd8] sm:$0xf]  ;;  %v10353_v46 = vld [vmem:[#allocation14 + $0x200] sm:$0xf0] }
 0x3aa   : > { %v12397_v19 = vld [vmem:[#allocation14 + $0x85c] sm:$0xf]  ;;  %v12169_v57 = vld [vmem:[#allocation14 + $0x134] sm:$0xf0] }
 0x3ab   : > { %6883 = vmatpush.bf16.msrb.mxu2 %v10340_v34  ;;  %6845 = vmatpush.bf16.msrb.mxu0 %v10336_v55  ;;  %v11399_v34 = vld [vmem:[#allocation14 + $0x9d8] sm:$0xf]  ;;  %v10636_v55 = vor.u32 %v12253_v63, %v10633_v22  ;;  %v11209_v50 = vld [vmem:[#allocation14 + $0x8b8] sm:$0xf0] }
 0x3ac   : > { %6864 = vmatpush.bf16.msrb.mxu1 %v11104_v12  ;;  %6902 = vmatpush.bf16.msrb.mxu3 %v11108_v18  ;;  %v10632_v12 = vor.u32 %v12265_v51, %v10631_v0  ;;  %v11400_v53 = vor.u32 %v12457_v10, %v11399_v34  ;;  %v11303_v18 = vld [vmem:[#allocation14 + $0x918] sm:$0xf]  ;;  %v11212_v8 = vor.u32 %v12397_v19, %v11209_v50  ;;  %v10345_v21 = vld [vmem:[#allocation14 + $0x1f8] sm:$0xf0]  ;;  %v11505_v50 = vld [vmem:[#allocation14 + $0xb00] sm:$0xf0] }
 0x3ad   : > { %v11113_v52 = vld [vmem:[#allocation14 + $0x7f8] sm:$0xf0]  ;;  %v11015_v6 = vld [vmem:[#allocation14 + $0x6d8] sm:$0xf] }
 0x3ae   : > { %v12157_v45 = vld [vmem:[#allocation14 + $0xdc] sm:$0xf]  ;;  %v12361_v32 = vld [vmem:[#allocation14 + $0x734] sm:$0xf0] }
 0x3af   : > { %6884 = vmatpush.bf16.msrb.mxu2 %v10244_v60  ;;  %6846 = vmatpush.bf16.msrb.mxu0 %v10240_v17  ;;  %v12433_v60 = vld [vmem:[#allocation14 + $0x974] sm:$0xf0]  ;;  %v12421_v17 = vld [vmem:[#allocation14 + $0x91c] sm:$0xf]  ;;  %v11016_v7 = vor.u32 %v12361_v32, %v11015_v6  ;;  %v12242_v6 = vld [vmem:[#allocation14 + $0x37c] sm:$0xf0] }
 0x3b0   : > { %6865 = vmatpush.bf16.msrb.mxu1 %v11008_v13  ;;  %6903 = vmatpush.bf16.msrb.mxu3 %v11012_v44  ;;  %v11304_v25 = vor.u32 %v12433_v60, %v11303_v18  ;;  %v11305_v13 = vld [vmem:[#allocation14 + $0x978] sm:$0xf0]  ;;  %v11207_v44 = vld [vmem:[#allocation14 + $0x858] sm:$0xf]  ;;  %v12314_v18 = vld [vmem:[#allocation14 + $0x5bc] sm:$0xf0] }
 0x3b1   : > { %v11308_v37 = vor.u32 %v12421_v17, %v11305_v13  ;;  %v12349_v26 = vld [vmem:[#allocation14 + $0x6dc] sm:$0xf]  ;;  %v12145_v0 = vld [vmem:[#allocation14 + $0x74] sm:$0xf0]  ;;  %v11599_v60 = vld [vmem:[#allocation14 + $0xb60] sm:$0xf] }
 0x3b2   : > { %v11017_v4 = vld [vmem:[#allocation14 + $0x738] sm:$0xf0]  ;;  %v10919_v51 = vld [vmem:[#allocation14 + $0x618] sm:$0xf]  ;;  %v12494_v17 = vld [vmem:[#allocation14 + $0xb64] sm:$0xf] }
 0x3b3   : > { %6885 = vmatpush.bf16.msrb.mxu2 %v10148_v15  ;;  %6847 = vmatpush.bf16.msrb.mxu0 %v10144_v23  ;;  %v12409_v15 = vld [vmem:[#allocation14 + $0x8b4] sm:$0xf0]  ;;  %v10440_v23 = vor.u32 %v12217_v41, %v10439_v2  ;;  %v12133_v63 = vld [vmem:[#allocation14 + $0x1c] sm:$0xf]  ;;  %v11601_v13 = vld [vmem:[#allocation14 + $0xbc0] sm:$0xf0] }
 0x3b4   : > { %6866 = vmatpush.bf16.msrb.mxu1 %v10912_v28  ;;  %6904 = vmatpush.bf16.msrb.mxu3 %v10916_v24  ;;  %v11208_v28 = vor.u32 %v12409_v15, %v11207_v44  ;;  %v12181_v24 = vld [vmem:[#allocation14 + $0x19c] sm:$0xf]  ;;  %v12337_v34 = vld [vmem:[#allocation14 + $0x674] sm:$0xf0]  ;;  %v11604_v59 = vor.u32 %v12494_v17, %v11601_v13  ;;  %v10735_v2 = vld [vmem:[#allocation14 + $0x4a0] sm:$0xf] }
 0x3b5   : > { %6772 = vmatmul.bf16.vlgmr.msra.gmra.mxu0 %v13932_v58  ;;  %6791 = vmatmul.bf16.vlgmr.msra.gmra.mxu1 %v13934_v3  ;;  %v10348_v33 = vor.u32 %v12181_v24, %v10345_v21  ;;  %v10153_v22 = vld [vmem:[#allocation14 + $0x78] sm:$0xf0]  ;;  %v10920_v56 = vor.u32 %v12337_v34, %v10919_v51  ;;  %v11503_v15 = vld [vmem:[#allocation14 + $0xaa0] sm:$0xf]  ;;  %v12254_v24 = vld [vmem:[#allocation14 + $0x3e4] sm:$0xf] }
 0x3b6   : > { %6810 = vmatmul.bf16.vlgmr.msra.gmra.mxu2 %v13932_v58  ;;  %6829 = vmatmul.bf16.vlgmr.msra.gmra.mxu3 %v13934_v3  ;;  %v10156_v10 = vor.u32 %v12133_v63, %v10153_v22  ;;  %v12206_v22 = vld [vmem:[#allocation14 + $0x264] sm:$0xf]  ;;  %v12218_v34 = vld [vmem:[#allocation14 + $0x2bc] sm:$0xf0] }
 0x3b7   : > { %6954 = vmatpush.bf16.msra.mxu2 %v10828_v43  ;;  %6916 = vmatpush.bf16.msra.mxu0 %v10824_v31  ;;  %v12193_v43 = vld [vmem:[#allocation14 + $0x1f4] sm:$0xf0]  ;;  %v11121_v13 = vld [vmem:[#allocation14 + $0x800] sm:$0xf0] }
 0x3b8   : > { %6935 = vmatpush.bf16.msra.mxu1 %v11592_v48  ;;  %6973 = vmatpush.bf16.msra.mxu3 %v11596_v61  ;;  %v10344_v9 = vor.u32 %v12193_v43, %v10343_v38  ;;  %v12385_v31 = vld [vmem:[#allocation14 + $0x7f4] sm:$0xf0]  ;;  %v12373_v48 = vld [vmem:[#allocation14 + $0x79c] sm:$0xf]  ;;  %v10639_v38 = vld [vmem:[#allocation14 + $0x3e0] sm:$0xf] }
 0x3b9   : > { %v11112_v11 = vor.u32 %v12385_v31, %v11111_v47  ;;  %v10249_v61 = vld [vmem:[#allocation14 + $0x138] sm:$0xf0]  ;;  %v12266_v43 = vld [vmem:[#allocation14 + $0x43c] sm:$0xf0]  ;;  %v12446_v31 = vld [vmem:[#allocation14 + $0x9e4] sm:$0xf] }
 0x3ba   : > { %v12458_v47 = vld [vmem:[#allocation14 + $0xa3c] sm:$0xf0] }
 0x3bb   : > { %6955 = vmatpush.bf16.msra.mxu2 %v10732_v39  ;;  %6917 = vmatpush.bf16.msra.mxu0 %v10728_v20  ;;  %v11116_v39 = vor.u32 %v12373_v48, %v11113_v52  ;;  %v10252_v20 = vor.u32 %v12157_v45, %v10249_v61  ;;  %v11409_v48 = vld [vmem:[#allocation14 + $0xa40] sm:$0xf0] }
 0x3bc   : > { %6936 = vmatpush.bf16.msra.mxu1 %v11496_v49  ;;  %6974 = vmatpush.bf16.msra.mxu3 %v11500_v1  ;;  %v10248_v49 = vor.u32 %v12169_v57, %v10247_v27  ;;  %v10151_v1 = vld [vmem:[#allocation14 + $0x18] sm:$0xf]  ;;  %v12230_v45 = vld [vmem:[#allocation14 + $0x324] sm:$0xf]  ;;  %v10543_v27 = vld [vmem:[#allocation14 + $0x320] sm:$0xf]  ;;  %v11412_v57 = vor.u32 %v12446_v31, %v11409_v48 }
 0x3bd   : > { %v10152_v42 = vor.u32 %v12145_v0, %v10151_v1  ;;  %v10545_v61 = vld [vmem:[#allocation14 + $0x380] sm:$0xf0]  ;;  %v10447_v0 = vld [vmem:[#allocation14 + $0x260] sm:$0xf] }
 0x3be   : > { %v10548_v32 = vor.u32 %v12230_v45, %v10545_v61  ;;  %v10449_v1 = vld [vmem:[#allocation14 + $0x2c0] sm:$0xf0]  ;;  %v12338_v31 = vld [vmem:[#allocation14 + $0x67c] sm:$0xf0]  ;;  %v12303_v61 = vld [vmem:[#allocation14 + $0x56c] sm:$0xf] }
 0x3bf   : > { %6956 = vmatpush.bf16.msra.mxu2 %v10636_v55  ;;  %6918 = vmatpush.bf16.msra.mxu0 %v10632_v12  ;;  %v11020_v55 = vor.u32 %v12349_v26, %v11017_v4  ;;  %v12325_v12 = vld [vmem:[#allocation14 + $0x61c] sm:$0xf]  ;;  %v10544_v26 = vor.u32 %v12242_v6, %v10543_v27  ;;  %v10452_v51 = vor.u32 %v12206_v22, %v10449_v1  ;;  %v12326_v48 = vld [vmem:[#allocation14 + $0x624] sm:$0xf]  ;;  %v10841_v27 = vld [vmem:[#allocation14 + $0x5c8] sm:$0xf0] }
 0x3c0   : > { %6937 = vmatpush.bf16.msra.mxu1 %v11400_v53  ;;  %6975 = vmatpush.bf16.msra.mxu3 %v11404_v35  ;;  %v10921_v53 = vld [vmem:[#allocation14 + $0x678] sm:$0xf0]  ;;  %v10831_v35 = vld [vmem:[#allocation14 + $0x560] sm:$0xf]  ;;  %v10844_v6 = vor.u32 %v12303_v61, %v10841_v27  ;;  %v12279_v22 = vld [vmem:[#allocation14 + $0x4ac] sm:$0xf] }
 0x3c1   : > { %v10924_v16 = vor.u32 %v12325_v12, %v10921_v53  ;;  %v12398_v12 = vld [vmem:[#allocation14 + $0x864] sm:$0xf]  ;;  %v10745_v1 = vld [vmem:[#allocation14 + $0x508] sm:$0xf0] }
 0x3c2   : > { %v11217_v53 = vld [vmem:[#allocation14 + $0x8c0] sm:$0xf0]  ;;  %v12183_v61 = vld [vmem:[#allocation14 + $0x1ac] sm:$0xf] }
 0x3c3   : > { %6957 = vmatpush.bf16.msra.mxu2 %v10540_v5  ;;  %6919 = vmatpush.bf16.msra.mxu0 %v10536_v36  ;;  %v12506_v5 = vld [vmem:[#allocation14 + $0xbbc] sm:$0xf0]  ;;  %v10832_v36 = vor.u32 %v12314_v18, %v10831_v35  ;;  %v11220_v40 = vor.u32 %v12398_v12, %v11217_v53  ;;  %v11513_v12 = vld [vmem:[#allocation14 + $0xb08] sm:$0xf0] }
 0x3c4   : > { %6938 = vmatpush.bf16.msra.mxu1 %v11304_v25  ;;  %6976 = vmatpush.bf16.msra.mxu3 %v11308_v37  ;;  %v11600_v25 = vor.u32 %v12506_v5, %v11599_v60  ;;  %v12278_v37 = vld [vmem:[#allocation14 + $0x4a4] sm:$0xf]  ;;  %v10351_v35 = vld [vmem:[#allocation14 + $0x1a0] sm:$0xf]  ;;  %v10361_v27 = vld [vmem:[#allocation14 + $0x208] sm:$0xf0] }
 0x3c5   : > { %6777 = vmatmul.bf16.gmra.mxu0 %v13944_v30  ;;  %6796 = vmatmul.bf16.gmra.mxu1 %v13946_v29  ;;  %v10740_v41 = vor.u32 %v12278_v37, %v10737_v14  ;;  %v11119_v5 = vld [vmem:[#allocation14 + $0x7a0] sm:$0xf]  ;;  %v12158_v37 = vld [vmem:[#allocation14 + $0xe4] sm:$0xf] }
 0x3c6   : > { %6815 = vmatmul.bf16.gmra.mxu2 %v13944_v30  ;;  %6834 = vmatmul.bf16.gmra.mxu3 %v13946_v29  ;;  %v10255_v14 = vld [vmem:[#allocation14 + $0xe0] sm:$0xf] }
 0x3c7   : > { %6958 = vmatpush.bf16.msra.mxu2 %v10444_v54  ;;  %6920 = vmatpush.bf16.msra.mxu0 %v10440_v23  ;;  %v12290_v54 = vld [vmem:[#allocation14 + $0x4fc] sm:$0xf0] }
 0x3c8   : > { %6939 = vmatpush.bf16.msra.mxu1 %v11208_v28  ;;  %6977 = vmatpush.bf16.msra.mxu3 %v11212_v8  ;;  %v10736_v44 = vor.u32 %v12290_v54, %v10735_v2  ;;  %v12482_v23 = vld [vmem:[#allocation14 + $0xafc] sm:$0xf0]  ;;  %v12470_v28 = vld [vmem:[#allocation14 + $0xaa4] sm:$0xf] }
 0x3c9   : > { %v11504_v19 = vor.u32 %v12482_v23, %v11503_v15  ;;  %v10641_v8 = vld [vmem:[#allocation14 + $0x440] sm:$0xf0]  ;;  %v11508_v21 = vor.u32 %v12470_v28, %v11505_v50  ;;  %v12170_v2 = vld [vmem:[#allocation14 + $0x13c] sm:$0xf0] }
 0x3ca   : > { %v11023_v54 = vld [vmem:[#allocation14 + $0x6e0] sm:$0xf]  ;;  %v12350_v23 = vld [vmem:[#allocation14 + $0x6e4] sm:$0xf]  ;;  %v10256_v28 = vor.u32 %v12170_v2, %v10255_v14  ;;  %v10553_v14 = vld [vmem:[#allocation14 + $0x388] sm:$0xf0] }
 0x3cb   : > { %6959 = vmatpush.bf16.msra.mxu2 %v10348_v33  ;;  %6921 = vmatpush.bf16.msra.mxu0 %v10344_v9  ;;  %v11407_v33 = vld [vmem:[#allocation14 + $0x9e0] sm:$0xf]  ;;  %v10644_v9 = vor.u32 %v12254_v24, %v10641_v8  ;;  %v11025_v50 = vld [vmem:[#allocation14 + $0x740] sm:$0xf0]  ;;  %v10551_v2 = vld [vmem:[#allocation14 + $0x328] sm:$0xf] }
 0x3cc   : > { %6940 = vmatpush.bf16.msra.mxu1 %v11112_v11  ;;  %6978 = vmatpush.bf16.msra.mxu3 %v11116_v39  ;;  %v10640_v11 = vor.u32 %v12266_v43, %v10639_v38  ;;  %v11408_v52 = vor.u32 %v12458_v47, %v11407_v33  ;;  %v11311_v39 = vld [vmem:[#allocation14 + $0x920] sm:$0xf]  ;;  %v12134_v24 = vld [vmem:[#allocation14 + $0x24] sm:$0xf] }
 0x3cd   : > { %v12362_v15 = vld [vmem:[#allocation14 + $0x73c] sm:$0xf0]  ;;  %v10161_v8 = vld [vmem:[#allocation14 + $0x80] sm:$0xf0] }
 0x3ce   : > { %v10164_v38 = vor.u32 %v12134_v24, %v10161_v8  ;;  %v10159_v43 = vld [vmem:[#allocation14 + $0x20] sm:$0xf]  ;;  %v12207_v8 = vld [vmem:[#allocation14 + $0x26c] sm:$0xf] }
 0x3cf   : > { %6960 = vmatpush.bf16.msra.mxu2 %v10252_v20  ;;  %6922 = vmatpush.bf16.msra.mxu0 %v10248_v49  ;;  %v12434_v20 = vld [vmem:[#allocation14 + $0x97c] sm:$0xf0]  ;;  %v12422_v49 = vld [vmem:[#allocation14 + $0x924] sm:$0xf] }
 0x3d0   : > { %6941 = vmatpush.bf16.msra.mxu1 %v11016_v7  ;;  %6979 = vmatpush.bf16.msra.mxu3 %v11020_v55  ;;  %v11312_v4 = vor.u32 %v12434_v20, %v11311_v39  ;;  %v11313_v7 = vld [vmem:[#allocation14 + $0x980] sm:$0xf0]  ;;  %v11215_v55 = vld [vmem:[#allocation14 + $0x860] sm:$0xf]  ;;  %v12315_v39 = vld [vmem:[#allocation14 + $0x5c4] sm:$0xf0] }
 0x3d1   : > { %v11316_v63 = vor.u32 %v12422_v49, %v11313_v7  ;;  %v12146_v33 = vld [vmem:[#allocation14 + $0x7c] sm:$0xf0]  ;;  %v11607_v20 = vld [vmem:[#allocation14 + $0xb68] sm:$0xf]  ;;  %v12495_v49 = vld [vmem:[#allocation14 + $0xb6c] sm:$0xf] }
 0x3d2   : > { %v10160_v47 = vor.u32 %v12146_v33, %v10159_v43  ;;  %v11609_v7 = vld [vmem:[#allocation14 + $0xbc8] sm:$0xf0]  ;;  %v12219_v33 = vld [vmem:[#allocation14 + $0x2c4] sm:$0xf0] }
 0x3d3   : > { %6961 = vmatpush.bf16.msra.mxu2 %v10156_v10  ;;  %6923 = vmatpush.bf16.msra.mxu0 %v10152_v42  ;;  %v12410_v10 = vld [vmem:[#allocation14 + $0x8bc] sm:$0xf0]  ;;  %v10448_v42 = vor.u32 %v12218_v34, %v10447_v0  ;;  %v10748_v0 = vor.u32 %v12279_v22, %v10745_v1  ;;  %v12291_v34 = vld [vmem:[#allocation14 + $0x504] sm:$0xf0]  ;;  %v12159_v1 = vld [vmem:[#allocation14 + $0xec] sm:$0xf] }
 0x3d4   : > { %6942 = vmatpush.bf16.msra.mxu1 %v10920_v56  ;;  %6980 = vmatpush.bf16.msra.mxu3 %v10924_v16  ;;  %v11216_v56 = vor.u32 %v12410_v10, %v11215_v55  ;;  %v12182_v16 = vld [vmem:[#allocation14 + $0x1a4] sm:$0xf]  ;;  %v11511_v55 = vld [vmem:[#allocation14 + $0xaa8] sm:$0xf] }
 0x3d5   : > { %6848 = vmatmul.bf16.vlgmr.msrb.gmra.mxu0 %v13932_v58  ;;  %6867 = vmatmul.bf16.vlgmr.msrb.gmra.mxu1 %v13934_v3  ;;  %v10356_v18 = vor.u32 %v12182_v16, %v10353_v46  ;;  %v10649_v46 = vld [vmem:[#allocation14 + $0x448] sm:$0xf0] }
 0x3d6   : > { %6886 = vmatmul.bf16.vlgmr.msrb.gmra.mxu2 %v13932_v58  ;;  %6905 = vmatmul.bf16.vlgmr.msrb.gmra.mxu3 %v13934_v3 }
 0x3d7   : > { %7030 = vmatpush.bf16.msrb.mxu2 %v10836_v62  ;;  %6992 = vmatpush.bf16.msrb.mxu0 %v10832_v36  ;;  %v12194_v62 = vld [vmem:[#allocation14 + $0x1fc] sm:$0xf0] }
 0x3d8   : > { %7011 = vmatpush.bf16.msrb.mxu1 %v11600_v25  ;;  %7049 = vmatpush.bf16.msrb.mxu3 %v11604_v59  ;;  %v10352_v60 = vor.u32 %v12194_v62, %v10351_v35  ;;  %v12386_v36 = vld [vmem:[#allocation14 + $0x7fc] sm:$0xf0]  ;;  %v12374_v25 = vld [vmem:[#allocation14 + $0x7a4] sm:$0xf]  ;;  %v10647_v35 = vld [vmem:[#allocation14 + $0x3e8] sm:$0xf] }
 0x3d9   : > { %v11120_v17 = vor.u32 %v12386_v36, %v11119_v5  ;;  %v10257_v59 = vld [vmem:[#allocation14 + $0x140] sm:$0xf0]  ;;  %v12459_v5 = vld [vmem:[#allocation14 + $0xa44] sm:$0xf0] }
 0x3db   : > { %7031 = vmatpush.bf16.msrb.mxu2 %v10740_v41  ;;  %6993 = vmatpush.bf16.msrb.mxu0 %v10736_v44  ;;  %v11124_v41 = vor.u32 %v12374_v25, %v11121_v13  ;;  %v10260_v44 = vor.u32 %v12158_v37, %v10257_v59  ;;  %v11417_v13 = vld [vmem:[#allocation14 + $0xa48] sm:$0xf0] }
 0x3dc   : > { %7012 = vmatpush.bf16.msrb.mxu1 %v11504_v19  ;;  %7050 = vmatpush.bf16.msrb.mxu3 %v11508_v21  ;;  %v11024_v19 = vor.u32 %v12362_v15, %v11023_v54  ;;  %v11028_v21 = vor.u32 %v12350_v23, %v11025_v50  ;;  %v12231_v59 = vld [vmem:[#allocation14 + $0x32c] sm:$0xf]  ;;  %v12435_v15 = vld [vmem:[#allocation14 + $0x984] sm:$0xf0] }
 0x3dd   : > { %v10556_v54 = vor.u32 %v12231_v59, %v10553_v14  ;;  %v12327_v59 = vld [vmem:[#allocation14 + $0x62c] sm:$0xf] }
 0x3de   : > { %v10937_v14 = vld [vmem:[#allocation14 + $0x688] sm:$0xf0] }
 0x3df   : > { %7032 = vmatpush.bf16.msrb.mxu2 %v10644_v9  ;;  %6994 = vmatpush.bf16.msrb.mxu0 %v10640_v11  ;;  %v10927_v9 = vld [vmem:[#allocation14 + $0x620] sm:$0xf]  ;;  %v10929_v11 = vld [vmem:[#allocation14 + $0x680] sm:$0xf0] }
 0x3e0   : > { %7013 = vmatpush.bf16.msrb.mxu1 %v11408_v52  ;;  %7051 = vmatpush.bf16.msrb.mxu3 %v11412_v57  ;;  %v10928_v52 = vor.u32 %v12338_v31, %v10927_v9  ;;  %v10932_v45 = vor.u32 %v12326_v48, %v10929_v11  ;;  %v10839_v57 = vld [vmem:[#allocation14 + $0x568] sm:$0xf]  ;;  %v12399_v48 = vld [vmem:[#allocation14 + $0x86c] sm:$0xf] }
 0x3e1   : > { %v11223_v9 = vld [vmem:[#allocation14 + $0x868] sm:$0xf]  ;;  %v11225_v11 = vld [vmem:[#allocation14 + $0x8c8] sm:$0xf0] }
 0x3e3   : > { %7033 = vmatpush.bf16.msrb.mxu2 %v10548_v32  ;;  %6995 = vmatpush.bf16.msrb.mxu0 %v10544_v26  ;;  %v12507_v32 = vld [vmem:[#allocation14 + $0xbc4] sm:$0xf0]  ;;  %v10840_v26 = vor.u32 %v12315_v39, %v10839_v57 }
 0x3e4   : > { %7014 = vmatpush.bf16.msrb.mxu1 %v11312_v4  ;;  %7052 = vmatpush.bf16.msrb.mxu3 %v11316_v63  ;;  %v11608_v4 = vor.u32 %v12507_v32, %v11607_v20  ;;  %v11612_v63 = vor.u32 %v12495_v49, %v11609_v7  ;;  %v10359_v57 = vld [vmem:[#allocation14 + $0x1a8] sm:$0xf]  ;;  %v11129_v49 = vld [vmem:[#allocation14 + $0x808] sm:$0xf0]  ;;  %v13976_v7 = vld [vmem:[#allocation16] sm:$0xff] }
 0x3e5   : > { %6853 = vmatmul.bf16.gmra.mxu0 %v13944_v30  ;;  %6872 = vmatmul.bf16.gmra.mxu1 %v13946_v29  ;;  %v12195_v39 = vld [vmem:[#allocation14 + $0x204] sm:$0xf0] }
 0x3e6   : > { %6891 = vmatmul.bf16.gmra.mxu2 %v13944_v30  ;;  %6910 = vmatmul.bf16.gmra.mxu3 %v13946_v29  ;;  %v11127_v20 = vld [vmem:[#allocation14 + $0x7a8] sm:$0xf] }
 0x3e7   : > { %7034 = vmatpush.bf16.msrb.mxu2 %v10452_v51  ;;  %6996 = vmatpush.bf16.msrb.mxu0 %v10448_v42  ;;  %v10743_v51 = vld [vmem:[#allocation14 + $0x4a8] sm:$0xf] }
 0x3e8   : > { %7015 = vmatpush.bf16.msrb.mxu1 %v11216_v56  ;;  %7053 = vmatpush.bf16.msrb.mxu3 %v11220_v40  ;;  %v10744_v10 = vor.u32 %v12291_v34, %v10743_v51  ;;  %v12483_v42 = vld [vmem:[#allocation14 + $0xb04] sm:$0xf0]  ;;  %v12471_v56 = vld [vmem:[#allocation14 + $0xaac] sm:$0xf] }
 0x3e9   : > { %v11512_v53 = vor.u32 %v12483_v42, %v11511_v55  ;;  %v11516_v16 = vor.u32 %v12471_v56, %v11513_v12  ;;  %v12255_v40 = vld [vmem:[#allocation14 + $0x3ec] sm:$0xf]  ;;  %v12387_v32 = vld [vmem:[#allocation14 + $0x804] sm:$0xf0] }
 0x3ea   : > { %v10652_v62 = vor.u32 %v12255_v40, %v10649_v46  ;;  %v10263_v51 = vld [vmem:[#allocation14 + $0xe8] sm:$0xf]  ;;  %v12351_v12 = vld [vmem:[#allocation14 + $0x6ec] sm:$0xf] }
 0x3eb   : > { %7035 = vmatpush.bf16.msrb.mxu2 %v10356_v18  ;;  %6997 = vmatpush.bf16.msrb.mxu0 %v10352_v60  ;;  %v12267_v18 = vld [vmem:[#allocation14 + $0x444] sm:$0xf0] }
 0x3ec   : > { %7016 = vmatpush.bf16.msrb.mxu1 %v11120_v17  ;;  %7054 = vmatpush.bf16.msrb.mxu3 %v11124_v41  ;;  %v11415_v60 = vld [vmem:[#allocation14 + $0x9e8] sm:$0xf]  ;;  %v10648_v36 = vor.u32 %v12267_v18, %v10647_v35  ;;  %v12447_v17 = vld [vmem:[#allocation14 + $0x9ec] sm:$0xf] }
 0x3ed   : > { %v11416_v25 = vor.u32 %v12459_v5, %v11415_v60  ;;  %v11420_v37 = vor.u32 %v12447_v17, %v11417_v13  ;;  %v12243_v41 = vld [vmem:[#allocation14 + $0x384] sm:$0xf0]  ;;  %v12135_v35 = vld [vmem:[#allocation14 + $0x2c] sm:$0xf] }
 0x3ee   : > { %v10552_v23 = vor.u32 %v12243_v41, %v10551_v2  ;;  %v12171_v55 = vld [vmem:[#allocation14 + $0x144] sm:$0xf0]  ;;  %v10940_v41 = vor.u32 %v12327_v59, %v10937_v14 }
 0x3ef   : > { %7036 = vmatpush.bf16.msrb.mxu2 %v10260_v44  ;;  %6998 = vmatpush.bf16.msrb.mxu0 %v10256_v28  ;;  %v11319_v44 = vld [vmem:[#allocation14 + $0x928] sm:$0xf]  ;;  %v12423_v28 = vld [vmem:[#allocation14 + $0x92c] sm:$0xf]  ;;  %v10264_v56 = vor.u32 %v12171_v55, %v10263_v51  ;;  %v10657_v55 = vld [vmem:[#allocation14 + $0x450] sm:$0xf0] }
 0x3f0   : > { %7017 = vmatpush.bf16.msrb.mxu1 %v11024_v19  ;;  %7055 = vmatpush.bf16.msrb.mxu3 %v11028_v21  ;;  %v11321_v19 = vld [vmem:[#allocation14 + $0x988] sm:$0xf0]  ;;  %v11320_v50 = vor.u32 %v12435_v15, %v11319_v44  ;;  %v12363_v42 = vld [vmem:[#allocation14 + $0x744] sm:$0xf0]  ;;  %v12304_v44 = vld [vmem:[#allocation14 + $0x574] sm:$0xf] }
 0x3f1   : > { %v11324_v24 = vor.u32 %v12423_v28, %v11321_v19  ;;  %v10457_v21 = vld [vmem:[#allocation14 + $0x2c8] sm:$0xf0]  ;;  %v10167_v18 = vld [vmem:[#allocation14 + $0x28] sm:$0xf]  ;;  %v10849_v15 = vld [vmem:[#allocation14 + $0x5d0] sm:$0xf0] }
 0x3f2   : > { %v10460_v43 = vor.u32 %v12207_v8, %v10457_v21  ;;  %v12147_v5 = vld [vmem:[#allocation14 + $0x84] sm:$0xf0]  ;;  %v10852_v19 = vor.u32 %v12304_v44, %v10849_v15  ;;  %v12508_v8 = vld [vmem:[#allocation14 + $0xbcc] sm:$0xf0]  ;;  %v13987_v21 = vperm.slane %v13976_v7, 1 }
 0x3f3   : > { %7037 = vmatpush.bf16.msrb.mxu2 %v10164_v38  ;;  %6999 = vmatpush.bf16.msrb.mxu0 %v10160_v47  ;;  %v10455_v38 = vld [vmem:[#allocation14 + $0x268] sm:$0xf] }
 0x3f4   : > { %7018 = vmatpush.bf16.msrb.mxu1 %v10928_v52  ;;  %7056 = vmatpush.bf16.msrb.mxu3 %v10932_v45  ;;  %v12411_v47 = vld [vmem:[#allocation14 + $0x8c4] sm:$0xf0]  ;;  %v10456_v31 = vor.u32 %v12219_v33, %v10455_v38  ;;  %v11228_v45 = vor.u32 %v12399_v48, %v11225_v11  ;;  %v12496_v33 = vld [vmem:[#allocation14 + $0xb74] sm:$0xf] }
 0x3f5   : > { %6924 = vmatmul.bf16.vlgmr.msra.gmra.mxu0 %v13932_v58  ;;  %6943 = vmatmul.bf16.vlgmr.msra.gmra.mxu1 %v13934_v3  ;;  %v11224_v52 = vor.u32 %v12411_v47, %v11223_v9  ;;  %v11617_v9 = vld [vmem:[#allocation14 + $0xbd0] sm:$0xf0] }
 0x3f6   : > { %6962 = vmatmul.bf16.vlgmr.msra.gmra.mxu2 %v13932_v58  ;;  %6981 = vmatmul.bf16.vlgmr.msra.gmra.mxu3 %v13934_v3  ;;  %v12280_v48 = vld [vmem:[#allocation14 + $0x4b4] sm:$0xf] }
 0x3f7   : > { %7106 = vmatpush.bf16.msra.mxu2 %v10844_v6  ;;  %7068 = vmatpush.bf16.msra.mxu0 %v10840_v26  ;;  %v10364_v6 = vor.u32 %v12183_v61, %v10361_v27  ;;  %v10360_v26 = vor.u32 %v12195_v39, %v10359_v57  ;;  %v10753_v11 = vld [vmem:[#allocation14 + $0x510] sm:$0xf0]  ;;  %v10751_v27 = vld [vmem:[#allocation14 + $0x4b0] sm:$0xf] }
 0x3f8   : > { %7087 = vmatpush.bf16.msra.mxu1 %v11608_v4  ;;  %7125 = vmatpush.bf16.msra.mxu3 %v11612_v63  ;;  %v12375_v4 = vld [vmem:[#allocation14 + $0x7ac] sm:$0xf]  ;;  %v11128_v63 = vor.u32 %v12387_v32, %v11127_v20  ;;  %v10756_v61 = vor.u32 %v12280_v48, %v10753_v11  ;;  %v12292_v57 = vld [vmem:[#allocation14 + $0x50c] sm:$0xf0] }
 0x3f9   : > { %v11132_v22 = vor.u32 %v12375_v4, %v11129_v49  ;;  %v12484_v4 = vld [vmem:[#allocation14 + $0xb0c] sm:$0xf0]  ;;  %v12472_v49 = vld [vmem:[#allocation14 + $0xab4] sm:$0xf] }
 0x3fa   : > { %v10463_v48 = vld [vmem:[#allocation14 + $0x270] sm:$0xf] }
 0x3fb   : > { %7107 = vmatpush.bf16.msra.mxu2 %v10748_v0  ;;  %7069 = vmatpush.bf16.msra.mxu0 %v10744_v10  ;;  %v10265_v0 = vld [vmem:[#allocation14 + $0x148] sm:$0xf0]  ;;  %v11031_v10 = vld [vmem:[#allocation14 + $0x6e8] sm:$0xf] }
 0x3fc   : > { %7088 = vmatpush.bf16.msra.mxu1 %v11512_v53  ;;  %7126 = vmatpush.bf16.msra.mxu3 %v11516_v16  ;;  %v10268_v34 = vor.u32 %v12159_v1, %v10265_v0  ;;  %v11033_v53 = vld [vmem:[#allocation14 + $0x748] sm:$0xf0]  ;;  %v13979_v16 = vperm.slane %v13976_v7, 0  ;;  %v11032_v40 = vor.u32 %v12363_v42, %v11031_v10  ;;  %v10655_v10 = vld [vmem:[#allocation14 + $0x3f0] sm:$0xf] }
 0x3fd   : > { %v11036_v46 = vor.u32 %v12351_v12, %v11033_v53  ;;  %v12268_v12 = vld [vmem:[#allocation14 + $0x44c] sm:$0xf0] }
 0x3fe   : > { %v11423_v53 = vld [vmem:[#allocation14 + $0x9f0] sm:$0xf] }
 0x3ff   : > { %7108 = vmatpush.bf16.msra.mxu2 %v10652_v62  ;;  %7070 = vmatpush.bf16.msra.mxu0 %v10648_v36  ;;  %v10169_v62 = vld [vmem:[#allocation14 + $0x88] sm:$0xf0]  ;;  %v10935_v36 = vld [vmem:[#allocation14 + $0x628] sm:$0xf] }
 0x400   : > { %7089 = vmatpush.bf16.msra.mxu1 %v11416_v25  ;;  %7127 = vmatpush.bf16.msra.mxu3 %v11420_v37  ;;  %v10172_v60 = vor.u32 %v12135_v35, %v10169_v62  ;;  %v12339_v25 = vld [vmem:[#allocation14 + $0x684] sm:$0xf0]  ;;  %v10168_v37 = vor.u32 %v12147_v5, %v10167_v18  ;;  %v10656_v35 = vor.u32 %v12268_v12, %v10655_v10  ;;  %v12448_v18 = vld [vmem:[#allocation14 + $0x9f4] sm:$0xf]  ;;  %v12196_v12 = vld [vmem:[#allocation14 + $0x20c] sm:$0xf0] }
 0x403   : > { %7109 = vmatpush.bf16.msra.mxu2 %v10556_v54  ;;  %7071 = vmatpush.bf16.msra.mxu0 %v10552_v23  ;;  %v10936_v54 = vor.u32 %v12339_v25, %v10935_v36  ;;  %v10847_v23 = vld [vmem:[#allocation14 + $0x570] sm:$0xf] }
 0x404   : > { %7090 = vmatpush.bf16.msra.mxu1 %v11320_v50  ;;  %7128 = vmatpush.bf16.msra.mxu3 %v11324_v24  ;;  %v12316_v50 = vld [vmem:[#allocation14 + $0x5cc] sm:$0xf0] }
 0x405   : > { %6929 = vmatmul.bf16.gmra.mxu0 %v13944_v30  ;;  %6948 = vmatmul.bf16.gmra.mxu1 %v13946_v29  ;;  %v11615_v24 = vld [vmem:[#allocation14 + $0xb70] sm:$0xf]  ;;  %v10848_v38 = vor.u32 %v12316_v50, %v10847_v23  ;;  %v12424_v50 = vld [vmem:[#allocation14 + $0x934] sm:$0xf] }
 0x406   : > { %6967 = vmatmul.bf16.gmra.mxu2 %v13944_v30  ;;  %6986 = vmatmul.bf16.gmra.mxu3 %v13946_v29 }
 0x407   : > { %7110 = vmatpush.bf16.msra.mxu2 %v10460_v43  ;;  %7072 = vmatpush.bf16.msra.mxu0 %v10456_v31  ;;  %v11616_v43 = vor.u32 %v12508_v8, %v11615_v24  ;;  %v11620_v31 = vor.u32 %v12496_v33, %v11617_v9 }
 0x408   : > { %7091 = vmatpush.bf16.msra.mxu1 %v11224_v52  ;;  %7129 = vmatpush.bf16.msra.mxu3 %v11228_v45 }
 0x40b   : > { %7111 = vmatpush.bf16.msra.mxu2 %v10364_v6  ;;  %7073 = vmatpush.bf16.msra.mxu0 %v10360_v26  ;;  %v11519_v6 = vld [vmem:[#allocation14 + $0xab0] sm:$0xf]  ;;  %v10752_v26 = vor.u32 %v12292_v57, %v10751_v27 }
 0x40c   : > { %7092 = vmatpush.bf16.msra.mxu1 %v11128_v63  ;;  %7130 = vmatpush.bf16.msra.mxu3 %v11132_v22  ;;  %v11521_v63 = vld [vmem:[#allocation14 + $0xb10] sm:$0xf0]  ;;  %v11520_v1 = vor.u32 %v12484_v4, %v11519_v6  ;;  %v12412_v27 = vld [vmem:[#allocation14 + $0x8cc] sm:$0xf0] }
 0x40d   : > { %v11524_v0 = vor.u32 %v12472_v49, %v11521_v63 }
 0x40f   : > { %7112 = vmatpush.bf16.msra.mxu2 %v10268_v34  ;;  %7074 = vmatpush.bf16.msra.mxu0 %v10264_v56  ;;  %v12256_v34 = vld [vmem:[#allocation14 + $0x3f4] sm:$0xf] }
 0x410   : > { %7093 = vmatpush.bf16.msra.mxu1 %v11032_v40  ;;  %7131 = vmatpush.bf16.msra.mxu3 %v11036_v46  ;;  %v10660_v56 = vor.u32 %v12256_v34, %v10657_v55  ;;  %v12460_v40 = vld [vmem:[#allocation14 + $0xa4c] sm:$0xf0] }
 0x411   : > { %v11424_v62 = vor.u32 %v12460_v40, %v11423_v53 }
 0x412   : > { %v6697_v17 = vpop.f32.mrf.mxu0  ;;  %v6716_v13 = vpop.f32.mrf.mxu1 }
 0x413   : > { %v6698_v2 = vadd.f32 %v6697_v17, %v13979_v16  ;;  %7113 = vmatpush.bf16.msra.mxu2 %v10172_v60  ;;  %7075 = vmatpush.bf16.msra.mxu0 %v10168_v37  ;;  %v11425_v60 = vld [vmem:[#allocation14 + $0xa50] sm:$0xf0] }
 0x414   : > { %7094 = vmatpush.bf16.msra.mxu1 %v10936_v54  ;;  %7132 = vmatpush.bf16.msra.mxu3 %v10940_v41  ;;  %v11428_v36 = vor.u32 %v12448_v18, %v11425_v60  ;;  %v12232_v17 = vld [vmem:[#allocation14 + $0x334] sm:$0xf]  ;;  %v12244_v54 = vld [vmem:[#allocation14 + $0x38c] sm:$0xf0] }
 0x415   : > { %v6717_v28 = vadd.f32 %v6716_v13, %v6698_v2  ;;  %7000 = vmatmul.bf16.vlgmr.msrb.gmra.mxu0 %v13932_v58  ;;  %7019 = vmatmul.bf16.vlgmr.msrb.gmra.mxu1 %v13934_v3  ;;  %v10561_v13 = vld [vmem:[#allocation14 + $0x390] sm:$0xf0]  ;;  %v10559_v2 = vld [vmem:[#allocation14 + $0x330] sm:$0xf] }
 0x416   : > { %7038 = vmatmul.bf16.vlgmr.msrb.gmra.mxu2 %v13932_v58  ;;  %7057 = vmatmul.bf16.vlgmr.msrb.gmra.mxu3 %v13934_v3  ;;  %v10564_v14 = vor.u32 %v12232_v17, %v10561_v13  ;;  %v11327_v41 = vld [vmem:[#allocation14 + $0x930] sm:$0xf]  ;;  %v12376_v17 = vld [vmem:[#allocation14 + $0x7b4] sm:$0xf] }
 0x417   : > { %v7600_v47 = vmul.f32 0.5, %v6717_v28  ;;  %7182 = vmatpush.bf16.msrb.mxu2 %v10852_v19  ;;  %7144 = vmatpush.bf16.msrb.mxu0 %v10848_v38  ;;  %v10560_v28 = vor.u32 %v12244_v54, %v10559_v2  ;;  %v12436_v19 = vld [vmem:[#allocation14 + $0x98c] sm:$0xf0]  ;;  %v11137_v13 = vld [vmem:[#allocation14 + $0x810] sm:$0xf0] }
 0x418   : > { %7163 = vmatpush.bf16.msrb.mxu1 %v11616_v43  ;;  %7201 = vmatpush.bf16.msrb.mxu3 %v11620_v31  ;;  %v11328_v38 = vor.u32 %v12436_v19, %v11327_v41  ;;  %v11329_v43 = vld [vmem:[#allocation14 + $0x990] sm:$0xf0]  ;;  %v12388_v18 = vld [vmem:[#allocation14 + $0x80c] sm:$0xf0] }
 0x419   : > { %v6735_v52 = vpop.f32.mrf.mxu2  ;;  %v6754_v45 = vpop.f32.mrf.mxu3  ;;  %12654 = vtanh.f32 %v7600_v47  ;;  %v11332_v9 = vor.u32 %v12424_v50, %v11329_v43  ;;  %v12208_v47 = vld [vmem:[#allocation14 + $0x274] sm:$0xf]  ;;  %v10271_v54 = vld [vmem:[#allocation14 + $0xf0] sm:$0xf]  ;;  %v14005_v43 = vperm.slane %v13976_v7, 2 }
 0x41a   : > { %v6736_v39 = vadd.f32 %v6735_v52, %v13987_v21  ;;  %v6699_v20 = vpop.f32.mrf.mxu0  ;;  %v6718_v32 = vpop.f32.mrf.mxu1  ;;  %v10465_v31 = vld [vmem:[#allocation14 + $0x2d0] sm:$0xf0] }
 0x41b   : > { %v6700_v22 = vadd.f32 %v6699_v20, %v13979_v16  ;;  %7183 = vmatpush.bf16.msrb.mxu2 %v10756_v61  ;;  %7145 = vmatpush.bf16.msrb.mxu0 %v10752_v26  ;;  %v10468_v52 = vor.u32 %v12208_v47, %v10465_v31  ;;  %v11231_v61 = vld [vmem:[#allocation14 + $0x870] sm:$0xf]  ;;  %v12400_v20 = vld [vmem:[#allocation14 + $0x874] sm:$0xf] }
 0x41c   : > { %v6755_v51 = vadd.f32 %v6754_v45, %v6736_v39  ;;  %7164 = vmatpush.bf16.msrb.mxu1 %v11520_v1  ;;  %7202 = vmatpush.bf16.msrb.mxu3 %v11524_v0  ;;  %v12220_v45 = vld [vmem:[#allocation14 + $0x2cc] sm:$0xf0]  ;;  %v11232_v4 = vor.u32 %v12412_v27, %v11231_v61  ;;  %v12184_v1 = vld [vmem:[#allocation14 + $0x1b4] sm:$0xf] }
 0x41d   : > { %v6719_v42 = vadd.f32 %v6718_v32, %v6700_v22  ;;  %v10464_v39 = vor.u32 %v12220_v45, %v10463_v48  ;;  %v11233_v32 = vld [vmem:[#allocation14 + $0x8d0] sm:$0xf0] }
 0x41e   : > { %v7601_v46 = vmul.f32 0.5, %v6755_v51  ;;  %v11236_v49 = vor.u32 %v12400_v20, %v11233_v32  ;;  %v10369_v0 = vld [vmem:[#allocation14 + $0x210] sm:$0xf0] }
 0x41f   : > { %v7624_v5 = vmul.f32 0.5, %v6719_v42  ;;  %v12655_v25 = vpop.eup %12654  ;;  %7184 = vmatpush.bf16.msrb.mxu2 %v10660_v56  ;;  %7146 = vmatpush.bf16.msrb.mxu0 %v10656_v35  ;;  %v10372_v42 = vor.u32 %v12184_v1, %v10369_v0  ;;  %v10367_v56 = vld [vmem:[#allocation14 + $0x1b0] sm:$0xf]  ;;  %v10273_v2 = vld [vmem:[#allocation14 + $0x150] sm:$0xf0] }
 0x420   : > { %12656 = vtanh.f32 %v7601_v46  ;;  %7165 = vmatpush.bf16.msrb.mxu1 %v11424_v62  ;;  %7203 = vmatpush.bf16.msrb.mxu3 %v11428_v36  ;;  %v7792_v24 = vmul.f32 0.5, %v12655_v25  ;;  %v10368_v35 = vor.u32 %v12196_v12, %v10367_v56  ;;  %v11135_v62 = vld [vmem:[#allocation14 + $0x7b0] sm:$0xf]  ;;  %v12136_v31 = vld [vmem:[#allocation14 + $0x34] sm:$0xf] }
 0x421   : > { %v6737_v37 = vpop.f32.mrf.mxu2  ;;  %v6756_v59 = vpop.f32.mrf.mxu3  ;;  %12658 = vtanh.f32 %v7624_v5  ;;  %v11136_v25 = vor.u32 %v12388_v18, %v11135_v62  ;;  %v10177_v48 = vld [vmem:[#allocation14 + $0x90] sm:$0xf0]  ;;  %v10855_v56 = vld [vmem:[#allocation14 + $0x578] sm:$0xf] }
 0x422   : > { %v6738_v44 = vadd.f32 %v6737_v37, %v13987_v21  ;;  %v6702_v15 = vpop.f32.mrf.mxu0  ;;  %v6721_v23 = vpop.f32.mrf.mxu1  ;;  %v7888_v51 = vadd.f32 0.5, %v7792_v24  ;;  %v12352_v24 = vld [vmem:[#allocation14 + $0x6f4] sm:$0xf]  ;;  %v10180_v27 = vor.u32 %v12136_v31, %v10177_v48 }
 0x423   : > { %v6703_v8 = vadd.f32 %v6702_v15, %v13979_v16  ;;  %7185 = vmatpush.bf16.msrb.mxu2 %v10564_v14  ;;  %7147 = vmatpush.bf16.msrb.mxu0 %v10560_v28  ;;  %v12160_v14 = vld [vmem:[#allocation14 + $0xf4] sm:$0xf]  ;;  %v11039_v15 = vld [vmem:[#allocation14 + $0x6f0] sm:$0xf] }
 0x424   : > { %v6757_v33 = vadd.f32 %v6756_v59, %v6738_v44  ;;  %7166 = vmatpush.bf16.msrb.mxu1 %v11328_v38  ;;  %7204 = vmatpush.bf16.msrb.mxu3 %v11332_v9  ;;  %v11140_v59 = vor.u32 %v12376_v17, %v11137_v13  ;;  %v12172_v44 = vld [vmem:[#allocation14 + $0x14c] sm:$0xf0] }
 0x425   : > { %v6722_v11 = vadd.f32 %v6721_v23, %v6703_v8  ;;  %7005 = vmatmul.bf16.gmra.mxu0 %v13944_v30  ;;  %7024 = vmatmul.bf16.gmra.mxu1 %v13946_v29  ;;  %v12364_v23 = vld [vmem:[#allocation14 + $0x74c] sm:$0xf0]  ;;  %v10272_v50 = vor.u32 %v12172_v44, %v10271_v54  ;;  %v11041_v8 = vld [vmem:[#allocation14 + $0x750] sm:$0xf0]  ;;  %v10761_v54 = vld [vmem:[#allocation14 + $0x518] sm:$0xf0] }
 0x426   : > { %v12657_v57 = vpop.eup %12656  ;;  %v7625_v6 = vmul.f32 0.5, %v6757_v33  ;;  %7043 = vmatmul.bf16.gmra.mxu2 %v13944_v30  ;;  %7062 = vmatmul.bf16.gmra.mxu3 %v13946_v29  ;;  %v11040_v33 = vor.u32 %v12364_v23, %v11039_v15  ;;  %v11044_v9 = vor.u32 %v12352_v24, %v11041_v8 }
 0x427   : > { %v7793_v26 = vmul.f32 0.5, %v12657_v57  ;;  %v12659_v63 = vpop.eup %12658  ;;  %v7648_v22 = vmul.f32 0.5, %v6722_v11  ;;  %7186 = vmatpush.bf16.msrb.mxu2 %v10468_v52  ;;  %7148 = vmatpush.bf16.msrb.mxu0 %v10464_v39  ;;  %v10175_v57 = vld [vmem:[#allocation14 + $0x30] sm:$0xf] }
 0x428   : > { %12660 = vtanh.f32 %v7625_v6  ;;  %v7816_v5 = vmul.f32 0.5, %v12659_v63  ;;  %7167 = vmatpush.bf16.msrb.mxu1 %v11232_v4  ;;  %7205 = vmatpush.bf16.msrb.mxu3 %v11236_v49  ;;  %v12148_v6 = vld [vmem:[#allocation14 + $0x8c] sm:$0xf0] }
 0x429   : > { %v7889_v34 = vadd.f32 0.5, %v7793_v26  ;;  %v6740_v55 = vpop.f32.mrf.mxu2  ;;  %v6759_v10 = vpop.f32.mrf.mxu3  ;;  %12662 = vtanh.f32 %v7648_v22  ;;  %v10176_v4 = vor.u32 %v12148_v6, %v10175_v57  ;;  %v10943_v49 = vld [vmem:[#allocation14 + $0x630] sm:$0xf]  ;;  %v12257_v57 = vld [vmem:[#allocation14 + $0x3fc] sm:$0xf] }
 0x42a   : > { %v6741_v53 = vadd.f32 %v6740_v55, %v13987_v21  ;;  %v6704_v40 = vpop.f32.mrf.mxu0  ;;  %v6723_v46 = vpop.f32.mrf.mxu1  ;;  %v7912_v11 = vadd.f32 0.5, %v7816_v5  ;;  %v12340_v63 = vld [vmem:[#allocation14 + $0x68c] sm:$0xf0]  ;;  %v10665_v6 = vld [vmem:[#allocation14 + $0x458] sm:$0xf0] }
 0x42b   : > { %v7984_v60 = vpack.c.bf16 %v7889_v34, %v7888_v51  ;;  %v6705_v36 = vadd.f32 %v6704_v40, %v13979_v16  ;;  %7187 = vmatpush.bf16.msrb.mxu2 %v10372_v42  ;;  %7149 = vmatpush.bf16.msrb.mxu0 %v10368_v35  ;;  %v10276_v16 = vor.u32 %v12160_v14, %v10273_v2  ;;  %v12328_v51 = vld [vmem:[#allocation14 + $0x634] sm:$0xf]  ;;  %v10857_v42 = vld [vmem:[#allocation14 + $0x5d8] sm:$0xf0]  ;;  %v11623_v35 = vld [vmem:[#allocation14 + $0xb78] sm:$0xf] }
 0x42c   : > { %v6760_v37 = vadd.f32 %v6759_v10, %v6741_v53  ;;  %7168 = vmatpush.bf16.msrb.mxu1 %v11136_v25  ;;  %7206 = vmatpush.bf16.msrb.mxu3 %v11140_v59  ;;  %v10944_v0 = vor.u32 %v12340_v63, %v10943_v49  ;;  %v10945_v34 = vld [vmem:[#allocation14 + $0x690] sm:$0xf0]  ;;  %v12497_v25 = vld [vmem:[#allocation14 + $0xb7c] sm:$0xf]  ;;  %v11431_v49 = vld [vmem:[#allocation14 + $0x9f8] sm:$0xf] }
 0x42d   : > { %8032 = vst [vmem:[%s14001_s17] sm:$0xff] %v7984_v60  ;;  %v6724_v41 = vadd.f32 %v6723_v46, %v6705_v36  ;;  %v10948_v10 = vor.u32 %v12328_v51, %v10945_v34  ;;  %v12317_v46 = vld [vmem:[#allocation14 + $0x5d4] sm:$0xf0]  ;;  %v14015_v60 = vperm.slane %v13976_v7, 3  ;;  %v12281_v2 = vld [vmem:[#allocation14 + $0x4bc] sm:$0xf] }
 0x42e   : > { %v12661_v28 = vpop.eup %12660  ;;  %v7649_v19 = vmul.f32 0.5, %v6760_v37  ;;  %v10856_v5 = vor.u32 %v12317_v46, %v10855_v56  ;;  %v12509_v36 = vld [vmem:[#allocation14 + $0xbd4] sm:$0xf0]  ;;  %v11625_v37 = vld [vmem:[#allocation14 + $0xbd8] sm:$0xf0]  ;;  %v10764_v23 = vor.u32 %v12281_v2, %v10761_v54 }
 0x42f   : > { %v7817_v38 = vmul.f32 0.5, %v12661_v28  ;;  %v7672_v47 = vmul.f32 0.5, %v6724_v41  ;;  %7188 = vmatpush.bf16.msrb.mxu2 %v10276_v16  ;;  %7150 = vmatpush.bf16.msrb.mxu0 %v10272_v50  ;;  %v12663_v39 = vpop.eup %12662  ;;  %v11624_v13 = vor.u32 %v12509_v36, %v11623_v35  ;;  %v11628_v14 = vor.u32 %v12497_v25, %v11625_v37  ;;  %v10759_v28 = vld [vmem:[#allocation14 + $0x4b8] sm:$0xf]  ;;  %v12449_v51 = vld [vmem:[#allocation14 + $0x9fc] sm:$0xf] }
 0x430   : > { %12664 = vtanh.f32 %v7649_v19  ;;  %7169 = vmatpush.bf16.msrb.mxu1 %v11040_v33  ;;  %7207 = vmatpush.bf16.msrb.mxu3 %v11044_v9  ;;  %v7840_v12 = vmul.f32 0.5, %v12663_v39  ;;  %v12293_v19 = vld [vmem:[#allocation14 + $0x514] sm:$0xf0]  ;;  %v12233_v56 = vld [vmem:[#allocation14 + $0x33c] sm:$0xf] }
 0x431   : > { %v7913_v52 = vadd.f32 0.5, %v7817_v38  ;;  %v6742_v45 = vpop.f32.mrf.mxu2  ;;  %v6761_v61 = vpop.f32.mrf.mxu3  ;;  %12666 = vtanh.f32 %v7672_v47  ;;  %v10760_v33 = vor.u32 %v12293_v19, %v10759_v28  ;;  %v11527_v9 = vld [vmem:[#allocation14 + $0xab8] sm:$0xf]  ;;  %v12209_v28 = vld [vmem:[#allocation14 + $0x27c] sm:$0xf] }
 0x432   : > { %v6743_v20 = vadd.f32 %v6742_v45, %v13987_v21  ;;  %v6773_v32 = vpop.f32.mrf.mxu0  ;;  %v6792_v26 = vpop.f32.mrf.mxu1  ;;  %v12305_v21 = vld [vmem:[#allocation14 + $0x57c] sm:$0xf]  ;;  %v7936_v41 = vadd.f32 0.5, %v7840_v12  ;;  %v12485_v47 = vld [vmem:[#allocation14 + $0xb14] sm:$0xf0] }
 0x433   : > { %v7996_v22 = vpack.c.bf16 %v7913_v52, %v7912_v11  ;;  %v6774_v1 = vadd.f32 %v6773_v32, %v14005_v43  ;;  %7189 = vmatpush.bf16.msrb.mxu2 %v10180_v27  ;;  %7151 = vmatpush.bf16.msrb.mxu0 %v10176_v4  ;;  %v10860_v40 = vor.u32 %v12305_v21, %v10857_v42  ;;  %v12473_v52 = vld [vmem:[#allocation14 + $0xabc] sm:$0xf]  ;;  %v10663_v39 = vld [vmem:[#allocation14 + $0x3f8] sm:$0xf] }
 0x434   : > { %v6762_v55 = vadd.f32 %v6761_v61, %v6743_v20  ;;  %7170 = vmatpush.bf16.msrb.mxu1 %v10944_v0  ;;  %7208 = vmatpush.bf16.msrb.mxu3 %v10948_v10  ;;  %v11528_v11 = vor.u32 %v12485_v47, %v11527_v9  ;;  %v11529_v45 = vld [vmem:[#allocation14 + $0xb18] sm:$0xf0]  ;;  %v12269_v4 = vld [vmem:[#allocation14 + $0x454] sm:$0xf0] }
 0x435   : > { %8044 = vst [vmem:[%s14001_s17 + $0x60] sm:$0xff] %v7996_v22  ;;  %v6793_v53 = vadd.f32 %v6792_v26, %v6774_v1  ;;  %7076 = vmatmul.bf16.vlgmr.msra.gmra.mxu0 %v13932_v58  ;;  %7095 = vmatmul.bf16.vlgmr.msra.gmra.mxu1 %v13934_v3  ;;  %v11532_v27 = vor.u32 %v12473_v52, %v11529_v45  ;;  %v12461_v0 = vld [vmem:[#allocation14 + $0xa54] sm:$0xf0]  ;;  %v11433_v10 = vld [vmem:[#allocation14 + $0xa58] sm:$0xf0] }
 0x436   : > { %v12665_v62 = vpop.eup %12664  ;;  %v7673_v18 = vmul.f32 0.5, %v6762_v55  ;;  %7114 = vmatmul.bf16.vlgmr.msra.gmra.mxu2 %v13932_v58  ;;  %7133 = vmatmul.bf16.vlgmr.msra.gmra.mxu3 %v13934_v3  ;;  %v10668_v26 = vor.u32 %v12257_v57, %v10665_v6  ;;  %v10664_v1 = vor.u32 %v12269_v4, %v10663_v39  ;;  %v11432_v55 = vor.u32 %v12461_v0, %v11431_v49  ;;  %v10569_v12 = vld [vmem:[#allocation14 + $0x398] sm:$0xf0]  ;;  %v11239_v9 = vld [vmem:[#allocation14 + $0x878] sm:$0xf] }
 0x437   : > { %v7841_v17 = vmul.f32 0.5, %v12665_v62  ;;  %v7602_v59 = vmul.f32 0.5, %v6793_v53  ;;  %7258 = vmatpush.bf16.msra.mxu2 %v10860_v40  ;;  %7220 = vmatpush.bf16.msra.mxu0 %v10856_v5  ;;  %v12667_v50 = vpop.eup %12666  ;;  %v11436_v42 = vor.u32 %v12449_v51, %v11433_v10  ;;  %v10572_v62 = vor.u32 %v12233_v56, %v10569_v12  ;;  %v12245_v5 = vld [vmem:[#allocation14 + $0x394] sm:$0xf0]  ;;  %v10473_v19 = vld [vmem:[#allocation14 + $0x2d8] sm:$0xf0] }
 0x438   : > { %12668 = vtanh.f32 %v7673_v18  ;;  %7239 = vmatpush.bf16.msra.mxu1 %v11624_v13  ;;  %7277 = vmatpush.bf16.msra.mxu3 %v11628_v14  ;;  %v7864_v20 = vmul.f32 0.5, %v12667_v50  ;;  %v10567_v18 = vld [vmem:[#allocation14 + $0x338] sm:$0xf]  ;;  %v12401_v52 = vld [vmem:[#allocation14 + $0x87c] sm:$0xf] }
 0x439   : > { %v7937_v16 = vadd.f32 0.5, %v7841_v17  ;;  %v6811_v44 = vpop.f32.mrf.mxu2  ;;  %v6830_v15 = vpop.f32.mrf.mxu3  ;;  %12670 = vtanh.f32 %v7602_v59  ;;  %v10568_v37 = vor.u32 %v12245_v5, %v10567_v18  ;;  %v11335_v59 = vld [vmem:[#allocation14 + $0x938] sm:$0xf]  ;;  %v12185_v39 = vld [vmem:[#allocation14 + $0x1bc] sm:$0xf] }
 0x43a   : > { %v6812_v24 = vadd.f32 %v6811_v44, %v14015_v60  ;;  %v6775_v8 = vpop.f32.mrf.mxu0  ;;  %v6794_v38 = vpop.f32.mrf.mxu1  ;;  %v7960_v53 = vadd.f32 0.5, %v7864_v20  ;;  %v12437_v14 = vld [vmem:[#allocation14 + $0x994] sm:$0xf0]  ;;  %v11337_v44 = vld [vmem:[#allocation14 + $0x998] sm:$0xf0] }
 0x43b   : > { %v8008_v31 = vpack.c.bf16 %v7937_v16, %v7936_v41  ;;  %v6776_v48 = vadd.f32 %v6775_v8, %v14005_v43  ;;  %7259 = vmatpush.bf16.msra.mxu2 %v10764_v23  ;;  %7221 = vmatpush.bf16.msra.mxu0 %v10760_v33  ;;  %v11336_v41 = vor.u32 %v12437_v14, %v11335_v59  ;;  %v12425_v16 = vld [vmem:[#allocation14 + $0x93c] sm:$0xf]  ;;  %v10471_v50 = vld [vmem:[#allocation14 + $0x278] sm:$0xf] }
 0x43c   : > { %v6831_v61 = vadd.f32 %v6830_v15, %v6812_v24  ;;  %7240 = vmatpush.bf16.msra.mxu1 %v11528_v11  ;;  %7278 = vmatpush.bf16.msra.mxu3 %v11532_v27  ;;  %v11340_v23 = vor.u32 %v12425_v16, %v11337_v44  ;;  %v12221_v33 = vld [vmem:[#allocation14 + $0x2d4] sm:$0xf0]  ;;  %v11241_v27 = vld [vmem:[#allocation14 + $0x8d8] sm:$0xf0]  ;;  %v14031_v44 = vperm.slane %v13976_v7, 4 }
 0x43d   : > { %8056 = vst [vmem:[%s14001_s17 + $0xc0] sm:$0xff] %v8008_v31  ;;  %v6795_v32 = vadd.f32 %v6794_v38, %v6776_v48  ;;  %v10476_v38 = vor.u32 %v12209_v28, %v10473_v19  ;;  %v10472_v48 = vor.u32 %v12221_v33, %v10471_v50  ;;  %v12413_v11 = vld [vmem:[#allocation14 + $0x8d4] sm:$0xf0]  ;;  %v11244_v6 = vor.u32 %v12401_v52, %v11241_v27  ;;  %v10377_v20 = vld [vmem:[#allocation14 + $0x218] sm:$0xf0] }
 0x43e   : > { %v12669_v63 = vpop.eup %12668  ;;  %v7603_v22 = vmul.f32 0.5, %v6831_v61  ;;  %v11240_v61 = vor.u32 %v12413_v11, %v11239_v9  ;;  %v12161_v18 = vld [vmem:[#allocation14 + $0xfc] sm:$0xf]  ;;  %v11047_v59 = vld [vmem:[#allocation14 + $0x6f8] sm:$0xf] }
 0x43f   : > { %v7865_v34 = vmul.f32 0.5, %v12669_v63  ;;  %v7626_v21 = vmul.f32 0.5, %v6795_v32  ;;  %7260 = vmatpush.bf16.msra.mxu2 %v10668_v26  ;;  %7222 = vmatpush.bf16.msra.mxu0 %v10664_v1  ;;  %v12671_v36 = vpop.eup %12670  ;;  %v10380_v63 = vor.u32 %v12185_v39, %v10377_v20  ;;  %v12197_v1 = vld [vmem:[#allocation14 + $0x214] sm:$0xf0]  ;;  %v10281_v5 = vld [vmem:[#allocation14 + $0x158] sm:$0xf0] }
 0x440   : > { %12672 = vtanh.f32 %v7603_v22  ;;  %7241 = vmatpush.bf16.msra.mxu1 %v11432_v55  ;;  %7279 = vmatpush.bf16.msra.mxu3 %v11436_v42  ;;  %v7794_v24 = vmul.f32 0.5, %v12671_v36  ;;  %v10375_v22 = vld [vmem:[#allocation14 + $0x1b8] sm:$0xf]  ;;  %v12137_v50 = vld [vmem:[#allocation14 + $0x3c] sm:$0xf] }
 0x441   : > { %v7961_v40 = vadd.f32 0.5, %v7865_v34  ;;  %v6813_v46 = vpop.f32.mrf.mxu2  ;;  %v6832_v35 = vpop.f32.mrf.mxu3  ;;  %12674 = vtanh.f32 %v7626_v21  ;;  %v10376_v10 = vor.u32 %v12197_v1, %v10375_v22  ;;  %v11143_v21 = vld [vmem:[#allocation14 + $0x7b8] sm:$0xf]  ;;  %v10865_v22 = vld [vmem:[#allocation14 + $0x5e0] sm:$0xf0] }
 0x442   : > { %v6814_v25 = vadd.f32 %v6813_v46, %v14015_v60  ;;  %v6778_v17 = vpop.f32.mrf.mxu0  ;;  %v6797_v13 = vpop.f32.mrf.mxu1  ;;  %v7890_v32 = vadd.f32 0.5, %v7794_v24  ;;  %v12389_v42 = vld [vmem:[#allocation14 + $0x814] sm:$0xf0]  ;;  %v11145_v46 = vld [vmem:[#allocation14 + $0x818] sm:$0xf0] }
 0x443   : > { %v8020_v2 = vpack.c.bf16 %v7961_v40, %v7960_v53  ;;  %v6779_v54 = vadd.f32 %v6778_v17, %v14005_v43  ;;  %7261 = vmatpush.bf16.msra.mxu2 %v10572_v62  ;;  %7223 = vmatpush.bf16.msra.mxu0 %v10568_v37  ;;  %v11144_v53 = vor.u32 %v12389_v42, %v11143_v21  ;;  %v12377_v40 = vld [vmem:[#allocation14 + $0x7bc] sm:$0xf]  ;;  %v10279_v36 = vld [vmem:[#allocation14 + $0xf8] sm:$0xf]  ;;  %v10863_v1 = vld [vmem:[#allocation14 + $0x580] sm:$0xf] }
 0x444   : > { %v6833_v15 = vadd.f32 %v6832_v35, %v6814_v25  ;;  %7242 = vmatpush.bf16.msra.mxu1 %v11336_v41  ;;  %7280 = vmatpush.bf16.msra.mxu3 %v11340_v23  ;;  %v11148_v62 = vor.u32 %v12377_v40, %v11145_v46  ;;  %v12173_v37 = vld [vmem:[#allocation14 + $0x154] sm:$0xf0]  ;;  %v12353_v41 = vld [vmem:[#allocation14 + $0x6fc] sm:$0xf]  ;;  %v12498_v40 = vld [vmem:[#allocation14 + $0xb84] sm:$0xf] }
 0x445   : > { %8068 = vst [vmem:[%s14001_s17 + $0x120] sm:$0xff] %v8020_v2  ;;  %v6798_v8 = vadd.f32 %v6797_v13, %v6779_v54  ;;  %7081 = vmatmul.bf16.gmra.mxu0 %v13944_v30  ;;  %7100 = vmatmul.bf16.gmra.mxu1 %v13946_v29  ;;  %v10284_v13 = vor.u32 %v12161_v18, %v10281_v5  ;;  %v12365_v54 = vld [vmem:[#allocation14 + $0x754] sm:$0xf0]  ;;  %v11049_v23 = vld [vmem:[#allocation14 + $0x758] sm:$0xf0] }
 0x446   : > { %v12673_v47 = vpop.eup %12672  ;;  %v7627_v31 = vmul.f32 0.5, %v6833_v15  ;;  %7119 = vmatmul.bf16.gmra.mxu2 %v13944_v30  ;;  %7138 = vmatmul.bf16.gmra.mxu3 %v13946_v29  ;;  %v10280_v2 = vor.u32 %v12173_v37, %v10279_v36  ;;  %v11048_v15 = vor.u32 %v12365_v54, %v11047_v59  ;;  %v11052_v19 = vor.u32 %v12353_v41, %v11049_v23  ;;  %v10185_v24 = vld [vmem:[#allocation14 + $0x98] sm:$0xf0]  ;;  %v12282_v36 = vld [vmem:[#allocation14 + $0x4c4] sm:$0xf] }
 0x447   : > { %v7795_v45 = vmul.f32 0.5, %v12673_v47  ;;  %v7650_v57 = vmul.f32 0.5, %v6798_v8  ;;  %7262 = vmatpush.bf16.msra.mxu2 %v10476_v38  ;;  %7224 = vmatpush.bf16.msra.mxu0 %v10472_v48  ;;  %v12675_v0 = vpop.eup %12674  ;;  %v10188_v47 = vor.u32 %v12137_v50, %v10185_v24  ;;  %v12149_v48 = vld [vmem:[#allocation14 + $0x94] sm:$0xf0]  ;;  %v11535_v23 = vld [vmem:[#allocation14 + $0xac0] sm:$0xf] }
 0x448   : > { %12676 = vtanh.f32 %v7627_v31  ;;  %7243 = vmatpush.bf16.msra.mxu1 %v11240_v61  ;;  %7281 = vmatpush.bf16.msra.mxu3 %v11244_v6  ;;  %v7818_v25 = vmul.f32 0.5, %v12675_v0  ;;  %v10183_v31 = vld [vmem:[#allocation14 + $0x38] sm:$0xf] }
 0x449   : > { %v7891_v26 = vadd.f32 0.5, %v7795_v45  ;;  %v6816_v4 = vpop.f32.mrf.mxu2  ;;  %v6835_v49 = vpop.f32.mrf.mxu3  ;;  %12678 = vtanh.f32 %v7650_v57  ;;  %v10184_v27 = vor.u32 %v12149_v48, %v10183_v31  ;;  %v10951_v57 = vld [vmem:[#allocation14 + $0x638] sm:$0xf]  ;;  %v10673_v31 = vld [vmem:[#allocation14 + $0x460] sm:$0xf0] }
 0x44a   : > { %v6817_v51 = vadd.f32 %v6816_v4, %v14015_v60  ;;  %v6780_v34 = vpop.f32.mrf.mxu0  ;;  %v6799_v55 = vpop.f32.mrf.mxu1  ;;  %v7914_v8 = vadd.f32 0.5, %v7818_v25  ;;  %v12341_v6 = vld [vmem:[#allocation14 + $0x694] sm:$0xf0]  ;;  %v10953_v4 = vld [vmem:[#allocation14 + $0x698] sm:$0xf0] }
 0x44b   : > { %v7985_v56 = vpack.c.bf16 %v7891_v26, %v7890_v32  ;;  %v6781_v12 = vadd.f32 %v6780_v34, %v14005_v43  ;;  %7263 = vmatpush.bf16.msra.mxu2 %v10380_v63  ;;  %7225 = vmatpush.bf16.msra.mxu0 %v10376_v10  ;;  %v10952_v32 = vor.u32 %v12341_v6, %v10951_v57  ;;  %v12329_v26 = vld [vmem:[#allocation14 + $0x63c] sm:$0xf]  ;;  %v11631_v10 = vld [vmem:[#allocation14 + $0xb80] sm:$0xf]  ;;  %v10769_v25 = vld [vmem:[#allocation14 + $0x520] sm:$0xf0] }
 0x44c   : > { %v6836_v35 = vadd.f32 %v6835_v49, %v6817_v51  ;;  %7244 = vmatpush.bf16.msra.mxu1 %v11144_v53  ;;  %7282 = vmatpush.bf16.msra.mxu3 %v11148_v62  ;;  %v10956_v63 = vor.u32 %v12329_v26, %v10953_v4  ;;  %v12510_v53 = vld [vmem:[#allocation14 + $0xbdc] sm:$0xf0]  ;;  %v11633_v62 = vld [vmem:[#allocation14 + $0xbe0] sm:$0xf0]  ;;  %v10772_v59 = vor.u32 %v12282_v36, %v10769_v25 }
 0x44d   : > { %8033 = vst [vmem:[%s14001_s17 + $0x8] sm:$0xff] %v7985_v56  ;;  %v6800_v17 = vadd.f32 %v6799_v55, %v6781_v12  ;;  %v12318_v55 = vld [vmem:[#allocation14 + $0x5dc] sm:$0xf0]  ;;  %v14041_v56 = vperm.slane %v13976_v7, 5  ;;  %v11636_v5 = vor.u32 %v12498_v40, %v11633_v62 }
 0x44e   : > { %v12677_v43 = vpop.eup %12676  ;;  %v7651_v14 = vmul.f32 0.5, %v6836_v35  ;;  %v10864_v12 = vor.u32 %v12318_v55, %v10863_v1  ;;  %v11632_v35 = vor.u32 %v12510_v53, %v11631_v10  ;;  %v10671_v48 = vld [vmem:[#allocation14 + $0x400] sm:$0xf]  ;;  %v10577_v1 = vld [vmem:[#allocation14 + $0x3a0] sm:$0xf0] }
 0x44f   : > { %v7819_v16 = vmul.f32 0.5, %v12677_v43  ;;  %v7674_v28 = vmul.f32 0.5, %v6800_v17  ;;  %7264 = vmatpush.bf16.msra.mxu2 %v10284_v13  ;;  %7226 = vmatpush.bf16.msra.mxu0 %v10280_v2  ;;  %v12679_v11 = vpop.eup %12678  ;;  %v10767_v43 = vld [vmem:[#allocation14 + $0x4c0] sm:$0xf] }
 0x450   : > { %12680 = vtanh.f32 %v7651_v14  ;;  %7245 = vmatpush.bf16.msra.mxu1 %v11048_v15  ;;  %7283 = vmatpush.bf16.msra.mxu3 %v11052_v19  ;;  %v7842_v0 = vmul.f32 0.5, %v12679_v11  ;;  %v12294_v14 = vld [vmem:[#allocation14 + $0x51c] sm:$0xf0] }
 0x451   : > { %v7915_v38 = vadd.f32 0.5, %v7819_v16  ;;  %v6818_v33 = vpop.f32.mrf.mxu2  ;;  %v6837_v9 = vpop.f32.mrf.mxu3  ;;  %12682 = vtanh.f32 %v7674_v28  ;;  %v10768_v15 = vor.u32 %v12294_v14, %v10767_v43  ;;  %v12486_v28 = vld [vmem:[#allocation14 + $0xb1c] sm:$0xf0]  ;;  %v10481_v43 = vld [vmem:[#allocation14 + $0x2e0] sm:$0xf0] }
 0x452   : > { %v6819_v52 = vadd.f32 %v6818_v33, %v14015_v60  ;;  %v6849_v45 = vpop.f32.mrf.mxu0  ;;  %v6868_v61 = vpop.f32.mrf.mxu1  ;;  %v12306_v60 = vld [vmem:[#allocation14 + $0x584] sm:$0xf]  ;;  %v7938_v17 = vadd.f32 0.5, %v7842_v0  ;;  %v11536_v24 = vor.u32 %v12486_v28, %v11535_v23  ;;  %v11343_v62 = vld [vmem:[#allocation14 + $0x940] sm:$0xf] }
 0x453   : > { %v7997_v39 = vpack.c.bf16 %v7915_v38, %v7914_v8  ;;  %v6850_v20 = vadd.f32 %v6849_v45, %v14031_v44  ;;  %7265 = vmatpush.bf16.msra.mxu2 %v10188_v47  ;;  %7227 = vmatpush.bf16.msra.mxu0 %v10184_v27  ;;  %v10868_v34 = vor.u32 %v12306_v60, %v10865_v22  ;;  %v12474_v8 = vld [vmem:[#allocation14 + $0xac4] sm:$0xf]  ;;  %v11439_v27 = vld [vmem:[#allocation14 + $0xa00] sm:$0xf] }
 0x454   : > { %v6838_v49 = vadd.f32 %v6837_v9, %v6819_v52  ;;  %7246 = vmatpush.bf16.msra.mxu1 %v10952_v32  ;;  %7284 = vmatpush.bf16.msra.mxu3 %v10956_v63  ;;  %v11537_v38 = vld [vmem:[#allocation14 + $0xb20] sm:$0xf0]  ;;  %v10479_v14 = vld [vmem:[#allocation14 + $0x280] sm:$0xf] }
 0x455   : > { %8045 = vst [vmem:[%s14001_s17 + $0x68] sm:$0xff] %v7997_v39  ;;  %v6869_v51 = vadd.f32 %v6868_v61, %v6850_v20  ;;  %7152 = vmatmul.bf16.vlgmr.msrb.gmra.mxu0 %v13932_v58  ;;  %7171 = vmatmul.bf16.vlgmr.msrb.gmra.mxu1 %v13934_v3  ;;  %v11540_v9 = vor.u32 %v12474_v8, %v11537_v38  ;;  %v12258_v47 = vld [vmem:[#allocation14 + $0x404] sm:$0xf]  ;;  %v12270_v61 = vld [vmem:[#allocation14 + $0x45c] sm:$0xf0] }
 0x456   : > { %v12681_v21 = vpop.eup %12680  ;;  %v7675_v42 = vmul.f32 0.5, %v6838_v49  ;;  %7190 = vmatmul.bf16.vlgmr.msrb.gmra.mxu2 %v13932_v58  ;;  %7209 = vmatmul.bf16.vlgmr.msrb.gmra.mxu3 %v13934_v3  ;;  %v10676_v45 = vor.u32 %v12258_v47, %v10673_v31  ;;  %v10672_v39 = vor.u32 %v12270_v61, %v10671_v48  ;;  %v12462_v20 = vld [vmem:[#allocation14 + $0xa5c] sm:$0xf0]  ;;  %v12450_v32 = vld [vmem:[#allocation14 + $0xa04] sm:$0xf] }
 0x457   : > { %v7843_v46 = vmul.f32 0.5, %v12681_v21  ;;  %v7604_v18 = vmul.f32 0.5, %v6869_v51  ;;  %7334 = vmatpush.bf16.msrb.mxu2 %v10868_v34  ;;  %7296 = vmatpush.bf16.msrb.mxu0 %v10864_v12  ;;  %v12683_v2 = vpop.eup %12682  ;;  %v11440_v4 = vor.u32 %v12462_v20, %v11439_v27  ;;  %v11441_v49 = vld [vmem:[#allocation14 + $0xa60] sm:$0xf0]  ;;  %v10575_v21 = vld [vmem:[#allocation14 + $0x340] sm:$0xf] }
 0x458   : > { %12684 = vtanh.f32 %v7675_v42  ;;  %7315 = vmatpush.bf16.msrb.mxu1 %v11632_v35  ;;  %7353 = vmatpush.bf16.msrb.mxu3 %v11636_v5  ;;  %v7866_v11 = vmul.f32 0.5, %v12683_v2  ;;  %v11444_v60 = vor.u32 %v12450_v32, %v11441_v49  ;;  %v12234_v22 = vld [vmem:[#allocation14 + $0x344] sm:$0xf]  ;;  %v12246_v42 = vld [vmem:[#allocation14 + $0x39c] sm:$0xf0] }
 0x459   : > { %v7939_v13 = vadd.f32 0.5, %v7843_v46  ;;  %v6887_v37 = vpop.f32.mrf.mxu2  ;;  %v6906_v7 = vpop.f32.mrf.mxu3  ;;  %12686 = vtanh.f32 %v7604_v18  ;;  %v10580_v10 = vor.u32 %v12234_v22, %v10577_v1  ;;  %v10576_v35 = vor.u32 %v12246_v42, %v10575_v21  ;;  %v12438_v18 = vld [vmem:[#allocation14 + $0x99c] sm:$0xf0]  ;;  %v12186_v31 = vld [vmem:[#allocation14 + $0x1c4] sm:$0xf] }
 0x45a   : > { %v6888_v54 = vadd.f32 %v6887_v37, %v14041_v56  ;;  %v6851_v41 = vpop.f32.mrf.mxu0  ;;  %v6870_v16 = vpop.f32.mrf.mxu1  ;;  %v7962_v0 = vadd.f32 0.5, %v7866_v11  ;;  %v11344_v25 = vor.u32 %v12438_v18, %v11343_v62  ;;  %v10385_v48 = vld [vmem:[#allocation14 + $0x220] sm:$0xf0]  ;;  %v11151_v49 = vld [vmem:[#allocation14 + $0x7c0] sm:$0xf] }
 0x45b   : > { %v8009_v19 = vpack.c.bf16 %v7939_v13, %v7938_v17  ;;  %v6852_v50 = vadd.f32 %v6851_v41, %v14031_v44  ;;  %7335 = vmatpush.bf16.msrb.mxu2 %v10772_v59  ;;  %7297 = vmatpush.bf16.msrb.mxu0 %v10768_v15  ;;  %v12426_v17 = vld [vmem:[#allocation14 + $0x944] sm:$0xf]  ;;  %v11247_v15 = vld [vmem:[#allocation14 + $0x880] sm:$0xf]  ;;  %v10388_v27 = vor.u32 %v12186_v31, %v10385_v48 }
 0x45c   : > { %v6907_v33 = vadd.f32 %v6906_v7, %v6888_v54  ;;  %7316 = vmatpush.bf16.msrb.mxu1 %v11536_v24  ;;  %7354 = vmatpush.bf16.msrb.mxu3 %v11540_v9  ;;  %v11345_v13 = vld [vmem:[#allocation14 + $0x9a0] sm:$0xf0]  ;;  %v10287_v42 = vld [vmem:[#allocation14 + $0x100] sm:$0xf] }
 0x45d   : > { %8057 = vst [vmem:[%s14001_s17 + $0xc8] sm:$0xff] %v8009_v19  ;;  %v6871_v52 = vadd.f32 %v6870_v16, %v6852_v50  ;;  %v11348_v7 = vor.u32 %v12426_v17, %v11345_v13  ;;  %v12210_v59 = vld [vmem:[#allocation14 + $0x284] sm:$0xf]  ;;  %v12222_v16 = vld [vmem:[#allocation14 + $0x2dc] sm:$0xf0] }
 0x45e   : > { %v12685_v57 = vpop.eup %12684  ;;  %v7605_v6 = vmul.f32 0.5, %v6907_v33  ;;  %v10484_v41 = vor.u32 %v12210_v59, %v10481_v43  ;;  %v10480_v19 = vor.u32 %v12222_v16, %v10479_v14  ;;  %v12414_v50 = vld [vmem:[#allocation14 + $0x8dc] sm:$0xf0]  ;;  %v12402_v24 = vld [vmem:[#allocation14 + $0x884] sm:$0xf] }
 0x45f   : > { %v7867_v26 = vmul.f32 0.5, %v12685_v57  ;;  %v7628_v63 = vmul.f32 0.5, %v6871_v52  ;;  %7336 = vmatpush.bf16.msrb.mxu2 %v10676_v45  ;;  %7298 = vmatpush.bf16.msrb.mxu0 %v10672_v39  ;;  %v12687_v12 = vpop.eup %12686  ;;  %v11248_v38 = vor.u32 %v12414_v50, %v11247_v15  ;;  %v11249_v33 = vld [vmem:[#allocation14 + $0x8e0] sm:$0xf0]  ;;  %v10383_v57 = vld [vmem:[#allocation14 + $0x1c0] sm:$0xf] }
 0x460   : > { %12688 = vtanh.f32 %v7605_v6  ;;  %7317 = vmatpush.bf16.msrb.mxu1 %v11440_v4  ;;  %7355 = vmatpush.bf16.msrb.mxu3 %v11444_v60  ;;  %v7796_v2 = vmul.f32 0.5, %v12687_v12  ;;  %v11252_v47 = vor.u32 %v12402_v24, %v11249_v33  ;;  %v12198_v6 = vld [vmem:[#allocation14 + $0x21c] sm:$0xf0]  ;;  %v10289_v21 = vld [vmem:[#allocation14 + $0x160] sm:$0xf0] }
 0x461   : > { %v7963_v51 = vadd.f32 0.5, %v7867_v26  ;;  %v6889_v34 = vpop.f32.mrf.mxu2  ;;  %v6908_v55 = vpop.f32.mrf.mxu3  ;;  %12690 = vtanh.f32 %v7628_v63  ;;  %v10384_v4 = vor.u32 %v12198_v6, %v10383_v57  ;;  %v12390_v63 = vld [vmem:[#allocation14 + $0x81c] sm:$0xf0]  ;;  %v12138_v14 = vld [vmem:[#allocation14 + $0x44] sm:$0xf] }
 0x462   : > { %v6890_v53 = vadd.f32 %v6889_v34, %v14041_v56  ;;  %v6854_v40 = vpop.f32.mrf.mxu0  ;;  %v6873_v46 = vpop.f32.mrf.mxu1  ;;  %v7892_v11 = vadd.f32 0.5, %v7796_v2  ;;  %v11152_v1 = vor.u32 %v12390_v63, %v11151_v49  ;;  %v12847_v17 = vld [vmem:[#allocation16] sm:$0xff]  ;;  %v10873_v57 = vld [vmem:[#allocation14 + $0x5e8] sm:$0xf0]  ;;  %v10871_v6 = vld [vmem:[#allocation14 + $0x588] sm:$0xf] }
 0x463   : > { %v8021_v5 = vpack.c.bf16 %v7963_v51, %v7962_v0  ;;  %v6855_v36 = vadd.f32 %v6854_v40, %v14031_v44  ;;  %7337 = vmatpush.bf16.msrb.mxu2 %v10580_v10  ;;  %7299 = vmatpush.bf16.msrb.mxu0 %v10576_v35  ;;  %v12378_v0 = vld [vmem:[#allocation14 + $0x7c4] sm:$0xf]  ;;  %v11055_v35 = vld [vmem:[#allocation14 + $0x700] sm:$0xf]  ;;  %v14056_v13 = vperm.slane %v12847_v17, 6 }
 0x464   : > { %v6909_v37 = vadd.f32 %v6908_v55, %v6890_v53  ;;  %7318 = vmatpush.bf16.msrb.mxu1 %v11344_v25  ;;  %7356 = vmatpush.bf16.msrb.mxu3 %v11348_v7  ;;  %v11153_v51 = vld [vmem:[#allocation14 + $0x820] sm:$0xf0] }
 0x465   : > { %8069 = vst [vmem:[%s14001_s17 + $0x128] sm:$0xff] %v8021_v5  ;;  %v6874_v54 = vadd.f32 %v6873_v46, %v6855_v36  ;;  %7157 = vmatmul.bf16.gmra.mxu0 %v13944_v30  ;;  %7176 = vmatmul.bf16.gmra.mxu1 %v13946_v29  ;;  %v11156_v55 = vor.u32 %v12378_v0, %v11153_v51  ;;  %v12162_v10 = vld [vmem:[#allocation14 + $0x104] sm:$0xf]  ;;  %v12174_v46 = vld [vmem:[#allocation14 + $0x15c] sm:$0xf0] }
 0x466   : > { %v12689_v23 = vpop.eup %12688  ;;  %v7629_v28 = vmul.f32 0.5, %v6909_v37  ;;  %7195 = vmatmul.bf16.gmra.mxu2 %v13944_v30  ;;  %7214 = vmatmul.bf16.gmra.mxu3 %v13946_v29  ;;  %v10292_v40 = vor.u32 %v12162_v10, %v10289_v21  ;;  %v10288_v18 = vor.u32 %v12174_v46, %v10287_v42  ;;  %v12366_v5 = vld [vmem:[#allocation14 + $0x75c] sm:$0xf0]  ;;  %v12354_v36 = vld [vmem:[#allocation14 + $0x704] sm:$0xf] }
 0x467   : > { %v7797_v8 = vmul.f32 0.5, %v12689_v23  ;;  %v7652_v9 = vmul.f32 0.5, %v6874_v54  ;;  %7338 = vmatpush.bf16.msrb.mxu2 %v10484_v41  ;;  %7300 = vmatpush.bf16.msrb.mxu0 %v10480_v19  ;;  %v12691_v39 = vpop.eup %12690  ;;  %v11056_v37 = vor.u32 %v12366_v5, %v11055_v35  ;;  %v11057_v7 = vld [vmem:[#allocation14 + $0x760] sm:$0xf0]  ;;  %v12150_v19 = vld [vmem:[#allocation14 + $0x9c] sm:$0xf0] }
 0x468   : > { %12692 = vtanh.f32 %v7629_v28  ;;  %7319 = vmatpush.bf16.msrb.mxu1 %v11248_v38  ;;  %7357 = vmatpush.bf16.msrb.mxu3 %v11252_v47  ;;  %v7820_v12 = vmul.f32 0.5, %v12691_v39  ;;  %v11060_v43 = vor.u32 %v12354_v36, %v11057_v7  ;;  %v10193_v2 = vld [vmem:[#allocation14 + $0xa0] sm:$0xf0]  ;;  %v10191_v28 = vld [vmem:[#allocation14 + $0x40] sm:$0xf] }
 0x469   : > { %v7893_v52 = vadd.f32 0.5, %v7797_v8  ;;  %v6892_v45 = vpop.f32.mrf.mxu2  ;;  %v6911_v61 = vpop.f32.mrf.mxu3  ;;  %12694 = vtanh.f32 %v7652_v9  ;;  %v10196_v23 = vor.u32 %v12138_v14, %v10193_v2  ;;  %v10192_v33 = vor.u32 %v12150_v19, %v10191_v28  ;;  %v10959_v9 = vld [vmem:[#allocation14 + $0x640] sm:$0xf]  ;;  %v12499_v0 = vld [vmem:[#allocation14 + $0xb8c] sm:$0xf] }
 0x46a   : > { %v6893_v20 = vadd.f32 %v6892_v45, %v14041_v56  ;;  %v6856_v32 = vpop.f32.mrf.mxu0  ;;  %v6875_v26 = vpop.f32.mrf.mxu1  ;;  %v7916_v54 = vadd.f32 0.5, %v7820_v12  ;;  %v12342_v47 = vld [vmem:[#allocation14 + $0x69c] sm:$0xf0]  ;;  %v10961_v45 = vld [vmem:[#allocation14 + $0x6a0] sm:$0xf0] }
 0x46b   : > { %v7986_v60 = vpack.c.bf16 %v7893_v52, %v7892_v11  ;;  %v6857_v22 = vadd.f32 %v6856_v32, %v14031_v44  ;;  %7339 = vmatpush.bf16.msrb.mxu2 %v10388_v27  ;;  %7301 = vmatpush.bf16.msrb.mxu0 %v10384_v4  ;;  %v10960_v11 = vor.u32 %v12342_v47, %v10959_v9  ;;  %v12330_v52 = vld [vmem:[#allocation14 + $0x644] sm:$0xf]  ;;  %v11639_v4 = vld [vmem:[#allocation14 + $0xb88] sm:$0xf]  ;;  %v12283_v42 = vld [vmem:[#allocation14 + $0x4cc] sm:$0xf] }
 0x46c   : > { %v6912_v34 = vadd.f32 %v6911_v61, %v6893_v20  ;;  %7320 = vmatpush.bf16.msrb.mxu1 %v11152_v1  ;;  %7358 = vmatpush.bf16.msrb.mxu3 %v11156_v55  ;;  %v10964_v27 = vor.u32 %v12330_v52, %v10961_v45  ;;  %v12511_v1 = vld [vmem:[#allocation14 + $0xbe4] sm:$0xf0]  ;;  %v11641_v55 = vld [vmem:[#allocation14 + $0xbe8] sm:$0xf0] }
 0x46d   : > { %8034 = vst [vmem:[%s14001_s17 + $0x10] sm:$0xff] %v7986_v60  ;;  %v6876_v53 = vadd.f32 %v6875_v26, %v6857_v22  ;;  %v12319_v26 = vld [vmem:[#allocation14 + $0x5e4] sm:$0xf0]  ;;  %v14065_v60 = vperm.slane %v12847_v17, 7  ;;  %v11644_v21 = vor.u32 %v12499_v0, %v11641_v55  ;;  %v10777_v12 = vld [vmem:[#allocation14 + $0x528] sm:$0xf0] }
 0x46e   : > { %v12693_v44 = vpop.eup %12692  ;;  %v7653_v62 = vmul.f32 0.5, %v6912_v34  ;;  %v10872_v22 = vor.u32 %v12319_v26, %v10871_v6  ;;  %v11640_v34 = vor.u32 %v12511_v1, %v11639_v4  ;;  %v11543_v7 = vld [vmem:[#allocation14 + $0xac8] sm:$0xf]  ;;  %v10681_v28 = vld [vmem:[#allocation14 + $0x468] sm:$0xf0] }
 0x46f   : > { %v7821_v25 = vmul.f32 0.5, %v12693_v44  ;;  %v7676_v59 = vmul.f32 0.5, %v6876_v53  ;;  %7340 = vmatpush.bf16.msrb.mxu2 %v10292_v40  ;;  %7302 = vmatpush.bf16.msrb.mxu0 %v10288_v18  ;;  %v12695_v50 = vpop.eup %12694  ;;  %v10780_v44 = vor.u32 %v12283_v42, %v10777_v12  ;;  %v12295_v18 = vld [vmem:[#allocation14 + $0x524] sm:$0xf0]  ;;  %v10585_v6 = vld [vmem:[#allocation14 + $0x3a8] sm:$0xf0] }
 0x470   : > { %12696 = vtanh.f32 %v7653_v62  ;;  %7321 = vmatpush.bf16.msrb.mxu1 %v11056_v37  ;;  %7359 = vmatpush.bf16.msrb.mxu3 %v11060_v43  ;;  %v7844_v39 = vmul.f32 0.5, %v12695_v50  ;;  %v10775_v62 = vld [vmem:[#allocation14 + $0x4c8] sm:$0xf] }
 0x471   : > { %v7917_v41 = vadd.f32 0.5, %v7821_v25  ;;  %v6894_v16 = vpop.f32.mrf.mxu2  ;;  %v6913_v15 = vpop.f32.mrf.mxu3  ;;  %12698 = vtanh.f32 %v7676_v59  ;;  %v10776_v37 = vor.u32 %v12295_v18, %v10775_v62  ;;  %v12487_v59 = vld [vmem:[#allocation14 + $0xb24] sm:$0xf0]  ;;  %v10489_v62 = vld [vmem:[#allocation14 + $0x2e8] sm:$0xf0] }
 0x472   : > { %v6895_v24 = vadd.f32 %v6894_v16, %v14041_v56  ;;  %v6925_v8 = vpop.f32.mrf.mxu0  ;;  %v6944_v38 = vpop.f32.mrf.mxu1  ;;  %v12307_v56 = vld [vmem:[#allocation14 + $0x58c] sm:$0xf]  ;;  %v7940_v53 = vadd.f32 0.5, %v7844_v39  ;;  %v11544_v2 = vor.u32 %v12487_v59, %v11543_v7  ;;  %v10679_v19 = vld [vmem:[#allocation14 + $0x408] sm:$0xf] }
 0x473   : > { %v7998_v31 = vpack.c.bf16 %v7917_v41, %v7916_v54  ;;  %v6926_v48 = vadd.f32 %v6925_v8, %v14056_v13  ;;  %7341 = vmatpush.bf16.msrb.mxu2 %v10196_v23  ;;  %7303 = vmatpush.bf16.msrb.mxu0 %v10192_v33  ;;  %v10876_v32 = vor.u32 %v12307_v56, %v10873_v57  ;;  %v12475_v54 = vld [vmem:[#allocation14 + $0xacc] sm:$0xf]  ;;  %v11447_v33 = vld [vmem:[#allocation14 + $0xa08] sm:$0xf] }
 0x474   : > { %v6914_v61 = vadd.f32 %v6913_v15, %v6895_v24  ;;  %7322 = vmatpush.bf16.msrb.mxu1 %v10960_v11  ;;  %7360 = vmatpush.bf16.msrb.mxu3 %v10964_v27  ;;  %v11545_v41 = vld [vmem:[#allocation14 + $0xb28] sm:$0xf0]  ;;  %v11351_v55 = vld [vmem:[#allocation14 + $0x948] sm:$0xf] }
 0x475   : > { %8046 = vst [vmem:[%s14001_s17 + $0x70] sm:$0xff] %v7998_v31  ;;  %v6945_v20 = vadd.f32 %v6944_v38, %v6926_v48  ;;  %7228 = vmatmul.bf16.vlgmr.msra.gmra.mxu0 %v13932_v58  ;;  %7247 = vmatmul.bf16.vlgmr.msra.gmra.mxu1 %v13934_v3  ;;  %v11548_v15 = vor.u32 %v12475_v54, %v11545_v41  ;;  %v12259_v23 = vld [vmem:[#allocation14 + $0x40c] sm:$0xf]  ;;  %v12271_v38 = vld [vmem:[#allocation14 + $0x464] sm:$0xf0] }
 0x476   : > { %v12697_v49 = vpop.eup %12696  ;;  %v7677_v63 = vmul.f32 0.5, %v6914_v61  ;;  %7266 = vmatmul.bf16.vlgmr.msra.gmra.mxu2 %v13932_v58  ;;  %7285 = vmatmul.bf16.vlgmr.msra.gmra.mxu3 %v13934_v3  ;;  %v10684_v8 = vor.u32 %v12259_v23, %v10681_v28  ;;  %v10680_v31 = vor.u32 %v12271_v38, %v10679_v19  ;;  %v12463_v48 = vld [vmem:[#allocation14 + $0xa64] sm:$0xf0]  ;;  %v12451_v11 = vld [vmem:[#allocation14 + $0xa0c] sm:$0xf] }
 0x477   : > { %v7845_v51 = vmul.f32 0.5, %v12697_v49  ;;  %v7606_v10 = vmul.f32 0.5, %v6945_v20  ;;  %7410 = vmatpush.bf16.msra.mxu2 %v10876_v32  ;;  %7372 = vmatpush.bf16.msra.mxu0 %v10872_v22  ;;  %v12699_v5 = vpop.eup %12698  ;;  %v11448_v45 = vor.u32 %v12463_v48, %v11447_v33  ;;  %v11449_v61 = vld [vmem:[#allocation14 + $0xa68] sm:$0xf0]  ;;  %v10583_v49 = vld [vmem:[#allocation14 + $0x348] sm:$0xf] }
 0x478   : > { %12700 = vtanh.f32 %v7677_v63  ;;  %7391 = vmatpush.bf16.msra.mxu1 %v11640_v34  ;;  %7429 = vmatpush.bf16.msra.mxu3 %v11644_v21  ;;  %v7868_v50 = vmul.f32 0.5, %v12699_v5  ;;  %v11452_v56 = vor.u32 %v12451_v11, %v11449_v61  ;;  %v12235_v57 = vld [vmem:[#allocation14 + $0x34c] sm:$0xf]  ;;  %v12247_v63 = vld [vmem:[#allocation14 + $0x3a4] sm:$0xf0] }
 0x479   : > { %v7941_v40 = vadd.f32 0.5, %v7845_v51  ;;  %v6963_v46 = vpop.f32.mrf.mxu2  ;;  %v6982_v35 = vpop.f32.mrf.mxu3  ;;  %12702 = vtanh.f32 %v7606_v10  ;;  %v10588_v4 = vor.u32 %v12235_v57, %v10585_v6  ;;  %v10584_v34 = vor.u32 %v12247_v63, %v10583_v49  ;;  %v12439_v10 = vld [vmem:[#allocation14 + $0x9a4] sm:$0xf0]  ;;  %v12187_v28 = vld [vmem:[#allocation14 + $0x1cc] sm:$0xf] }
 0x47a   : > { %v6964_v36 = vadd.f32 %v6963_v46, %v14065_v60  ;;  %v6927_v25 = vpop.f32.mrf.mxu0  ;;  %v6946_v17 = vpop.f32.mrf.mxu1  ;;  %v7964_v39 = vadd.f32 0.5, %v7868_v50  ;;  %v11352_v12 = vor.u32 %v12439_v10, %v11351_v55  ;;  %v10487_v18 = vld [vmem:[#allocation14 + $0x288] sm:$0xf]  ;;  %v10393_v19 = vld [vmem:[#allocation14 + $0x228] sm:$0xf0] }
 0x47b   : > { %v8010_v43 = vpack.c.bf16 %v7941_v40, %v7940_v53  ;;  %v6928_v14 = vadd.f32 %v6927_v25, %v14056_v13  ;;  %7411 = vmatpush.bf16.msra.mxu2 %v10780_v44  ;;  %7373 = vmatpush.bf16.msra.mxu0 %v10776_v37  ;;  %v12427_v53 = vld [vmem:[#allocation14 + $0x94c] sm:$0xf]  ;;  %v11255_v37 = vld [vmem:[#allocation14 + $0x888] sm:$0xf]  ;;  %v10396_v33 = vor.u32 %v12187_v28, %v10393_v19 }
 0x47c   : > { %v6983_v16 = vadd.f32 %v6982_v35, %v6964_v36  ;;  %7392 = vmatpush.bf16.msra.mxu1 %v11544_v2  ;;  %7430 = vmatpush.bf16.msra.mxu3 %v11548_v15  ;;  %v11353_v40 = vld [vmem:[#allocation14 + $0x9a8] sm:$0xf0]  ;;  %v11159_v61 = vld [vmem:[#allocation14 + $0x7c8] sm:$0xf] }
 0x47d   : > { %8058 = vst [vmem:[%s14001_s17 + $0xd0] sm:$0xff] %v8010_v43  ;;  %v6947_v24 = vadd.f32 %v6946_v17, %v6928_v14  ;;  %v11356_v35 = vor.u32 %v12427_v53, %v11353_v40  ;;  %v12211_v44 = vld [vmem:[#allocation14 + $0x28c] sm:$0xf]  ;;  %v12223_v17 = vld [vmem:[#allocation14 + $0x2e4] sm:$0xf0] }
 0x47e   : > { %v12701_v9 = vpop.eup %12700  ;;  %v7607_v47 = vmul.f32 0.5, %v6983_v16  ;;  %v10492_v25 = vor.u32 %v12211_v44, %v10489_v62  ;;  %v10488_v43 = vor.u32 %v12223_v17, %v10487_v18  ;;  %v12415_v14 = vld [vmem:[#allocation14 + $0x8e4] sm:$0xf0]  ;;  %v12403_v2 = vld [vmem:[#allocation14 + $0x88c] sm:$0xf] }
 0x47f   : > { %v7869_v52 = vmul.f32 0.5, %v12701_v9  ;;  %v7630_v27 = vmul.f32 0.5, %v6947_v24  ;;  %7412 = vmatpush.bf16.msra.mxu2 %v10684_v8  ;;  %7374 = vmatpush.bf16.msra.mxu0 %v10680_v31  ;;  %v12703_v22 = vpop.eup %12702  ;;  %v11256_v41 = vor.u32 %v12415_v14, %v11255_v37  ;;  %v11257_v16 = vld [vmem:[#allocation14 + $0x8e8] sm:$0xf0]  ;;  %v10391_v9 = vld [vmem:[#allocation14 + $0x1c8] sm:$0xf] }
 0x480   : > { %12704 = vtanh.f32 %v7607_v47  ;;  %7393 = vmatpush.bf16.msra.mxu1 %v11448_v45  ;;  %7431 = vmatpush.bf16.msra.mxu3 %v11452_v56  ;;  %v7798_v5 = vmul.f32 0.5, %v12703_v22  ;;  %v11260_v23 = vor.u32 %v12403_v2, %v11257_v16  ;;  %v12199_v47 = vld [vmem:[#allocation14 + $0x224] sm:$0xf0]  ;;  %v12163_v49 = vld [vmem:[#allocation14 + $0x10c] sm:$0xf] }
 0x481   : > { %v7965_v20 = vadd.f32 0.5, %v7869_v52  ;;  %v6965_v32 = vpop.f32.mrf.mxu2  ;;  %v6984_v26 = vpop.f32.mrf.mxu3  ;;  %12706 = vtanh.f32 %v7630_v27  ;;  %v10392_v45 = vor.u32 %v12199_v47, %v10391_v9  ;;  %v12391_v27 = vld [vmem:[#allocation14 + $0x824] sm:$0xf0]  ;;  %v10297_v63 = vld [vmem:[#allocation14 + $0x168] sm:$0xf0] }
 0x482   : > { %v6966_v1 = vadd.f32 %v6965_v32, %v14065_v60  ;;  %v6930_v0 = vpop.f32.mrf.mxu0  ;;  %v6949_v51 = vpop.f32.mrf.mxu1  ;;  %v7894_v50 = vadd.f32 0.5, %v7798_v5  ;;  %v14079_v6 = vld [vmem:[#allocation16 + $0x8] sm:$0xff]  ;;  %v10881_v9 = vld [vmem:[#allocation14 + $0x5f0] sm:$0xf0]  ;;  %v10879_v47 = vld [vmem:[#allocation14 + $0x590] sm:$0xf] }
 0x483   : > { %v8022_v21 = vpack.c.bf16 %v7965_v20, %v7964_v39  ;;  %v6931_v42 = vadd.f32 %v6930_v0, %v14056_v13  ;;  %7413 = vmatpush.bf16.msra.mxu2 %v10588_v4  ;;  %7375 = vmatpush.bf16.msra.mxu0 %v10584_v34  ;;  %v11160_v39 = vor.u32 %v12391_v27, %v11159_v61  ;;  %v12379_v20 = vld [vmem:[#allocation14 + $0x7cc] sm:$0xf]  ;;  %v10295_v22 = vld [vmem:[#allocation14 + $0x108] sm:$0xf]  ;;  %v14083_v40 = vperm.slane %v14079_v6, 0 }
 0x484   : > { %v6985_v46 = vadd.f32 %v6984_v26, %v6966_v1  ;;  %7394 = vmatpush.bf16.msra.mxu1 %v11352_v12  ;;  %7432 = vmatpush.bf16.msra.mxu3 %v11356_v35  ;;  %v11161_v32 = vld [vmem:[#allocation14 + $0x828] sm:$0xf0]  ;;  %v11063_v34 = vld [vmem:[#allocation14 + $0x708] sm:$0xf] }
 0x485   : > { %8070 = vst [vmem:[%s14001_s17 + $0x130] sm:$0xff] %v8022_v21  ;;  %v6950_v36 = vadd.f32 %v6949_v51, %v6931_v42  ;;  %7233 = vmatmul.bf16.gmra.mxu0 %v13944_v30  ;;  %7252 = vmatmul.bf16.gmra.mxu1 %v13946_v29  ;;  %v11164_v4 = vor.u32 %v12379_v20, %v11161_v32  ;;  %v12367_v42 = vld [vmem:[#allocation14 + $0x764] sm:$0xf0]  ;;  %v12355_v12 = vld [vmem:[#allocation14 + $0x70c] sm:$0xf] }
 0x486   : > { %v12705_v7 = vpop.eup %12704  ;;  %v7631_v59 = vmul.f32 0.5, %v6985_v46  ;;  %7271 = vmatmul.bf16.gmra.mxu2 %v13944_v30  ;;  %7290 = vmatmul.bf16.gmra.mxu3 %v13946_v29  ;;  %v10300_v51 = vor.u32 %v12163_v49, %v10297_v63  ;;  %v11064_v46 = vor.u32 %v12367_v42, %v11063_v34  ;;  %v11065_v35 = vld [vmem:[#allocation14 + $0x768] sm:$0xf0]  ;;  %v12500_v20 = vld [vmem:[#allocation14 + $0xb94] sm:$0xf] }
 0x487   : > { %v7799_v54 = vmul.f32 0.5, %v12705_v7  ;;  %v7654_v15 = vmul.f32 0.5, %v6950_v36  ;;  %7414 = vmatpush.bf16.msra.mxu2 %v10492_v25  ;;  %7376 = vmatpush.bf16.msra.mxu0 %v10488_v43  ;;  %v12707_v31 = vpop.eup %12706  ;;  %v11068_v62 = vor.u32 %v12355_v12, %v11065_v35  ;;  %v12139_v18 = vld [vmem:[#allocation14 + $0x4c] sm:$0xf]  ;;  %v12151_v43 = vld [vmem:[#allocation14 + $0xa4] sm:$0xf0] }
 0x488   : > { %12708 = vtanh.f32 %v7631_v59  ;;  %7395 = vmatpush.bf16.msra.mxu1 %v11256_v41  ;;  %7433 = vmatpush.bf16.msra.mxu3 %v11260_v23  ;;  %v7822_v1 = vmul.f32 0.5, %v12707_v31  ;;  %v10201_v5 = vld [vmem:[#allocation14 + $0xa8] sm:$0xf0]  ;;  %v10199_v59 = vld [vmem:[#allocation14 + $0x48] sm:$0xf] }
 0x489   : > { %v7895_v24 = vadd.f32 0.5, %v7799_v54  ;;  %v6968_v8 = vpop.f32.mrf.mxu2  ;;  %v6987_v38 = vpop.f32.mrf.mxu3  ;;  %12710 = vtanh.f32 %v7654_v15  ;;  %v10204_v7 = vor.u32 %v12139_v18, %v10201_v5  ;;  %v10200_v16 = vor.u32 %v12151_v43, %v10199_v59  ;;  %v10967_v15 = vld [vmem:[#allocation14 + $0x648] sm:$0xf]  ;;  %v12260_v59 = vld [vmem:[#allocation14 + $0x414] sm:$0xf] }
 0x48a   : > { %v6969_v48 = vadd.f32 %v6968_v8, %v14065_v60  ;;  %v6932_v11 = vpop.f32.mrf.mxu0  ;;  %v6951_v52 = vpop.f32.mrf.mxu1  ;;  %v7918_v36 = vadd.f32 0.5, %v7822_v1  ;;  %v12343_v23 = vld [vmem:[#allocation14 + $0x6a4] sm:$0xf0]  ;;  %v10969_v8 = vld [vmem:[#allocation14 + $0x6a8] sm:$0xf0] }
 0x48b   : > { %v7987_v56 = vpack.c.bf16 %v7895_v24, %v7894_v50  ;;  %v6933_v57 = vadd.f32 %v6932_v11, %v14056_v13  ;;  %7415 = vmatpush.bf16.msra.mxu2 %v10396_v33  ;;  %7377 = vmatpush.bf16.msra.mxu0 %v10392_v45  ;;  %v12175_v13 = vld [vmem:[#allocation14 + $0x164] sm:$0xf0]  ;;  %v10968_v50 = vor.u32 %v12343_v23, %v10967_v15  ;;  %v12331_v24 = vld [vmem:[#allocation14 + $0x64c] sm:$0xf]  ;;  %v11647_v45 = vld [vmem:[#allocation14 + $0xb90] sm:$0xf] }
 0x48c   : > { %v6988_v26 = vadd.f32 %v6987_v38, %v6969_v48  ;;  %v10296_v21 = vor.u32 %v12175_v13, %v10295_v22  ;;  %7396 = vmatpush.bf16.msra.mxu1 %v11160_v39  ;;  %7434 = vmatpush.bf16.msra.mxu3 %v11164_v4  ;;  %v10972_v33 = vor.u32 %v12331_v24, %v10969_v8  ;;  %v12512_v39 = vld [vmem:[#allocation14 + $0xbec] sm:$0xf0]  ;;  %v11649_v4 = vld [vmem:[#allocation14 + $0xbf0] sm:$0xf0] }
 0x48d   : > { %8035 = vst [vmem:[%s14001_s17 + $0x18] sm:$0xff] %v7987_v56  ;;  %v6952_v0 = vadd.f32 %v6951_v52, %v6933_v57  ;;  %v12320_v52 = vld [vmem:[#allocation14 + $0x5ec] sm:$0xf0]  ;;  %v14093_v56 = vperm.slane %v14079_v6, 1  ;;  %v11652_v63 = vor.u32 %v12500_v20, %v11649_v4  ;;  %v12284_v22 = vld [vmem:[#allocation14 + $0x4d4] sm:$0xf] }
 0x48e   : > { %v12709_v55 = vpop.eup %12708  ;;  %v7655_v10 = vmul.f32 0.5, %v6988_v26  ;;  %v10880_v57 = vor.u32 %v12320_v52, %v10879_v47  ;;  %v11648_v26 = vor.u32 %v12512_v39, %v11647_v45  ;;  %v10785_v1 = vld [vmem:[#allocation14 + $0x530] sm:$0xf0]  ;;  %v11455_v15 = vld [vmem:[#allocation14 + $0xa10] sm:$0xf] }
 0x48f   : > { %v7823_v53 = vmul.f32 0.5, %v12709_v55  ;;  %v7678_v44 = vmul.f32 0.5, %v6952_v0  ;;  %7416 = vmatpush.bf16.msra.mxu2 %v10300_v51  ;;  %7378 = vmatpush.bf16.msra.mxu0 %v10296_v21  ;;  %v12711_v14 = vpop.eup %12710  ;;  %v10788_v55 = vor.u32 %v12284_v22, %v10785_v1  ;;  %v12296_v21 = vld [vmem:[#allocation14 + $0x52c] sm:$0xf0]  ;;  %v10689_v43 = vld [vmem:[#allocation14 + $0x470] sm:$0xf0] }
 0x490   : > { %12712 = vtanh.f32 %v7655_v10  ;;  %7397 = vmatpush.bf16.msra.mxu1 %v11064_v46  ;;  %7435 = vmatpush.bf16.msra.mxu3 %v11068_v62  ;;  %v7846_v31 = vmul.f32 0.5, %v12711_v14  ;;  %v10783_v10 = vld [vmem:[#allocation14 + $0x4d0] sm:$0xf]  ;;  %v12452_v24 = vld [vmem:[#allocation14 + $0xa14] sm:$0xf] }
 0x491   : > { %v7919_v25 = vadd.f32 0.5, %v7823_v53  ;;  %v6970_v17 = vpop.f32.mrf.mxu2  ;;  %v6989_v37 = vpop.f32.mrf.mxu3  ;;  %12714 = vtanh.f32 %v7678_v44  ;;  %v10784_v35 = vor.u32 %v12296_v21, %v10783_v10  ;;  %v11551_v44 = vld [vmem:[#allocation14 + $0xad0] sm:$0xf]  ;;  %v12236_v47 = vld [vmem:[#allocation14 + $0x354] sm:$0xf] }
 0x492   : > { %v6971_v2 = vadd.f32 %v6970_v17, %v14065_v60  ;;  %v7001_v54 = vpop.f32.mrf.mxu0  ;;  %v7020_v41 = vpop.f32.mrf.mxu1  ;;  %v12308_v60 = vld [vmem:[#allocation14 + $0x594] sm:$0xf]  ;;  %v7942_v0 = vadd.f32 0.5, %v7846_v31  ;;  %v12488_v62 = vld [vmem:[#allocation14 + $0xb2c] sm:$0xf0] }
 0x493   : > { %v7999_v28 = vpack.c.bf16 %v7919_v25, %v7918_v36  ;;  %v7002_v19 = vadd.f32 %v7001_v54, %v14083_v40  ;;  %7417 = vmatpush.bf16.msra.mxu2 %v10204_v7  ;;  %7379 = vmatpush.bf16.msra.mxu0 %v10200_v16  ;;  %v10884_v11 = vor.u32 %v12308_v60, %v10881_v9  ;;  %v12476_v25 = vld [vmem:[#allocation14 + $0xad4] sm:$0xf]  ;;  %v10687_v14 = vld [vmem:[#allocation14 + $0x410] sm:$0xf] }
 0x494   : > { %v6990_v38 = vadd.f32 %v6989_v37, %v6971_v2  ;;  %7398 = vmatpush.bf16.msra.mxu1 %v10968_v50  ;;  %7436 = vmatpush.bf16.msra.mxu3 %v10972_v33  ;;  %v11552_v36 = vor.u32 %v12488_v62, %v11551_v44  ;;  %v11553_v17 = vld [vmem:[#allocation14 + $0xb30] sm:$0xf0]  ;;  %v12272_v16 = vld [vmem:[#allocation14 + $0x46c] sm:$0xf0] }
 0x495   : > { %8047 = vst [vmem:[%s14001_s17 + $0x78] sm:$0xff] %v7999_v28  ;;  %v7021_v48 = vadd.f32 %v7020_v41, %v7002_v19  ;;  %7304 = vmatmul.bf16.vlgmr.msrb.gmra.mxu0 %v13932_v58  ;;  %7323 = vmatmul.bf16.vlgmr.msrb.gmra.mxu1 %v13934_v3  ;;  %v11556_v7 = vor.u32 %v12476_v25, %v11553_v17  ;;  %v12464_v50 = vld [vmem:[#allocation14 + $0xa6c] sm:$0xf0]  ;;  %v11457_v33 = vld [vmem:[#allocation14 + $0xa70] sm:$0xf0] }
 0x496   : > { %v12713_v61 = vpop.eup %12712  ;;  %v7679_v27 = vmul.f32 0.5, %v6990_v38  ;;  %7342 = vmatmul.bf16.vlgmr.msrb.gmra.mxu2 %v13932_v58  ;;  %7361 = vmatmul.bf16.vlgmr.msrb.gmra.mxu3 %v13934_v3  ;;  %v10692_v41 = vor.u32 %v12260_v59, %v10689_v43  ;;  %v10688_v19 = vor.u32 %v12272_v16, %v10687_v14  ;;  %v11456_v38 = vor.u32 %v12464_v50, %v11455_v15  ;;  %v10593_v31 = vld [vmem:[#allocation14 + $0x3b0] sm:$0xf0]  ;;  %v11263_v44 = vld [vmem:[#allocation14 + $0x890] sm:$0xf] }
 0x497   : > { %v7847_v32 = vmul.f32 0.5, %v12713_v61  ;;  %v7608_v49 = vmul.f32 0.5, %v7021_v48  ;;  %7486 = vmatpush.bf16.msrb.mxu2 %v10884_v11  ;;  %7448 = vmatpush.bf16.msrb.mxu0 %v10880_v57  ;;  %v12715_v42 = vpop.eup %12714  ;;  %v11460_v9 = vor.u32 %v12452_v24, %v11457_v33  ;;  %v10596_v61 = vor.u32 %v12236_v47, %v10593_v31  ;;  %v12248_v57 = vld [vmem:[#allocation14 + $0x3ac] sm:$0xf0]  ;;  %v12212_v10 = vld [vmem:[#allocation14 + $0x294] sm:$0xf] }
 0x498   : > { %12716 = vtanh.f32 %v7679_v27  ;;  %7467 = vmatpush.bf16.msrb.mxu1 %v11648_v26  ;;  %7505 = vmatpush.bf16.msrb.mxu3 %v11652_v63  ;;  %v7870_v2 = vmul.f32 0.5, %v12715_v42  ;;  %v10591_v27 = vld [vmem:[#allocation14 + $0x350] sm:$0xf]  ;;  %v10497_v21 = vld [vmem:[#allocation14 + $0x2f0] sm:$0xf0] }
 0x499   : > { %v7943_v51 = vadd.f32 0.5, %v7847_v32  ;;  %v7039_v13 = vpop.f32.mrf.mxu2  ;;  %v7058_v34 = vpop.f32.mrf.mxu3  ;;  %12718 = vtanh.f32 %v7608_v49  ;;  %v10592_v4 = vor.u32 %v12248_v57, %v10591_v27  ;;  %v11359_v49 = vld [vmem:[#allocation14 + $0x950] sm:$0xf]  ;;  %v12404_v25 = vld [vmem:[#allocation14 + $0x894] sm:$0xf] }
 0x49a   : > { %v7040_v12 = vadd.f32 %v7039_v13, %v14093_v56  ;;  %v7003_v53 = vpop.f32.mrf.mxu0  ;;  %v7022_v46 = vpop.f32.mrf.mxu1  ;;  %v7966_v48 = vadd.f32 0.5, %v7870_v2  ;;  %v12440_v63 = vld [vmem:[#allocation14 + $0x9ac] sm:$0xf0]  ;;  %v11361_v13 = vld [vmem:[#allocation14 + $0x9b0] sm:$0xf0] }
 0x49b   : > { %v8011_v18 = vpack.c.bf16 %v7943_v51, %v7942_v0  ;;  %v7004_v5 = vadd.f32 %v7003_v53, %v14083_v40  ;;  %7487 = vmatpush.bf16.msrb.mxu2 %v10788_v55  ;;  %7449 = vmatpush.bf16.msrb.mxu0 %v10784_v35  ;;  %v11360_v0 = vor.u32 %v12440_v63, %v11359_v49  ;;  %v12428_v51 = vld [vmem:[#allocation14 + $0x954] sm:$0xf]  ;;  %v10495_v42 = vld [vmem:[#allocation14 + $0x290] sm:$0xf] }
 0x49c   : > { %v7059_v37 = vadd.f32 %v7058_v34, %v7040_v12  ;;  %7468 = vmatpush.bf16.msrb.mxu1 %v11552_v36  ;;  %7506 = vmatpush.bf16.msrb.mxu3 %v11556_v7  ;;  %v11364_v55 = vor.u32 %v12428_v51, %v11361_v13  ;;  %v12224_v35 = vld [vmem:[#allocation14 + $0x2ec] sm:$0xf0]  ;;  %v11265_v7 = vld [vmem:[#allocation14 + $0x8f0] sm:$0xf0]  ;;  %v14109_v13 = vperm.slane %v14079_v6, 2 }
 0x49d   : > { %8059 = vst [vmem:[%s14001_s17 + $0xd8] sm:$0xff] %v8011_v18  ;;  %v7023_v54 = vadd.f32 %v7022_v46, %v7004_v5  ;;  %v10500_v46 = vor.u32 %v12212_v10, %v10497_v21  ;;  %v10496_v5 = vor.u32 %v12224_v35, %v10495_v42  ;;  %v12416_v36 = vld [vmem:[#allocation14 + $0x8ec] sm:$0xf0]  ;;  %v11268_v43 = vor.u32 %v12404_v25, %v11265_v7  ;;  %v12188_v14 = vld [vmem:[#allocation14 + $0x1d4] sm:$0xf] }
 0x49e   : > { %v12717_v23 = vpop.eup %12716  ;;  %v7609_v28 = vmul.f32 0.5, %v7059_v37  ;;  %v11264_v37 = vor.u32 %v12416_v36, %v11263_v44  ;;  %v10401_v2 = vld [vmem:[#allocation14 + $0x230] sm:$0xf0]  ;;  %v11071_v49 = vld [vmem:[#allocation14 + $0x710] sm:$0xf] }
 0x49f   : > { %v7871_v8 = vmul.f32 0.5, %v12717_v23  ;;  %v7632_v60 = vmul.f32 0.5, %v7023_v54  ;;  %7488 = vmatpush.bf16.msrb.mxu2 %v10692_v41  ;;  %7450 = vmatpush.bf16.msrb.mxu0 %v10688_v19  ;;  %v12719_v39 = vpop.eup %12718  ;;  %v10404_v23 = vor.u32 %v12188_v14, %v10401_v2  ;;  %v12200_v19 = vld [vmem:[#allocation14 + $0x22c] sm:$0xf0]  ;;  %v12164_v27 = vld [vmem:[#allocation14 + $0x114] sm:$0xf] }
 0x4a0   : > { %12720 = vtanh.f32 %v7609_v28  ;;  %7469 = vmatpush.bf16.msrb.mxu1 %v11456_v38  ;;  %7507 = vmatpush.bf16.msrb.mxu3 %v11460_v9  ;;  %v7800_v12 = vmul.f32 0.5, %v12719_v39  ;;  %v10399_v28 = vld [vmem:[#allocation14 + $0x1d0] sm:$0xf]  ;;  %v10305_v57 = vld [vmem:[#allocation14 + $0x170] sm:$0xf0] }
 0x4a1   : > { %v7967_v11 = vadd.f32 0.5, %v7871_v8  ;;  %v7041_v52 = vpop.f32.mrf.mxu2  ;;  %v7060_v45 = vpop.f32.mrf.mxu3  ;;  %12722 = vtanh.f32 %v7632_v60  ;;  %v10400_v33 = vor.u32 %v12200_v19, %v10399_v28  ;;  %v11167_v60 = vld [vmem:[#allocation14 + $0x7d0] sm:$0xf]  ;;  %v12140_v42 = vld [vmem:[#allocation14 + $0x54] sm:$0xf] }
 0x4a2   : > { %v7042_v20 = vadd.f32 %v7041_v52, %v14093_v56  ;;  %v7006_v32 = vpop.f32.mrf.mxu0  ;;  %v7025_v26 = vpop.f32.mrf.mxu1  ;;  %v7896_v54 = vadd.f32 0.5, %v7800_v12  ;;  %v12392_v9 = vld [vmem:[#allocation14 + $0x82c] sm:$0xf0]  ;;  %v11169_v52 = vld [vmem:[#allocation14 + $0x830] sm:$0xf0] }
 0x4a3   : > { %v8023_v22 = vpack.c.bf16 %v7967_v11, %v7966_v48  ;;  %v7007_v1 = vadd.f32 %v7006_v32, %v14083_v40  ;;  %7489 = vmatpush.bf16.msrb.mxu2 %v10596_v61  ;;  %7451 = vmatpush.bf16.msrb.mxu0 %v10592_v4  ;;  %v11168_v48 = vor.u32 %v12392_v9, %v11167_v60  ;;  %v12380_v11 = vld [vmem:[#allocation14 + $0x7d4] sm:$0xf]  ;;  %v10303_v39 = vld [vmem:[#allocation14 + $0x110] sm:$0xf]  ;;  %v10889_v28 = vld [vmem:[#allocation14 + $0x5f8] sm:$0xf0] }
 0x4a4   : > { %v7061_v34 = vadd.f32 %v7060_v45, %v7042_v20  ;;  %7470 = vmatpush.bf16.msrb.mxu1 %v11360_v0  ;;  %7508 = vmatpush.bf16.msrb.mxu3 %v11364_v55  ;;  %v11172_v61 = vor.u32 %v12380_v11, %v11169_v52  ;;  %v12176_v4 = vld [vmem:[#allocation14 + $0x16c] sm:$0xf0]  ;;  %v12356_v0 = vld [vmem:[#allocation14 + $0x714] sm:$0xf]  ;;  %v10887_v19 = vld [vmem:[#allocation14 + $0x598] sm:$0xf] }
 0x4a5   : > { %8071 = vst [vmem:[%s14001_s17 + $0x138] sm:$0xff] %v8023_v22  ;;  %v7026_v53 = vadd.f32 %v7025_v26, %v7007_v1  ;;  %7309 = vmatmul.bf16.gmra.mxu0 %v13944_v30  ;;  %7328 = vmatmul.bf16.gmra.mxu1 %v13946_v29  ;;  %v10308_v26 = vor.u32 %v12164_v27, %v10305_v57  ;;  %v12368_v1 = vld [vmem:[#allocation14 + $0x76c] sm:$0xf0]  ;;  %v11073_v55 = vld [vmem:[#allocation14 + $0x770] sm:$0xf0] }
 0x4a6   : > { %v12721_v62 = vpop.eup %12720  ;;  %v7633_v18 = vmul.f32 0.5, %v7061_v34  ;;  %7347 = vmatmul.bf16.gmra.mxu2 %v13944_v30  ;;  %7366 = vmatmul.bf16.gmra.mxu3 %v13946_v29  ;;  %v10304_v22 = vor.u32 %v12176_v4, %v10303_v39  ;;  %v11072_v34 = vor.u32 %v12368_v1, %v11071_v49  ;;  %v11076_v21 = vor.u32 %v12356_v0, %v11073_v55  ;;  %v10209_v12 = vld [vmem:[#allocation14 + $0xb0] sm:$0xf0]  ;;  %v12501_v11 = vld [vmem:[#allocation14 + $0xb9c] sm:$0xf] }
 0x4a7   : > { %v7801_v17 = vmul.f32 0.5, %v12721_v62  ;;  %v7656_v59 = vmul.f32 0.5, %v7026_v53  ;;  %7490 = vmatpush.bf16.msrb.mxu2 %v10500_v46  ;;  %7452 = vmatpush.bf16.msrb.mxu0 %v10496_v5  ;;  %v12723_v50 = vpop.eup %12722  ;;  %v10212_v62 = vor.u32 %v12140_v42, %v10209_v12  ;;  %v12152_v5 = vld [vmem:[#allocation14 + $0xac] sm:$0xf0]  ;;  %v12285_v39 = vld [vmem:[#allocation14 + $0x4dc] sm:$0xf] }
 0x4a8   : > { %12724 = vtanh.f32 %v7633_v18  ;;  %7471 = vmatpush.bf16.msrb.mxu1 %v11264_v37  ;;  %7509 = vmatpush.bf16.msrb.mxu3 %v11268_v43  ;;  %v7824_v20 = vmul.f32 0.5, %v12723_v50  ;;  %v10207_v18 = vld [vmem:[#allocation14 + $0x50] sm:$0xf] }
 0x4a9   : > { %v7897_v41 = vadd.f32 0.5, %v7801_v17  ;;  %v7044_v16 = vpop.f32.mrf.mxu2  ;;  %v7063_v15 = vpop.f32.mrf.mxu3  ;;  %12726 = vtanh.f32 %v7656_v59  ;;  %v10208_v7 = vor.u32 %v12152_v5, %v10207_v18  ;;  %v10975_v59 = vld [vmem:[#allocation14 + $0x650] sm:$0xf]  ;;  %v12261_v18 = vld [vmem:[#allocation14 + $0x41c] sm:$0xf] }
 0x4aa   : > { %v7045_v24 = vadd.f32 %v7044_v16, %v14093_v56  ;;  %v7008_v8 = vpop.f32.mrf.mxu0  ;;  %v7027_v38 = vpop.f32.mrf.mxu1  ;;  %v7920_v53 = vadd.f32 0.5, %v7824_v20  ;;  %v12344_v43 = vld [vmem:[#allocation14 + $0x6ac] sm:$0xf0]  ;;  %v10977_v16 = vld [vmem:[#allocation14 + $0x6b0] sm:$0xf0] }
 0x4ab   : > { %v7988_v47 = vpack.c.bf16 %v7897_v41, %v7896_v54  ;;  %v7009_v31 = vadd.f32 %v7008_v8, %v14083_v40  ;;  %7491 = vmatpush.bf16.msrb.mxu2 %v10404_v23  ;;  %7453 = vmatpush.bf16.msrb.mxu0 %v10400_v33  ;;  %v10976_v54 = vor.u32 %v12344_v43, %v10975_v59  ;;  %v12332_v41 = vld [vmem:[#allocation14 + $0x654] sm:$0xf]  ;;  %v11655_v33 = vld [vmem:[#allocation14 + $0xb98] sm:$0xf]  ;;  %v10793_v20 = vld [vmem:[#allocation14 + $0x538] sm:$0xf0] }
 0x4ac   : > { %v7064_v45 = vadd.f32 %v7063_v15, %v7045_v24  ;;  %7472 = vmatpush.bf16.msrb.mxu1 %v11168_v48  ;;  %7510 = vmatpush.bf16.msrb.mxu3 %v11172_v61  ;;  %v10980_v23 = vor.u32 %v12332_v41, %v10977_v16  ;;  %v12513_v48 = vld [vmem:[#allocation14 + $0xbf4] sm:$0xf0]  ;;  %v11657_v61 = vld [vmem:[#allocation14 + $0xbf8] sm:$0xf0] }
 0x4ad   : > { %8036 = vst [vmem:[%s14001_s17 + $0x20] sm:$0xff] %v7988_v47  ;;  %v7028_v32 = vadd.f32 %v7027_v38, %v7009_v31  ;;  %v12321_v38 = vld [vmem:[#allocation14 + $0x5f4] sm:$0xf0]  ;;  %v14119_v47 = vperm.slane %v14079_v6, 3  ;;  %v11660_v57 = vor.u32 %v12501_v11, %v11657_v61  ;;  %v10697_v5 = vld [vmem:[#allocation14 + $0x478] sm:$0xf0] }
 0x4ae   : > { %v12725_v40 = vpop.eup %12724  ;;  %v7657_v63 = vmul.f32 0.5, %v7064_v45  ;;  %v10888_v31 = vor.u32 %v12321_v38, %v10887_v19  ;;  %v11656_v45 = vor.u32 %v12513_v48, %v11655_v33  ;;  %v11463_v59 = vld [vmem:[#allocation14 + $0xa18] sm:$0xf]  ;;  %v12453_v41 = vld [vmem:[#allocation14 + $0xa1c] sm:$0xf] }
 0x4af   : > { %v7825_v51 = vmul.f32 0.5, %v12725_v40  ;;  %v7680_v10 = vmul.f32 0.5, %v7028_v32  ;;  %7492 = vmatpush.bf16.msrb.mxu2 %v10308_v26  ;;  %7454 = vmatpush.bf16.msrb.mxu0 %v10304_v22  ;;  %v12727_v36 = vpop.eup %12726  ;;  %v10796_v40 = vor.u32 %v12285_v39, %v10793_v20  ;;  %v12297_v22 = vld [vmem:[#allocation14 + $0x534] sm:$0xf0]  ;;  %v12237_v19 = vld [vmem:[#allocation14 + $0x35c] sm:$0xf] }
 0x4b0   : > { %12728 = vtanh.f32 %v7657_v63  ;;  %7473 = vmatpush.bf16.msrb.mxu1 %v11072_v34  ;;  %7511 = vmatpush.bf16.msrb.mxu3 %v11076_v21  ;;  %v7848_v50 = vmul.f32 0.5, %v12727_v36  ;;  %v10791_v63 = vld [vmem:[#allocation14 + $0x4d8] sm:$0xf] }
 0x4b1   : > { %v7921_v46 = vadd.f32 0.5, %v7825_v51  ;;  %v7046_v35 = vpop.f32.mrf.mxu2  ;;  %v7065_v44 = vpop.f32.mrf.mxu3  ;;  %12730 = vtanh.f32 %v7680_v10  ;;  %v10792_v55 = vor.u32 %v12297_v22, %v10791_v63  ;;  %v11559_v10 = vld [vmem:[#allocation14 + $0xad8] sm:$0xf]  ;;  %v12213_v63 = vld [vmem:[#allocation14 + $0x29c] sm:$0xf] }
 0x4b2   : > { %v7047_v25 = vadd.f32 %v7046_v35, %v14093_v56  ;;  %v7077_v17 = vpop.f32.mrf.mxu0  ;;  %v7096_v37 = vpop.f32.mrf.mxu1  ;;  %v12309_v56 = vld [vmem:[#allocation14 + $0x59c] sm:$0xf]  ;;  %v7944_v32 = vadd.f32 0.5, %v7848_v50  ;;  %v12489_v21 = vld [vmem:[#allocation14 + $0xb34] sm:$0xf0] }
 0x4b3   : > { %v8000_v14 = vpack.c.bf16 %v7921_v46, %v7920_v53  ;;  %v7078_v2 = vadd.f32 %v7077_v17, %v14109_v13  ;;  %7493 = vmatpush.bf16.msrb.mxu2 %v10212_v62  ;;  %7455 = vmatpush.bf16.msrb.mxu0 %v10208_v7  ;;  %v10892_v8 = vor.u32 %v12309_v56, %v10889_v28  ;;  %v12477_v46 = vld [vmem:[#allocation14 + $0xadc] sm:$0xf]  ;;  %v10695_v36 = vld [vmem:[#allocation14 + $0x418] sm:$0xf] }
 0x4b4   : > { %v7066_v15 = vadd.f32 %v7065_v44, %v7047_v25  ;;  %7474 = vmatpush.bf16.msrb.mxu1 %v10976_v54  ;;  %7512 = vmatpush.bf16.msrb.mxu3 %v10980_v23  ;;  %v11560_v53 = vor.u32 %v12489_v21, %v11559_v10  ;;  %v11561_v35 = vld [vmem:[#allocation14 + $0xb38] sm:$0xf0]  ;;  %v12273_v7 = vld [vmem:[#allocation14 + $0x474] sm:$0xf0] }
 0x4b5   : > { %8048 = vst [vmem:[%s14001_s17 + $0x80] sm:$0xff] %v8000_v14  ;;  %v7097_v24 = vadd.f32 %v7096_v37, %v7078_v2  ;;  %7380 = vmatmul.bf16.vlgmr.msra.gmra.mxu0 %v13932_v58  ;;  %7399 = vmatmul.bf16.vlgmr.msra.gmra.mxu1 %v13934_v3  ;;  %v11564_v62 = vor.u32 %v12477_v46, %v11561_v35  ;;  %v12465_v54 = vld [vmem:[#allocation14 + $0xa74] sm:$0xf0]  ;;  %v11465_v23 = vld [vmem:[#allocation14 + $0xa78] sm:$0xf0] }
 0x4b6   : > { %v12729_v60 = vpop.eup %12728  ;;  %v7681_v9 = vmul.f32 0.5, %v7066_v15  ;;  %7418 = vmatmul.bf16.vlgmr.msra.gmra.mxu2 %v13932_v58  ;;  %7437 = vmatmul.bf16.vlgmr.msra.gmra.mxu3 %v13934_v3  ;;  %v10700_v37 = vor.u32 %v12261_v18, %v10697_v5  ;;  %v10696_v2 = vor.u32 %v12273_v7, %v10695_v36  ;;  %v11464_v15 = vor.u32 %v12465_v54, %v11463_v59  ;;  %v10601_v50 = vld [vmem:[#allocation14 + $0x3b8] sm:$0xf0]  ;;  %v11271_v10 = vld [vmem:[#allocation14 + $0x898] sm:$0xf] }
 0x4b7   : > { %v7849_v52 = vmul.f32 0.5, %v12729_v60  ;;  %v7610_v27 = vmul.f32 0.5, %v7097_v24  ;;  %7562 = vmatpush.bf16.msra.mxu2 %v10892_v8  ;;  %7524 = vmatpush.bf16.msra.mxu0 %v10888_v31  ;;  %v12731_v1 = vpop.eup %12730  ;;  %v11468_v28 = vor.u32 %v12453_v41, %v11465_v23  ;;  %v10604_v60 = vor.u32 %v12237_v19, %v10601_v50  ;;  %v12249_v31 = vld [vmem:[#allocation14 + $0x3b4] sm:$0xf0]  ;;  %v10505_v22 = vld [vmem:[#allocation14 + $0x2f8] sm:$0xf0] }
 0x4b8   : > { %12732 = vtanh.f32 %v7681_v9  ;;  %7543 = vmatpush.bf16.msra.mxu1 %v11656_v45  ;;  %7581 = vmatpush.bf16.msra.mxu3 %v11660_v57  ;;  %v7872_v25 = vmul.f32 0.5, %v12731_v1  ;;  %v10599_v9 = vld [vmem:[#allocation14 + $0x358] sm:$0xf]  ;;  %v12405_v46 = vld [vmem:[#allocation14 + $0x89c] sm:$0xf] }
 0x4b9   : > { %v7945_v26 = vadd.f32 0.5, %v7849_v52  ;;  %v7115_v4 = vpop.f32.mrf.mxu2  ;;  %v7134_v49 = vpop.f32.mrf.mxu3  ;;  %12734 = vtanh.f32 %v7610_v27  ;;  %v10600_v61 = vor.u32 %v12249_v31, %v10599_v9  ;;  %v11367_v27 = vld [vmem:[#allocation14 + $0x958] sm:$0xf]  ;;  %v12189_v36 = vld [vmem:[#allocation14 + $0x1dc] sm:$0xf] }
 0x4ba   : > { %v7116_v0 = vadd.f32 %v7115_v4, %v14119_v47  ;;  %v7079_v51 = vpop.f32.mrf.mxu0  ;;  %v7098_v34 = vpop.f32.mrf.mxu1  ;;  %v7968_v24 = vadd.f32 0.5, %v7872_v25  ;;  %v12441_v57 = vld [vmem:[#allocation14 + $0x9b4] sm:$0xf0]  ;;  %v11369_v4 = vld [vmem:[#allocation14 + $0x9b8] sm:$0xf0] }
 0x4bb   : > { %v8012_v42 = vpack.c.bf16 %v7945_v26, %v7944_v32  ;;  %v7080_v12 = vadd.f32 %v7079_v51, %v14109_v13  ;;  %7563 = vmatpush.bf16.msra.mxu2 %v10796_v40  ;;  %7525 = vmatpush.bf16.msra.mxu0 %v10792_v55  ;;  %v11368_v32 = vor.u32 %v12441_v57, %v11367_v27  ;;  %v12429_v26 = vld [vmem:[#allocation14 + $0x95c] sm:$0xf]  ;;  %v10503_v1 = vld [vmem:[#allocation14 + $0x298] sm:$0xf] }
 0x4bc   : > { %v7135_v44 = vadd.f32 %v7134_v49, %v7116_v0  ;;  %7544 = vmatpush.bf16.msra.mxu1 %v11560_v53  ;;  %7582 = vmatpush.bf16.msra.mxu3 %v11564_v62  ;;  %v11372_v40 = vor.u32 %v12429_v26, %v11369_v4  ;;  %v12225_v55 = vld [vmem:[#allocation14 + $0x2f4] sm:$0xf0]  ;;  %v11273_v62 = vld [vmem:[#allocation14 + $0x8f8] sm:$0xf0]  ;;  %v14135_v4 = vperm.slane %v14079_v6, 4 }
 0x4bd   : > { %8060 = vst [vmem:[%s14001_s17 + $0xe0] sm:$0xff] %v8012_v42  ;;  %v7099_v17 = vadd.f32 %v7098_v34, %v7080_v12  ;;  %v10508_v34 = vor.u32 %v12213_v63, %v10505_v22  ;;  %v10504_v12 = vor.u32 %v12225_v55, %v10503_v1  ;;  %v12417_v53 = vld [vmem:[#allocation14 + $0x8f4] sm:$0xf0]  ;;  %v11276_v5 = vor.u32 %v12405_v46, %v11273_v62  ;;  %v10409_v25 = vld [vmem:[#allocation14 + $0x238] sm:$0xf0] }
 0x4be   : > { %v12733_v43 = vpop.eup %12732  ;;  %v7611_v14 = vmul.f32 0.5, %v7135_v44  ;;  %v11272_v44 = vor.u32 %v12417_v53, %v11271_v10  ;;  %v12165_v9 = vld [vmem:[#allocation14 + $0x11c] sm:$0xf]  ;;  %v11079_v27 = vld [vmem:[#allocation14 + $0x718] sm:$0xf] }
 0x4bf   : > { %v7873_v16 = vmul.f32 0.5, %v12733_v43  ;;  %v7634_v56 = vmul.f32 0.5, %v7099_v17  ;;  %7564 = vmatpush.bf16.msra.mxu2 %v10700_v37  ;;  %7526 = vmatpush.bf16.msra.mxu0 %v10696_v2  ;;  %v12735_v48 = vpop.eup %12734  ;;  %v10412_v43 = vor.u32 %v12189_v36, %v10409_v25  ;;  %v12201_v2 = vld [vmem:[#allocation14 + $0x234] sm:$0xf0]  ;;  %v10313_v31 = vld [vmem:[#allocation14 + $0x178] sm:$0xf0] }
 0x4c0   : > { %12736 = vtanh.f32 %v7611_v14  ;;  %7545 = vmatpush.bf16.msra.mxu1 %v11464_v15  ;;  %7583 = vmatpush.bf16.msra.mxu3 %v11468_v28  ;;  %v7802_v0 = vmul.f32 0.5, %v12735_v48  ;;  %v10407_v14 = vld [vmem:[#allocation14 + $0x1d8] sm:$0xf]  ;;  %v12141_v1 = vld [vmem:[#allocation14 + $0x5c] sm:$0xf] }
 0x4c1   : > { %v7969_v8 = vadd.f32 0.5, %v7873_v16  ;;  %v7117_v38 = vpop.f32.mrf.mxu2  ;;  %v7136_v33 = vpop.f32.mrf.mxu3  ;;  %12738 = vtanh.f32 %v7634_v56  ;;  %v10408_v23 = vor.u32 %v12201_v2, %v10407_v14  ;;  %v11175_v56 = vld [vmem:[#allocation14 + $0x7d8] sm:$0xf] }
 0x4c2   : > { %v7118_v11 = vadd.f32 %v7117_v38, %v14119_v47  ;;  %v7082_v52 = vpop.f32.mrf.mxu0  ;;  %v7101_v45 = vpop.f32.mrf.mxu1  ;;  %v7898_v17 = vadd.f32 0.5, %v7802_v0  ;;  %v12393_v28 = vld [vmem:[#allocation14 + $0x834] sm:$0xf0]  ;;  %v11177_v38 = vld [vmem:[#allocation14 + $0x838] sm:$0xf0] }
 0x4c3   : > { %v8024_v39 = vpack.c.bf16 %v7969_v8, %v7968_v24  ;;  %v7083_v20 = vadd.f32 %v7082_v52, %v14109_v13  ;;  %7565 = vmatpush.bf16.msra.mxu2 %v10604_v60  ;;  %7527 = vmatpush.bf16.msra.mxu0 %v10600_v61  ;;  %v11176_v24 = vor.u32 %v12393_v28, %v11175_v56  ;;  %v12381_v8 = vld [vmem:[#allocation14 + $0x7dc] sm:$0xf]  ;;  %v10311_v48 = vld [vmem:[#allocation14 + $0x118] sm:$0xf] }
 0x4c4   : > { %v7137_v49 = vadd.f32 %v7136_v33, %v7118_v11  ;;  %7546 = vmatpush.bf16.msra.mxu1 %v11368_v32  ;;  %7584 = vmatpush.bf16.msra.mxu3 %v11372_v40  ;;  %v11180_v60 = vor.u32 %v12381_v8, %v11177_v38  ;;  %v12177_v61 = vld [vmem:[#allocation14 + $0x174] sm:$0xf0]  ;;  %v12357_v32 = vld [vmem:[#allocation14 + $0x71c] sm:$0xf] }
 0x4c5   : > { %8072 = vst [vmem:[%s14001_s17 + $0x140] sm:$0xff] %v8024_v39  ;;  %v7102_v51 = vadd.f32 %v7101_v45, %v7083_v20  ;;  %7385 = vmatmul.bf16.gmra.mxu0 %v13944_v30  ;;  %7404 = vmatmul.bf16.gmra.mxu1 %v13946_v29  ;;  %v10316_v45 = vor.u32 %v12165_v9, %v10313_v31  ;;  %v12369_v20 = vld [vmem:[#allocation14 + $0x774] sm:$0xf0]  ;;  %v11081_v40 = vld [vmem:[#allocation14 + $0x778] sm:$0xf0] }
 0x4c6   : > { %v12737_v21 = vpop.eup %12736  ;;  %v7635_v42 = vmul.f32 0.5, %v7137_v49  ;;  %7423 = vmatmul.bf16.gmra.mxu2 %v13944_v30  ;;  %7442 = vmatmul.bf16.gmra.mxu3 %v13946_v29  ;;  %v10312_v39 = vor.u32 %v12177_v61, %v10311_v48  ;;  %v11080_v49 = vor.u32 %v12369_v20, %v11079_v27  ;;  %v11084_v22 = vor.u32 %v12357_v32, %v11081_v40  ;;  %v10217_v0 = vld [vmem:[#allocation14 + $0xb8] sm:$0xf0] }
 0x4c7   : > { %v7803_v35 = vmul.f32 0.5, %v12737_v21  ;;  %v7658_v18 = vmul.f32 0.5, %v7102_v51  ;;  %7566 = vmatpush.bf16.msra.mxu2 %v10508_v34  ;;  %7528 = vmatpush.bf16.msra.mxu0 %v10504_v12  ;;  %v12739_v54 = vpop.eup %12738  ;;  %v10220_v21 = vor.u32 %v12141_v1, %v10217_v0  ;;  %v12153_v12 = vld [vmem:[#allocation14 + $0xb4] sm:$0xf0] }
 0x4c8   : > { %12740 = vtanh.f32 %v7635_v42  ;;  %7547 = vmatpush.bf16.msra.mxu1 %v11272_v44  ;;  %7585 = vmatpush.bf16.msra.mxu3 %v11276_v5  ;;  %v7826_v11 = vmul.f32 0.5, %v12739_v54  ;;  %v10215_v42 = vld [vmem:[#allocation14 + $0x58] sm:$0xf] }
 0x4c9   : > { %v7899_v37 = vadd.f32 0.5, %v7803_v35  ;;  %v7120_v7 = vpop.f32.mrf.mxu2  ;;  %v7139_v59 = vpop.f32.mrf.mxu3  ;;  %12742 = vtanh.f32 %v7658_v18  ;;  %v10216_v62 = vor.u32 %v12153_v12, %v10215_v42  ;;  %v10983_v18 = vld [vmem:[#allocation14 + $0x658] sm:$0xf] }
 0x4ca   : > { %v7121_v41 = vadd.f32 %v7120_v7, %v14119_v47  ;;  %v7084_v16 = vpop.f32.mrf.mxu0  ;;  %v7103_v15 = vpop.f32.mrf.mxu1  ;;  %v7922_v51 = vadd.f32 0.5, %v7826_v11  ;;  %v12345_v5 = vld [vmem:[#allocation14 + $0x6b4] sm:$0xf0]  ;;  %v10985_v7 = vld [vmem:[#allocation14 + $0x6b8] sm:$0xf0] }
 0x4cb   : > { %v7989_v19 = vpack.c.bf16 %v7899_v37, %v7898_v17  ;;  %v7085_v50 = vadd.f32 %v7084_v16, %v14109_v13  ;;  %7567 = vmatpush.bf16.msra.mxu2 %v10412_v43  ;;  %7529 = vmatpush.bf16.msra.mxu0 %v10408_v23  ;;  %v10984_v17 = vor.u32 %v12345_v5, %v10983_v18  ;;  %v12333_v37 = vld [vmem:[#allocation14 + $0x65c] sm:$0xf] }
 0x4cc   : > { %v7140_v33 = vadd.f32 %v7139_v59, %v7121_v41  ;;  %7548 = vmatpush.bf16.msra.mxu1 %v11176_v24  ;;  %7586 = vmatpush.bf16.msra.mxu3 %v11180_v60  ;;  %v10988_v43 = vor.u32 %v12333_v37, %v10985_v7  ;;  %v14145_v41 = vperm.slane %v14079_v6, 5 }
 0x4cd   : > { %8037 = vst [vmem:[%s14001_s17 + $0x28] sm:$0xff] %v7989_v19  ;;  %v7104_v52 = vadd.f32 %v7103_v15, %v7085_v50 }
 0x4ce   : > { %v12741_v13 = vpop.eup %12740  ;;  %v7659_v57 = vmul.f32 0.5, %v7140_v33 }
 0x4cf   : > { %v7827_v26 = vmul.f32 0.5, %v12741_v13  ;;  %v7682_v63 = vmul.f32 0.5, %v7104_v52  ;;  %7568 = vmatpush.bf16.msra.mxu2 %v10316_v45  ;;  %7530 = vmatpush.bf16.msra.mxu0 %v10312_v39  ;;  %v12743_v53 = vpop.eup %12742 }
 0x4d0   : > { %12744 = vtanh.f32 %v7659_v57  ;;  %7549 = vmatpush.bf16.msra.mxu1 %v11080_v49  ;;  %7587 = vmatpush.bf16.msra.mxu3 %v11084_v22 }
 0x4d1   : > { %v7923_v34 = vadd.f32 0.5, %v7827_v26  ;;  %v7122_v55 = vpop.f32.mrf.mxu2  ;;  %v7141_v10 = vpop.f32.mrf.mxu3  ;;  %12746 = vtanh.f32 %v7682_v63 }
 0x4d2   : > { %v7123_v46 = vadd.f32 %v7122_v55, %v14119_v47  ;;  %v7153_v35 = vpop.f32.mrf.mxu0  ;;  %v7172_v44 = vpop.f32.mrf.mxu1  ;;  %v7850_v47 = vmul.f32 0.5, %v12743_v53 }
 0x4d3   : > { %v8001_v36 = vpack.c.bf16 %v7923_v34, %v7922_v51  ;;  %v7154_v25 = vadd.f32 %v7153_v35, %v14135_v4  ;;  %7569 = vmatpush.bf16.msra.mxu2 %v10220_v21  ;;  %7531 = vmatpush.bf16.msra.mxu0 %v10216_v62 }
 0x4d4   : > { %v7142_v59 = vadd.f32 %v7141_v10, %v7123_v46  ;;  %7550 = vmatpush.bf16.msra.mxu1 %v10984_v17  ;;  %7588 = vmatpush.bf16.msra.mxu3 %v10988_v43  ;;  %v7946_v23 = vadd.f32 0.5, %v7850_v47 }
 0x4d5   : > { %8049 = vst [vmem:[%s14001_s17 + $0x88] sm:$0xff] %v8001_v36  ;;  %v7173_v14 = vadd.f32 %v7172_v44, %v7154_v25  ;;  %7456 = vmatmul.bf16.vlgmr.msrb.gmra.mxu0 %v13932_v58  ;;  %7475 = vmatmul.bf16.vlgmr.msrb.gmra.mxu1 %v13934_v3 }
 0x4d6   : > { %v12745_v2 = vpop.eup %12744  ;;  %v7683_v54 = vmul.f32 0.5, %v7142_v59  ;;  %7494 = vmatmul.bf16.vlgmr.msrb.gmra.mxu2 %v13932_v58  ;;  %7513 = vmatmul.bf16.vlgmr.msrb.gmra.mxu3 %v13934_v3  ;;  %v12848_v59 = vld [vmem:[#allocation16 + $0x8] sm:$0xff] }
 0x4d7   : > { %v7851_v16 = vmul.f32 0.5, %v12745_v2  ;;  %v7612_v15 = vmul.f32 0.5, %v7173_v14  ;;  %v12747_v50 = vpop.eup %12746  ;;  %v14160_v43 = vperm.slane %v12848_v59, 6 }
 0x4d8   : > { %12748 = vtanh.f32 %v7683_v54  ;;  %v7874_v9 = vmul.f32 0.5, %v12747_v50 }
 0x4d9   : > { %v7947_v56 = vadd.f32 0.5, %v7851_v16  ;;  %v7191_v28 = vpop.f32.mrf.mxu2  ;;  %v7210_v19 = vpop.f32.mrf.mxu3  ;;  %12750 = vtanh.f32 %v7612_v15 }
 0x4da   : > { %v7192_v24 = vadd.f32 %v7191_v28, %v14145_v41  ;;  %v7155_v8 = vpop.f32.mrf.mxu0  ;;  %v7174_v38 = vpop.f32.mrf.mxu1  ;;  %v7970_v61 = vadd.f32 0.5, %v7874_v9 }
 0x4db   : > { %v8013_v33 = vpack.c.bf16 %v7947_v56, %v7946_v23  ;;  %v7156_v60 = vadd.f32 %v7155_v8, %v14135_v4 }
 0x4dc   : > { %v7211_v6 = vadd.f32 %v7210_v19, %v7192_v24 }
 0x4dd   : > { %8061 = vst [vmem:[%s14001_s17 + $0xe8] sm:$0xff] %v8013_v33  ;;  %v7175_v31 = vadd.f32 %v7174_v38, %v7156_v60 }
 0x4de   : > { %v12749_v48 = vpop.eup %12748  ;;  %v7613_v11 = vmul.f32 0.5, %v7211_v6 }
 0x4df   : > { %v7875_v52 = vmul.f32 0.5, %v12749_v48  ;;  %v7636_v45 = vmul.f32 0.5, %v7175_v31  ;;  %v12751_v39 = vpop.eup %12750 }
 0x4e0   : > { %12752 = vtanh.f32 %v7613_v11  ;;  %v7804_v22 = vmul.f32 0.5, %v12751_v39 }
 0x4e1   : > { %v7971_v27 = vadd.f32 0.5, %v7875_v52  ;;  %v7193_v13 = vpop.f32.mrf.mxu2  ;;  %v7212_v57 = vpop.f32.mrf.mxu3  ;;  %12754 = vtanh.f32 %v7636_v45 }
 0x4e2   : > { %v7194_v20 = vadd.f32 %v7193_v13, %v14145_v41  ;;  %v7158_v32 = vpop.f32.mrf.mxu0  ;;  %v7177_v26 = vpop.f32.mrf.mxu1  ;;  %v7900_v10 = vadd.f32 0.5, %v7804_v22 }
 0x4e3   : > { %v8025_v49 = vpack.c.bf16 %v7971_v27, %v7970_v61  ;;  %v7159_v40 = vadd.f32 %v7158_v32, %v14135_v4 }
 0x4e4   : > { %v7213_v63 = vadd.f32 %v7212_v57, %v7194_v20 }
 0x4e5   : > { %8073 = vst [vmem:[%s14001_s17 + $0x148] sm:$0xff] %v8025_v49  ;;  %v7178_v1 = vadd.f32 %v7177_v26, %v7159_v40  ;;  %7461 = vmatmul.bf16.gmra.mxu0 %v13944_v30  ;;  %7480 = vmatmul.bf16.gmra.mxu1 %v13946_v29 }
 0x4e6   : > { %v12753_v0 = vpop.eup %12752  ;;  %v7637_v51 = vmul.f32 0.5, %v7213_v63  ;;  %7499 = vmatmul.bf16.gmra.mxu2 %v13944_v30  ;;  %7518 = vmatmul.bf16.gmra.mxu3 %v13946_v29 }
 0x4e7   : > { %v7805_v34 = vmul.f32 0.5, %v12753_v0  ;;  %v7660_v55 = vmul.f32 0.5, %v7178_v1  ;;  %v12755_v53 = vpop.eup %12754 }
 0x4e8   : > { %12756 = vtanh.f32 %v7637_v51  ;;  %v7828_v36 = vmul.f32 0.5, %v12755_v53 }
 0x4e9   : > { %v7901_v21 = vadd.f32 0.5, %v7805_v34  ;;  %v7196_v42 = vpop.f32.mrf.mxu2  ;;  %v7215_v12 = vpop.f32.mrf.mxu3  ;;  %12758 = vtanh.f32 %v7660_v55 }
 0x4ea   : > { %v7197_v46 = vadd.f32 %v7196_v42, %v14145_v41  ;;  %v7160_v35 = vpop.f32.mrf.mxu0  ;;  %v7179_v44 = vpop.f32.mrf.mxu1  ;;  %v7924_v14 = vadd.f32 0.5, %v7828_v36 }
 0x4eb   : > { %v7990_v62 = vpack.c.bf16 %v7901_v21, %v7900_v10  ;;  %v7161_v18 = vadd.f32 %v7160_v35, %v14135_v4 }
 0x4ec   : > { %v7216_v5 = vadd.f32 %v7215_v12, %v7197_v46 }
 0x4ed   : > { %8038 = vst [vmem:[%s14001_s17 + $0x30] sm:$0xff] %v7990_v62  ;;  %v7180_v25 = vadd.f32 %v7179_v44, %v7161_v18 }
 0x4ee   : > { %v12757_v17 = vpop.eup %12756  ;;  %v7661_v37 = vmul.f32 0.5, %v7216_v5 }
 0x4ef   : > { %v7829_v7 = vmul.f32 0.5, %v12757_v17  ;;  %v7684_v47 = vmul.f32 0.5, %v7180_v25  ;;  %v12759_v15 = vpop.eup %12758 }
 0x4f0   : > { %12760 = vtanh.f32 %v7661_v37  ;;  %v7852_v24 = vmul.f32 0.5, %v12759_v15 }
 0x4f1   : > { %v7925_v2 = vadd.f32 0.5, %v7829_v7  ;;  %v7198_v54 = vpop.f32.mrf.mxu2  ;;  %v7217_v16 = vpop.f32.mrf.mxu3  ;;  %12762 = vtanh.f32 %v7684_v47 }
 0x4f2   : > { %v7199_v4 = vadd.f32 %v7198_v54, %v14145_v41  ;;  %v7229_v23 = vpop.f32.mrf.mxu0  ;;  %v7248_v56 = vpop.f32.mrf.mxu1  ;;  %v14169_v41 = vperm.slane %v12848_v59, 7  ;;  %v7948_v9 = vadd.f32 0.5, %v7852_v24 }
 0x4f3   : > { %v8002_v28 = vpack.c.bf16 %v7925_v2, %v7924_v14  ;;  %v7230_v19 = vadd.f32 %v7229_v23, %v14160_v43  ;;  %v14183_v2 = vld [vmem:[#allocation16 + $0x10] sm:$0xff] }
 0x4f4   : > { %v7218_v50 = vadd.f32 %v7217_v16, %v7199_v4  ;;  %v14187_v23 = vperm.slane %v14183_v2, 0 }
 0x4f5   : > { %8050 = vst [vmem:[%s14001_s17 + $0x90] sm:$0xff] %v8002_v28  ;;  %v7249_v8 = vadd.f32 %v7248_v56, %v7230_v19  ;;  %7532 = vmatmul.bf16.vlgmr.msra.gmra.mxu0 %v13932_v58  ;;  %7551 = vmatmul.bf16.vlgmr.msra.gmra.mxu1 %v13934_v3 }
 0x4f6   : > { %v12761_v38 = vpop.eup %12760  ;;  %v7685_v33 = vmul.f32 0.5, %v7218_v50  ;;  %7570 = vmatmul.bf16.vlgmr.msra.gmra.mxu2 %v13932_v58  ;;  %7589 = vmatmul.bf16.vlgmr.msra.gmra.mxu3 %v13934_v3 }
 0x4f7   : > { %v7853_v60 = vmul.f32 0.5, %v12761_v38  ;;  %v7614_v6 = vmul.f32 0.5, %v7249_v8  ;;  %v12763_v52 = vpop.eup %12762 }
 0x4f8   : > { %12764 = vtanh.f32 %v7685_v33  ;;  %v7876_v57 = vmul.f32 0.5, %v12763_v52 }
 0x4f9   : > { %v7949_v31 = vadd.f32 0.5, %v7853_v60  ;;  %v7267_v48 = vpop.f32.mrf.mxu2  ;;  %v7286_v11 = vpop.f32.mrf.mxu3  ;;  %12766 = vtanh.f32 %v7614_v6 }
 0x4fa   : > { %v7268_v45 = vadd.f32 %v7267_v48, %v14169_v41  ;;  %v7231_v61 = vpop.f32.mrf.mxu0  ;;  %v7250_v27 = vpop.f32.mrf.mxu1  ;;  %v7972_v40 = vadd.f32 0.5, %v7876_v57 }
 0x4fb   : > { %v8014_v13 = vpack.c.bf16 %v7949_v31, %v7948_v9  ;;  %v7232_v58 = vadd.f32 %v7231_v61, %v14160_v43 }
 0x4fc   : > { %v7287_v3 = vadd.f32 %v7286_v11, %v7268_v45  ;;  %v14193_v45 = vperm.slane %v14183_v2, 1 }
 0x4fd   : > { %8062 = vst [vmem:[%s14001_s17 + $0xf0] sm:$0xff] %v8014_v13  ;;  %v7251_v39 = vadd.f32 %v7250_v27, %v7232_v58 }
 0x4fe   : > { %v12765_v20 = vpop.eup %12764  ;;  %v7615_v32 = vmul.f32 0.5, %v7287_v3 }
 0x4ff   : > { %v7877_v26 = vmul.f32 0.5, %v12765_v20  ;;  %v7638_v49 = vmul.f32 0.5, %v7251_v39  ;;  %v12767_v0 = vpop.eup %12766 }
 0x500   : > { %12768 = vtanh.f32 %v7615_v32  ;;  %v7806_v12 = vmul.f32 0.5, %v12767_v0 }
 0x501   : > { %v7973_v63 = vadd.f32 0.5, %v7877_v26  ;;  %v7269_v22 = vpop.f32.mrf.mxu2  ;;  %v7288_v1 = vpop.f32.mrf.mxu3  ;;  %12770 = vtanh.f32 %v7638_v49 }
 0x502   : > { %v7270_v51 = vadd.f32 %v7269_v22, %v14169_v41  ;;  %v7234_v34 = vpop.f32.mrf.mxu0  ;;  %v7253_v55 = vpop.f32.mrf.mxu1  ;;  %v7902_v18 = vadd.f32 0.5, %v7806_v12 }
 0x503   : > { %v8026_v10 = vpack.c.bf16 %v7973_v63, %v7972_v40  ;;  %v7235_v21 = vadd.f32 %v7234_v34, %v14160_v43 }
 0x504   : > { %v7289_v42 = vadd.f32 %v7288_v1, %v7270_v51 }
 0x505   : > { %8074 = vst [vmem:[%s14001_s17 + $0x150] sm:$0xff] %v8026_v10  ;;  %v7254_v53 = vadd.f32 %v7253_v55, %v7235_v21  ;;  %7537 = vmatmul.bf16.gmra.mxu0 %v13944_v30  ;;  %7556 = vmatmul.bf16.gmra.mxu1 %v13946_v29 }
 0x506   : > { %v12769_v46 = vpop.eup %12768  ;;  %v7639_v35 = vmul.f32 0.5, %v7289_v42  ;;  %7575 = vmatmul.bf16.gmra.mxu2 %v13944_v30  ;;  %7594 = vmatmul.bf16.gmra.mxu3 %v13946_v29 }
 0x507   : > { %v7807_v44 = vmul.f32 0.5, %v12769_v46  ;;  %v7662_v62 = vmul.f32 0.5, %v7254_v53  ;;  %v12771_v17 = vpop.eup %12770 }
 0x508   : > { %12772 = vtanh.f32 %v7639_v35  ;;  %v7830_v29 = vmul.f32 0.5, %v12771_v17 }
 0x509   : > { %v7903_v5 = vadd.f32 0.5, %v7807_v44  ;;  %v7272_v36 = vpop.f32.mrf.mxu2  ;;  %v7291_v25 = vpop.f32.mrf.mxu3  ;;  %12774 = vtanh.f32 %v7662_v62 }
 0x50a   : > { %v7273_v37 = vadd.f32 %v7272_v36, %v14169_v41  ;;  %v7236_v7 = vpop.f32.mrf.mxu0  ;;  %v7255_v59 = vpop.f32.mrf.mxu1  ;;  %v7926_v28 = vadd.f32 0.5, %v7830_v29 }
 0x50b   : > { %v7991_v47 = vpack.c.bf16 %v7903_v5, %v7902_v18  ;;  %v7237_v14 = vadd.f32 %v7236_v7, %v14160_v43 }
 0x50c   : > { %v7292_v30 = vadd.f32 %v7291_v25, %v7273_v37 }
 0x50d   : > { %8039 = vst [vmem:[%s14001_s17 + $0x38] sm:$0xff] %v7991_v47  ;;  %v7256_v54 = vadd.f32 %v7255_v59, %v7237_v14 }
 0x50e   : > { %v12773_v16 = vpop.eup %12772  ;;  %v7663_v15 = vmul.f32 0.5, %v7292_v30 }
 0x50f   : > { %v7831_v4 = vmul.f32 0.5, %v12773_v16  ;;  %v7686_v56 = vmul.f32 0.5, %v7256_v54  ;;  %v12775_v24 = vpop.eup %12774 }
 0x510   : > { %12776 = vtanh.f32 %v7663_v15  ;;  %v7854_v31 = vmul.f32 0.5, %v12775_v24 }
 0x511   : > { %v7927_v19 = vadd.f32 0.5, %v7831_v4  ;;  %v7274_v50 = vpop.f32.mrf.mxu2  ;;  %v7293_v43 = vpop.f32.mrf.mxu3  ;;  %12778 = vtanh.f32 %v7686_v56 }
 0x512   : > { %v7275_v8 = vadd.f32 %v7274_v50, %v14169_v41  ;;  %v7305_v38 = vpop.f32.mrf.mxu0  ;;  %v7324_v33 = vpop.f32.mrf.mxu1  ;;  %v7950_v41 = vadd.f32 0.5, %v7854_v31 }
 0x513   : > { %v8003_v60 = vpack.c.bf16 %v7927_v19, %v7926_v28  ;;  %v7306_v6 = vadd.f32 %v7305_v38, %v14187_v23  ;;  %v14205_v38 = vperm.slane %v14183_v2, 2 }
 0x514   : > { %v7294_v9 = vadd.f32 %v7293_v43, %v7275_v8 }
 0x515   : > { %8051 = vst [vmem:[%s14001_s17 + $0x98] sm:$0xff] %v8003_v60  ;;  %v7325_v48 = vadd.f32 %v7324_v33, %v7306_v6 }
 0x516   : > { %v12777_v11 = vpop.eup %12776  ;;  %v7687_v52 = vmul.f32 0.5, %v7294_v9 }
 0x517   : > { %v7855_v61 = vmul.f32 0.5, %v12777_v11  ;;  %v7616_v27 = vmul.f32 0.5, %v7325_v48  ;;  %v12779_v57 = vpop.eup %12778 }
 0x518   : > { %12780 = vtanh.f32 %v7687_v52  ;;  %v7878_v63 = vmul.f32 0.5, %v12779_v57 }
 0x519   : > { %v7951_v13 = vadd.f32 0.5, %v7855_v61  ;;  %v7343_v58 = vpop.f32.mrf.mxu2  ;;  %v7362_v3 = vpop.f32.mrf.mxu3  ;;  %12782 = vtanh.f32 %v7616_v27 }
 0x51a   : > { %v7344_v39 = vadd.f32 %v7343_v58, %v14193_v45  ;;  %v7307_v20 = vpop.f32.mrf.mxu0  ;;  %v7326_v32 = vpop.f32.mrf.mxu1  ;;  %v7974_v55 = vadd.f32 0.5, %v7878_v63 }
 0x51b   : > { %v8015_v26 = vpack.c.bf16 %v7951_v13, %v7950_v41  ;;  %v7308_v49 = vadd.f32 %v7307_v20, %v14187_v23 }
 0x51c   : > { %v7363_v40 = vadd.f32 %v7362_v3, %v7344_v39  ;;  %v14211_v39 = vperm.slane %v14183_v2, 3 }
 0x51d   : > { %8063 = vst [vmem:[%s14001_s17 + $0xf8] sm:$0xff] %v8015_v26  ;;  %v7327_v22 = vadd.f32 %v7326_v32, %v7308_v49 }
 0x51e   : > { %v12781_v1 = vpop.eup %12780  ;;  %v7617_v0 = vmul.f32 0.5, %v7363_v40 }
 0x51f   : > { %v7879_v51 = vmul.f32 0.5, %v12781_v1  ;;  %v7640_v34 = vmul.f32 0.5, %v7327_v22  ;;  %v12783_v12 = vpop.eup %12782 }
 0x520   : > { %12784 = vtanh.f32 %v7617_v0  ;;  %v7808_v5 = vmul.f32 0.5, %v12783_v12 }
 0x521   : > { %v7975_v10 = vadd.f32 0.5, %v7879_v51  ;;  %v7345_v21 = vpop.f32.mrf.mxu2  ;;  %v7364_v42 = vpop.f32.mrf.mxu3  ;;  %12786 = vtanh.f32 %v7640_v34 }
 0x522   : > { %v7346_v53 = vadd.f32 %v7345_v21, %v14193_v45  ;;  %v7310_v46 = vpop.f32.mrf.mxu0  ;;  %v7329_v35 = vpop.f32.mrf.mxu1  ;;  %v7904_v59 = vadd.f32 0.5, %v7808_v5 }
 0x523   : > { %v8027_v44 = vpack.c.bf16 %v7975_v10, %v7974_v55  ;;  %v7311_v62 = vadd.f32 %v7310_v46, %v14187_v23 }
 0x524   : > { %v7365_v18 = vadd.f32 %v7364_v42, %v7346_v53 }
 0x525   : > { %8075 = vst [vmem:[%s14001_s17 + $0x158] sm:$0xff] %v8027_v44  ;;  %v7330_v36 = vadd.f32 %v7329_v35, %v7311_v62 }
 0x526   : > { %v12785_v25 = vpop.eup %12784  ;;  %v7641_v17 = vmul.f32 0.5, %v7365_v18 }
 0x527   : > { %v7809_v37 = vmul.f32 0.5, %v12785_v25  ;;  %v7664_v7 = vmul.f32 0.5, %v7330_v36  ;;  %v12787_v29 = vpop.eup %12786 }
 0x528   : > { %12788 = vtanh.f32 %v7641_v17  ;;  %v7832_v19 = vmul.f32 0.5, %v12787_v29 }
 0x529   : > { %v7905_v47 = vadd.f32 0.5, %v7809_v37  ;;  %v7348_v14 = vpop.f32.mrf.mxu2  ;;  %v7367_v30 = vpop.f32.mrf.mxu3  ;;  %12790 = vtanh.f32 %v7664_v7 }
 0x52a   : > { %v7349_v54 = vadd.f32 %v7348_v14, %v14193_v45  ;;  %v7312_v16 = vpop.f32.mrf.mxu0  ;;  %v7331_v15 = vpop.f32.mrf.mxu1  ;;  %v7928_v60 = vadd.f32 0.5, %v7832_v19 }
 0x52b   : > { %v7992_v4 = vpack.c.bf16 %v7905_v47, %v7904_v59  ;;  %v7313_v56 = vadd.f32 %v7312_v16, %v14187_v23 }
 0x52c   : > { %v7368_v28 = vadd.f32 %v7367_v30, %v7349_v54 }
 0x52d   : > { %8040 = vst [vmem:[%s14001_s17 + $0x40] sm:$0xff] %v7992_v4  ;;  %v7332_v50 = vadd.f32 %v7331_v15, %v7313_v56 }
 0x52e   : > { %v12789_v43 = vpop.eup %12788  ;;  %v7665_v24 = vmul.f32 0.5, %v7368_v28 }
 0x52f   : > { %v7833_v8 = vmul.f32 0.5, %v12789_v43  ;;  %v7688_v33 = vmul.f32 0.5, %v7332_v50  ;;  %v12791_v48 = vpop.eup %12790 }
 0x530   : > { %12792 = vtanh.f32 %v7665_v24  ;;  %v7856_v13 = vmul.f32 0.5, %v12791_v48 }
 0x531   : > { %v7929_v6 = vadd.f32 0.5, %v7833_v8  ;;  %v7350_v9 = vpop.f32.mrf.mxu2  ;;  %v7369_v31 = vpop.f32.mrf.mxu3  ;;  %12794 = vtanh.f32 %v7688_v33 }
 0x532   : > { %v7351_v23 = vadd.f32 %v7350_v9, %v14193_v45  ;;  %v7381_v11 = vpop.f32.mrf.mxu0  ;;  %v7400_v52 = vpop.f32.mrf.mxu1  ;;  %v7952_v45 = vadd.f32 0.5, %v7856_v13 }
 0x533   : > { %v8004_v61 = vpack.c.bf16 %v7929_v6, %v7928_v60  ;;  %v7382_v27 = vadd.f32 %v7381_v11, %v14205_v38  ;;  %v14223_v11 = vperm.slane %v14183_v2, 4 }
 0x534   : > { %v7370_v41 = vadd.f32 %v7369_v31, %v7351_v23 }
 0x535   : > { %8052 = vst [vmem:[%s14001_s17 + $0xa0] sm:$0xff] %v8004_v61  ;;  %v7401_v58 = vadd.f32 %v7400_v52, %v7382_v27 }
 0x536   : > { %v12793_v3 = vpop.eup %12792  ;;  %v7689_v57 = vmul.f32 0.5, %v7370_v41 }
 0x537   : > { %v7857_v20 = vmul.f32 0.5, %v12793_v3  ;;  %v7618_v32 = vmul.f32 0.5, %v7401_v58  ;;  %v12795_v63 = vpop.eup %12794 }
 0x538   : > { %12796 = vtanh.f32 %v7689_v57  ;;  %v7880_v10 = vmul.f32 0.5, %v12795_v63 }
 0x539   : > { %v7953_v26 = vadd.f32 0.5, %v7857_v20  ;;  %v7419_v49 = vpop.f32.mrf.mxu2  ;;  %v7438_v40 = vpop.f32.mrf.mxu3  ;;  %12798 = vtanh.f32 %v7618_v32 }
 0x53a   : > { %v7420_v22 = vadd.f32 %v7419_v49, %v14211_v39  ;;  %v7383_v1 = vpop.f32.mrf.mxu0  ;;  %v7402_v0 = vpop.f32.mrf.mxu1  ;;  %v7976_v35 = vadd.f32 0.5, %v7880_v10 }
 0x53b   : > { %v8016_v51 = vpack.c.bf16 %v7953_v26, %v7952_v45  ;;  %v7384_v34 = vadd.f32 %v7383_v1, %v14205_v38 }
 0x53c   : > { %v7439_v55 = vadd.f32 %v7438_v40, %v7420_v22  ;;  %v14229_v22 = vperm.slane %v14183_v2, 5 }
 0x53d   : > { %8064 = vst [vmem:[%s14001_s17 + $0x100] sm:$0xff] %v8016_v51  ;;  %v7403_v21 = vadd.f32 %v7402_v0, %v7384_v34 }
 0x53e   : > { %v12797_v42 = vpop.eup %12796  ;;  %v7619_v12 = vmul.f32 0.5, %v7439_v55 }
 0x53f   : > { %v7881_v53 = vmul.f32 0.5, %v12797_v42  ;;  %v7642_v46 = vmul.f32 0.5, %v7403_v21  ;;  %v12799_v5 = vpop.eup %12798 }
 0x540   : > { %12800 = vtanh.f32 %v7619_v12  ;;  %v7810_v47 = vmul.f32 0.5, %v12799_v5 }
 0x541   : > { %v7977_v44 = vadd.f32 0.5, %v7881_v53  ;;  %v7421_v62 = vpop.f32.mrf.mxu2  ;;  %v7440_v18 = vpop.f32.mrf.mxu3  ;;  %12802 = vtanh.f32 %v7642_v46 }
 0x542   : > { %v7422_v36 = vadd.f32 %v7421_v62, %v14211_v39  ;;  %v7386_v25 = vpop.f32.mrf.mxu0  ;;  %v7405_v17 = vpop.f32.mrf.mxu1  ;;  %v7906_v15 = vadd.f32 0.5, %v7810_v47 }
 0x543   : > { %v8028_v37 = vpack.c.bf16 %v7977_v44, %v7976_v35  ;;  %v7387_v7 = vadd.f32 %v7386_v25, %v14205_v38 }
 0x544   : > { %v7441_v59 = vadd.f32 %v7440_v18, %v7422_v36 }
 0x545   : > { %8076 = vst [vmem:[%s14001_s17 + $0x160] sm:$0xff] %v8028_v37  ;;  %v7406_v14 = vadd.f32 %v7405_v17, %v7387_v7 }
 0x546   : > { %v12801_v30 = vpop.eup %12800  ;;  %v7643_v29 = vmul.f32 0.5, %v7441_v59 }
 0x547   : > { %v7811_v54 = vmul.f32 0.5, %v12801_v30  ;;  %v7666_v16 = vmul.f32 0.5, %v7406_v14  ;;  %v12803_v19 = vpop.eup %12802 }
 0x548   : > { %12804 = vtanh.f32 %v7643_v29  ;;  %v7834_v6 = vmul.f32 0.5, %v12803_v19 }
 0x549   : > { %v7907_v4 = vadd.f32 0.5, %v7811_v54  ;;  %v7424_v56 = vpop.f32.mrf.mxu2  ;;  %v7443_v28 = vpop.f32.mrf.mxu3  ;;  %12806 = vtanh.f32 %v7666_v16 }
 0x54a   : > { %v7425_v50 = vadd.f32 %v7424_v56, %v14211_v39  ;;  %v7388_v43 = vpop.f32.mrf.mxu0  ;;  %v7407_v24 = vpop.f32.mrf.mxu1  ;;  %v7930_v61 = vadd.f32 0.5, %v7834_v6 }
 0x54b   : > { %v7993_v8 = vpack.c.bf16 %v7907_v4, %v7906_v15  ;;  %v7389_v33 = vadd.f32 %v7388_v43, %v14205_v38 }
 0x54c   : > { %v7444_v60 = vadd.f32 %v7443_v28, %v7425_v50 }
 0x54d   : > { %8041 = vst [vmem:[%s14001_s17 + $0x48] sm:$0xff] %v7993_v8  ;;  %v7408_v9 = vadd.f32 %v7407_v24, %v7389_v33 }
 0x54e   : > { %v12805_v31 = vpop.eup %12804  ;;  %v7667_v48 = vmul.f32 0.5, %v7444_v60 }
 0x54f   : > { %v7835_v23 = vmul.f32 0.5, %v12805_v31  ;;  %v7690_v52 = vmul.f32 0.5, %v7408_v9  ;;  %v12807_v58 = vpop.eup %12806 }
 0x550   : > { %12808 = vtanh.f32 %v7667_v48  ;;  %v7858_v26 = vmul.f32 0.5, %v12807_v58 }
 0x551   : > { %v7931_v27 = vadd.f32 0.5, %v7835_v23  ;;  %v7426_v41 = vpop.f32.mrf.mxu2  ;;  %v7445_v13 = vpop.f32.mrf.mxu3  ;;  %12810 = vtanh.f32 %v7690_v52 }
 0x552   : > { %v7427_v38 = vadd.f32 %v7426_v41, %v14211_v39  ;;  %v7457_v3 = vpop.f32.mrf.mxu0  ;;  %v7476_v57 = vpop.f32.mrf.mxu1  ;;  %v7954_v39 = vadd.f32 0.5, %v7858_v26 }
 0x553   : > { %v8005_v20 = vpack.c.bf16 %v7931_v27, %v7930_v61  ;;  %v7458_v32 = vadd.f32 %v7457_v3, %v14223_v11  ;;  %v14241_v3 = vperm.slane %v14183_v2, 6 }
 0x554   : > { %v7446_v45 = vadd.f32 %v7445_v13, %v7427_v38 }
 0x555   : > { %8053 = vst [vmem:[%s14001_s17 + $0xa8] sm:$0xff] %v8005_v20  ;;  %v7477_v49 = vadd.f32 %v7476_v57, %v7458_v32 }
 0x556   : > { %v12809_v40 = vpop.eup %12808  ;;  %v7691_v63 = vmul.f32 0.5, %v7446_v45 }
 0x557   : > { %v7859_v1 = vmul.f32 0.5, %v12809_v40  ;;  %v7620_v0 = vmul.f32 0.5, %v7477_v49  ;;  %v12811_v10 = vpop.eup %12810 }
 0x558   : > { %12812 = vtanh.f32 %v7691_v63  ;;  %v7882_v44 = vmul.f32 0.5, %v12811_v10 }
 0x559   : > { %v7955_v51 = vadd.f32 0.5, %v7859_v1  ;;  %v7495_v34 = vpop.f32.mrf.mxu2  ;;  %v7514_v55 = vpop.f32.mrf.mxu3  ;;  %12814 = vtanh.f32 %v7620_v0 }
 0x55a   : > { %v7496_v21 = vadd.f32 %v7495_v34, %v14229_v22  ;;  %v7459_v42 = vpop.f32.mrf.mxu0  ;;  %v7478_v12 = vpop.f32.mrf.mxu1  ;;  %v7978_v17 = vadd.f32 0.5, %v7882_v44 }
 0x55b   : > { %v8017_v53 = vpack.c.bf16 %v7955_v51, %v7954_v39  ;;  %v7460_v46 = vadd.f32 %v7459_v42, %v14223_v11 }
 0x55c   : > { %v7515_v35 = vadd.f32 %v7514_v55, %v7496_v21  ;;  %v14247_v21 = vperm.slane %v14183_v2, 7 }
 0x55d   : > { %8065 = vst [vmem:[%s14001_s17 + $0x108] sm:$0xff] %v8017_v53  ;;  %v7479_v62 = vadd.f32 %v7478_v12, %v7460_v46 }
 0x55e   : > { %v12813_v18 = vpop.eup %12812  ;;  %v7621_v5 = vmul.f32 0.5, %v7515_v35 }
 0x55f   : > { %v7883_v36 = vmul.f32 0.5, %v12813_v18  ;;  %v7644_v25 = vmul.f32 0.5, %v7479_v62  ;;  %v12815_v47 = vpop.eup %12814 }
 0x560   : > { %12816 = vtanh.f32 %v7621_v5  ;;  %v7812_v4 = vmul.f32 0.5, %v12815_v47 }
 0x561   : > { %v7979_v37 = vadd.f32 0.5, %v7883_v36  ;;  %v7497_v7 = vpop.f32.mrf.mxu2  ;;  %v7516_v59 = vpop.f32.mrf.mxu3  ;;  %12818 = vtanh.f32 %v7644_v25 }
 0x562   : > { %v7498_v14 = vadd.f32 %v7497_v7, %v14229_v22  ;;  %v7462_v30 = vpop.f32.mrf.mxu0  ;;  %v7481_v29 = vpop.f32.mrf.mxu1  ;;  %v7908_v24 = vadd.f32 0.5, %v7812_v4 }
 0x563   : > { %v8029_v54 = vpack.c.bf16 %v7979_v37, %v7978_v17  ;;  %v7463_v16 = vadd.f32 %v7462_v30, %v14223_v11 }
 0x564   : > { %v7517_v15 = vadd.f32 %v7516_v59, %v7498_v14 }
 0x565   : > { %8077 = vst [vmem:[%s14001_s17 + $0x168] sm:$0xff] %v8029_v54  ;;  %v7482_v56 = vadd.f32 %v7481_v29, %v7463_v16 }
 0x566   : > { %v12817_v28 = vpop.eup %12816  ;;  %v7645_v19 = vmul.f32 0.5, %v7517_v15 }
 0x567   : > { %v7813_v50 = vmul.f32 0.5, %v12817_v28  ;;  %v7668_v43 = vmul.f32 0.5, %v7482_v56  ;;  %v12819_v6 = vpop.eup %12818 }
 0x568   : > { %12820 = vtanh.f32 %v7645_v19  ;;  %v7836_v27 = vmul.f32 0.5, %v12819_v6 }
 0x569   : > { %v7909_v8 = vadd.f32 0.5, %v7813_v50  ;;  %v7500_v33 = vpop.f32.mrf.mxu2  ;;  %v7519_v60 = vpop.f32.mrf.mxu3  ;;  %12822 = vtanh.f32 %v7668_v43 }
 0x56a   : > { %v7501_v9 = vadd.f32 %v7500_v33, %v14229_v22  ;;  %v7464_v31 = vpop.f32.mrf.mxu0  ;;  %v7483_v48 = vpop.f32.mrf.mxu1  ;;  %v7932_v20 = vadd.f32 0.5, %v7836_v27 }
 0x56b   : > { %v7994_v23 = vpack.c.bf16 %v7909_v8, %v7908_v24  ;;  %v7465_v52 = vadd.f32 %v7464_v31, %v14223_v11 }
 0x56c   : > { %v7520_v61 = vadd.f32 %v7519_v60, %v7501_v9 }
 0x56d   : > { %8042 = vst [vmem:[%s14001_s17 + $0x50] sm:$0xff] %v7994_v23  ;;  %v7484_v41 = vadd.f32 %v7483_v48, %v7465_v52 }
 0x56e   : > { %v12821_v13 = vpop.eup %12820  ;;  %v7669_v58 = vmul.f32 0.5, %v7520_v61 }
 0x56f   : > { %v7837_v38 = vmul.f32 0.5, %v12821_v13  ;;  %v7692_v57 = vmul.f32 0.5, %v7484_v41  ;;  %v12823_v49 = vpop.eup %12822 }
 0x570   : > { %12824 = vtanh.f32 %v7669_v58  ;;  %v7860_v51 = vmul.f32 0.5, %v12823_v49 }
 0x571   : > { %v7933_v32 = vadd.f32 0.5, %v7837_v38  ;;  %v7502_v45 = vpop.f32.mrf.mxu2  ;;  %v7521_v26 = vpop.f32.mrf.mxu3  ;;  %12826 = vtanh.f32 %v7692_v57 }
 0x572   : > { %v7503_v11 = vadd.f32 %v7502_v45, %v14229_v22  ;;  %v7533_v40 = vpop.f32.mrf.mxu0  ;;  %v7552_v63 = vpop.f32.mrf.mxu1  ;;  %v7956_v22 = vadd.f32 0.5, %v7860_v51 }
 0x573   : > { %v8006_v1 = vpack.c.bf16 %v7933_v32, %v7932_v20  ;;  %v7534_v0 = vadd.f32 %v7533_v40, %v14241_v3 }
 0x574   : > { %v7522_v39 = vadd.f32 %v7521_v26, %v7503_v11 }
 0x575   : > { %8054 = vst [vmem:[%s14001_s17 + $0xb0] sm:$0xff] %v8006_v1  ;;  %v7553_v34 = vadd.f32 %v7552_v63, %v7534_v0 }
 0x576   : > { %v12825_v55 = vpop.eup %12824  ;;  %v7693_v10 = vmul.f32 0.5, %v7522_v39 }
 0x577   : > { %v7861_v42 = vmul.f32 0.5, %v12825_v55  ;;  %v7622_v12 = vmul.f32 0.5, %v7553_v34  ;;  %v12827_v44 = vpop.eup %12826 }
 0x578   : > { %12828 = vtanh.f32 %v7693_v10  ;;  %v7884_v2 = vmul.f32 0.5, %v12827_v44 }
 0x579   : > { %v7957_v53 = vadd.f32 0.5, %v7861_v42  ;;  %v7571_v46 = vpop.f32.mrf.mxu2  ;;  %v7590_v35 = vpop.f32.mrf.mxu3  ;;  %12830 = vtanh.f32 %v7622_v12 }
 0x57a   : > { %v7572_v62 = vadd.f32 %v7571_v46, %v14247_v21  ;;  %v7535_v18 = vpop.f32.mrf.mxu0  ;;  %v7554_v5 = vpop.f32.mrf.mxu1  ;;  %v7980_v30 = vadd.f32 0.5, %v7884_v2 }
 0x57b   : > { %v8018_v36 = vpack.c.bf16 %v7957_v53, %v7956_v22  ;;  %v7536_v25 = vadd.f32 %v7535_v18, %v14241_v3 }
 0x57c   : > { %v7591_v17 = vadd.f32 %v7590_v35, %v7572_v62 }
 0x57d   : > { %8066 = vst [vmem:[%s14001_s17 + $0x110] sm:$0xff] %v8018_v36  ;;  %v7555_v37 = vadd.f32 %v7554_v5, %v7536_v25 }
 0x57e   : > { %v12829_v7 = vpop.eup %12828  ;;  %v7623_v59 = vmul.f32 0.5, %v7591_v17 }
 0x57f   : > { %v7885_v47 = vmul.f32 0.5, %v12829_v7  ;;  %v7646_v14 = vmul.f32 0.5, %v7555_v37  ;;  %v12831_v15 = vpop.eup %12830 }
 0x580   : > { %12832 = vtanh.f32 %v7623_v59  ;;  %v7814_v24 = vmul.f32 0.5, %v12831_v15 }
 0x581   : > { %v7981_v29 = vadd.f32 0.5, %v7885_v47  ;;  %v7573_v54 = vpop.f32.mrf.mxu2  ;;  %v7592_v16 = vpop.f32.mrf.mxu3  ;;  %12834 = vtanh.f32 %v7646_v14 }
 0x582   : > { %v7574_v4 = vadd.f32 %v7573_v54, %v14247_v21  ;;  %v7538_v56 = vpop.f32.mrf.mxu0  ;;  %v7557_v28 = vpop.f32.mrf.mxu1  ;;  %v7910_v31 = vadd.f32 0.5, %v7814_v24 }
 0x583   : > { %v8030_v19 = vpack.c.bf16 %v7981_v29, %v7980_v30  ;;  %v7539_v50 = vadd.f32 %v7538_v56, %v14241_v3 }
 0x584   : > { %v7593_v43 = vadd.f32 %v7592_v16, %v7574_v4 }
 0x585   : > { %8078 = vst [vmem:[%s14001_s17 + $0x170] sm:$0xff] %v8030_v19  ;;  %v7558_v8 = vadd.f32 %v7557_v28, %v7539_v50 }
 0x586   : > { %v12833_v33 = vpop.eup %12832  ;;  %v7647_v60 = vmul.f32 0.5, %v7593_v43 }
 0x587   : > { %v7815_v6 = vmul.f32 0.5, %v12833_v33  ;;  %v7670_v9 = vmul.f32 0.5, %v7558_v8  ;;  %v12835_v61 = vpop.eup %12834 }
 0x588   : > { %12836 = vtanh.f32 %v7647_v60  ;;  %v7838_v20 = vmul.f32 0.5, %v12835_v61 }
 0x589   : > { %v7911_v48 = vadd.f32 0.5, %v7815_v6  ;;  %v7576_v23 = vpop.f32.mrf.mxu2  ;;  %v7595_v52 = vpop.f32.mrf.mxu3  ;;  %12838 = vtanh.f32 %v7670_v9 }
 0x58a   : > { %v7577_v27 = vadd.f32 %v7576_v23, %v14247_v21  ;;  %v7540_v41 = vpop.f32.mrf.mxu0  ;;  %v7559_v57 = vpop.f32.mrf.mxu1  ;;  %v7934_v40 = vadd.f32 0.5, %v7838_v20 }
 0x58b   : > { %v7995_v13 = vpack.c.bf16 %v7911_v48, %v7910_v31  ;;  %v7541_v58 = vadd.f32 %v7540_v41, %v14241_v3 }
 0x58c   : > { %v7596_v38 = vadd.f32 %v7595_v52, %v7577_v27 }
 0x58d   : > { %8043 = vst [vmem:[%s14001_s17 + $0x58] sm:$0xff] %v7995_v13  ;;  %v7560_v32 = vadd.f32 %v7559_v57, %v7541_v58 }
 0x58e   : > { %v12837_v45 = vpop.eup %12836  ;;  %v7671_v26 = vmul.f32 0.5, %v7596_v38 }
 0x58f   : > { %v7839_v49 = vmul.f32 0.5, %v12837_v45  ;;  %v7694_v11 = vmul.f32 0.5, %v7560_v32  ;;  %v12839_v0 = vpop.eup %12838 }
 0x590   : > { %12840 = vtanh.f32 %v7671_v26  ;;  %v7862_v55 = vmul.f32 0.5, %v12839_v0 }
 0x591   : > { %v7935_v63 = vadd.f32 0.5, %v7839_v49  ;;  %v7578_v1 = vpop.f32.mrf.mxu2  ;;  %v7597_v51 = vpop.f32.mrf.mxu3  ;;  %12842 = vtanh.f32 %v7694_v11 }
 0x592   : > { %v7579_v39 = vadd.f32 %v7578_v1, %v14247_v21  ;;  %v7958_v22 = vadd.f32 0.5, %v7862_v55 }
 0x593   : > { %v8007_v3 = vpack.c.bf16 %v7935_v63, %v7934_v40 }
 0x594   : > { %v7598_v34 = vadd.f32 %v7597_v51, %v7579_v39 }
 0x595   : > { %8055 = vst [vmem:[%s14001_s17 + $0xb8] sm:$0xff] %v8007_v3 }
 0x596   : > { %v12841_v10 = vpop.eup %12840  ;;  %v7695_v42 = vmul.f32 0.5, %v7598_v34 }
 0x597   : > { %v7863_v12 = vmul.f32 0.5, %v12841_v10  ;;  %v12843_v46 = vpop.eup %12842 }
 0x598   : > { %12844 = vtanh.f32 %v7695_v42  ;;  %v7886_v21 = vmul.f32 0.5, %v12843_v46 }
 0x599   : > { %v7959_v53 = vadd.f32 0.5, %v7863_v12 }
 0x59a   : > { %v7982_v18 = vadd.f32 0.5, %v7886_v21 }
 0x59b   : > { %v8019_v35 = vpack.c.bf16 %v7959_v53, %v7958_v22 }
 0x59d   : > { %8067 = vst [vmem:[%s14001_s17 + $0x118] sm:$0xff] %v8019_v35 }
 0x59e   : > { %v12845_v44 = vpop.eup %12844 }
 0x59f   : > { %v7887_v62 = vmul.f32 0.5, %v12845_v44 }
 0x5a1   : > { %v7983_v5 = vadd.f32 0.5, %v7887_v62 }
 0x5a3   : > { %v8031_v36 = vpack.c.bf16 %v7983_v5, %v7982_v18 }
 0x5a5   : > { %8079 = vst [vmem:[%s14001_s17 + $0x178] sm:$0xff] %v8031_v36 }
 0x5a6   : > { %13146 = shalt.err (!%p13143_p9)
}
 0x5a7   : > { %s13217_s4 = smov 1536   ;;  %s13218_s5 = smov 96  }
 0x5a8   : > { %12552 = dma.vmem_to_hbm [thread:$0]  (%p13375_p4), %s8095_s27, 6144, %s8097_s20, %s8081_s16, %s13217_s4, %s13217_s4, %s13218_s5  }
 0x5a9 PF: > { %s8111_s25 = sand.u32 1, %s13189_s30   ;;  %p14389_p10 = scmp.ge.s32.totalorder %s13201_s12, 2 }
 0x5aa   : > { %s8112_s17 = scalar_lea.sflag [#allocation4], %s8111_s25 }
 0x5ab   : > { %p12584_p11 = pnand %p14389_p10, %p13379_p6 }
 0x5ad   : > { %p12585_p13 = pneg %p12584_p11 }
 0x5af   : > { %13184 = dma.done.wait (%p12585_p13), %s8112_s17, 6144  }
 0x5b0   : > { %13186 = vsyncadd (%p12585_p13), %s8112_s17, 4294961152  ;;  %p26_p0 = scmp.ge.s32.totalorder %s13353_s18, 4   ;;  %s14390_s30 = smov %s13193_s10 }
 0x5b1   : > { %s14391_s10 = smov %s13197_s11  ;;  %s14392_s11 = smov %s13364_s21 }
 0x5b2   : > { %s14393_s12 = smov %s13353_s18  ;;  %28 = sbr.rel (!%p26_p0) target bundleno = 15 (0xf), region = 133 }
 0x5b7   :  { %8118 = vsyncpa [#allocation3], 1 }
 0x5b8   :  { %8120 = vsyncpa [#allocation3 + $0x1], 1 }
 0x5b9   :  { %8121 = vsyncpa [#allocation6], 1 }
 0x5ba   :  { %8122 = vsyncpa [#allocation9], 1 }
 0x5bb   :  { %8123 = vsyncpa [#allocation12], 1 }
 0x5bc   :  { %8124 = vsyncpa [#allocation15], 1 }
 0x5bd   :  { %8125 = vsyncpa [#allocation4], 1 }
 0x5be   :  { %8127 = vsyncpa [#allocation4 + $0x1], 1 }

</bundles_post_ra>
